<compile_context>
chip_gen: v7x
topology: tpu7x:2x2x1
jax: 0.10.0
libtpu: 0.0.40
codegen_flags: <defaults>
</compile_context>

<pallas_src>
import functools
import math

import jax
import jax.numpy as jnp
from jax import lax
from jax.experimental import pallas as pl
from jax.experimental.pallas import tpu as pltpu

# ---- KnotsKAN hyperparameters (module defaults) -----------------------------
GRID_SIZE = 20
SPLINE_ORDER = 3
GRID_RANGE = (-3.0, 3.0)
GROUPS = 8
NEED_RELU = True          # adds the SiLU shortcut branch
LN_EPS = 1e-5
H = (GRID_RANGE[1] - GRID_RANGE[0]) / GRID_SIZE
NUM_KNOTS = GRID_SIZE + 2 * SPLINE_ORDER + 1      # 27
NUM_BASES = GRID_SIZE + SPLINE_ORDER              # 23

# ---- kernel layout constants -------------------------------------------------
SUB = 8                                            # row sub-chunk = sublane count
U_COUNTS = [NUM_KNOTS - k for k in range(1, SPLINE_ORDER + 1)]   # [26, 25, 24]
NUM_U = sum(U_COUNTS)                              # 75
U_OFF = [sum(U_COUNTS[:i]) for i in range(SPLINE_ORDER)]         # [0, 26, 51]

# logical row offsets inside the per-layer parameter table
P_LNW = 0
P_LNB = 1
P_KNOT = 2
P_UA = P_KNOT + NUM_KNOTS                          # 29
P_US = P_UA + NUM_U                                # 104
P_CPREV = P_US + NUM_U                             # 179
P_CDIFF = P_CPREV + (NUM_BASES + 1)                # 203
P_ROWS = P_CDIFF + (NUM_BASES + 1)                 # 227

PARAM_VMEM_BUDGET = 20 * 1024 * 1024               # per-segment resident param budget
VMEM_LIMIT_BYTES = 48 * 1024 * 1024                # below v7x physical 64 MiB


def _round_up(n, m):
    return ((n + m - 1) // m) * m


def _tree_sum(xs):
    xs = list(xs)
    while len(xs) > 1:
        nxt = [xs[i] + xs[i + 1] for i in range(0, len(xs) - 1, 2)]
        if len(xs) % 2:
            nxt.append(xs[-1])
        xs = nxt
    return xs[0]


# ---- Pallas kernel: a segment of fused (LayerNorm -> KANLinear) layers -------
def fused_kan_kernel(*refs, dims, tb, need_relu):
    n_layers = len(dims) - 1
    x_ref = refs[0]
    o_ref = refs[1 + 2 * n_layers]
    scratch = refs[2 + 2 * n_layers:]
    act_refs = scratch[:n_layers]                  # per-layer activation buffers
    inter_refs = scratch[n_layers:]                # inter-layer outputs (n_layers-1)
    n_sub = tb // SUB

    for l in range(n_layers):
        fin, fout = dims[l], dims[l + 1]
        tab_ref = refs[1 + 2 * l]
        w_ref = refs[2 + 2 * l]
        src_ref = x_ref if l == 0 else inter_refs[l - 1]
        act_ref = act_refs[l]

        def prow(r):
            # logical parameter row r, stored pre-broadcast to SUB sublanes host-side
            return tab_ref[r * SUB:(r + 1) * SUB, :]

        def sub_body(s, carry):
            r0 = pl.multiple_of(s * SUB, SUB)
            x = src_ref[pl.ds(r0, SUB), :].astype(jnp.float32)       # (SUB, fin)

            # --- LayerNorm over the feature (lane) axis ---
            mean = jnp.mean(x, axis=-1, keepdims=True)
            xc = x - mean
            var = jnp.mean(xc * xc, axis=-1, keepdims=True)
            xln = xc * lax.rsqrt(var + LN_EPS) * prow(P_LNW) + prow(P_LNB)

            # --- order-0 bases from shared comparisons: b0[z] = ge[z] & ~ge[z+1] ---
            ge = [xln >= prow(P_KNOT + z) for z in range(NUM_KNOTS)]
            b = [(ge[z] & (~ge[z + 1])).astype(jnp.float32)
                 for z in range(NUM_KNOTS - 1)]

            # --- de Boor levels 1..order-1, u = x * (1/den) - knot*(1/den) ---
            # (reciprocals precomputed per feature; zero-denominator guarded to 0)
            for k in range(1, SPLINE_ORDER):
                off = U_OFF[k - 1]
                m = NUM_KNOTS - k
                u = [xln * prow(P_UA + off + z) - prow(P_US + off + z)
                     for z in range(m)]
                b = [u[z] * b[z] + (1.0 - u[z + 1]) * b[z + 1]
                     for z in range(m - 1)]

            # --- final level with spline coefficients folded in:
            #     act = sum_z (c[z-1] + u3[z]*(c[z]-c[z-1])) * b2[z]
            off = U_OFF[SPLINE_ORDER - 1]
            m = NUM_KNOTS - SPLINE_ORDER            # == len(b) == NUM_BASES + 1
            parts = []
            for z in range(m):
                u_z = xln * prow(P_UA + off + z) - prow(P_US + off + z)
                w_z = prow(P_CPREV + z) + u_z * prow(P_CDIFF + z)
                parts.append(w_z * b[z])
            act = _tree_sum(parts)

            if need_relu:
                act = act + xln * jax.nn.sigmoid(xln)   # SiLU shortcut branch

            act_ref[pl.ds(r0, SUB), :] = act
            return carry

        lax.fori_loop(0, n_sub, sub_body, 0)

        # --- output projection on the MXU (bf16 operands, f32 accumulation) ---
        a16 = act_ref[...].astype(jnp.bfloat16)
        y = jnp.dot(a16, w_ref[...], preferred_element_type=jnp.float32)
        if l == n_layers - 1:
            o_ref[...] = y.astype(o_ref.dtype)
        else:
            inter_refs[l][...] = y


def _fused_segment_call(seg, x, tb):
    b_pad, f0 = x.shape
    dims = [p["W"].shape[0] for p in seg] + [seg[-1]["W"].shape[1]]
    assert dims[0] == f0
    n_layers = len(seg)

    in_specs = [pl.BlockSpec((tb, f0), lambda i: (i, 0))]
    args = [x]
    for p in seg:
        in_specs.append(pl.BlockSpec(p["table"].shape, lambda i: (0, 0)))
        in_specs.append(pl.BlockSpec(p["W"].shape, lambda i: (0, 0)))
        args += [p["table"], p["W"]]

    scratch_shapes = [pltpu.VMEM((tb, dims[l]), jnp.float32) for l in range(n_layers)]
    scratch_shapes += [pltpu.VMEM((tb, dims[l + 1]), jnp.float32)
                       for l in range(n_layers - 1)]

    kernel = functools.partial(fused_kan_kernel, dims=tuple(dims), tb=tb,
                               need_relu=NEED_RELU)
    return pl.pallas_call(
        kernel,
        out_shape=jax.ShapeDtypeStruct((b_pad, dims[-1]), jnp.float32),
        grid=(b_pad // tb,),
        in_specs=in_specs,
        out_specs=pl.BlockSpec((tb, dims[-1]), lambda i: (i, 0)),
        scratch_shapes=scratch_shapes,
        compiler_params=pltpu.CompilerParams(
            dimension_semantics=("parallel",),
            vmem_limit_bytes=VMEM_LIMIT_BYTES),
    )(*args)


def _segment_layers(params, budget_bytes):
    """Greedily group consecutive layers whose resident params fit the VMEM budget."""
    segs, cur, cur_b = [], [], 0
    for p in params:
        b = 2 * (p["table"].size * p["table"].dtype.itemsize
                 + p["W"].size * p["W"].dtype.itemsize)
        if cur and cur_b + b > budget_bytes:
            segs.append(cur)
            cur, cur_b = [], 0
        cur.append(p)
        cur_b += b
    if cur:
        segs.append(cur)
    return segs


def knots_kan_forward(params, x, *, out_features, block_batch=128):
    """normalize=False path of KnotsKAN.forward: repeat (LayerNorm -> KANLinear)."""
    B = x.shape[0]
    assert block_batch % SUB == 0
    tb = min(block_batch, _round_up(B, SUB))
    b_pad = _round_up(B, tb)
    h = x.astype(jnp.float32)
    if b_pad != B:
        h = jnp.pad(h, ((0, b_pad - B), (0, 0)))
    for seg in _segment_layers(params, PARAM_VMEM_BUDGET):
        h = _fused_segment_call(seg, h, tb)
    return h[:B, :out_features]


# ---- parameter preprocessing / init (deterministic, synthetic) ---------------
def _build_param_table(lnw, lnb, grid_g, c_g, fin):
    """Per-feature parameter table, each logical row pre-broadcast to SUB sublanes."""
    feat_group = jnp.arange(fin) % GROUPS
    knots = grid_g[feat_group].T                       # (NUM_KNOTS, fin)
    c_feat = c_g[feat_group].T                         # (NUM_BASES, fin)

    ua_rows, us_rows = [], []
    for k in range(1, SPLINE_ORDER + 1):
        t_lo = knots[:NUM_KNOTS - k]
        t_hi = knots[k:]
        den = t_hi - t_lo
        safe = jnp.where(den == 0, 1.0, den)
        inv = jnp.where(den == 0, 0.0, 1.0 / safe)     # guard: 0 contribution if knots coincide
        ua_rows.append(inv)
        us_rows.append(t_lo * inv)
    u_a = jnp.concatenate(ua_rows, axis=0)             # (NUM_U, fin)
    u_s = jnp.concatenate(us_rows, axis=0)             # (NUM_U, fin)

    zero = jnp.zeros((1, fin), jnp.float32)
    c_ext = jnp.concatenate([zero, c_feat, zero], axis=0)   # c[-1..NUM_BASES]
    c_prev = c_ext[:NUM_BASES + 1]                          # row z -> c[z-1]
    c_diff = c_ext[1:NUM_BASES + 2] - c_prev                # row z -> c[z]-c[z-1]

    rows = jnp.concatenate([lnw[None, :], lnb[None, :], knots,
                            u_a, u_s, c_prev, c_diff], axis=0)
    assert rows.shape[0] == P_ROWS
    return jnp.repeat(rows, SUB, axis=0)                # (P_ROWS*SUB, fin)


def init_knots_kan(key, layers_hidden):
    params = []
    base_knots = (jnp.arange(-SPLINE_ORDER, GRID_SIZE + SPLINE_ORDER + 1,
                             dtype=jnp.float32) * H + GRID_RANGE[0])   # (NUM_KNOTS,)
    n_layers = len(layers_hidden) - 1
    for idx, (fin, fout) in enumerate(zip(layers_hidden[:-1], layers_hidden[1:])):
        assert fin % GROUPS == 0
        key, kw, kc, kb = jax.random.split(key, 4)
        # spline_weight: kaiming_uniform(a=sqrt(5)) -> U(-1/sqrt(fan_in), 1/sqrt(fan_in))
        bw = 1.0 / math.sqrt(fout)
        W = jax.random.uniform(kw, (fin, fout), jnp.float32, -bw, bw)
        # spline_lin_c: synthetic scale larger than torch's 1/sqrt(groups*NUM_BASES)
        # so the spline branch is not negligible next to SiLU (makes the self-check
        # in __main__ sensitive to spline-math bugs).
        c = jax.random.uniform(kc, (GROUPS, NUM_BASES), jnp.float32, -0.5, 0.5)
        # grid_bias ~ U(-h/8, h/8); grid = clamp(sort(base + bias))
        grid_bias = jax.random.uniform(kb, (GROUPS, NUM_KNOTS), jnp.float32,
                                       -H / 8, H / 8)
        grid = jnp.sort(base_knots[None, :] + grid_bias, axis=-1)
        grid = jnp.clip(grid,
                        GRID_RANGE[0] - H * SPLINE_ORDER,
                        GRID_RANGE[1] + H * SPLINE_ORDER)
        lnw = jnp.ones((fin,), jnp.float32)
        lnb = jnp.zeros((fin,), jnp.float32)

        table = _build_param_table(lnw, lnb, grid, c, fin)
        W_k = W.astype(jnp.bfloat16)
        if idx == n_layers - 1 and fout % 128 != 0:
            # pad network-final output columns to a lane-dense multiple of 128
            W_k = jnp.pad(W_k, ((0, 0), (0, _round_up(fout, 128) - fout)))

        params.append(dict(
            table=table,                                  # (P_ROWS*SUB, fin) f32
            W=W_k,                                        # (fin, fout[_pad]) bf16
            ref=dict(lnw=lnw, lnb=lnb, grid=grid, c=c, W=W),   # f32, for validation
        ))
    return params


# ---- pure-JAX f32 reference (mirrors the PyTorch forward, normalize=False) ---
def knots_kan_reference(params, x):
    h = x.astype(jnp.float32)
    for p in params:
        r = p["ref"]
        mean = jnp.mean(h, axis=-1, keepdims=True)
        var = jnp.mean((h - mean) ** 2, axis=-1, keepdims=True)
        xn = (h - mean) / jnp.sqrt(var + LN_EPS) * r["lnw"] + r["lnb"]
        bsz, e = xn.shape
        xr = xn.reshape(bsz, e // GROUPS, GROUPS)[..., None]
        g = r["grid"][None, None]                          # (1, 1, G, NUM_KNOTS)
        bases = ((xr >= g[..., :-1]) & (xr < g[..., 1:])).astype(jnp.float32)
        for k in range(1, SPLINE_ORDER + 1):
            bases = ((xr - g[..., :-(k + 1)]) / (g[..., k:-1] - g[..., :-(k + 1)])
                     * bases[..., :-1]
                     + (g[..., k + 1:] - xr) / (g[..., k + 1:] - g[..., 1:-k])
                     * bases[..., 1:])
        spl = jnp.einsum("bngz,gz->bng", bases, r["c"]).reshape(bsz, e)
        act = spl + xn * jax.nn.sigmoid(xn) if NEED_RELU else spl
        h = act @ r["W"]
    return h


# TODO(synk): the `normalize=True` instance-norm wrapper and `update_grid` /
# curve2coeff (lstsq-based grid refitting) are training-time utilities not on
# the forward hot path and are not implemented here.
# TODO(synk): feature-axis (Fin) padding to 128 lanes (with masked LayerNorm
# statistics) would further raise VPU lane utilization at these demo widths.

if __name__ == "__main__":
    layers_hidden = [32, 64, 32]
    batch = 256          # 2 grid steps at block_batch=128 -> pipelining + both v7x TCs

    key = jax.random.PRNGKey(0)
    key, kx = jax.random.split(key)
    x = jax.random.normal(kx, (batch, layers_hidden[0]), jnp.float32)

    params = init_knots_kan(key, layers_hidden)

    fwd = jax.jit(functools.partial(knots_kan_forward,
                                    out_features=layers_hidden[-1],
                                    block_batch=128))
    out = jax.block_until_ready(fwd(params, x))

    assert out.shape == (batch, layers_hidden[-1])
    assert bool(jnp.all(jnp.isfinite(out)))

    # Validate against the pure-f32 reference. The kernel uses bf16 matmul operands
    # (f32 accumulation); everything else is f32, so only small rounding noise.
    ref = knots_kan_reference(params, x)
    max_err = float(jnp.max(jnp.abs(out - ref)))
    mean_err = float(jnp.mean(jnp.abs(out - ref)))
    assert max_err < 0.25 and mean_err < 0.03, (max_err, mean_err)

    print("KERNEL_OK")
</pallas_src>

<mosaic_0001>
module attributes {stable_mosaic.version = 11 : i64} {
  func.func @fused_kan_kernel(%arg0: i32, %arg1: memref<128x32xf32, #tpu.memory_space<vmem>>, %arg2: memref<1816x32xf32, #tpu.memory_space<vmem>>, %arg3: memref<32x64xbf16, #tpu.memory_space<vmem>>, %arg4: memref<1816x64xf32, #tpu.memory_space<vmem>>, %arg5: memref<64x128xbf16, #tpu.memory_space<vmem>>, %arg6: memref<128x128xf32, #tpu.memory_space<vmem>>, %arg7: memref<128x32xf32, #tpu.memory_space<vmem>>, %arg8: memref<128x64xf32, #tpu.memory_space<vmem>>, %arg9: memref<128x64xf32, #tpu.memory_space<vmem>>) attributes {dimension_semantics = [#tpu.dimension_semantics<parallel>], iteration_bounds = array<i64: 2>, scalar_prefetch = 0 : i64, scratch_operands = 3 : i64, tpu.core_type = #tpu.core_type<tc>, window_params = [{transform_indices = @transform_0, window_bounds = array<i64: 128, 32>}, {pipeline_mode = #tpu.pipeline_mode<synchronous>, transform_indices = @transform_1, window_bounds = array<i64: 1816, 32>}, {pipeline_mode = #tpu.pipeline_mode<synchronous>, transform_indices = @transform_2, window_bounds = array<i64: 32, 64>}, {pipeline_mode = #tpu.pipeline_mode<synchronous>, transform_indices = @transform_3, window_bounds = array<i64: 1816, 64>}, {pipeline_mode = #tpu.pipeline_mode<synchronous>, transform_indices = @transform_4, window_bounds = array<i64: 64, 128>}, {transform_indices = @transform_5, window_bounds = array<i64: 128, 128>}]} {
    %c0_i32 = arith.constant 0 : i32
    %c16_i32 = arith.constant 16 : i32
    %0 = arith.addi %c0_i32, %c16_i32 : i32
    %c1_i32 = arith.constant 1 : i32
    scf.for %arg10 = %c0_i32 to %0 step %c1_i32  : i32 {
      %c8_i32 = arith.constant 8 : i32
      %12 = arith.muli %arg10, %c8_i32 : i32
      %13 = tpu.assume_multiple %12, 8 : i32
      %14 = arith.index_cast %13 : i32 to index
      %c0_17 = arith.constant 0 : index
      %15 = vector.load %arg1[%14, %c0_17] : memref<128x32xf32, #tpu.memory_space<vmem>>, vector<8x32xf32>
      %cst_18 = arith.constant dense<0.000000e+00> : vector<8xf32>
      %16 = vector.multi_reduction <add>, %15, %cst_18 [1] : vector<8x32xf32> to vector<8xf32>
      %17 = vector.shape_cast %16 : vector<8xf32> to vector<8x1xf32>
      %cst_19 = arith.constant 3.200000e+01 : f32
      %18 = vector.broadcast %cst_19 : f32 to vector<8x1xf32>
      %19 = arith.divf %17, %18 : vector<8x1xf32>
      %20 = vector.broadcast %19 : vector<8x1xf32> to vector<8x32xf32>
      %21 = arith.subf %15, %20 : vector<8x32xf32>
      %22 = arith.mulf %21, %21 : vector<8x32xf32>
      %cst_20 = arith.constant dense<0.000000e+00> : vector<8xf32>
      %23 = vector.multi_reduction <add>, %22, %cst_20 [1] : vector<8x32xf32> to vector<8xf32>
      %24 = vector.shape_cast %23 : vector<8xf32> to vector<8x1xf32>
      %cst_21 = arith.constant 3.200000e+01 : f32
      %25 = vector.broadcast %cst_21 : f32 to vector<8x1xf32>
      %26 = arith.divf %24, %25 : vector<8x1xf32>
      %cst_22 = arith.constant 9.99999974E-6 : f32
      %27 = vector.broadcast %cst_22 : f32 to vector<8x1xf32>
      %28 = arith.addf %26, %27 : vector<8x1xf32>
      %29 = math.rsqrt %28 : vector<8x1xf32>
      %30 = vector.broadcast %29 : vector<8x1xf32> to vector<8x32xf32>
      %31 = arith.mulf %21, %30 : vector<8x32xf32>
      %c0_23 = arith.constant 0 : index
      %c0_24 = arith.constant 0 : index
      %32 = vector.load %arg2[%c0_23, %c0_24] : memref<1816x32xf32, #tpu.memory_space<vmem>>, vector<8x32xf32>
      %33 = arith.mulf %31, %32 : vector<8x32xf32>
      %c8 = arith.constant 8 : index
      %c0_25 = arith.constant 0 : index
      %34 = vector.load %arg2[%c8, %c0_25] : memref<1816x32xf32, #tpu.memory_space<vmem>>, vector<8x32xf32>
      %35 = arith.addf %33, %34 : vector<8x32xf32>
      %c16 = arith.constant 16 : index
      %c0_26 = arith.constant 0 : index
      %36 = vector.load %arg2[%c16, %c0_26] : memref<1816x32xf32, #tpu.memory_space<vmem>>, vector<8x32xf32>
      %37 = arith.cmpf oge, %35, %36 : vector<8x32xf32>
      %c24 = arith.constant 24 : index
      %c0_27 = arith.constant 0 : index
      %38 = vector.load %arg2[%c24, %c0_27] : memref<1816x32xf32, #tpu.memory_space<vmem>>, vector<8x32xf32>
      %39 = arith.cmpf oge, %35, %38 : vector<8x32xf32>
      %c32 = arith.constant 32 : index
      %c0_28 = arith.constant 0 : index
      %40 = vector.load %arg2[%c32, %c0_28] : memref<1816x32xf32, #tpu.memory_space<vmem>>, vector<8x32xf32>
      %41 = arith.cmpf oge, %35, %40 : vector<8x32xf32>
      %c40 = arith.constant 40 : index
      %c0_29 = arith.constant 0 : index
      %42 = vector.load %arg2[%c40, %c0_29] : memref<1816x32xf32, #tpu.memory_space<vmem>>, vector<8x32xf32>
      %43 = arith.cmpf oge, %35, %42 : vector<8x32xf32>
      %c48 = arith.constant 48 : index
      %c0_30 = arith.constant 0 : index
      %44 = vector.load %arg2[%c48, %c0_30] : memref<1816x32xf32, #tpu.memory_space<vmem>>, vector<8x32xf32>
      %45 = arith.cmpf oge, %35, %44 : vector<8x32xf32>
      %c56 = arith.constant 56 : index
      %c0_31 = arith.constant 0 : index
      %46 = vector.load %arg2[%c56, %c0_31] : memref<1816x32xf32, #tpu.memory_space<vmem>>, vector<8x32xf32>
      %47 = arith.cmpf oge, %35, %46 : vector<8x32xf32>
      %c64 = arith.constant 64 : index
      %c0_32 = arith.constant 0 : index
      %48 = vector.load %arg2[%c64, %c0_32] : memref<1816x32xf32, #tpu.memory_space<vmem>>, vector<8x32xf32>
      %49 = arith.cmpf oge, %35, %48 : vector<8x32xf32>
      %c72 = arith.constant 72 : index
      %c0_33 = arith.constant 0 : index
      %50 = vector.load %arg2[%c72, %c0_33] : memref<1816x32xf32, #tpu.memory_space<vmem>>, vector<8x32xf32>
      %51 = arith.cmpf oge, %35, %50 : vector<8x32xf32>
      %c80 = arith.constant 80 : index
      %c0_34 = arith.constant 0 : index
      %52 = vector.load %arg2[%c80, %c0_34] : memref<1816x32xf32, #tpu.memory_space<vmem>>, vector<8x32xf32>
      %53 = arith.cmpf oge, %35, %52 : vector<8x32xf32>
      %c88 = arith.constant 88 : index
      %c0_35 = arith.constant 0 : index
      %54 = vector.load %arg2[%c88, %c0_35] : memref<1816x32xf32, #tpu.memory_space<vmem>>, vector<8x32xf32>
      %55 = arith.cmpf oge, %35, %54 : vector<8x32xf32>
      %c96 = arith.constant 96 : index
      %c0_36 = arith.constant 0 : index
      %56 = vector.load %arg2[%c96, %c0_36] : memref<1816x32xf32, #tpu.memory_space<vmem>>, vector<8x32xf32>
      %57 = arith.cmpf oge, %35, %56 : vector<8x32xf32>
      %c104 = arith.constant 104 : index
      %c0_37 = arith.constant 0 : index
      %58 = vector.load %arg2[%c104, %c0_37] : memref<1816x32xf32, #tpu.memory_space<vmem>>, vector<8x32xf32>
      %59 = arith.cmpf oge, %35, %58 : vector<8x32xf32>
      %c112 = arith.constant 112 : index
      %c0_38 = arith.constant 0 : index
      %60 = vector.load %arg2[%c112, %c0_38] : memref<1816x32xf32, #tpu.memory_space<vmem>>, vector<8x32xf32>
      %61 = arith.cmpf oge, %35, %60 : vector<8x32xf32>
      %c120 = arith.constant 120 : index
      %c0_39 = arith.constant 0 : index
      %62 = vector.load %arg2[%c120, %c0_39] : memref<1816x32xf32, #tpu.memory_space<vmem>>, vector<8x32xf32>
      %63 = arith.cmpf oge, %35, %62 : vector<8x32xf32>
      %c128 = arith.constant 128 : index
      %c0_40 = arith.constant 0 : index
      %64 = vector.load %arg2[%c128, %c0_40] : memref<1816x32xf32, #tpu.memory_space<vmem>>, vector<8x32xf32>
      %65 = arith.cmpf oge, %35, %64 : vector<8x32xf32>
      %c136 = arith.constant 136 : index
      %c0_41 = arith.constant 0 : index
      %66 = vector.load %arg2[%c136, %c0_41] : memref<1816x32xf32, #tpu.memory_space<vmem>>, vector<8x32xf32>
      %67 = arith.cmpf oge, %35, %66 : vector<8x32xf32>
      %c144 = arith.constant 144 : index
      %c0_42 = arith.constant 0 : index
      %68 = vector.load %arg2[%c144, %c0_42] : memref<1816x32xf32, #tpu.memory_space<vmem>>, vector<8x32xf32>
      %69 = arith.cmpf oge, %35, %68 : vector<8x32xf32>
      %c152 = arith.constant 152 : index
      %c0_43 = arith.constant 0 : index
      %70 = vector.load %arg2[%c152, %c0_43] : memref<1816x32xf32, #tpu.memory_space<vmem>>, vector<8x32xf32>
      %71 = arith.cmpf oge, %35, %70 : vector<8x32xf32>
      %c160 = arith.constant 160 : index
      %c0_44 = arith.constant 0 : index
      %72 = vector.load %arg2[%c160, %c0_44] : memref<1816x32xf32, #tpu.memory_space<vmem>>, vector<8x32xf32>
      %73 = arith.cmpf oge, %35, %72 : vector<8x32xf32>
      %c168 = arith.constant 168 : index
      %c0_45 = arith.constant 0 : index
      %74 = vector.load %arg2[%c168, %c0_45] : memref<1816x32xf32, #tpu.memory_space<vmem>>, vector<8x32xf32>
      %75 = arith.cmpf oge, %35, %74 : vector<8x32xf32>
      %c176 = arith.constant 176 : index
      %c0_46 = arith.constant 0 : index
      %76 = vector.load %arg2[%c176, %c0_46] : memref<1816x32xf32, #tpu.memory_space<vmem>>, vector<8x32xf32>
      %77 = arith.cmpf oge, %35, %76 : vector<8x32xf32>
      %c184 = arith.constant 184 : index
      %c0_47 = arith.constant 0 : index
      %78 = vector.load %arg2[%c184, %c0_47] : memref<1816x32xf32, #tpu.memory_space<vmem>>, vector<8x32xf32>
      %79 = arith.cmpf oge, %35, %78 : vector<8x32xf32>
      %c192 = arith.constant 192 : index
      %c0_48 = arith.constant 0 : index
      %80 = vector.load %arg2[%c192, %c0_48] : memref<1816x32xf32, #tpu.memory_space<vmem>>, vector<8x32xf32>
      %81 = arith.cmpf oge, %35, %80 : vector<8x32xf32>
      %c200 = arith.constant 200 : index
      %c0_49 = arith.constant 0 : index
      %82 = vector.load %arg2[%c200, %c0_49] : memref<1816x32xf32, #tpu.memory_space<vmem>>, vector<8x32xf32>
      %83 = arith.cmpf oge, %35, %82 : vector<8x32xf32>
      %c208 = arith.constant 208 : index
      %c0_50 = arith.constant 0 : index
      %84 = vector.load %arg2[%c208, %c0_50] : memref<1816x32xf32, #tpu.memory_space<vmem>>, vector<8x32xf32>
      %85 = arith.cmpf oge, %35, %84 : vector<8x32xf32>
      %c216 = arith.constant 216 : index
      %c0_51 = arith.constant 0 : index
      %86 = vector.load %arg2[%c216, %c0_51] : memref<1816x32xf32, #tpu.memory_space<vmem>>, vector<8x32xf32>
      %87 = arith.cmpf oge, %35, %86 : vector<8x32xf32>
      %c224 = arith.constant 224 : index
      %c0_52 = arith.constant 0 : index
      %88 = vector.load %arg2[%c224, %c0_52] : memref<1816x32xf32, #tpu.memory_space<vmem>>, vector<8x32xf32>
      %89 = arith.cmpf oge, %35, %88 : vector<8x32xf32>
      %cst_53 = arith.constant dense<true> : vector<8x32xi1>
      %90 = arith.xori %39, %cst_53 : vector<8x32xi1>
      %91 = arith.andi %37, %90 : vector<8x32xi1>
      %92 = arith.extui %91 : vector<8x32xi1> to vector<8x32xi32>
      %93 = arith.sitofp %92 : vector<8x32xi32> to vector<8x32xf32>
      %cst_54 = arith.constant dense<true> : vector<8x32xi1>
      %94 = arith.xori %41, %cst_54 : vector<8x32xi1>
      %95 = arith.andi %39, %94 : vector<8x32xi1>
      %96 = arith.extui %95 : vector<8x32xi1> to vector<8x32xi32>
      %97 = arith.sitofp %96 : vector<8x32xi32> to vector<8x32xf32>
      %cst_55 = arith.constant dense<true> : vector<8x32xi1>
      %98 = arith.xori %43, %cst_55 : vector<8x32xi1>
      %99 = arith.andi %41, %98 : vector<8x32xi1>
      %100 = arith.extui %99 : vector<8x32xi1> to vector<8x32xi32>
      %101 = arith.sitofp %100 : vector<8x32xi32> to vector<8x32xf32>
      %cst_56 = arith.constant dense<true> : vector<8x32xi1>
      %102 = arith.xori %45, %cst_56 : vector<8x32xi1>
      %103 = arith.andi %43, %102 : vector<8x32xi1>
      %104 = arith.extui %103 : vector<8x32xi1> to vector<8x32xi32>
      %105 = arith.sitofp %104 : vector<8x32xi32> to vector<8x32xf32>
      %cst_57 = arith.constant dense<true> : vector<8x32xi1>
      %106 = arith.xori %47, %cst_57 : vector<8x32xi1>
      %107 = arith.andi %45, %106 : vector<8x32xi1>
      %108 = arith.extui %107 : vector<8x32xi1> to vector<8x32xi32>
      %109 = arith.sitofp %108 : vector<8x32xi32> to vector<8x32xf32>
      %cst_58 = arith.constant dense<true> : vector<8x32xi1>
      %110 = arith.xori %49, %cst_58 : vector<8x32xi1>
      %111 = arith.andi %47, %110 : vector<8x32xi1>
      %112 = arith.extui %111 : vector<8x32xi1> to vector<8x32xi32>
      %113 = arith.sitofp %112 : vector<8x32xi32> to vector<8x32xf32>
      %cst_59 = arith.constant dense<true> : vector<8x32xi1>
      %114 = arith.xori %51, %cst_59 : vector<8x32xi1>
      %115 = arith.andi %49, %114 : vector<8x32xi1>
      %116 = arith.extui %115 : vector<8x32xi1> to vector<8x32xi32>
      %117 = arith.sitofp %116 : vector<8x32xi32> to vector<8x32xf32>
      %cst_60 = arith.constant dense<true> : vector<8x32xi1>
      %118 = arith.xori %53, %cst_60 : vector<8x32xi1>
      %119 = arith.andi %51, %118 : vector<8x32xi1>
      %120 = arith.extui %119 : vector<8x32xi1> to vector<8x32xi32>
      %121 = arith.sitofp %120 : vector<8x32xi32> to vector<8x32xf32>
      %cst_61 = arith.constant dense<true> : vector<8x32xi1>
      %122 = arith.xori %55, %cst_61 : vector<8x32xi1>
      %123 = arith.andi %53, %122 : vector<8x32xi1>
      %124 = arith.extui %123 : vector<8x32xi1> to vector<8x32xi32>
      %125 = arith.sitofp %124 : vector<8x32xi32> to vector<8x32xf32>
      %cst_62 = arith.constant dense<true> : vector<8x32xi1>
      %126 = arith.xori %57, %cst_62 : vector<8x32xi1>
      %127 = arith.andi %55, %126 : vector<8x32xi1>
      %128 = arith.extui %127 : vector<8x32xi1> to vector<8x32xi32>
      %129 = arith.sitofp %128 : vector<8x32xi32> to vector<8x32xf32>
      %cst_63 = arith.constant dense<true> : vector<8x32xi1>
      %130 = arith.xori %59, %cst_63 : vector<8x32xi1>
      %131 = arith.andi %57, %130 : vector<8x32xi1>
      %132 = arith.extui %131 : vector<8x32xi1> to vector<8x32xi32>
      %133 = arith.sitofp %132 : vector<8x32xi32> to vector<8x32xf32>
      %cst_64 = arith.constant dense<true> : vector<8x32xi1>
      %134 = arith.xori %61, %cst_64 : vector<8x32xi1>
      %135 = arith.andi %59, %134 : vector<8x32xi1>
      %136 = arith.extui %135 : vector<8x32xi1> to vector<8x32xi32>
      %137 = arith.sitofp %136 : vector<8x32xi32> to vector<8x32xf32>
      %cst_65 = arith.constant dense<true> : vector<8x32xi1>
      %138 = arith.xori %63, %cst_65 : vector<8x32xi1>
      %139 = arith.andi %61, %138 : vector<8x32xi1>
      %140 = arith.extui %139 : vector<8x32xi1> to vector<8x32xi32>
      %141 = arith.sitofp %140 : vector<8x32xi32> to vector<8x32xf32>
      %cst_66 = arith.constant dense<true> : vector<8x32xi1>
      %142 = arith.xori %65, %cst_66 : vector<8x32xi1>
      %143 = arith.andi %63, %142 : vector<8x32xi1>
      %144 = arith.extui %143 : vector<8x32xi1> to vector<8x32xi32>
      %145 = arith.sitofp %144 : vector<8x32xi32> to vector<8x32xf32>
      %cst_67 = arith.constant dense<true> : vector<8x32xi1>
      %146 = arith.xori %67, %cst_67 : vector<8x32xi1>
      %147 = arith.andi %65, %146 : vector<8x32xi1>
      %148 = arith.extui %147 : vector<8x32xi1> to vector<8x32xi32>
      %149 = arith.sitofp %148 : vector<8x32xi32> to vector<8x32xf32>
      %cst_68 = arith.constant dense<true> : vector<8x32xi1>
      %150 = arith.xori %69, %cst_68 : vector<8x32xi1>
      %151 = arith.andi %67, %150 : vector<8x32xi1>
      %152 = arith.extui %151 : vector<8x32xi1> to vector<8x32xi32>
      %153 = arith.sitofp %152 : vector<8x32xi32> to vector<8x32xf32>
      %cst_69 = arith.constant dense<true> : vector<8x32xi1>
      %154 = arith.xori %71, %cst_69 : vector<8x32xi1>
      %155 = arith.andi %69, %154 : vector<8x32xi1>
      %156 = arith.extui %155 : vector<8x32xi1> to vector<8x32xi32>
      %157 = arith.sitofp %156 : vector<8x32xi32> to vector<8x32xf32>
      %cst_70 = arith.constant dense<true> : vector<8x32xi1>
      %158 = arith.xori %73, %cst_70 : vector<8x32xi1>
      %159 = arith.andi %71, %158 : vector<8x32xi1>
      %160 = arith.extui %159 : vector<8x32xi1> to vector<8x32xi32>
      %161 = arith.sitofp %160 : vector<8x32xi32> to vector<8x32xf32>
      %cst_71 = arith.constant dense<true> : vector<8x32xi1>
      %162 = arith.xori %75, %cst_71 : vector<8x32xi1>
      %163 = arith.andi %73, %162 : vector<8x32xi1>
      %164 = arith.extui %163 : vector<8x32xi1> to vector<8x32xi32>
      %165 = arith.sitofp %164 : vector<8x32xi32> to vector<8x32xf32>
      %cst_72 = arith.constant dense<true> : vector<8x32xi1>
      %166 = arith.xori %77, %cst_72 : vector<8x32xi1>
      %167 = arith.andi %75, %166 : vector<8x32xi1>
      %168 = arith.extui %167 : vector<8x32xi1> to vector<8x32xi32>
      %169 = arith.sitofp %168 : vector<8x32xi32> to vector<8x32xf32>
      %cst_73 = arith.constant dense<true> : vector<8x32xi1>
      %170 = arith.xori %79, %cst_73 : vector<8x32xi1>
      %171 = arith.andi %77, %170 : vector<8x32xi1>
      %172 = arith.extui %171 : vector<8x32xi1> to vector<8x32xi32>
      %173 = arith.sitofp %172 : vector<8x32xi32> to vector<8x32xf32>
      %cst_74 = arith.constant dense<true> : vector<8x32xi1>
      %174 = arith.xori %81, %cst_74 : vector<8x32xi1>
      %175 = arith.andi %79, %174 : vector<8x32xi1>
      %176 = arith.extui %175 : vector<8x32xi1> to vector<8x32xi32>
      %177 = arith.sitofp %176 : vector<8x32xi32> to vector<8x32xf32>
      %cst_75 = arith.constant dense<true> : vector<8x32xi1>
      %178 = arith.xori %83, %cst_75 : vector<8x32xi1>
      %179 = arith.andi %81, %178 : vector<8x32xi1>
      %180 = arith.extui %179 : vector<8x32xi1> to vector<8x32xi32>
      %181 = arith.sitofp %180 : vector<8x32xi32> to vector<8x32xf32>
      %cst_76 = arith.constant dense<true> : vector<8x32xi1>
      %182 = arith.xori %85, %cst_76 : vector<8x32xi1>
      %183 = arith.andi %83, %182 : vector<8x32xi1>
      %184 = arith.extui %183 : vector<8x32xi1> to vector<8x32xi32>
      %185 = arith.sitofp %184 : vector<8x32xi32> to vector<8x32xf32>
      %cst_77 = arith.constant dense<true> : vector<8x32xi1>
      %186 = arith.xori %87, %cst_77 : vector<8x32xi1>
      %187 = arith.andi %85, %186 : vector<8x32xi1>
      %188 = arith.extui %187 : vector<8x32xi1> to vector<8x32xi32>
      %189 = arith.sitofp %188 : vector<8x32xi32> to vector<8x32xf32>
      %cst_78 = arith.constant dense<true> : vector<8x32xi1>
      %190 = arith.xori %89, %cst_78 : vector<8x32xi1>
      %191 = arith.andi %87, %190 : vector<8x32xi1>
      %192 = arith.extui %191 : vector<8x32xi1> to vector<8x32xi32>
      %193 = arith.sitofp %192 : vector<8x32xi32> to vector<8x32xf32>
      %c232 = arith.constant 232 : index
      %c0_79 = arith.constant 0 : index
      %194 = vector.load %arg2[%c232, %c0_79] : memref<1816x32xf32, #tpu.memory_space<vmem>>, vector<8x32xf32>
      %195 = arith.mulf %35, %194 : vector<8x32xf32>
      %c832 = arith.constant 832 : index
      %c0_80 = arith.constant 0 : index
      %196 = vector.load %arg2[%c832, %c0_80] : memref<1816x32xf32, #tpu.memory_space<vmem>>, vector<8x32xf32>
      %197 = arith.subf %195, %196 : vector<8x32xf32>
      %c240 = arith.constant 240 : index
      %c0_81 = arith.constant 0 : index
      %198 = vector.load %arg2[%c240, %c0_81] : memref<1816x32xf32, #tpu.memory_space<vmem>>, vector<8x32xf32>
      %199 = arith.mulf %35, %198 : vector<8x32xf32>
      %c840 = arith.constant 840 : index
      %c0_82 = arith.constant 0 : index
      %200 = vector.load %arg2[%c840, %c0_82] : memref<1816x32xf32, #tpu.memory_space<vmem>>, vector<8x32xf32>
      %201 = arith.subf %199, %200 : vector<8x32xf32>
      %c248 = arith.constant 248 : index
      %c0_83 = arith.constant 0 : index
      %202 = vector.load %arg2[%c248, %c0_83] : memref<1816x32xf32, #tpu.memory_space<vmem>>, vector<8x32xf32>
      %203 = arith.mulf %35, %202 : vector<8x32xf32>
      %c848 = arith.constant 848 : index
      %c0_84 = arith.constant 0 : index
      %204 = vector.load %arg2[%c848, %c0_84] : memref<1816x32xf32, #tpu.memory_space<vmem>>, vector<8x32xf32>
      %205 = arith.subf %203, %204 : vector<8x32xf32>
      %c256 = arith.constant 256 : index
      %c0_85 = arith.constant 0 : index
      %206 = vector.load %arg2[%c256, %c0_85] : memref<1816x32xf32, #tpu.memory_space<vmem>>, vector<8x32xf32>
      %207 = arith.mulf %35, %206 : vector<8x32xf32>
      %c856 = arith.constant 856 : index
      %c0_86 = arith.constant 0 : index
      %208 = vector.load %arg2[%c856, %c0_86] : memref<1816x32xf32, #tpu.memory_space<vmem>>, vector<8x32xf32>
      %209 = arith.subf %207, %208 : vector<8x32xf32>
      %c264 = arith.constant 264 : index
      %c0_87 = arith.constant 0 : index
      %210 = vector.load %arg2[%c264, %c0_87] : memref<1816x32xf32, #tpu.memory_space<vmem>>, vector<8x32xf32>
      %211 = arith.mulf %35, %210 : vector<8x32xf32>
      %c864 = arith.constant 864 : index
      %c0_88 = arith.constant 0 : index
      %212 = vector.load %arg2[%c864, %c0_88] : memref<1816x32xf32, #tpu.memory_space<vmem>>, vector<8x32xf32>
      %213 = arith.subf %211, %212 : vector<8x32xf32>
      %c272 = arith.constant 272 : index
      %c0_89 = arith.constant 0 : index
      %214 = vector.load %arg2[%c272, %c0_89] : memref<1816x32xf32, #tpu.memory_space<vmem>>, vector<8x32xf32>
      %215 = arith.mulf %35, %214 : vector<8x32xf32>
      %c872 = arith.constant 872 : index
      %c0_90 = arith.constant 0 : index
      %216 = vector.load %arg2[%c872, %c0_90] : memref<1816x32xf32, #tpu.memory_space<vmem>>, vector<8x32xf32>
      %217 = arith.subf %215, %216 : vector<8x32xf32>
      %c280 = arith.constant 280 : index
      %c0_91 = arith.constant 0 : index
      %218 = vector.load %arg2[%c280, %c0_91] : memref<1816x32xf32, #tpu.memory_space<vmem>>, vector<8x32xf32>
      %219 = arith.mulf %35, %218 : vector<8x32xf32>
      %c880 = arith.constant 880 : index
      %c0_92 = arith.constant 0 : index
      %220 = vector.load %arg2[%c880, %c0_92] : memref<1816x32xf32, #tpu.memory_space<vmem>>, vector<8x32xf32>
      %221 = arith.subf %219, %220 : vector<8x32xf32>
      %c288 = arith.constant 288 : index
      %c0_93 = arith.constant 0 : index
      %222 = vector.load %arg2[%c288, %c0_93] : memref<1816x32xf32, #tpu.memory_space<vmem>>, vector<8x32xf32>
      %223 = arith.mulf %35, %222 : vector<8x32xf32>
      %c888 = arith.constant 888 : index
      %c0_94 = arith.constant 0 : index
      %224 = vector.load %arg2[%c888, %c0_94] : memref<1816x32xf32, #tpu.memory_space<vmem>>, vector<8x32xf32>
      %225 = arith.subf %223, %224 : vector<8x32xf32>
      %c296 = arith.constant 296 : index
      %c0_95 = arith.constant 0 : index
      %226 = vector.load %arg2[%c296, %c0_95] : memref<1816x32xf32, #tpu.memory_space<vmem>>, vector<8x32xf32>
      %227 = arith.mulf %35, %226 : vector<8x32xf32>
      %c896 = arith.constant 896 : index
      %c0_96 = arith.constant 0 : index
      %228 = vector.load %arg2[%c896, %c0_96] : memref<1816x32xf32, #tpu.memory_space<vmem>>, vector<8x32xf32>
      %229 = arith.subf %227, %228 : vector<8x32xf32>
      %c304 = arith.constant 304 : index
      %c0_97 = arith.constant 0 : index
      %230 = vector.load %arg2[%c304, %c0_97] : memref<1816x32xf32, #tpu.memory_space<vmem>>, vector<8x32xf32>
      %231 = arith.mulf %35, %230 : vector<8x32xf32>
      %c904 = arith.constant 904 : index
      %c0_98 = arith.constant 0 : index
      %232 = vector.load %arg2[%c904, %c0_98] : memref<1816x32xf32, #tpu.memory_space<vmem>>, vector<8x32xf32>
      %233 = arith.subf %231, %232 : vector<8x32xf32>
      %c312 = arith.constant 312 : index
      %c0_99 = arith.constant 0 : index
      %234 = vector.load %arg2[%c312, %c0_99] : memref<1816x32xf32, #tpu.memory_space<vmem>>, vector<8x32xf32>
      %235 = arith.mulf %35, %234 : vector<8x32xf32>
      %c912 = arith.constant 912 : index
      %c0_100 = arith.constant 0 : index
      %236 = vector.load %arg2[%c912, %c0_100] : memref<1816x32xf32, #tpu.memory_space<vmem>>, vector<8x32xf32>
      %237 = arith.subf %235, %236 : vector<8x32xf32>
      %c320 = arith.constant 320 : index
      %c0_101 = arith.constant 0 : index
      %238 = vector.load %arg2[%c320, %c0_101] : memref<1816x32xf32, #tpu.memory_space<vmem>>, vector<8x32xf32>
      %239 = arith.mulf %35, %238 : vector<8x32xf32>
      %c920 = arith.constant 920 : index
      %c0_102 = arith.constant 0 : index
      %240 = vector.load %arg2[%c920, %c0_102] : memref<1816x32xf32, #tpu.memory_space<vmem>>, vector<8x32xf32>
      %241 = arith.subf %239, %240 : vector<8x32xf32>
      %c328 = arith.constant 328 : index
      %c0_103 = arith.constant 0 : index
      %242 = vector.load %arg2[%c328, %c0_103] : memref<1816x32xf32, #tpu.memory_space<vmem>>, vector<8x32xf32>
      %243 = arith.mulf %35, %242 : vector<8x32xf32>
      %c928 = arith.constant 928 : index
      %c0_104 = arith.constant 0 : index
      %244 = vector.load %arg2[%c928, %c0_104] : memref<1816x32xf32, #tpu.memory_space<vmem>>, vector<8x32xf32>
      %245 = arith.subf %243, %244 : vector<8x32xf32>
      %c336 = arith.constant 336 : index
      %c0_105 = arith.constant 0 : index
      %246 = vector.load %arg2[%c336, %c0_105] : memref<1816x32xf32, #tpu.memory_space<vmem>>, vector<8x32xf32>
      %247 = arith.mulf %35, %246 : vector<8x32xf32>
      %c936 = arith.constant 936 : index
      %c0_106 = arith.constant 0 : index
      %248 = vector.load %arg2[%c936, %c0_106] : memref<1816x32xf32, #tpu.memory_space<vmem>>, vector<8x32xf32>
      %249 = arith.subf %247, %248 : vector<8x32xf32>
      %c344 = arith.constant 344 : index
      %c0_107 = arith.constant 0 : index
      %250 = vector.load %arg2[%c344, %c0_107] : memref<1816x32xf32, #tpu.memory_space<vmem>>, vector<8x32xf32>
      %251 = arith.mulf %35, %250 : vector<8x32xf32>
      %c944 = arith.constant 944 : index
      %c0_108 = arith.constant 0 : index
      %252 = vector.load %arg2[%c944, %c0_108] : memref<1816x32xf32, #tpu.memory_space<vmem>>, vector<8x32xf32>
      %253 = arith.subf %251, %252 : vector<8x32xf32>
      %c352 = arith.constant 352 : index
      %c0_109 = arith.constant 0 : index
      %254 = vector.load %arg2[%c352, %c0_109] : memref<1816x32xf32, #tpu.memory_space<vmem>>, vector<8x32xf32>
      %255 = arith.mulf %35, %254 : vector<8x32xf32>
      %c952 = arith.constant 952 : index
      %c0_110 = arith.constant 0 : index
      %256 = vector.load %arg2[%c952, %c0_110] : memref<1816x32xf32, #tpu.memory_space<vmem>>, vector<8x32xf32>
      %257 = arith.subf %255, %256 : vector<8x32xf32>
      %c360 = arith.constant 360 : index
      %c0_111 = arith.constant 0 : index
      %258 = vector.load %arg2[%c360, %c0_111] : memref<1816x32xf32, #tpu.memory_space<vmem>>, vector<8x32xf32>
      %259 = arith.mulf %35, %258 : vector<8x32xf32>
      %c960 = arith.constant 960 : index
      %c0_112 = arith.constant 0 : index
      %260 = vector.load %arg2[%c960, %c0_112] : memref<1816x32xf32, #tpu.memory_space<vmem>>, vector<8x32xf32>
      %261 = arith.subf %259, %260 : vector<8x32xf32>
      %c368 = arith.constant 368 : index
      %c0_113 = arith.constant 0 : index
      %262 = vector.load %arg2[%c368, %c0_113] : memref<1816x32xf32, #tpu.memory_space<vmem>>, vector<8x32xf32>
      %263 = arith.mulf %35, %262 : vector<8x32xf32>
      %c968 = arith.constant 968 : index
      %c0_114 = arith.constant 0 : index
      %264 = vector.load %arg2[%c968, %c0_114] : memref<1816x32xf32, #tpu.memory_space<vmem>>, vector<8x32xf32>
      %265 = arith.subf %263, %264 : vector<8x32xf32>
      %c376 = arith.constant 376 : index
      %c0_115 = arith.constant 0 : index
      %266 = vector.load %arg2[%c376, %c0_115] : memref<1816x32xf32, #tpu.memory_space<vmem>>, vector<8x32xf32>
      %267 = arith.mulf %35, %266 : vector<8x32xf32>
      %c976 = arith.constant 976 : index
      %c0_116 = arith.constant 0 : index
      %268 = vector.load %arg2[%c976, %c0_116] : memref<1816x32xf32, #tpu.memory_space<vmem>>, vector<8x32xf32>
      %269 = arith.subf %267, %268 : vector<8x32xf32>
      %c384 = arith.constant 384 : index
      %c0_117 = arith.constant 0 : index
      %270 = vector.load %arg2[%c384, %c0_117] : memref<1816x32xf32, #tpu.memory_space<vmem>>, vector<8x32xf32>
      %271 = arith.mulf %35, %270 : vector<8x32xf32>
      %c984 = arith.constant 984 : index
      %c0_118 = arith.constant 0 : index
      %272 = vector.load %arg2[%c984, %c0_118] : memref<1816x32xf32, #tpu.memory_space<vmem>>, vector<8x32xf32>
      %273 = arith.subf %271, %272 : vector<8x32xf32>
      %c392 = arith.constant 392 : index
      %c0_119 = arith.constant 0 : index
      %274 = vector.load %arg2[%c392, %c0_119] : memref<1816x32xf32, #tpu.memory_space<vmem>>, vector<8x32xf32>
      %275 = arith.mulf %35, %274 : vector<8x32xf32>
      %c992 = arith.constant 992 : index
      %c0_120 = arith.constant 0 : index
      %276 = vector.load %arg2[%c992, %c0_120] : memref<1816x32xf32, #tpu.memory_space<vmem>>, vector<8x32xf32>
      %277 = arith.subf %275, %276 : vector<8x32xf32>
      %c400 = arith.constant 400 : index
      %c0_121 = arith.constant 0 : index
      %278 = vector.load %arg2[%c400, %c0_121] : memref<1816x32xf32, #tpu.memory_space<vmem>>, vector<8x32xf32>
      %279 = arith.mulf %35, %278 : vector<8x32xf32>
      %c1000 = arith.constant 1000 : index
      %c0_122 = arith.constant 0 : index
      %280 = vector.load %arg2[%c1000, %c0_122] : memref<1816x32xf32, #tpu.memory_space<vmem>>, vector<8x32xf32>
      %281 = arith.subf %279, %280 : vector<8x32xf32>
      %c408 = arith.constant 408 : index
      %c0_123 = arith.constant 0 : index
      %282 = vector.load %arg2[%c408, %c0_123] : memref<1816x32xf32, #tpu.memory_space<vmem>>, vector<8x32xf32>
      %283 = arith.mulf %35, %282 : vector<8x32xf32>
      %c1008 = arith.constant 1008 : index
      %c0_124 = arith.constant 0 : index
      %284 = vector.load %arg2[%c1008, %c0_124] : memref<1816x32xf32, #tpu.memory_space<vmem>>, vector<8x32xf32>
      %285 = arith.subf %283, %284 : vector<8x32xf32>
      %c416 = arith.constant 416 : index
      %c0_125 = arith.constant 0 : index
      %286 = vector.load %arg2[%c416, %c0_125] : memref<1816x32xf32, #tpu.memory_space<vmem>>, vector<8x32xf32>
      %287 = arith.mulf %35, %286 : vector<8x32xf32>
      %c1016 = arith.constant 1016 : index
      %c0_126 = arith.constant 0 : index
      %288 = vector.load %arg2[%c1016, %c0_126] : memref<1816x32xf32, #tpu.memory_space<vmem>>, vector<8x32xf32>
      %289 = arith.subf %287, %288 : vector<8x32xf32>
      %c424 = arith.constant 424 : index
      %c0_127 = arith.constant 0 : index
      %290 = vector.load %arg2[%c424, %c0_127] : memref<1816x32xf32, #tpu.memory_space<vmem>>, vector<8x32xf32>
      %291 = arith.mulf %35, %290 : vector<8x32xf32>
      %c1024 = arith.constant 1024 : index
      %c0_128 = arith.constant 0 : index
      %292 = vector.load %arg2[%c1024, %c0_128] : memref<1816x32xf32, #tpu.memory_space<vmem>>, vector<8x32xf32>
      %293 = arith.subf %291, %292 : vector<8x32xf32>
      %c432 = arith.constant 432 : index
      %c0_129 = arith.constant 0 : index
      %294 = vector.load %arg2[%c432, %c0_129] : memref<1816x32xf32, #tpu.memory_space<vmem>>, vector<8x32xf32>
      %295 = arith.mulf %35, %294 : vector<8x32xf32>
      %c1032 = arith.constant 1032 : index
      %c0_130 = arith.constant 0 : index
      %296 = vector.load %arg2[%c1032, %c0_130] : memref<1816x32xf32, #tpu.memory_space<vmem>>, vector<8x32xf32>
      %297 = arith.subf %295, %296 : vector<8x32xf32>
      %298 = arith.mulf %197, %93 : vector<8x32xf32>
      %cst_131 = arith.constant 1.000000e+00 : f32
      %299 = vector.broadcast %cst_131 : f32 to vector<8x32xf32>
      %300 = arith.subf %299, %201 : vector<8x32xf32>
      %301 = arith.mulf %300, %97 : vector<8x32xf32>
      %302 = arith.addf %298, %301 : vector<8x32xf32>
      %303 = arith.mulf %201, %97 : vector<8x32xf32>
      %cst_132 = arith.constant 1.000000e+00 : f32
      %304 = vector.broadcast %cst_132 : f32 to vector<8x32xf32>
      %305 = arith.subf %304, %205 : vector<8x32xf32>
      %306 = arith.mulf %305, %101 : vector<8x32xf32>
      %307 = arith.addf %303, %306 : vector<8x32xf32>
      %308 = arith.mulf %205, %101 : vector<8x32xf32>
      %cst_133 = arith.constant 1.000000e+00 : f32
      %309 = vector.broadcast %cst_133 : f32 to vector<8x32xf32>
      %310 = arith.subf %309, %209 : vector<8x32xf32>
      %311 = arith.mulf %310, %105 : vector<8x32xf32>
      %312 = arith.addf %308, %311 : vector<8x32xf32>
      %313 = arith.mulf %209, %105 : vector<8x32xf32>
      %cst_134 = arith.constant 1.000000e+00 : f32
      %314 = vector.broadcast %cst_134 : f32 to vector<8x32xf32>
      %315 = arith.subf %314, %213 : vector<8x32xf32>
      %316 = arith.mulf %315, %109 : vector<8x32xf32>
      %317 = arith.addf %313, %316 : vector<8x32xf32>
      %318 = arith.mulf %213, %109 : vector<8x32xf32>
      %cst_135 = arith.constant 1.000000e+00 : f32
      %319 = vector.broadcast %cst_135 : f32 to vector<8x32xf32>
      %320 = arith.subf %319, %217 : vector<8x32xf32>
      %321 = arith.mulf %320, %113 : vector<8x32xf32>
      %322 = arith.addf %318, %321 : vector<8x32xf32>
      %323 = arith.mulf %217, %113 : vector<8x32xf32>
      %cst_136 = arith.constant 1.000000e+00 : f32
      %324 = vector.broadcast %cst_136 : f32 to vector<8x32xf32>
      %325 = arith.subf %324, %221 : vector<8x32xf32>
      %326 = arith.mulf %325, %117 : vector<8x32xf32>
      %327 = arith.addf %323, %326 : vector<8x32xf32>
      %328 = arith.mulf %221, %117 : vector<8x32xf32>
      %cst_137 = arith.constant 1.000000e+00 : f32
      %329 = vector.broadcast %cst_137 : f32 to vector<8x32xf32>
      %330 = arith.subf %329, %225 : vector<8x32xf32>
      %331 = arith.mulf %330, %121 : vector<8x32xf32>
      %332 = arith.addf %328, %331 : vector<8x32xf32>
      %333 = arith.mulf %225, %121 : vector<8x32xf32>
      %cst_138 = arith.constant 1.000000e+00 : f32
      %334 = vector.broadcast %cst_138 : f32 to vector<8x32xf32>
      %335 = arith.subf %334, %229 : vector<8x32xf32>
      %336 = arith.mulf %335, %125 : vector<8x32xf32>
      %337 = arith.addf %333, %336 : vector<8x32xf32>
      %338 = arith.mulf %229, %125 : vector<8x32xf32>
      %cst_139 = arith.constant 1.000000e+00 : f32
      %339 = vector.broadcast %cst_139 : f32 to vector<8x32xf32>
      %340 = arith.subf %339, %233 : vector<8x32xf32>
      %341 = arith.mulf %340, %129 : vector<8x32xf32>
      %342 = arith.addf %338, %341 : vector<8x32xf32>
      %343 = arith.mulf %233, %129 : vector<8x32xf32>
      %cst_140 = arith.constant 1.000000e+00 : f32
      %344 = vector.broadcast %cst_140 : f32 to vector<8x32xf32>
      %345 = arith.subf %344, %237 : vector<8x32xf32>
      %346 = arith.mulf %345, %133 : vector<8x32xf32>
      %347 = arith.addf %343, %346 : vector<8x32xf32>
      %348 = arith.mulf %237, %133 : vector<8x32xf32>
      %cst_141 = arith.constant 1.000000e+00 : f32
      %349 = vector.broadcast %cst_141 : f32 to vector<8x32xf32>
      %350 = arith.subf %349, %241 : vector<8x32xf32>
      %351 = arith.mulf %350, %137 : vector<8x32xf32>
      %352 = arith.addf %348, %351 : vector<8x32xf32>
      %353 = arith.mulf %241, %137 : vector<8x32xf32>
      %cst_142 = arith.constant 1.000000e+00 : f32
      %354 = vector.broadcast %cst_142 : f32 to vector<8x32xf32>
      %355 = arith.subf %354, %245 : vector<8x32xf32>
      %356 = arith.mulf %355, %141 : vector<8x32xf32>
      %357 = arith.addf %353, %356 : vector<8x32xf32>
      %358 = arith.mulf %245, %141 : vector<8x32xf32>
      %cst_143 = arith.constant 1.000000e+00 : f32
      %359 = vector.broadcast %cst_143 : f32 to vector<8x32xf32>
      %360 = arith.subf %359, %249 : vector<8x32xf32>
      %361 = arith.mulf %360, %145 : vector<8x32xf32>
      %362 = arith.addf %358, %361 : vector<8x32xf32>
      %363 = arith.mulf %249, %145 : vector<8x32xf32>
      %cst_144 = arith.constant 1.000000e+00 : f32
      %364 = vector.broadcast %cst_144 : f32 to vector<8x32xf32>
      %365 = arith.subf %364, %253 : vector<8x32xf32>
      %366 = arith.mulf %365, %149 : vector<8x32xf32>
      %367 = arith.addf %363, %366 : vector<8x32xf32>
      %368 = arith.mulf %253, %149 : vector<8x32xf32>
      %cst_145 = arith.constant 1.000000e+00 : f32
      %369 = vector.broadcast %cst_145 : f32 to vector<8x32xf32>
      %370 = arith.subf %369, %257 : vector<8x32xf32>
      %371 = arith.mulf %370, %153 : vector<8x32xf32>
      %372 = arith.addf %368, %371 : vector<8x32xf32>
      %373 = arith.mulf %257, %153 : vector<8x32xf32>
      %cst_146 = arith.constant 1.000000e+00 : f32
      %374 = vector.broadcast %cst_146 : f32 to vector<8x32xf32>
      %375 = arith.subf %374, %261 : vector<8x32xf32>
      %376 = arith.mulf %375, %157 : vector<8x32xf32>
      %377 = arith.addf %373, %376 : vector<8x32xf32>
      %378 = arith.mulf %261, %157 : vector<8x32xf32>
      %cst_147 = arith.constant 1.000000e+00 : f32
      %379 = vector.broadcast %cst_147 : f32 to vector<8x32xf32>
      %380 = arith.subf %379, %265 : vector<8x32xf32>
      %381 = arith.mulf %380, %161 : vector<8x32xf32>
      %382 = arith.addf %378, %381 : vector<8x32xf32>
      %383 = arith.mulf %265, %161 : vector<8x32xf32>
      %cst_148 = arith.constant 1.000000e+00 : f32
      %384 = vector.broadcast %cst_148 : f32 to vector<8x32xf32>
      %385 = arith.subf %384, %269 : vector<8x32xf32>
      %386 = arith.mulf %385, %165 : vector<8x32xf32>
      %387 = arith.addf %383, %386 : vector<8x32xf32>
      %388 = arith.mulf %269, %165 : vector<8x32xf32>
      %cst_149 = arith.constant 1.000000e+00 : f32
      %389 = vector.broadcast %cst_149 : f32 to vector<8x32xf32>
      %390 = arith.subf %389, %273 : vector<8x32xf32>
      %391 = arith.mulf %390, %169 : vector<8x32xf32>
      %392 = arith.addf %388, %391 : vector<8x32xf32>
      %393 = arith.mulf %273, %169 : vector<8x32xf32>
      %cst_150 = arith.constant 1.000000e+00 : f32
      %394 = vector.broadcast %cst_150 : f32 to vector<8x32xf32>
      %395 = arith.subf %394, %277 : vector<8x32xf32>
      %396 = arith.mulf %395, %173 : vector<8x32xf32>
      %397 = arith.addf %393, %396 : vector<8x32xf32>
      %398 = arith.mulf %277, %173 : vector<8x32xf32>
      %cst_151 = arith.constant 1.000000e+00 : f32
      %399 = vector.broadcast %cst_151 : f32 to vector<8x32xf32>
      %400 = arith.subf %399, %281 : vector<8x32xf32>
      %401 = arith.mulf %400, %177 : vector<8x32xf32>
      %402 = arith.addf %398, %401 : vector<8x32xf32>
      %403 = arith.mulf %281, %177 : vector<8x32xf32>
      %cst_152 = arith.constant 1.000000e+00 : f32
      %404 = vector.broadcast %cst_152 : f32 to vector<8x32xf32>
      %405 = arith.subf %404, %285 : vector<8x32xf32>
      %406 = arith.mulf %405, %181 : vector<8x32xf32>
      %407 = arith.addf %403, %406 : vector<8x32xf32>
      %408 = arith.mulf %285, %181 : vector<8x32xf32>
      %cst_153 = arith.constant 1.000000e+00 : f32
      %409 = vector.broadcast %cst_153 : f32 to vector<8x32xf32>
      %410 = arith.subf %409, %289 : vector<8x32xf32>
      %411 = arith.mulf %410, %185 : vector<8x32xf32>
      %412 = arith.addf %408, %411 : vector<8x32xf32>
      %413 = arith.mulf %289, %185 : vector<8x32xf32>
      %cst_154 = arith.constant 1.000000e+00 : f32
      %414 = vector.broadcast %cst_154 : f32 to vector<8x32xf32>
      %415 = arith.subf %414, %293 : vector<8x32xf32>
      %416 = arith.mulf %415, %189 : vector<8x32xf32>
      %417 = arith.addf %413, %416 : vector<8x32xf32>
      %418 = arith.mulf %293, %189 : vector<8x32xf32>
      %cst_155 = arith.constant 1.000000e+00 : f32
      %419 = vector.broadcast %cst_155 : f32 to vector<8x32xf32>
      %420 = arith.subf %419, %297 : vector<8x32xf32>
      %421 = arith.mulf %420, %193 : vector<8x32xf32>
      %422 = arith.addf %418, %421 : vector<8x32xf32>
      %c440 = arith.constant 440 : index
      %c0_156 = arith.constant 0 : index
      %423 = vector.load %arg2[%c440, %c0_156] : memref<1816x32xf32, #tpu.memory_space<vmem>>, vector<8x32xf32>
      %424 = arith.mulf %35, %423 : vector<8x32xf32>
      %c1040 = arith.constant 1040 : index
      %c0_157 = arith.constant 0 : index
      %425 = vector.load %arg2[%c1040, %c0_157] : memref<1816x32xf32, #tpu.memory_space<vmem>>, vector<8x32xf32>
      %426 = arith.subf %424, %425 : vector<8x32xf32>
      %c448 = arith.constant 448 : index
      %c0_158 = arith.constant 0 : index
      %427 = vector.load %arg2[%c448, %c0_158] : memref<1816x32xf32, #tpu.memory_space<vmem>>, vector<8x32xf32>
      %428 = arith.mulf %35, %427 : vector<8x32xf32>
      %c1048 = arith.constant 1048 : index
      %c0_159 = arith.constant 0 : index
      %429 = vector.load %arg2[%c1048, %c0_159] : memref<1816x32xf32, #tpu.memory_space<vmem>>, vector<8x32xf32>
      %430 = arith.subf %428, %429 : vector<8x32xf32>
      %c456 = arith.constant 456 : index
      %c0_160 = arith.constant 0 : index
      %431 = vector.load %arg2[%c456, %c0_160] : memref<1816x32xf32, #tpu.memory_space<vmem>>, vector<8x32xf32>
      %432 = arith.mulf %35, %431 : vector<8x32xf32>
      %c1056 = arith.constant 1056 : index
      %c0_161 = arith.constant 0 : index
      %433 = vector.load %arg2[%c1056, %c0_161] : memref<1816x32xf32, #tpu.memory_space<vmem>>, vector<8x32xf32>
      %434 = arith.subf %432, %433 : vector<8x32xf32>
      %c464 = arith.constant 464 : index
      %c0_162 = arith.constant 0 : index
      %435 = vector.load %arg2[%c464, %c0_162] : memref<1816x32xf32, #tpu.memory_space<vmem>>, vector<8x32xf32>
      %436 = arith.mulf %35, %435 : vector<8x32xf32>
      %c1064 = arith.constant 1064 : index
      %c0_163 = arith.constant 0 : index
      %437 = vector.load %arg2[%c1064, %c0_163] : memref<1816x32xf32, #tpu.memory_space<vmem>>, vector<8x32xf32>
      %438 = arith.subf %436, %437 : vector<8x32xf32>
      %c472 = arith.constant 472 : index
      %c0_164 = arith.constant 0 : index
      %439 = vector.load %arg2[%c472, %c0_164] : memref<1816x32xf32, #tpu.memory_space<vmem>>, vector<8x32xf32>
      %440 = arith.mulf %35, %439 : vector<8x32xf32>
      %c1072 = arith.constant 1072 : index
      %c0_165 = arith.constant 0 : index
      %441 = vector.load %arg2[%c1072, %c0_165] : memref<1816x32xf32, #tpu.memory_space<vmem>>, vector<8x32xf32>
      %442 = arith.subf %440, %441 : vector<8x32xf32>
      %c480 = arith.constant 480 : index
      %c0_166 = arith.constant 0 : index
      %443 = vector.load %arg2[%c480, %c0_166] : memref<1816x32xf32, #tpu.memory_space<vmem>>, vector<8x32xf32>
      %444 = arith.mulf %35, %443 : vector<8x32xf32>
      %c1080 = arith.constant 1080 : index
      %c0_167 = arith.constant 0 : index
      %445 = vector.load %arg2[%c1080, %c0_167] : memref<1816x32xf32, #tpu.memory_space<vmem>>, vector<8x32xf32>
      %446 = arith.subf %444, %445 : vector<8x32xf32>
      %c488 = arith.constant 488 : index
      %c0_168 = arith.constant 0 : index
      %447 = vector.load %arg2[%c488, %c0_168] : memref<1816x32xf32, #tpu.memory_space<vmem>>, vector<8x32xf32>
      %448 = arith.mulf %35, %447 : vector<8x32xf32>
      %c1088 = arith.constant 1088 : index
      %c0_169 = arith.constant 0 : index
      %449 = vector.load %arg2[%c1088, %c0_169] : memref<1816x32xf32, #tpu.memory_space<vmem>>, vector<8x32xf32>
      %450 = arith.subf %448, %449 : vector<8x32xf32>
      %c496 = arith.constant 496 : index
      %c0_170 = arith.constant 0 : index
      %451 = vector.load %arg2[%c496, %c0_170] : memref<1816x32xf32, #tpu.memory_space<vmem>>, vector<8x32xf32>
      %452 = arith.mulf %35, %451 : vector<8x32xf32>
      %c1096 = arith.constant 1096 : index
      %c0_171 = arith.constant 0 : index
      %453 = vector.load %arg2[%c1096, %c0_171] : memref<1816x32xf32, #tpu.memory_space<vmem>>, vector<8x32xf32>
      %454 = arith.subf %452, %453 : vector<8x32xf32>
      %c504 = arith.constant 504 : index
      %c0_172 = arith.constant 0 : index
      %455 = vector.load %arg2[%c504, %c0_172] : memref<1816x32xf32, #tpu.memory_space<vmem>>, vector<8x32xf32>
      %456 = arith.mulf %35, %455 : vector<8x32xf32>
      %c1104 = arith.constant 1104 : index
      %c0_173 = arith.constant 0 : index
      %457 = vector.load %arg2[%c1104, %c0_173] : memref<1816x32xf32, #tpu.memory_space<vmem>>, vector<8x32xf32>
      %458 = arith.subf %456, %457 : vector<8x32xf32>
      %c512 = arith.constant 512 : index
      %c0_174 = arith.constant 0 : index
      %459 = vector.load %arg2[%c512, %c0_174] : memref<1816x32xf32, #tpu.memory_space<vmem>>, vector<8x32xf32>
      %460 = arith.mulf %35, %459 : vector<8x32xf32>
      %c1112 = arith.constant 1112 : index
      %c0_175 = arith.constant 0 : index
      %461 = vector.load %arg2[%c1112, %c0_175] : memref<1816x32xf32, #tpu.memory_space<vmem>>, vector<8x32xf32>
      %462 = arith.subf %460, %461 : vector<8x32xf32>
      %c520 = arith.constant 520 : index
      %c0_176 = arith.constant 0 : index
      %463 = vector.load %arg2[%c520, %c0_176] : memref<1816x32xf32, #tpu.memory_space<vmem>>, vector<8x32xf32>
      %464 = arith.mulf %35, %463 : vector<8x32xf32>
      %c1120 = arith.constant 1120 : index
      %c0_177 = arith.constant 0 : index
      %465 = vector.load %arg2[%c1120, %c0_177] : memref<1816x32xf32, #tpu.memory_space<vmem>>, vector<8x32xf32>
      %466 = arith.subf %464, %465 : vector<8x32xf32>
      %c528 = arith.constant 528 : index
      %c0_178 = arith.constant 0 : index
      %467 = vector.load %arg2[%c528, %c0_178] : memref<1816x32xf32, #tpu.memory_space<vmem>>, vector<8x32xf32>
      %468 = arith.mulf %35, %467 : vector<8x32xf32>
      %c1128 = arith.constant 1128 : index
      %c0_179 = arith.constant 0 : index
      %469 = vector.load %arg2[%c1128, %c0_179] : memref<1816x32xf32, #tpu.memory_space<vmem>>, vector<8x32xf32>
      %470 = arith.subf %468, %469 : vector<8x32xf32>
      %c536 = arith.constant 536 : index
      %c0_180 = arith.constant 0 : index
      %471 = vector.load %arg2[%c536, %c0_180] : memref<1816x32xf32, #tpu.memory_space<vmem>>, vector<8x32xf32>
      %472 = arith.mulf %35, %471 : vector<8x32xf32>
      %c1136 = arith.constant 1136 : index
      %c0_181 = arith.constant 0 : index
      %473 = vector.load %arg2[%c1136, %c0_181] : memref<1816x32xf32, #tpu.memory_space<vmem>>, vector<8x32xf32>
      %474 = arith.subf %472, %473 : vector<8x32xf32>
      %c544 = arith.constant 544 : index
      %c0_182 = arith.constant 0 : index
      %475 = vector.load %arg2[%c544, %c0_182] : memref<1816x32xf32, #tpu.memory_space<vmem>>, vector<8x32xf32>
      %476 = arith.mulf %35, %475 : vector<8x32xf32>
      %c1144 = arith.constant 1144 : index
      %c0_183 = arith.constant 0 : index
      %477 = vector.load %arg2[%c1144, %c0_183] : memref<1816x32xf32, #tpu.memory_space<vmem>>, vector<8x32xf32>
      %478 = arith.subf %476, %477 : vector<8x32xf32>
      %c552 = arith.constant 552 : index
      %c0_184 = arith.constant 0 : index
      %479 = vector.load %arg2[%c552, %c0_184] : memref<1816x32xf32, #tpu.memory_space<vmem>>, vector<8x32xf32>
      %480 = arith.mulf %35, %479 : vector<8x32xf32>
      %c1152 = arith.constant 1152 : index
      %c0_185 = arith.constant 0 : index
      %481 = vector.load %arg2[%c1152, %c0_185] : memref<1816x32xf32, #tpu.memory_space<vmem>>, vector<8x32xf32>
      %482 = arith.subf %480, %481 : vector<8x32xf32>
      %c560 = arith.constant 560 : index
      %c0_186 = arith.constant 0 : index
      %483 = vector.load %arg2[%c560, %c0_186] : memref<1816x32xf32, #tpu.memory_space<vmem>>, vector<8x32xf32>
      %484 = arith.mulf %35, %483 : vector<8x32xf32>
      %c1160 = arith.constant 1160 : index
      %c0_187 = arith.constant 0 : index
      %485 = vector.load %arg2[%c1160, %c0_187] : memref<1816x32xf32, #tpu.memory_space<vmem>>, vector<8x32xf32>
      %486 = arith.subf %484, %485 : vector<8x32xf32>
      %c568 = arith.constant 568 : index
      %c0_188 = arith.constant 0 : index
      %487 = vector.load %arg2[%c568, %c0_188] : memref<1816x32xf32, #tpu.memory_space<vmem>>, vector<8x32xf32>
      %488 = arith.mulf %35, %487 : vector<8x32xf32>
      %c1168 = arith.constant 1168 : index
      %c0_189 = arith.constant 0 : index
      %489 = vector.load %arg2[%c1168, %c0_189] : memref<1816x32xf32, #tpu.memory_space<vmem>>, vector<8x32xf32>
      %490 = arith.subf %488, %489 : vector<8x32xf32>
      %c576 = arith.constant 576 : index
      %c0_190 = arith.constant 0 : index
      %491 = vector.load %arg2[%c576, %c0_190] : memref<1816x32xf32, #tpu.memory_space<vmem>>, vector<8x32xf32>
      %492 = arith.mulf %35, %491 : vector<8x32xf32>
      %c1176 = arith.constant 1176 : index
      %c0_191 = arith.constant 0 : index
      %493 = vector.load %arg2[%c1176, %c0_191] : memref<1816x32xf32, #tpu.memory_space<vmem>>, vector<8x32xf32>
      %494 = arith.subf %492, %493 : vector<8x32xf32>
      %c584 = arith.constant 584 : index
      %c0_192 = arith.constant 0 : index
      %495 = vector.load %arg2[%c584, %c0_192] : memref<1816x32xf32, #tpu.memory_space<vmem>>, vector<8x32xf32>
      %496 = arith.mulf %35, %495 : vector<8x32xf32>
      %c1184 = arith.constant 1184 : index
      %c0_193 = arith.constant 0 : index
      %497 = vector.load %arg2[%c1184, %c0_193] : memref<1816x32xf32, #tpu.memory_space<vmem>>, vector<8x32xf32>
      %498 = arith.subf %496, %497 : vector<8x32xf32>
      %c592 = arith.constant 592 : index
      %c0_194 = arith.constant 0 : index
      %499 = vector.load %arg2[%c592, %c0_194] : memref<1816x32xf32, #tpu.memory_space<vmem>>, vector<8x32xf32>
      %500 = arith.mulf %35, %499 : vector<8x32xf32>
      %c1192 = arith.constant 1192 : index
      %c0_195 = arith.constant 0 : index
      %501 = vector.load %arg2[%c1192, %c0_195] : memref<1816x32xf32, #tpu.memory_space<vmem>>, vector<8x32xf32>
      %502 = arith.subf %500, %501 : vector<8x32xf32>
      %c600 = arith.constant 600 : index
      %c0_196 = arith.constant 0 : index
      %503 = vector.load %arg2[%c600, %c0_196] : memref<1816x32xf32, #tpu.memory_space<vmem>>, vector<8x32xf32>
      %504 = arith.mulf %35, %503 : vector<8x32xf32>
      %c1200 = arith.constant 1200 : index
      %c0_197 = arith.constant 0 : index
      %505 = vector.load %arg2[%c1200, %c0_197] : memref<1816x32xf32, #tpu.memory_space<vmem>>, vector<8x32xf32>
      %506 = arith.subf %504, %505 : vector<8x32xf32>
      %c608 = arith.constant 608 : index
      %c0_198 = arith.constant 0 : index
      %507 = vector.load %arg2[%c608, %c0_198] : memref<1816x32xf32, #tpu.memory_space<vmem>>, vector<8x32xf32>
      %508 = arith.mulf %35, %507 : vector<8x32xf32>
      %c1208 = arith.constant 1208 : index
      %c0_199 = arith.constant 0 : index
      %509 = vector.load %arg2[%c1208, %c0_199] : memref<1816x32xf32, #tpu.memory_space<vmem>>, vector<8x32xf32>
      %510 = arith.subf %508, %509 : vector<8x32xf32>
      %c616 = arith.constant 616 : index
      %c0_200 = arith.constant 0 : index
      %511 = vector.load %arg2[%c616, %c0_200] : memref<1816x32xf32, #tpu.memory_space<vmem>>, vector<8x32xf32>
      %512 = arith.mulf %35, %511 : vector<8x32xf32>
      %c1216 = arith.constant 1216 : index
      %c0_201 = arith.constant 0 : index
      %513 = vector.load %arg2[%c1216, %c0_201] : memref<1816x32xf32, #tpu.memory_space<vmem>>, vector<8x32xf32>
      %514 = arith.subf %512, %513 : vector<8x32xf32>
      %c624 = arith.constant 624 : index
      %c0_202 = arith.constant 0 : index
      %515 = vector.load %arg2[%c624, %c0_202] : memref<1816x32xf32, #tpu.memory_space<vmem>>, vector<8x32xf32>
      %516 = arith.mulf %35, %515 : vector<8x32xf32>
      %c1224 = arith.constant 1224 : index
      %c0_203 = arith.constant 0 : index
      %517 = vector.load %arg2[%c1224, %c0_203] : memref<1816x32xf32, #tpu.memory_space<vmem>>, vector<8x32xf32>
      %518 = arith.subf %516, %517 : vector<8x32xf32>
      %c632 = arith.constant 632 : index
      %c0_204 = arith.constant 0 : index
      %519 = vector.load %arg2[%c632, %c0_204] : memref<1816x32xf32, #tpu.memory_space<vmem>>, vector<8x32xf32>
      %520 = arith.mulf %35, %519 : vector<8x32xf32>
      %c1232 = arith.constant 1232 : index
      %c0_205 = arith.constant 0 : index
      %521 = vector.load %arg2[%c1232, %c0_205] : memref<1816x32xf32, #tpu.memory_space<vmem>>, vector<8x32xf32>
      %522 = arith.subf %520, %521 : vector<8x32xf32>
      %523 = arith.mulf %426, %302 : vector<8x32xf32>
      %cst_206 = arith.constant 1.000000e+00 : f32
      %524 = vector.broadcast %cst_206 : f32 to vector<8x32xf32>
      %525 = arith.subf %524, %430 : vector<8x32xf32>
      %526 = arith.mulf %525, %307 : vector<8x32xf32>
      %527 = arith.addf %523, %526 : vector<8x32xf32>
      %528 = arith.mulf %430, %307 : vector<8x32xf32>
      %cst_207 = arith.constant 1.000000e+00 : f32
      %529 = vector.broadcast %cst_207 : f32 to vector<8x32xf32>
      %530 = arith.subf %529, %434 : vector<8x32xf32>
      %531 = arith.mulf %530, %312 : vector<8x32xf32>
      %532 = arith.addf %528, %531 : vector<8x32xf32>
      %533 = arith.mulf %434, %312 : vector<8x32xf32>
      %cst_208 = arith.constant 1.000000e+00 : f32
      %534 = vector.broadcast %cst_208 : f32 to vector<8x32xf32>
      %535 = arith.subf %534, %438 : vector<8x32xf32>
      %536 = arith.mulf %535, %317 : vector<8x32xf32>
      %537 = arith.addf %533, %536 : vector<8x32xf32>
      %538 = arith.mulf %438, %317 : vector<8x32xf32>
      %cst_209 = arith.constant 1.000000e+00 : f32
      %539 = vector.broadcast %cst_209 : f32 to vector<8x32xf32>
      %540 = arith.subf %539, %442 : vector<8x32xf32>
      %541 = arith.mulf %540, %322 : vector<8x32xf32>
      %542 = arith.addf %538, %541 : vector<8x32xf32>
      %543 = arith.mulf %442, %322 : vector<8x32xf32>
      %cst_210 = arith.constant 1.000000e+00 : f32
      %544 = vector.broadcast %cst_210 : f32 to vector<8x32xf32>
      %545 = arith.subf %544, %446 : vector<8x32xf32>
      %546 = arith.mulf %545, %327 : vector<8x32xf32>
      %547 = arith.addf %543, %546 : vector<8x32xf32>
      %548 = arith.mulf %446, %327 : vector<8x32xf32>
      %cst_211 = arith.constant 1.000000e+00 : f32
      %549 = vector.broadcast %cst_211 : f32 to vector<8x32xf32>
      %550 = arith.subf %549, %450 : vector<8x32xf32>
      %551 = arith.mulf %550, %332 : vector<8x32xf32>
      %552 = arith.addf %548, %551 : vector<8x32xf32>
      %553 = arith.mulf %450, %332 : vector<8x32xf32>
      %cst_212 = arith.constant 1.000000e+00 : f32
      %554 = vector.broadcast %cst_212 : f32 to vector<8x32xf32>
      %555 = arith.subf %554, %454 : vector<8x32xf32>
      %556 = arith.mulf %555, %337 : vector<8x32xf32>
      %557 = arith.addf %553, %556 : vector<8x32xf32>
      %558 = arith.mulf %454, %337 : vector<8x32xf32>
      %cst_213 = arith.constant 1.000000e+00 : f32
      %559 = vector.broadcast %cst_213 : f32 to vector<8x32xf32>
      %560 = arith.subf %559, %458 : vector<8x32xf32>
      %561 = arith.mulf %560, %342 : vector<8x32xf32>
      %562 = arith.addf %558, %561 : vector<8x32xf32>
      %563 = arith.mulf %458, %342 : vector<8x32xf32>
      %cst_214 = arith.constant 1.000000e+00 : f32
      %564 = vector.broadcast %cst_214 : f32 to vector<8x32xf32>
      %565 = arith.subf %564, %462 : vector<8x32xf32>
      %566 = arith.mulf %565, %347 : vector<8x32xf32>
      %567 = arith.addf %563, %566 : vector<8x32xf32>
      %568 = arith.mulf %462, %347 : vector<8x32xf32>
      %cst_215 = arith.constant 1.000000e+00 : f32
      %569 = vector.broadcast %cst_215 : f32 to vector<8x32xf32>
      %570 = arith.subf %569, %466 : vector<8x32xf32>
      %571 = arith.mulf %570, %352 : vector<8x32xf32>
      %572 = arith.addf %568, %571 : vector<8x32xf32>
      %573 = arith.mulf %466, %352 : vector<8x32xf32>
      %cst_216 = arith.constant 1.000000e+00 : f32
      %574 = vector.broadcast %cst_216 : f32 to vector<8x32xf32>
      %575 = arith.subf %574, %470 : vector<8x32xf32>
      %576 = arith.mulf %575, %357 : vector<8x32xf32>
      %577 = arith.addf %573, %576 : vector<8x32xf32>
      %578 = arith.mulf %470, %357 : vector<8x32xf32>
      %cst_217 = arith.constant 1.000000e+00 : f32
      %579 = vector.broadcast %cst_217 : f32 to vector<8x32xf32>
      %580 = arith.subf %579, %474 : vector<8x32xf32>
      %581 = arith.mulf %580, %362 : vector<8x32xf32>
      %582 = arith.addf %578, %581 : vector<8x32xf32>
      %583 = arith.mulf %474, %362 : vector<8x32xf32>
      %cst_218 = arith.constant 1.000000e+00 : f32
      %584 = vector.broadcast %cst_218 : f32 to vector<8x32xf32>
      %585 = arith.subf %584, %478 : vector<8x32xf32>
      %586 = arith.mulf %585, %367 : vector<8x32xf32>
      %587 = arith.addf %583, %586 : vector<8x32xf32>
      %588 = arith.mulf %478, %367 : vector<8x32xf32>
      %cst_219 = arith.constant 1.000000e+00 : f32
      %589 = vector.broadcast %cst_219 : f32 to vector<8x32xf32>
      %590 = arith.subf %589, %482 : vector<8x32xf32>
      %591 = arith.mulf %590, %372 : vector<8x32xf32>
      %592 = arith.addf %588, %591 : vector<8x32xf32>
      %593 = arith.mulf %482, %372 : vector<8x32xf32>
      %cst_220 = arith.constant 1.000000e+00 : f32
      %594 = vector.broadcast %cst_220 : f32 to vector<8x32xf32>
      %595 = arith.subf %594, %486 : vector<8x32xf32>
      %596 = arith.mulf %595, %377 : vector<8x32xf32>
      %597 = arith.addf %593, %596 : vector<8x32xf32>
      %598 = arith.mulf %486, %377 : vector<8x32xf32>
      %cst_221 = arith.constant 1.000000e+00 : f32
      %599 = vector.broadcast %cst_221 : f32 to vector<8x32xf32>
      %600 = arith.subf %599, %490 : vector<8x32xf32>
      %601 = arith.mulf %600, %382 : vector<8x32xf32>
      %602 = arith.addf %598, %601 : vector<8x32xf32>
      %603 = arith.mulf %490, %382 : vector<8x32xf32>
      %cst_222 = arith.constant 1.000000e+00 : f32
      %604 = vector.broadcast %cst_222 : f32 to vector<8x32xf32>
      %605 = arith.subf %604, %494 : vector<8x32xf32>
      %606 = arith.mulf %605, %387 : vector<8x32xf32>
      %607 = arith.addf %603, %606 : vector<8x32xf32>
      %608 = arith.mulf %494, %387 : vector<8x32xf32>
      %cst_223 = arith.constant 1.000000e+00 : f32
      %609 = vector.broadcast %cst_223 : f32 to vector<8x32xf32>
      %610 = arith.subf %609, %498 : vector<8x32xf32>
      %611 = arith.mulf %610, %392 : vector<8x32xf32>
      %612 = arith.addf %608, %611 : vector<8x32xf32>
      %613 = arith.mulf %498, %392 : vector<8x32xf32>
      %cst_224 = arith.constant 1.000000e+00 : f32
      %614 = vector.broadcast %cst_224 : f32 to vector<8x32xf32>
      %615 = arith.subf %614, %502 : vector<8x32xf32>
      %616 = arith.mulf %615, %397 : vector<8x32xf32>
      %617 = arith.addf %613, %616 : vector<8x32xf32>
      %618 = arith.mulf %502, %397 : vector<8x32xf32>
      %cst_225 = arith.constant 1.000000e+00 : f32
      %619 = vector.broadcast %cst_225 : f32 to vector<8x32xf32>
      %620 = arith.subf %619, %506 : vector<8x32xf32>
      %621 = arith.mulf %620, %402 : vector<8x32xf32>
      %622 = arith.addf %618, %621 : vector<8x32xf32>
      %623 = arith.mulf %506, %402 : vector<8x32xf32>
      %cst_226 = arith.constant 1.000000e+00 : f32
      %624 = vector.broadcast %cst_226 : f32 to vector<8x32xf32>
      %625 = arith.subf %624, %510 : vector<8x32xf32>
      %626 = arith.mulf %625, %407 : vector<8x32xf32>
      %627 = arith.addf %623, %626 : vector<8x32xf32>
      %628 = arith.mulf %510, %407 : vector<8x32xf32>
      %cst_227 = arith.constant 1.000000e+00 : f32
      %629 = vector.broadcast %cst_227 : f32 to vector<8x32xf32>
      %630 = arith.subf %629, %514 : vector<8x32xf32>
      %631 = arith.mulf %630, %412 : vector<8x32xf32>
      %632 = arith.addf %628, %631 : vector<8x32xf32>
      %633 = arith.mulf %514, %412 : vector<8x32xf32>
      %cst_228 = arith.constant 1.000000e+00 : f32
      %634 = vector.broadcast %cst_228 : f32 to vector<8x32xf32>
      %635 = arith.subf %634, %518 : vector<8x32xf32>
      %636 = arith.mulf %635, %417 : vector<8x32xf32>
      %637 = arith.addf %633, %636 : vector<8x32xf32>
      %638 = arith.mulf %518, %417 : vector<8x32xf32>
      %cst_229 = arith.constant 1.000000e+00 : f32
      %639 = vector.broadcast %cst_229 : f32 to vector<8x32xf32>
      %640 = arith.subf %639, %522 : vector<8x32xf32>
      %641 = arith.mulf %640, %422 : vector<8x32xf32>
      %642 = arith.addf %638, %641 : vector<8x32xf32>
      %c640 = arith.constant 640 : index
      %c0_230 = arith.constant 0 : index
      %643 = vector.load %arg2[%c640, %c0_230] : memref<1816x32xf32, #tpu.memory_space<vmem>>, vector<8x32xf32>
      %644 = arith.mulf %35, %643 : vector<8x32xf32>
      %c1240 = arith.constant 1240 : index
      %c0_231 = arith.constant 0 : index
      %645 = vector.load %arg2[%c1240, %c0_231] : memref<1816x32xf32, #tpu.memory_space<vmem>>, vector<8x32xf32>
      %646 = arith.subf %644, %645 : vector<8x32xf32>
      %c1432 = arith.constant 1432 : index
      %c0_232 = arith.constant 0 : index
      %647 = vector.load %arg2[%c1432, %c0_232] : memref<1816x32xf32, #tpu.memory_space<vmem>>, vector<8x32xf32>
      %c1624 = arith.constant 1624 : index
      %c0_233 = arith.constant 0 : index
      %648 = vector.load %arg2[%c1624, %c0_233] : memref<1816x32xf32, #tpu.memory_space<vmem>>, vector<8x32xf32>
      %649 = arith.mulf %646, %648 : vector<8x32xf32>
      %650 = arith.addf %647, %649 : vector<8x32xf32>
      %651 = arith.mulf %650, %527 : vector<8x32xf32>
      %c648 = arith.constant 648 : index
      %c0_234 = arith.constant 0 : index
      %652 = vector.load %arg2[%c648, %c0_234] : memref<1816x32xf32, #tpu.memory_space<vmem>>, vector<8x32xf32>
      %653 = arith.mulf %35, %652 : vector<8x32xf32>
      %c1248 = arith.constant 1248 : index
      %c0_235 = arith.constant 0 : index
      %654 = vector.load %arg2[%c1248, %c0_235] : memref<1816x32xf32, #tpu.memory_space<vmem>>, vector<8x32xf32>
      %655 = arith.subf %653, %654 : vector<8x32xf32>
      %c1440 = arith.constant 1440 : index
      %c0_236 = arith.constant 0 : index
      %656 = vector.load %arg2[%c1440, %c0_236] : memref<1816x32xf32, #tpu.memory_space<vmem>>, vector<8x32xf32>
      %c1632 = arith.constant 1632 : index
      %c0_237 = arith.constant 0 : index
      %657 = vector.load %arg2[%c1632, %c0_237] : memref<1816x32xf32, #tpu.memory_space<vmem>>, vector<8x32xf32>
      %658 = arith.mulf %655, %657 : vector<8x32xf32>
      %659 = arith.addf %656, %658 : vector<8x32xf32>
      %660 = arith.mulf %659, %532 : vector<8x32xf32>
      %c656 = arith.constant 656 : index
      %c0_238 = arith.constant 0 : index
      %661 = vector.load %arg2[%c656, %c0_238] : memref<1816x32xf32, #tpu.memory_space<vmem>>, vector<8x32xf32>
      %662 = arith.mulf %35, %661 : vector<8x32xf32>
      %c1256 = arith.constant 1256 : index
      %c0_239 = arith.constant 0 : index
      %663 = vector.load %arg2[%c1256, %c0_239] : memref<1816x32xf32, #tpu.memory_space<vmem>>, vector<8x32xf32>
      %664 = arith.subf %662, %663 : vector<8x32xf32>
      %c1448 = arith.constant 1448 : index
      %c0_240 = arith.constant 0 : index
      %665 = vector.load %arg2[%c1448, %c0_240] : memref<1816x32xf32, #tpu.memory_space<vmem>>, vector<8x32xf32>
      %c1640 = arith.constant 1640 : index
      %c0_241 = arith.constant 0 : index
      %666 = vector.load %arg2[%c1640, %c0_241] : memref<1816x32xf32, #tpu.memory_space<vmem>>, vector<8x32xf32>
      %667 = arith.mulf %664, %666 : vector<8x32xf32>
      %668 = arith.addf %665, %667 : vector<8x32xf32>
      %669 = arith.mulf %668, %537 : vector<8x32xf32>
      %c664 = arith.constant 664 : index
      %c0_242 = arith.constant 0 : index
      %670 = vector.load %arg2[%c664, %c0_242] : memref<1816x32xf32, #tpu.memory_space<vmem>>, vector<8x32xf32>
      %671 = arith.mulf %35, %670 : vector<8x32xf32>
      %c1264 = arith.constant 1264 : index
      %c0_243 = arith.constant 0 : index
      %672 = vector.load %arg2[%c1264, %c0_243] : memref<1816x32xf32, #tpu.memory_space<vmem>>, vector<8x32xf32>
      %673 = arith.subf %671, %672 : vector<8x32xf32>
      %c1456 = arith.constant 1456 : index
      %c0_244 = arith.constant 0 : index
      %674 = vector.load %arg2[%c1456, %c0_244] : memref<1816x32xf32, #tpu.memory_space<vmem>>, vector<8x32xf32>
      %c1648 = arith.constant 1648 : index
      %c0_245 = arith.constant 0 : index
      %675 = vector.load %arg2[%c1648, %c0_245] : memref<1816x32xf32, #tpu.memory_space<vmem>>, vector<8x32xf32>
      %676 = arith.mulf %673, %675 : vector<8x32xf32>
      %677 = arith.addf %674, %676 : vector<8x32xf32>
      %678 = arith.mulf %677, %542 : vector<8x32xf32>
      %c672 = arith.constant 672 : index
      %c0_246 = arith.constant 0 : index
      %679 = vector.load %arg2[%c672, %c0_246] : memref<1816x32xf32, #tpu.memory_space<vmem>>, vector<8x32xf32>
      %680 = arith.mulf %35, %679 : vector<8x32xf32>
      %c1272 = arith.constant 1272 : index
      %c0_247 = arith.constant 0 : index
      %681 = vector.load %arg2[%c1272, %c0_247] : memref<1816x32xf32, #tpu.memory_space<vmem>>, vector<8x32xf32>
      %682 = arith.subf %680, %681 : vector<8x32xf32>
      %c1464 = arith.constant 1464 : index
      %c0_248 = arith.constant 0 : index
      %683 = vector.load %arg2[%c1464, %c0_248] : memref<1816x32xf32, #tpu.memory_space<vmem>>, vector<8x32xf32>
      %c1656 = arith.constant 1656 : index
      %c0_249 = arith.constant 0 : index
      %684 = vector.load %arg2[%c1656, %c0_249] : memref<1816x32xf32, #tpu.memory_space<vmem>>, vector<8x32xf32>
      %685 = arith.mulf %682, %684 : vector<8x32xf32>
      %686 = arith.addf %683, %685 : vector<8x32xf32>
      %687 = arith.mulf %686, %547 : vector<8x32xf32>
      %c680 = arith.constant 680 : index
      %c0_250 = arith.constant 0 : index
      %688 = vector.load %arg2[%c680, %c0_250] : memref<1816x32xf32, #tpu.memory_space<vmem>>, vector<8x32xf32>
      %689 = arith.mulf %35, %688 : vector<8x32xf32>
      %c1280 = arith.constant 1280 : index
      %c0_251 = arith.constant 0 : index
      %690 = vector.load %arg2[%c1280, %c0_251] : memref<1816x32xf32, #tpu.memory_space<vmem>>, vector<8x32xf32>
      %691 = arith.subf %689, %690 : vector<8x32xf32>
      %c1472 = arith.constant 1472 : index
      %c0_252 = arith.constant 0 : index
      %692 = vector.load %arg2[%c1472, %c0_252] : memref<1816x32xf32, #tpu.memory_space<vmem>>, vector<8x32xf32>
      %c1664 = arith.constant 1664 : index
      %c0_253 = arith.constant 0 : index
      %693 = vector.load %arg2[%c1664, %c0_253] : memref<1816x32xf32, #tpu.memory_space<vmem>>, vector<8x32xf32>
      %694 = arith.mulf %691, %693 : vector<8x32xf32>
      %695 = arith.addf %692, %694 : vector<8x32xf32>
      %696 = arith.mulf %695, %552 : vector<8x32xf32>
      %c688 = arith.constant 688 : index
      %c0_254 = arith.constant 0 : index
      %697 = vector.load %arg2[%c688, %c0_254] : memref<1816x32xf32, #tpu.memory_space<vmem>>, vector<8x32xf32>
      %698 = arith.mulf %35, %697 : vector<8x32xf32>
      %c1288 = arith.constant 1288 : index
      %c0_255 = arith.constant 0 : index
      %699 = vector.load %arg2[%c1288, %c0_255] : memref<1816x32xf32, #tpu.memory_space<vmem>>, vector<8x32xf32>
      %700 = arith.subf %698, %699 : vector<8x32xf32>
      %c1480 = arith.constant 1480 : index
      %c0_256 = arith.constant 0 : index
      %701 = vector.load %arg2[%c1480, %c0_256] : memref<1816x32xf32, #tpu.memory_space<vmem>>, vector<8x32xf32>
      %c1672 = arith.constant 1672 : index
      %c0_257 = arith.constant 0 : index
      %702 = vector.load %arg2[%c1672, %c0_257] : memref<1816x32xf32, #tpu.memory_space<vmem>>, vector<8x32xf32>
      %703 = arith.mulf %700, %702 : vector<8x32xf32>
      %704 = arith.addf %701, %703 : vector<8x32xf32>
      %705 = arith.mulf %704, %557 : vector<8x32xf32>
      %c696 = arith.constant 696 : index
      %c0_258 = arith.constant 0 : index
      %706 = vector.load %arg2[%c696, %c0_258] : memref<1816x32xf32, #tpu.memory_space<vmem>>, vector<8x32xf32>
      %707 = arith.mulf %35, %706 : vector<8x32xf32>
      %c1296 = arith.constant 1296 : index
      %c0_259 = arith.constant 0 : index
      %708 = vector.load %arg2[%c1296, %c0_259] : memref<1816x32xf32, #tpu.memory_space<vmem>>, vector<8x32xf32>
      %709 = arith.subf %707, %708 : vector<8x32xf32>
      %c1488 = arith.constant 1488 : index
      %c0_260 = arith.constant 0 : index
      %710 = vector.load %arg2[%c1488, %c0_260] : memref<1816x32xf32, #tpu.memory_space<vmem>>, vector<8x32xf32>
      %c1680 = arith.constant 1680 : index
      %c0_261 = arith.constant 0 : index
      %711 = vector.load %arg2[%c1680, %c0_261] : memref<1816x32xf32, #tpu.memory_space<vmem>>, vector<8x32xf32>
      %712 = arith.mulf %709, %711 : vector<8x32xf32>
      %713 = arith.addf %710, %712 : vector<8x32xf32>
      %714 = arith.mulf %713, %562 : vector<8x32xf32>
      %c704 = arith.constant 704 : index
      %c0_262 = arith.constant 0 : index
      %715 = vector.load %arg2[%c704, %c0_262] : memref<1816x32xf32, #tpu.memory_space<vmem>>, vector<8x32xf32>
      %716 = arith.mulf %35, %715 : vector<8x32xf32>
      %c1304 = arith.constant 1304 : index
      %c0_263 = arith.constant 0 : index
      %717 = vector.load %arg2[%c1304, %c0_263] : memref<1816x32xf32, #tpu.memory_space<vmem>>, vector<8x32xf32>
      %718 = arith.subf %716, %717 : vector<8x32xf32>
      %c1496 = arith.constant 1496 : index
      %c0_264 = arith.constant 0 : index
      %719 = vector.load %arg2[%c1496, %c0_264] : memref<1816x32xf32, #tpu.memory_space<vmem>>, vector<8x32xf32>
      %c1688 = arith.constant 1688 : index
      %c0_265 = arith.constant 0 : index
      %720 = vector.load %arg2[%c1688, %c0_265] : memref<1816x32xf32, #tpu.memory_space<vmem>>, vector<8x32xf32>
      %721 = arith.mulf %718, %720 : vector<8x32xf32>
      %722 = arith.addf %719, %721 : vector<8x32xf32>
      %723 = arith.mulf %722, %567 : vector<8x32xf32>
      %c712 = arith.constant 712 : index
      %c0_266 = arith.constant 0 : index
      %724 = vector.load %arg2[%c712, %c0_266] : memref<1816x32xf32, #tpu.memory_space<vmem>>, vector<8x32xf32>
      %725 = arith.mulf %35, %724 : vector<8x32xf32>
      %c1312 = arith.constant 1312 : index
      %c0_267 = arith.constant 0 : index
      %726 = vector.load %arg2[%c1312, %c0_267] : memref<1816x32xf32, #tpu.memory_space<vmem>>, vector<8x32xf32>
      %727 = arith.subf %725, %726 : vector<8x32xf32>
      %c1504 = arith.constant 1504 : index
      %c0_268 = arith.constant 0 : index
      %728 = vector.load %arg2[%c1504, %c0_268] : memref<1816x32xf32, #tpu.memory_space<vmem>>, vector<8x32xf32>
      %c1696 = arith.constant 1696 : index
      %c0_269 = arith.constant 0 : index
      %729 = vector.load %arg2[%c1696, %c0_269] : memref<1816x32xf32, #tpu.memory_space<vmem>>, vector<8x32xf32>
      %730 = arith.mulf %727, %729 : vector<8x32xf32>
      %731 = arith.addf %728, %730 : vector<8x32xf32>
      %732 = arith.mulf %731, %572 : vector<8x32xf32>
      %c720 = arith.constant 720 : index
      %c0_270 = arith.constant 0 : index
      %733 = vector.load %arg2[%c720, %c0_270] : memref<1816x32xf32, #tpu.memory_space<vmem>>, vector<8x32xf32>
      %734 = arith.mulf %35, %733 : vector<8x32xf32>
      %c1320 = arith.constant 1320 : index
      %c0_271 = arith.constant 0 : index
      %735 = vector.load %arg2[%c1320, %c0_271] : memref<1816x32xf32, #tpu.memory_space<vmem>>, vector<8x32xf32>
      %736 = arith.subf %734, %735 : vector<8x32xf32>
      %c1512 = arith.constant 1512 : index
      %c0_272 = arith.constant 0 : index
      %737 = vector.load %arg2[%c1512, %c0_272] : memref<1816x32xf32, #tpu.memory_space<vmem>>, vector<8x32xf32>
      %c1704 = arith.constant 1704 : index
      %c0_273 = arith.constant 0 : index
      %738 = vector.load %arg2[%c1704, %c0_273] : memref<1816x32xf32, #tpu.memory_space<vmem>>, vector<8x32xf32>
      %739 = arith.mulf %736, %738 : vector<8x32xf32>
      %740 = arith.addf %737, %739 : vector<8x32xf32>
      %741 = arith.mulf %740, %577 : vector<8x32xf32>
      %c728 = arith.constant 728 : index
      %c0_274 = arith.constant 0 : index
      %742 = vector.load %arg2[%c728, %c0_274] : memref<1816x32xf32, #tpu.memory_space<vmem>>, vector<8x32xf32>
      %743 = arith.mulf %35, %742 : vector<8x32xf32>
      %c1328 = arith.constant 1328 : index
      %c0_275 = arith.constant 0 : index
      %744 = vector.load %arg2[%c1328, %c0_275] : memref<1816x32xf32, #tpu.memory_space<vmem>>, vector<8x32xf32>
      %745 = arith.subf %743, %744 : vector<8x32xf32>
      %c1520 = arith.constant 1520 : index
      %c0_276 = arith.constant 0 : index
      %746 = vector.load %arg2[%c1520, %c0_276] : memref<1816x32xf32, #tpu.memory_space<vmem>>, vector<8x32xf32>
      %c1712 = arith.constant 1712 : index
      %c0_277 = arith.constant 0 : index
      %747 = vector.load %arg2[%c1712, %c0_277] : memref<1816x32xf32, #tpu.memory_space<vmem>>, vector<8x32xf32>
      %748 = arith.mulf %745, %747 : vector<8x32xf32>
      %749 = arith.addf %746, %748 : vector<8x32xf32>
      %750 = arith.mulf %749, %582 : vector<8x32xf32>
      %c736 = arith.constant 736 : index
      %c0_278 = arith.constant 0 : index
      %751 = vector.load %arg2[%c736, %c0_278] : memref<1816x32xf32, #tpu.memory_space<vmem>>, vector<8x32xf32>
      %752 = arith.mulf %35, %751 : vector<8x32xf32>
      %c1336 = arith.constant 1336 : index
      %c0_279 = arith.constant 0 : index
      %753 = vector.load %arg2[%c1336, %c0_279] : memref<1816x32xf32, #tpu.memory_space<vmem>>, vector<8x32xf32>
      %754 = arith.subf %752, %753 : vector<8x32xf32>
      %c1528 = arith.constant 1528 : index
      %c0_280 = arith.constant 0 : index
      %755 = vector.load %arg2[%c1528, %c0_280] : memref<1816x32xf32, #tpu.memory_space<vmem>>, vector<8x32xf32>
      %c1720 = arith.constant 1720 : index
      %c0_281 = arith.constant 0 : index
      %756 = vector.load %arg2[%c1720, %c0_281] : memref<1816x32xf32, #tpu.memory_space<vmem>>, vector<8x32xf32>
      %757 = arith.mulf %754, %756 : vector<8x32xf32>
      %758 = arith.addf %755, %757 : vector<8x32xf32>
      %759 = arith.mulf %758, %587 : vector<8x32xf32>
      %c744 = arith.constant 744 : index
      %c0_282 = arith.constant 0 : index
      %760 = vector.load %arg2[%c744, %c0_282] : memref<1816x32xf32, #tpu.memory_space<vmem>>, vector<8x32xf32>
      %761 = arith.mulf %35, %760 : vector<8x32xf32>
      %c1344 = arith.constant 1344 : index
      %c0_283 = arith.constant 0 : index
      %762 = vector.load %arg2[%c1344, %c0_283] : memref<1816x32xf32, #tpu.memory_space<vmem>>, vector<8x32xf32>
      %763 = arith.subf %761, %762 : vector<8x32xf32>
      %c1536 = arith.constant 1536 : index
      %c0_284 = arith.constant 0 : index
      %764 = vector.load %arg2[%c1536, %c0_284] : memref<1816x32xf32, #tpu.memory_space<vmem>>, vector<8x32xf32>
      %c1728 = arith.constant 1728 : index
      %c0_285 = arith.constant 0 : index
      %765 = vector.load %arg2[%c1728, %c0_285] : memref<1816x32xf32, #tpu.memory_space<vmem>>, vector<8x32xf32>
      %766 = arith.mulf %763, %765 : vector<8x32xf32>
      %767 = arith.addf %764, %766 : vector<8x32xf32>
      %768 = arith.mulf %767, %592 : vector<8x32xf32>
      %c752 = arith.constant 752 : index
      %c0_286 = arith.constant 0 : index
      %769 = vector.load %arg2[%c752, %c0_286] : memref<1816x32xf32, #tpu.memory_space<vmem>>, vector<8x32xf32>
      %770 = arith.mulf %35, %769 : vector<8x32xf32>
      %c1352 = arith.constant 1352 : index
      %c0_287 = arith.constant 0 : index
      %771 = vector.load %arg2[%c1352, %c0_287] : memref<1816x32xf32, #tpu.memory_space<vmem>>, vector<8x32xf32>
      %772 = arith.subf %770, %771 : vector<8x32xf32>
      %c1544 = arith.constant 1544 : index
      %c0_288 = arith.constant 0 : index
      %773 = vector.load %arg2[%c1544, %c0_288] : memref<1816x32xf32, #tpu.memory_space<vmem>>, vector<8x32xf32>
      %c1736 = arith.constant 1736 : index
      %c0_289 = arith.constant 0 : index
      %774 = vector.load %arg2[%c1736, %c0_289] : memref<1816x32xf32, #tpu.memory_space<vmem>>, vector<8x32xf32>
      %775 = arith.mulf %772, %774 : vector<8x32xf32>
      %776 = arith.addf %773, %775 : vector<8x32xf32>
      %777 = arith.mulf %776, %597 : vector<8x32xf32>
      %c760 = arith.constant 760 : index
      %c0_290 = arith.constant 0 : index
      %778 = vector.load %arg2[%c760, %c0_290] : memref<1816x32xf32, #tpu.memory_space<vmem>>, vector<8x32xf32>
      %779 = arith.mulf %35, %778 : vector<8x32xf32>
      %c1360 = arith.constant 1360 : index
      %c0_291 = arith.constant 0 : index
      %780 = vector.load %arg2[%c1360, %c0_291] : memref<1816x32xf32, #tpu.memory_space<vmem>>, vector<8x32xf32>
      %781 = arith.subf %779, %780 : vector<8x32xf32>
      %c1552 = arith.constant 1552 : index
      %c0_292 = arith.constant 0 : index
      %782 = vector.load %arg2[%c1552, %c0_292] : memref<1816x32xf32, #tpu.memory_space<vmem>>, vector<8x32xf32>
      %c1744 = arith.constant 1744 : index
      %c0_293 = arith.constant 0 : index
      %783 = vector.load %arg2[%c1744, %c0_293] : memref<1816x32xf32, #tpu.memory_space<vmem>>, vector<8x32xf32>
      %784 = arith.mulf %781, %783 : vector<8x32xf32>
      %785 = arith.addf %782, %784 : vector<8x32xf32>
      %786 = arith.mulf %785, %602 : vector<8x32xf32>
      %c768 = arith.constant 768 : index
      %c0_294 = arith.constant 0 : index
      %787 = vector.load %arg2[%c768, %c0_294] : memref<1816x32xf32, #tpu.memory_space<vmem>>, vector<8x32xf32>
      %788 = arith.mulf %35, %787 : vector<8x32xf32>
      %c1368 = arith.constant 1368 : index
      %c0_295 = arith.constant 0 : index
      %789 = vector.load %arg2[%c1368, %c0_295] : memref<1816x32xf32, #tpu.memory_space<vmem>>, vector<8x32xf32>
      %790 = arith.subf %788, %789 : vector<8x32xf32>
      %c1560 = arith.constant 1560 : index
      %c0_296 = arith.constant 0 : index
      %791 = vector.load %arg2[%c1560, %c0_296] : memref<1816x32xf32, #tpu.memory_space<vmem>>, vector<8x32xf32>
      %c1752 = arith.constant 1752 : index
      %c0_297 = arith.constant 0 : index
      %792 = vector.load %arg2[%c1752, %c0_297] : memref<1816x32xf32, #tpu.memory_space<vmem>>, vector<8x32xf32>
      %793 = arith.mulf %790, %792 : vector<8x32xf32>
      %794 = arith.addf %791, %793 : vector<8x32xf32>
      %795 = arith.mulf %794, %607 : vector<8x32xf32>
      %c776 = arith.constant 776 : index
      %c0_298 = arith.constant 0 : index
      %796 = vector.load %arg2[%c776, %c0_298] : memref<1816x32xf32, #tpu.memory_space<vmem>>, vector<8x32xf32>
      %797 = arith.mulf %35, %796 : vector<8x32xf32>
      %c1376 = arith.constant 1376 : index
      %c0_299 = arith.constant 0 : index
      %798 = vector.load %arg2[%c1376, %c0_299] : memref<1816x32xf32, #tpu.memory_space<vmem>>, vector<8x32xf32>
      %799 = arith.subf %797, %798 : vector<8x32xf32>
      %c1568 = arith.constant 1568 : index
      %c0_300 = arith.constant 0 : index
      %800 = vector.load %arg2[%c1568, %c0_300] : memref<1816x32xf32, #tpu.memory_space<vmem>>, vector<8x32xf32>
      %c1760 = arith.constant 1760 : index
      %c0_301 = arith.constant 0 : index
      %801 = vector.load %arg2[%c1760, %c0_301] : memref<1816x32xf32, #tpu.memory_space<vmem>>, vector<8x32xf32>
      %802 = arith.mulf %799, %801 : vector<8x32xf32>
      %803 = arith.addf %800, %802 : vector<8x32xf32>
      %804 = arith.mulf %803, %612 : vector<8x32xf32>
      %c784 = arith.constant 784 : index
      %c0_302 = arith.constant 0 : index
      %805 = vector.load %arg2[%c784, %c0_302] : memref<1816x32xf32, #tpu.memory_space<vmem>>, vector<8x32xf32>
      %806 = arith.mulf %35, %805 : vector<8x32xf32>
      %c1384 = arith.constant 1384 : index
      %c0_303 = arith.constant 0 : index
      %807 = vector.load %arg2[%c1384, %c0_303] : memref<1816x32xf32, #tpu.memory_space<vmem>>, vector<8x32xf32>
      %808 = arith.subf %806, %807 : vector<8x32xf32>
      %c1576 = arith.constant 1576 : index
      %c0_304 = arith.constant 0 : index
      %809 = vector.load %arg2[%c1576, %c0_304] : memref<1816x32xf32, #tpu.memory_space<vmem>>, vector<8x32xf32>
      %c1768 = arith.constant 1768 : index
      %c0_305 = arith.constant 0 : index
      %810 = vector.load %arg2[%c1768, %c0_305] : memref<1816x32xf32, #tpu.memory_space<vmem>>, vector<8x32xf32>
      %811 = arith.mulf %808, %810 : vector<8x32xf32>
      %812 = arith.addf %809, %811 : vector<8x32xf32>
      %813 = arith.mulf %812, %617 : vector<8x32xf32>
      %c792 = arith.constant 792 : index
      %c0_306 = arith.constant 0 : index
      %814 = vector.load %arg2[%c792, %c0_306] : memref<1816x32xf32, #tpu.memory_space<vmem>>, vector<8x32xf32>
      %815 = arith.mulf %35, %814 : vector<8x32xf32>
      %c1392 = arith.constant 1392 : index
      %c0_307 = arith.constant 0 : index
      %816 = vector.load %arg2[%c1392, %c0_307] : memref<1816x32xf32, #tpu.memory_space<vmem>>, vector<8x32xf32>
      %817 = arith.subf %815, %816 : vector<8x32xf32>
      %c1584 = arith.constant 1584 : index
      %c0_308 = arith.constant 0 : index
      %818 = vector.load %arg2[%c1584, %c0_308] : memref<1816x32xf32, #tpu.memory_space<vmem>>, vector<8x32xf32>
      %c1776 = arith.constant 1776 : index
      %c0_309 = arith.constant 0 : index
      %819 = vector.load %arg2[%c1776, %c0_309] : memref<1816x32xf32, #tpu.memory_space<vmem>>, vector<8x32xf32>
      %820 = arith.mulf %817, %819 : vector<8x32xf32>
      %821 = arith.addf %818, %820 : vector<8x32xf32>
      %822 = arith.mulf %821, %622 : vector<8x32xf32>
      %c800 = arith.constant 800 : index
      %c0_310 = arith.constant 0 : index
      %823 = vector.load %arg2[%c800, %c0_310] : memref<1816x32xf32, #tpu.memory_space<vmem>>, vector<8x32xf32>
      %824 = arith.mulf %35, %823 : vector<8x32xf32>
      %c1400 = arith.constant 1400 : index
      %c0_311 = arith.constant 0 : index
      %825 = vector.load %arg2[%c1400, %c0_311] : memref<1816x32xf32, #tpu.memory_space<vmem>>, vector<8x32xf32>
      %826 = arith.subf %824, %825 : vector<8x32xf32>
      %c1592 = arith.constant 1592 : index
      %c0_312 = arith.constant 0 : index
      %827 = vector.load %arg2[%c1592, %c0_312] : memref<1816x32xf32, #tpu.memory_space<vmem>>, vector<8x32xf32>
      %c1784 = arith.constant 1784 : index
      %c0_313 = arith.constant 0 : index
      %828 = vector.load %arg2[%c1784, %c0_313] : memref<1816x32xf32, #tpu.memory_space<vmem>>, vector<8x32xf32>
      %829 = arith.mulf %826, %828 : vector<8x32xf32>
      %830 = arith.addf %827, %829 : vector<8x32xf32>
      %831 = arith.mulf %830, %627 : vector<8x32xf32>
      %c808 = arith.constant 808 : index
      %c0_314 = arith.constant 0 : index
      %832 = vector.load %arg2[%c808, %c0_314] : memref<1816x32xf32, #tpu.memory_space<vmem>>, vector<8x32xf32>
      %833 = arith.mulf %35, %832 : vector<8x32xf32>
      %c1408 = arith.constant 1408 : index
      %c0_315 = arith.constant 0 : index
      %834 = vector.load %arg2[%c1408, %c0_315] : memref<1816x32xf32, #tpu.memory_space<vmem>>, vector<8x32xf32>
      %835 = arith.subf %833, %834 : vector<8x32xf32>
      %c1600 = arith.constant 1600 : index
      %c0_316 = arith.constant 0 : index
      %836 = vector.load %arg2[%c1600, %c0_316] : memref<1816x32xf32, #tpu.memory_space<vmem>>, vector<8x32xf32>
      %c1792 = arith.constant 1792 : index
      %c0_317 = arith.constant 0 : index
      %837 = vector.load %arg2[%c1792, %c0_317] : memref<1816x32xf32, #tpu.memory_space<vmem>>, vector<8x32xf32>
      %838 = arith.mulf %835, %837 : vector<8x32xf32>
      %839 = arith.addf %836, %838 : vector<8x32xf32>
      %840 = arith.mulf %839, %632 : vector<8x32xf32>
      %c816 = arith.constant 816 : index
      %c0_318 = arith.constant 0 : index
      %841 = vector.load %arg2[%c816, %c0_318] : memref<1816x32xf32, #tpu.memory_space<vmem>>, vector<8x32xf32>
      %842 = arith.mulf %35, %841 : vector<8x32xf32>
      %c1416 = arith.constant 1416 : index
      %c0_319 = arith.constant 0 : index
      %843 = vector.load %arg2[%c1416, %c0_319] : memref<1816x32xf32, #tpu.memory_space<vmem>>, vector<8x32xf32>
      %844 = arith.subf %842, %843 : vector<8x32xf32>
      %c1608 = arith.constant 1608 : index
      %c0_320 = arith.constant 0 : index
      %845 = vector.load %arg2[%c1608, %c0_320] : memref<1816x32xf32, #tpu.memory_space<vmem>>, vector<8x32xf32>
      %c1800 = arith.constant 1800 : index
      %c0_321 = arith.constant 0 : index
      %846 = vector.load %arg2[%c1800, %c0_321] : memref<1816x32xf32, #tpu.memory_space<vmem>>, vector<8x32xf32>
      %847 = arith.mulf %844, %846 : vector<8x32xf32>
      %848 = arith.addf %845, %847 : vector<8x32xf32>
      %849 = arith.mulf %848, %637 : vector<8x32xf32>
      %c824 = arith.constant 824 : index
      %c0_322 = arith.constant 0 : index
      %850 = vector.load %arg2[%c824, %c0_322] : memref<1816x32xf32, #tpu.memory_space<vmem>>, vector<8x32xf32>
      %851 = arith.mulf %35, %850 : vector<8x32xf32>
      %c1424 = arith.constant 1424 : index
      %c0_323 = arith.constant 0 : index
      %852 = vector.load %arg2[%c1424, %c0_323] : memref<1816x32xf32, #tpu.memory_space<vmem>>, vector<8x32xf32>
      %853 = arith.subf %851, %852 : vector<8x32xf32>
      %c1616 = arith.constant 1616 : index
      %c0_324 = arith.constant 0 : index
      %854 = vector.load %arg2[%c1616, %c0_324] : memref<1816x32xf32, #tpu.memory_space<vmem>>, vector<8x32xf32>
      %c1808 = arith.constant 1808 : index
      %c0_325 = arith.constant 0 : index
      %855 = vector.load %arg2[%c1808, %c0_325] : memref<1816x32xf32, #tpu.memory_space<vmem>>, vector<8x32xf32>
      %856 = arith.mulf %853, %855 : vector<8x32xf32>
      %857 = arith.addf %854, %856 : vector<8x32xf32>
      %858 = arith.mulf %857, %642 : vector<8x32xf32>
      %859 = arith.addf %651, %660 : vector<8x32xf32>
      %860 = arith.addf %669, %678 : vector<8x32xf32>
      %861 = arith.addf %687, %696 : vector<8x32xf32>
      %862 = arith.addf %705, %714 : vector<8x32xf32>
      %863 = arith.addf %723, %732 : vector<8x32xf32>
      %864 = arith.addf %741, %750 : vector<8x32xf32>
      %865 = arith.addf %759, %768 : vector<8x32xf32>
      %866 = arith.addf %777, %786 : vector<8x32xf32>
      %867 = arith.addf %795, %804 : vector<8x32xf32>
      %868 = arith.addf %813, %822 : vector<8x32xf32>
      %869 = arith.addf %831, %840 : vector<8x32xf32>
      %870 = arith.addf %849, %858 : vector<8x32xf32>
      %871 = arith.addf %859, %860 : vector<8x32xf32>
      %872 = arith.addf %861, %862 : vector<8x32xf32>
      %873 = arith.addf %863, %864 : vector<8x32xf32>
      %874 = arith.addf %865, %866 : vector<8x32xf32>
      %875 = arith.addf %867, %868 : vector<8x32xf32>
      %876 = arith.addf %869, %870 : vector<8x32xf32>
      %877 = arith.addf %871, %872 : vector<8x32xf32>
      %878 = arith.addf %873, %874 : vector<8x32xf32>
      %879 = arith.addf %875, %876 : vector<8x32xf32>
      %880 = arith.addf %877, %878 : vector<8x32xf32>
      %881 = arith.addf %880, %879 : vector<8x32xf32>
      %882 = arith.negf %35 : vector<8x32xf32>
      %883 = math.exp %882 : vector<8x32xf32>
      %cst_326 = arith.constant 1.000000e+00 : f32
      %884 = vector.broadcast %cst_326 : f32 to vector<8x32xf32>
      %885 = arith.addf %884, %883 : vector<8x32xf32>
      %886 = arith.divf %884, %885 : vector<8x32xf32>
      %887 = arith.mulf %35, %886 : vector<8x32xf32>
      %888 = arith.addf %881, %887 : vector<8x32xf32>
      %889 = arith.index_cast %13 : i32 to index
      %c0_327 = arith.constant 0 : index
      %890 = vector.load %arg7[%889, %c0_327] : memref<128x32xf32, #tpu.memory_space<vmem>>, vector<8x32xf32>
      tpu.vector_store %arg7[%889, %c0_327], %888 {strides = array<i32>} : memref<128x32xf32, #tpu.memory_space<vmem>>, vector<8x32xf32>,
    }
    %c16_i32_0 = arith.constant 16 : i32
    %c0 = arith.constant 0 : index
    %c0_1 = arith.constant 0 : index
    %1 = vector.load %arg7[%c0, %c0_1] : memref<128x32xf32, #tpu.memory_space<vmem>>, vector<128x32xf32>
    %2 = arith.truncf %1 : vector<128x32xf32> to vector<128x32xbf16>
    %c0_2 = arith.constant 0 : index
    %c0_3 = arith.constant 0 : index
    %3 = vector.load %arg3[%c0_2, %c0_3] : memref<32x64xbf16, #tpu.memory_space<vmem>>, vector<32x64xbf16>
    %cst = arith.constant dense<0.000000e+00> : vector<128x64xf32>
    %4 = tpu.matmul %2, %3, %cst {dimension_numbers = #tpu.dot_dimension_numbers<[1], [0], [0], [1], [0, 0, 1, 1], [], []>} : vector<128x32xbf16>, vector<32x64xbf16>, vector<128x64xf32> -> vector<128x64xf32>
    %c0_4 = arith.constant 0 : index
    %c0_5 = arith.constant 0 : index
    %5 = vector.load %arg9[%c0_4, %c0_5] : memref<128x64xf32, #tpu.memory_space<vmem>>, vector<128x64xf32>
    tpu.vector_store %arg9[%c0_4, %c0_5], %4 {strides = array<i32>} : memref<128x64xf32, #tpu.memory_space<vmem>>, vector<128x64xf32>,
    %c0_i32_6 = arith.constant 0 : i32
    %c16_i32_7 = arith.constant 16 : i32
    %6 = arith.addi %c0_i32_6, %c16_i32_7 : i32
    %c1_i32_8 = arith.constant 1 : i32
    scf.for %arg10 = %c0_i32_6 to %6 step %c1_i32_8  : i32 {
      %c8_i32 = arith.constant 8 : i32
      %12 = arith.muli %arg10, %c8_i32 : i32
      %13 = tpu.assume_multiple %12, 8 : i32
      %14 = arith.index_cast %13 : i32 to index
      %c0_17 = arith.constant 0 : index
      %15 = vector.load %arg9[%14, %c0_17] : memref<128x64xf32, #tpu.memory_space<vmem>>, vector<8x64xf32>
      %cst_18 = arith.constant dense<0.000000e+00> : vector<8xf32>
      %16 = vector.multi_reduction <add>, %15, %cst_18 [1] : vector<8x64xf32> to vector<8xf32>
      %17 = vector.shape_cast %16 : vector<8xf32> to vector<8x1xf32>
      %cst_19 = arith.constant 6.400000e+01 : f32
      %18 = vector.broadcast %cst_19 : f32 to vector<8x1xf32>
      %19 = arith.divf %17, %18 : vector<8x1xf32>
      %20 = vector.broadcast %19 : vector<8x1xf32> to vector<8x64xf32>
      %21 = arith.subf %15, %20 : vector<8x64xf32>
      %22 = arith.mulf %21, %21 : vector<8x64xf32>
      %cst_20 = arith.constant dense<0.000000e+00> : vector<8xf32>
      %23 = vector.multi_reduction <add>, %22, %cst_20 [1] : vector<8x64xf32> to vector<8xf32>
      %24 = vector.shape_cast %23 : vector<8xf32> to vector<8x1xf32>
      %cst_21 = arith.constant 6.400000e+01 : f32
      %25 = vector.broadcast %cst_21 : f32 to vector<8x1xf32>
      %26 = arith.divf %24, %25 : vector<8x1xf32>
      %cst_22 = arith.constant 9.99999974E-6 : f32
      %27 = vector.broadcast %cst_22 : f32 to vector<8x1xf32>
      %28 = arith.addf %26, %27 : vector<8x1xf32>
      %29 = math.rsqrt %28 : vector<8x1xf32>
      %30 = vector.broadcast %29 : vector<8x1xf32> to vector<8x64xf32>
      %31 = arith.mulf %21, %30 : vector<8x64xf32>
      %c0_23 = arith.constant 0 : index
      %c0_24 = arith.constant 0 : index
      %32 = vector.load %arg4[%c0_23, %c0_24] : memref<1816x64xf32, #tpu.memory_space<vmem>>, vector<8x64xf32>
      %33 = arith.mulf %31, %32 : vector<8x64xf32>
      %c8 = arith.constant 8 : index
      %c0_25 = arith.constant 0 : index
      %34 = vector.load %arg4[%c8, %c0_25] : memref<1816x64xf32, #tpu.memory_space<vmem>>, vector<8x64xf32>
      %35 = arith.addf %33, %34 : vector<8x64xf32>
      %c16 = arith.constant 16 : index
      %c0_26 = arith.constant 0 : index
      %36 = vector.load %arg4[%c16, %c0_26] : memref<1816x64xf32, #tpu.memory_space<vmem>>, vector<8x64xf32>
      %37 = arith.cmpf oge, %35, %36 : vector<8x64xf32>
      %c24 = arith.constant 24 : index
      %c0_27 = arith.constant 0 : index
      %38 = vector.load %arg4[%c24, %c0_27] : memref<1816x64xf32, #tpu.memory_space<vmem>>, vector<8x64xf32>
      %39 = arith.cmpf oge, %35, %38 : vector<8x64xf32>
      %c32 = arith.constant 32 : index
      %c0_28 = arith.constant 0 : index
      %40 = vector.load %arg4[%c32, %c0_28] : memref<1816x64xf32, #tpu.memory_space<vmem>>, vector<8x64xf32>
      %41 = arith.cmpf oge, %35, %40 : vector<8x64xf32>
      %c40 = arith.constant 40 : index
      %c0_29 = arith.constant 0 : index
      %42 = vector.load %arg4[%c40, %c0_29] : memref<1816x64xf32, #tpu.memory_space<vmem>>, vector<8x64xf32>
      %43 = arith.cmpf oge, %35, %42 : vector<8x64xf32>
      %c48 = arith.constant 48 : index
      %c0_30 = arith.constant 0 : index
      %44 = vector.load %arg4[%c48, %c0_30] : memref<1816x64xf32, #tpu.memory_space<vmem>>, vector<8x64xf32>
      %45 = arith.cmpf oge, %35, %44 : vector<8x64xf32>
      %c56 = arith.constant 56 : index
      %c0_31 = arith.constant 0 : index
      %46 = vector.load %arg4[%c56, %c0_31] : memref<1816x64xf32, #tpu.memory_space<vmem>>, vector<8x64xf32>
      %47 = arith.cmpf oge, %35, %46 : vector<8x64xf32>
      %c64 = arith.constant 64 : index
      %c0_32 = arith.constant 0 : index
      %48 = vector.load %arg4[%c64, %c0_32] : memref<1816x64xf32, #tpu.memory_space<vmem>>, vector<8x64xf32>
      %49 = arith.cmpf oge, %35, %48 : vector<8x64xf32>
      %c72 = arith.constant 72 : index
      %c0_33 = arith.constant 0 : index
      %50 = vector.load %arg4[%c72, %c0_33] : memref<1816x64xf32, #tpu.memory_space<vmem>>, vector<8x64xf32>
      %51 = arith.cmpf oge, %35, %50 : vector<8x64xf32>
      %c80 = arith.constant 80 : index
      %c0_34 = arith.constant 0 : index
      %52 = vector.load %arg4[%c80, %c0_34] : memref<1816x64xf32, #tpu.memory_space<vmem>>, vector<8x64xf32>
      %53 = arith.cmpf oge, %35, %52 : vector<8x64xf32>
      %c88 = arith.constant 88 : index
      %c0_35 = arith.constant 0 : index
      %54 = vector.load %arg4[%c88, %c0_35] : memref<1816x64xf32, #tpu.memory_space<vmem>>, vector<8x64xf32>
      %55 = arith.cmpf oge, %35, %54 : vector<8x64xf32>
      %c96 = arith.constant 96 : index
      %c0_36 = arith.constant 0 : index
      %56 = vector.load %arg4[%c96, %c0_36] : memref<1816x64xf32, #tpu.memory_space<vmem>>, vector<8x64xf32>
      %57 = arith.cmpf oge, %35, %56 : vector<8x64xf32>
      %c104 = arith.constant 104 : index
      %c0_37 = arith.constant 0 : index
      %58 = vector.load %arg4[%c104, %c0_37] : memref<1816x64xf32, #tpu.memory_space<vmem>>, vector<8x64xf32>
      %59 = arith.cmpf oge, %35, %58 : vector<8x64xf32>
      %c112 = arith.constant 112 : index
      %c0_38 = arith.constant 0 : index
      %60 = vector.load %arg4[%c112, %c0_38] : memref<1816x64xf32, #tpu.memory_space<vmem>>, vector<8x64xf32>
      %61 = arith.cmpf oge, %35, %60 : vector<8x64xf32>
      %c120 = arith.constant 120 : index
      %c0_39 = arith.constant 0 : index
      %62 = vector.load %arg4[%c120, %c0_39] : memref<1816x64xf32, #tpu.memory_space<vmem>>, vector<8x64xf32>
      %63 = arith.cmpf oge, %35, %62 : vector<8x64xf32>
      %c128 = arith.constant 128 : index
      %c0_40 = arith.constant 0 : index
      %64 = vector.load %arg4[%c128, %c0_40] : memref<1816x64xf32, #tpu.memory_space<vmem>>, vector<8x64xf32>
      %65 = arith.cmpf oge, %35, %64 : vector<8x64xf32>
      %c136 = arith.constant 136 : index
      %c0_41 = arith.constant 0 : index
      %66 = vector.load %arg4[%c136, %c0_41] : memref<1816x64xf32, #tpu.memory_space<vmem>>, vector<8x64xf32>
      %67 = arith.cmpf oge, %35, %66 : vector<8x64xf32>
      %c144 = arith.constant 144 : index
      %c0_42 = arith.constant 0 : index
      %68 = vector.load %arg4[%c144, %c0_42] : memref<1816x64xf32, #tpu.memory_space<vmem>>, vector<8x64xf32>
      %69 = arith.cmpf oge, %35, %68 : vector<8x64xf32>
      %c152 = arith.constant 152 : index
      %c0_43 = arith.constant 0 : index
      %70 = vector.load %arg4[%c152, %c0_43] : memref<1816x64xf32, #tpu.memory_space<vmem>>, vector<8x64xf32>
      %71 = arith.cmpf oge, %35, %70 : vector<8x64xf32>
      %c160 = arith.constant 160 : index
      %c0_44 = arith.constant 0 : index
      %72 = vector.load %arg4[%c160, %c0_44] : memref<1816x64xf32, #tpu.memory_space<vmem>>, vector<8x64xf32>
      %73 = arith.cmpf oge, %35, %72 : vector<8x64xf32>
      %c168 = arith.constant 168 : index
      %c0_45 = arith.constant 0 : index
      %74 = vector.load %arg4[%c168, %c0_45] : memref<1816x64xf32, #tpu.memory_space<vmem>>, vector<8x64xf32>
      %75 = arith.cmpf oge, %35, %74 : vector<8x64xf32>
      %c176 = arith.constant 176 : index
      %c0_46 = arith.constant 0 : index
      %76 = vector.load %arg4[%c176, %c0_46] : memref<1816x64xf32, #tpu.memory_space<vmem>>, vector<8x64xf32>
      %77 = arith.cmpf oge, %35, %76 : vector<8x64xf32>
      %c184 = arith.constant 184 : index
      %c0_47 = arith.constant 0 : index
      %78 = vector.load %arg4[%c184, %c0_47] : memref<1816x64xf32, #tpu.memory_space<vmem>>, vector<8x64xf32>
      %79 = arith.cmpf oge, %35, %78 : vector<8x64xf32>
      %c192 = arith.constant 192 : index
      %c0_48 = arith.constant 0 : index
      %80 = vector.load %arg4[%c192, %c0_48] : memref<1816x64xf32, #tpu.memory_space<vmem>>, vector<8x64xf32>
      %81 = arith.cmpf oge, %35, %80 : vector<8x64xf32>
      %c200 = arith.constant 200 : index
      %c0_49 = arith.constant 0 : index
      %82 = vector.load %arg4[%c200, %c0_49] : memref<1816x64xf32, #tpu.memory_space<vmem>>, vector<8x64xf32>
      %83 = arith.cmpf oge, %35, %82 : vector<8x64xf32>
      %c208 = arith.constant 208 : index
      %c0_50 = arith.constant 0 : index
      %84 = vector.load %arg4[%c208, %c0_50] : memref<1816x64xf32, #tpu.memory_space<vmem>>, vector<8x64xf32>
      %85 = arith.cmpf oge, %35, %84 : vector<8x64xf32>
      %c216 = arith.constant 216 : index
      %c0_51 = arith.constant 0 : index
      %86 = vector.load %arg4[%c216, %c0_51] : memref<1816x64xf32, #tpu.memory_space<vmem>>, vector<8x64xf32>
      %87 = arith.cmpf oge, %35, %86 : vector<8x64xf32>
      %c224 = arith.constant 224 : index
      %c0_52 = arith.constant 0 : index
      %88 = vector.load %arg4[%c224, %c0_52] : memref<1816x64xf32, #tpu.memory_space<vmem>>, vector<8x64xf32>
      %89 = arith.cmpf oge, %35, %88 : vector<8x64xf32>
      %cst_53 = arith.constant dense<true> : vector<8x64xi1>
      %90 = arith.xori %39, %cst_53 : vector<8x64xi1>
      %91 = arith.andi %37, %90 : vector<8x64xi1>
      %92 = arith.extui %91 : vector<8x64xi1> to vector<8x64xi32>
      %93 = arith.sitofp %92 : vector<8x64xi32> to vector<8x64xf32>
      %cst_54 = arith.constant dense<true> : vector<8x64xi1>
      %94 = arith.xori %41, %cst_54 : vector<8x64xi1>
      %95 = arith.andi %39, %94 : vector<8x64xi1>
      %96 = arith.extui %95 : vector<8x64xi1> to vector<8x64xi32>
      %97 = arith.sitofp %96 : vector<8x64xi32> to vector<8x64xf32>
      %cst_55 = arith.constant dense<true> : vector<8x64xi1>
      %98 = arith.xori %43, %cst_55 : vector<8x64xi1>
      %99 = arith.andi %41, %98 : vector<8x64xi1>
      %100 = arith.extui %99 : vector<8x64xi1> to vector<8x64xi32>
      %101 = arith.sitofp %100 : vector<8x64xi32> to vector<8x64xf32>
      %cst_56 = arith.constant dense<true> : vector<8x64xi1>
      %102 = arith.xori %45, %cst_56 : vector<8x64xi1>
      %103 = arith.andi %43, %102 : vector<8x64xi1>
      %104 = arith.extui %103 : vector<8x64xi1> to vector<8x64xi32>
      %105 = arith.sitofp %104 : vector<8x64xi32> to vector<8x64xf32>
      %cst_57 = arith.constant dense<true> : vector<8x64xi1>
      %106 = arith.xori %47, %cst_57 : vector<8x64xi1>
      %107 = arith.andi %45, %106 : vector<8x64xi1>
      %108 = arith.extui %107 : vector<8x64xi1> to vector<8x64xi32>
      %109 = arith.sitofp %108 : vector<8x64xi32> to vector<8x64xf32>
      %cst_58 = arith.constant dense<true> : vector<8x64xi1>
      %110 = arith.xori %49, %cst_58 : vector<8x64xi1>
      %111 = arith.andi %47, %110 : vector<8x64xi1>
      %112 = arith.extui %111 : vector<8x64xi1> to vector<8x64xi32>
      %113 = arith.sitofp %112 : vector<8x64xi32> to vector<8x64xf32>
      %cst_59 = arith.constant dense<true> : vector<8x64xi1>
      %114 = arith.xori %51, %cst_59 : vector<8x64xi1>
      %115 = arith.andi %49, %114 : vector<8x64xi1>
      %116 = arith.extui %115 : vector<8x64xi1> to vector<8x64xi32>
      %117 = arith.sitofp %116 : vector<8x64xi32> to vector<8x64xf32>
      %cst_60 = arith.constant dense<true> : vector<8x64xi1>
      %118 = arith.xori %53, %cst_60 : vector<8x64xi1>
      %119 = arith.andi %51, %118 : vector<8x64xi1>
      %120 = arith.extui %119 : vector<8x64xi1> to vector<8x64xi32>
      %121 = arith.sitofp %120 : vector<8x64xi32> to vector<8x64xf32>
      %cst_61 = arith.constant dense<true> : vector<8x64xi1>
      %122 = arith.xori %55, %cst_61 : vector<8x64xi1>
      %123 = arith.andi %53, %122 : vector<8x64xi1>
      %124 = arith.extui %123 : vector<8x64xi1> to vector<8x64xi32>
      %125 = arith.sitofp %124 : vector<8x64xi32> to vector<8x64xf32>
      %cst_62 = arith.constant dense<true> : vector<8x64xi1>
      %126 = arith.xori %57, %cst_62 : vector<8x64xi1>
      %127 = arith.andi %55, %126 : vector<8x64xi1>
      %128 = arith.extui %127 : vector<8x64xi1> to vector<8x64xi32>
      %129 = arith.sitofp %128 : vector<8x64xi32> to vector<8x64xf32>
      %cst_63 = arith.constant dense<true> : vector<8x64xi1>
      %130 = arith.xori %59, %cst_63 : vector<8x64xi1>
      %131 = arith.andi %57, %130 : vector<8x64xi1>
      %132 = arith.extui %131 : vector<8x64xi1> to vector<8x64xi32>
      %133 = arith.sitofp %132 : vector<8x64xi32> to vector<8x64xf32>
      %cst_64 = arith.constant dense<true> : vector<8x64xi1>
      %134 = arith.xori %61, %cst_64 : vector<8x64xi1>
      %135 = arith.andi %59, %134 : vector<8x64xi1>
      %136 = arith.extui %135 : vector<8x64xi1> to vector<8x64xi32>
      %137 = arith.sitofp %136 : vector<8x64xi32> to vector<8x64xf32>
      %cst_65 = arith.constant dense<true> : vector<8x64xi1>
      %138 = arith.xori %63, %cst_65 : vector<8x64xi1>
      %139 = arith.andi %61, %138 : vector<8x64xi1>
      %140 = arith.extui %139 : vector<8x64xi1> to vector<8x64xi32>
      %141 = arith.sitofp %140 : vector<8x64xi32> to vector<8x64xf32>
      %cst_66 = arith.constant dense<true> : vector<8x64xi1>
      %142 = arith.xori %65, %cst_66 : vector<8x64xi1>
      %143 = arith.andi %63, %142 : vector<8x64xi1>
      %144 = arith.extui %143 : vector<8x64xi1> to vector<8x64xi32>
      %145 = arith.sitofp %144 : vector<8x64xi32> to vector<8x64xf32>
      %cst_67 = arith.constant dense<true> : vector<8x64xi1>
      %146 = arith.xori %67, %cst_67 : vector<8x64xi1>
      %147 = arith.andi %65, %146 : vector<8x64xi1>
      %148 = arith.extui %147 : vector<8x64xi1> to vector<8x64xi32>
      %149 = arith.sitofp %148 : vector<8x64xi32> to vector<8x64xf32>
      %cst_68 = arith.constant dense<true> : vector<8x64xi1>
      %150 = arith.xori %69, %cst_68 : vector<8x64xi1>
      %151 = arith.andi %67, %150 : vector<8x64xi1>
      %152 = arith.extui %151 : vector<8x64xi1> to vector<8x64xi32>
      %153 = arith.sitofp %152 : vector<8x64xi32> to vector<8x64xf32>
      %cst_69 = arith.constant dense<true> : vector<8x64xi1>
      %154 = arith.xori %71, %cst_69 : vector<8x64xi1>
      %155 = arith.andi %69, %154 : vector<8x64xi1>
      %156 = arith.extui %155 : vector<8x64xi1> to vector<8x64xi32>
      %157 = arith.sitofp %156 : vector<8x64xi32> to vector<8x64xf32>
      %cst_70 = arith.constant dense<true> : vector<8x64xi1>
      %158 = arith.xori %73, %cst_70 : vector<8x64xi1>
      %159 = arith.andi %71, %158 : vector<8x64xi1>
      %160 = arith.extui %159 : vector<8x64xi1> to vector<8x64xi32>
      %161 = arith.sitofp %160 : vector<8x64xi32> to vector<8x64xf32>
      %cst_71 = arith.constant dense<true> : vector<8x64xi1>
      %162 = arith.xori %75, %cst_71 : vector<8x64xi1>
      %163 = arith.andi %73, %162 : vector<8x64xi1>
      %164 = arith.extui %163 : vector<8x64xi1> to vector<8x64xi32>
      %165 = arith.sitofp %164 : vector<8x64xi32> to vector<8x64xf32>
      %cst_72 = arith.constant dense<true> : vector<8x64xi1>
      %166 = arith.xori %77, %cst_72 : vector<8x64xi1>
      %167 = arith.andi %75, %166 : vector<8x64xi1>
      %168 = arith.extui %167 : vector<8x64xi1> to vector<8x64xi32>
      %169 = arith.sitofp %168 : vector<8x64xi32> to vector<8x64xf32>
      %cst_73 = arith.constant dense<true> : vector<8x64xi1>
      %170 = arith.xori %79, %cst_73 : vector<8x64xi1>
      %171 = arith.andi %77, %170 : vector<8x64xi1>
      %172 = arith.extui %171 : vector<8x64xi1> to vector<8x64xi32>
      %173 = arith.sitofp %172 : vector<8x64xi32> to vector<8x64xf32>
      %cst_74 = arith.constant dense<true> : vector<8x64xi1>
      %174 = arith.xori %81, %cst_74 : vector<8x64xi1>
      %175 = arith.andi %79, %174 : vector<8x64xi1>
      %176 = arith.extui %175 : vector<8x64xi1> to vector<8x64xi32>
      %177 = arith.sitofp %176 : vector<8x64xi32> to vector<8x64xf32>
      %cst_75 = arith.constant dense<true> : vector<8x64xi1>
      %178 = arith.xori %83, %cst_75 : vector<8x64xi1>
      %179 = arith.andi %81, %178 : vector<8x64xi1>
      %180 = arith.extui %179 : vector<8x64xi1> to vector<8x64xi32>
      %181 = arith.sitofp %180 : vector<8x64xi32> to vector<8x64xf32>
      %cst_76 = arith.constant dense<true> : vector<8x64xi1>
      %182 = arith.xori %85, %cst_76 : vector<8x64xi1>
      %183 = arith.andi %83, %182 : vector<8x64xi1>
      %184 = arith.extui %183 : vector<8x64xi1> to vector<8x64xi32>
      %185 = arith.sitofp %184 : vector<8x64xi32> to vector<8x64xf32>
      %cst_77 = arith.constant dense<true> : vector<8x64xi1>
      %186 = arith.xori %87, %cst_77 : vector<8x64xi1>
      %187 = arith.andi %85, %186 : vector<8x64xi1>
      %188 = arith.extui %187 : vector<8x64xi1> to vector<8x64xi32>
      %189 = arith.sitofp %188 : vector<8x64xi32> to vector<8x64xf32>
      %cst_78 = arith.constant dense<true> : vector<8x64xi1>
      %190 = arith.xori %89, %cst_78 : vector<8x64xi1>
      %191 = arith.andi %87, %190 : vector<8x64xi1>
      %192 = arith.extui %191 : vector<8x64xi1> to vector<8x64xi32>
      %193 = arith.sitofp %192 : vector<8x64xi32> to vector<8x64xf32>
      %c232 = arith.constant 232 : index
      %c0_79 = arith.constant 0 : index
      %194 = vector.load %arg4[%c232, %c0_79] : memref<1816x64xf32, #tpu.memory_space<vmem>>, vector<8x64xf32>
      %195 = arith.mulf %35, %194 : vector<8x64xf32>
      %c832 = arith.constant 832 : index
      %c0_80 = arith.constant 0 : index
      %196 = vector.load %arg4[%c832, %c0_80] : memref<1816x64xf32, #tpu.memory_space<vmem>>, vector<8x64xf32>
      %197 = arith.subf %195, %196 : vector<8x64xf32>
      %c240 = arith.constant 240 : index
      %c0_81 = arith.constant 0 : index
      %198 = vector.load %arg4[%c240, %c0_81] : memref<1816x64xf32, #tpu.memory_space<vmem>>, vector<8x64xf32>
      %199 = arith.mulf %35, %198 : vector<8x64xf32>
      %c840 = arith.constant 840 : index
      %c0_82 = arith.constant 0 : index
      %200 = vector.load %arg4[%c840, %c0_82] : memref<1816x64xf32, #tpu.memory_space<vmem>>, vector<8x64xf32>
      %201 = arith.subf %199, %200 : vector<8x64xf32>
      %c248 = arith.constant 248 : index
      %c0_83 = arith.constant 0 : index
      %202 = vector.load %arg4[%c248, %c0_83] : memref<1816x64xf32, #tpu.memory_space<vmem>>, vector<8x64xf32>
      %203 = arith.mulf %35, %202 : vector<8x64xf32>
      %c848 = arith.constant 848 : index
      %c0_84 = arith.constant 0 : index
      %204 = vector.load %arg4[%c848, %c0_84] : memref<1816x64xf32, #tpu.memory_space<vmem>>, vector<8x64xf32>
      %205 = arith.subf %203, %204 : vector<8x64xf32>
      %c256 = arith.constant 256 : index
      %c0_85 = arith.constant 0 : index
      %206 = vector.load %arg4[%c256, %c0_85] : memref<1816x64xf32, #tpu.memory_space<vmem>>, vector<8x64xf32>
      %207 = arith.mulf %35, %206 : vector<8x64xf32>
      %c856 = arith.constant 856 : index
      %c0_86 = arith.constant 0 : index
      %208 = vector.load %arg4[%c856, %c0_86] : memref<1816x64xf32, #tpu.memory_space<vmem>>, vector<8x64xf32>
      %209 = arith.subf %207, %208 : vector<8x64xf32>
      %c264 = arith.constant 264 : index
      %c0_87 = arith.constant 0 : index
      %210 = vector.load %arg4[%c264, %c0_87] : memref<1816x64xf32, #tpu.memory_space<vmem>>, vector<8x64xf32>
      %211 = arith.mulf %35, %210 : vector<8x64xf32>
      %c864 = arith.constant 864 : index
      %c0_88 = arith.constant 0 : index
      %212 = vector.load %arg4[%c864, %c0_88] : memref<1816x64xf32, #tpu.memory_space<vmem>>, vector<8x64xf32>
      %213 = arith.subf %211, %212 : vector<8x64xf32>
      %c272 = arith.constant 272 : index
      %c0_89 = arith.constant 0 : index
      %214 = vector.load %arg4[%c272, %c0_89] : memref<1816x64xf32, #tpu.memory_space<vmem>>, vector<8x64xf32>
      %215 = arith.mulf %35, %214 : vector<8x64xf32>
      %c872 = arith.constant 872 : index
      %c0_90 = arith.constant 0 : index
      %216 = vector.load %arg4[%c872, %c0_90] : memref<1816x64xf32, #tpu.memory_space<vmem>>, vector<8x64xf32>
      %217 = arith.subf %215, %216 : vector<8x64xf32>
      %c280 = arith.constant 280 : index
      %c0_91 = arith.constant 0 : index
      %218 = vector.load %arg4[%c280, %c0_91] : memref<1816x64xf32, #tpu.memory_space<vmem>>, vector<8x64xf32>
      %219 = arith.mulf %35, %218 : vector<8x64xf32>
      %c880 = arith.constant 880 : index
      %c0_92 = arith.constant 0 : index
      %220 = vector.load %arg4[%c880, %c0_92] : memref<1816x64xf32, #tpu.memory_space<vmem>>, vector<8x64xf32>
      %221 = arith.subf %219, %220 : vector<8x64xf32>
      %c288 = arith.constant 288 : index
      %c0_93 = arith.constant 0 : index
      %222 = vector.load %arg4[%c288, %c0_93] : memref<1816x64xf32, #tpu.memory_space<vmem>>, vector<8x64xf32>
      %223 = arith.mulf %35, %222 : vector<8x64xf32>
      %c888 = arith.constant 888 : index
      %c0_94 = arith.constant 0 : index
      %224 = vector.load %arg4[%c888, %c0_94] : memref<1816x64xf32, #tpu.memory_space<vmem>>, vector<8x64xf32>
      %225 = arith.subf %223, %224 : vector<8x64xf32>
      %c296 = arith.constant 296 : index
      %c0_95 = arith.constant 0 : index
      %226 = vector.load %arg4[%c296, %c0_95] : memref<1816x64xf32, #tpu.memory_space<vmem>>, vector<8x64xf32>
      %227 = arith.mulf %35, %226 : vector<8x64xf32>
      %c896 = arith.constant 896 : index
      %c0_96 = arith.constant 0 : index
      %228 = vector.load %arg4[%c896, %c0_96] : memref<1816x64xf32, #tpu.memory_space<vmem>>, vector<8x64xf32>
      %229 = arith.subf %227, %228 : vector<8x64xf32>
      %c304 = arith.constant 304 : index
      %c0_97 = arith.constant 0 : index
      %230 = vector.load %arg4[%c304, %c0_97] : memref<1816x64xf32, #tpu.memory_space<vmem>>, vector<8x64xf32>
      %231 = arith.mulf %35, %230 : vector<8x64xf32>
      %c904 = arith.constant 904 : index
      %c0_98 = arith.constant 0 : index
      %232 = vector.load %arg4[%c904, %c0_98] : memref<1816x64xf32, #tpu.memory_space<vmem>>, vector<8x64xf32>
      %233 = arith.subf %231, %232 : vector<8x64xf32>
      %c312 = arith.constant 312 : index
      %c0_99 = arith.constant 0 : index
      %234 = vector.load %arg4[%c312, %c0_99] : memref<1816x64xf32, #tpu.memory_space<vmem>>, vector<8x64xf32>
      %235 = arith.mulf %35, %234 : vector<8x64xf32>
      %c912 = arith.constant 912 : index
      %c0_100 = arith.constant 0 : index
      %236 = vector.load %arg4[%c912, %c0_100] : memref<1816x64xf32, #tpu.memory_space<vmem>>, vector<8x64xf32>
      %237 = arith.subf %235, %236 : vector<8x64xf32>
      %c320 = arith.constant 320 : index
      %c0_101 = arith.constant 0 : index
      %238 = vector.load %arg4[%c320, %c0_101] : memref<1816x64xf32, #tpu.memory_space<vmem>>, vector<8x64xf32>
      %239 = arith.mulf %35, %238 : vector<8x64xf32>
      %c920 = arith.constant 920 : index
      %c0_102 = arith.constant 0 : index
      %240 = vector.load %arg4[%c920, %c0_102] : memref<1816x64xf32, #tpu.memory_space<vmem>>, vector<8x64xf32>
      %241 = arith.subf %239, %240 : vector<8x64xf32>
      %c328 = arith.constant 328 : index
      %c0_103 = arith.constant 0 : index
      %242 = vector.load %arg4[%c328, %c0_103] : memref<1816x64xf32, #tpu.memory_space<vmem>>, vector<8x64xf32>
      %243 = arith.mulf %35, %242 : vector<8x64xf32>
      %c928 = arith.constant 928 : index
      %c0_104 = arith.constant 0 : index
      %244 = vector.load %arg4[%c928, %c0_104] : memref<1816x64xf32, #tpu.memory_space<vmem>>, vector<8x64xf32>
      %245 = arith.subf %243, %244 : vector<8x64xf32>
      %c336 = arith.constant 336 : index
      %c0_105 = arith.constant 0 : index
      %246 = vector.load %arg4[%c336, %c0_105] : memref<1816x64xf32, #tpu.memory_space<vmem>>, vector<8x64xf32>
      %247 = arith.mulf %35, %246 : vector<8x64xf32>
      %c936 = arith.constant 936 : index
      %c0_106 = arith.constant 0 : index
      %248 = vector.load %arg4[%c936, %c0_106] : memref<1816x64xf32, #tpu.memory_space<vmem>>, vector<8x64xf32>
      %249 = arith.subf %247, %248 : vector<8x64xf32>
      %c344 = arith.constant 344 : index
      %c0_107 = arith.constant 0 : index
      %250 = vector.load %arg4[%c344, %c0_107] : memref<1816x64xf32, #tpu.memory_space<vmem>>, vector<8x64xf32>
      %251 = arith.mulf %35, %250 : vector<8x64xf32>
      %c944 = arith.constant 944 : index
      %c0_108 = arith.constant 0 : index
      %252 = vector.load %arg4[%c944, %c0_108] : memref<1816x64xf32, #tpu.memory_space<vmem>>, vector<8x64xf32>
      %253 = arith.subf %251, %252 : vector<8x64xf32>
      %c352 = arith.constant 352 : index
      %c0_109 = arith.constant 0 : index
      %254 = vector.load %arg4[%c352, %c0_109] : memref<1816x64xf32, #tpu.memory_space<vmem>>, vector<8x64xf32>
      %255 = arith.mulf %35, %254 : vector<8x64xf32>
      %c952 = arith.constant 952 : index
      %c0_110 = arith.constant 0 : index
      %256 = vector.load %arg4[%c952, %c0_110] : memref<1816x64xf32, #tpu.memory_space<vmem>>, vector<8x64xf32>
      %257 = arith.subf %255, %256 : vector<8x64xf32>
      %c360 = arith.constant 360 : index
      %c0_111 = arith.constant 0 : index
      %258 = vector.load %arg4[%c360, %c0_111] : memref<1816x64xf32, #tpu.memory_space<vmem>>, vector<8x64xf32>
      %259 = arith.mulf %35, %258 : vector<8x64xf32>
      %c960 = arith.constant 960 : index
      %c0_112 = arith.constant 0 : index
      %260 = vector.load %arg4[%c960, %c0_112] : memref<1816x64xf32, #tpu.memory_space<vmem>>, vector<8x64xf32>
      %261 = arith.subf %259, %260 : vector<8x64xf32>
      %c368 = arith.constant 368 : index
      %c0_113 = arith.constant 0 : index
      %262 = vector.load %arg4[%c368, %c0_113] : memref<1816x64xf32, #tpu.memory_space<vmem>>, vector<8x64xf32>
      %263 = arith.mulf %35, %262 : vector<8x64xf32>
      %c968 = arith.constant 968 : index
      %c0_114 = arith.constant 0 : index
      %264 = vector.load %arg4[%c968, %c0_114] : memref<1816x64xf32, #tpu.memory_space<vmem>>, vector<8x64xf32>
      %265 = arith.subf %263, %264 : vector<8x64xf32>
      %c376 = arith.constant 376 : index
      %c0_115 = arith.constant 0 : index
      %266 = vector.load %arg4[%c376, %c0_115] : memref<1816x64xf32, #tpu.memory_space<vmem>>, vector<8x64xf32>
      %267 = arith.mulf %35, %266 : vector<8x64xf32>
      %c976 = arith.constant 976 : index
      %c0_116 = arith.constant 0 : index
      %268 = vector.load %arg4[%c976, %c0_116] : memref<1816x64xf32, #tpu.memory_space<vmem>>, vector<8x64xf32>
      %269 = arith.subf %267, %268 : vector<8x64xf32>
      %c384 = arith.constant 384 : index
      %c0_117 = arith.constant 0 : index
      %270 = vector.load %arg4[%c384, %c0_117] : memref<1816x64xf32, #tpu.memory_space<vmem>>, vector<8x64xf32>
      %271 = arith.mulf %35, %270 : vector<8x64xf32>
      %c984 = arith.constant 984 : index
      %c0_118 = arith.constant 0 : index
      %272 = vector.load %arg4[%c984, %c0_118] : memref<1816x64xf32, #tpu.memory_space<vmem>>, vector<8x64xf32>
      %273 = arith.subf %271, %272 : vector<8x64xf32>
      %c392 = arith.constant 392 : index
      %c0_119 = arith.constant 0 : index
      %274 = vector.load %arg4[%c392, %c0_119] : memref<1816x64xf32, #tpu.memory_space<vmem>>, vector<8x64xf32>
      %275 = arith.mulf %35, %274 : vector<8x64xf32>
      %c992 = arith.constant 992 : index
      %c0_120 = arith.constant 0 : index
      %276 = vector.load %arg4[%c992, %c0_120] : memref<1816x64xf32, #tpu.memory_space<vmem>>, vector<8x64xf32>
      %277 = arith.subf %275, %276 : vector<8x64xf32>
      %c400 = arith.constant 400 : index
      %c0_121 = arith.constant 0 : index
      %278 = vector.load %arg4[%c400, %c0_121] : memref<1816x64xf32, #tpu.memory_space<vmem>>, vector<8x64xf32>
      %279 = arith.mulf %35, %278 : vector<8x64xf32>
      %c1000 = arith.constant 1000 : index
      %c0_122 = arith.constant 0 : index
      %280 = vector.load %arg4[%c1000, %c0_122] : memref<1816x64xf32, #tpu.memory_space<vmem>>, vector<8x64xf32>
      %281 = arith.subf %279, %280 : vector<8x64xf32>
      %c408 = arith.constant 408 : index
      %c0_123 = arith.constant 0 : index
      %282 = vector.load %arg4[%c408, %c0_123] : memref<1816x64xf32, #tpu.memory_space<vmem>>, vector<8x64xf32>
      %283 = arith.mulf %35, %282 : vector<8x64xf32>
      %c1008 = arith.constant 1008 : index
      %c0_124 = arith.constant 0 : index
      %284 = vector.load %arg4[%c1008, %c0_124] : memref<1816x64xf32, #tpu.memory_space<vmem>>, vector<8x64xf32>
      %285 = arith.subf %283, %284 : vector<8x64xf32>
      %c416 = arith.constant 416 : index
      %c0_125 = arith.constant 0 : index
      %286 = vector.load %arg4[%c416, %c0_125] : memref<1816x64xf32, #tpu.memory_space<vmem>>, vector<8x64xf32>
      %287 = arith.mulf %35, %286 : vector<8x64xf32>
      %c1016 = arith.constant 1016 : index
      %c0_126 = arith.constant 0 : index
      %288 = vector.load %arg4[%c1016, %c0_126] : memref<1816x64xf32, #tpu.memory_space<vmem>>, vector<8x64xf32>
      %289 = arith.subf %287, %288 : vector<8x64xf32>
      %c424 = arith.constant 424 : index
      %c0_127 = arith.constant 0 : index
      %290 = vector.load %arg4[%c424, %c0_127] : memref<1816x64xf32, #tpu.memory_space<vmem>>, vector<8x64xf32>
      %291 = arith.mulf %35, %290 : vector<8x64xf32>
      %c1024 = arith.constant 1024 : index
      %c0_128 = arith.constant 0 : index
      %292 = vector.load %arg4[%c1024, %c0_128] : memref<1816x64xf32, #tpu.memory_space<vmem>>, vector<8x64xf32>
      %293 = arith.subf %291, %292 : vector<8x64xf32>
      %c432 = arith.constant 432 : index
      %c0_129 = arith.constant 0 : index
      %294 = vector.load %arg4[%c432, %c0_129] : memref<1816x64xf32, #tpu.memory_space<vmem>>, vector<8x64xf32>
      %295 = arith.mulf %35, %294 : vector<8x64xf32>
      %c1032 = arith.constant 1032 : index
      %c0_130 = arith.constant 0 : index
      %296 = vector.load %arg4[%c1032, %c0_130] : memref<1816x64xf32, #tpu.memory_space<vmem>>, vector<8x64xf32>
      %297 = arith.subf %295, %296 : vector<8x64xf32>
      %298 = arith.mulf %197, %93 : vector<8x64xf32>
      %cst_131 = arith.constant 1.000000e+00 : f32
      %299 = vector.broadcast %cst_131 : f32 to vector<8x64xf32>
      %300 = arith.subf %299, %201 : vector<8x64xf32>
      %301 = arith.mulf %300, %97 : vector<8x64xf32>
      %302 = arith.addf %298, %301 : vector<8x64xf32>
      %303 = arith.mulf %201, %97 : vector<8x64xf32>
      %cst_132 = arith.constant 1.000000e+00 : f32
      %304 = vector.broadcast %cst_132 : f32 to vector<8x64xf32>
      %305 = arith.subf %304, %205 : vector<8x64xf32>
      %306 = arith.mulf %305, %101 : vector<8x64xf32>
      %307 = arith.addf %303, %306 : vector<8x64xf32>
      %308 = arith.mulf %205, %101 : vector<8x64xf32>
      %cst_133 = arith.constant 1.000000e+00 : f32
      %309 = vector.broadcast %cst_133 : f32 to vector<8x64xf32>
      %310 = arith.subf %309, %209 : vector<8x64xf32>
      %311 = arith.mulf %310, %105 : vector<8x64xf32>
      %312 = arith.addf %308, %311 : vector<8x64xf32>
      %313 = arith.mulf %209, %105 : vector<8x64xf32>
      %cst_134 = arith.constant 1.000000e+00 : f32
      %314 = vector.broadcast %cst_134 : f32 to vector<8x64xf32>
      %315 = arith.subf %314, %213 : vector<8x64xf32>
      %316 = arith.mulf %315, %109 : vector<8x64xf32>
      %317 = arith.addf %313, %316 : vector<8x64xf32>
      %318 = arith.mulf %213, %109 : vector<8x64xf32>
      %cst_135 = arith.constant 1.000000e+00 : f32
      %319 = vector.broadcast %cst_135 : f32 to vector<8x64xf32>
      %320 = arith.subf %319, %217 : vector<8x64xf32>
      %321 = arith.mulf %320, %113 : vector<8x64xf32>
      %322 = arith.addf %318, %321 : vector<8x64xf32>
      %323 = arith.mulf %217, %113 : vector<8x64xf32>
      %cst_136 = arith.constant 1.000000e+00 : f32
      %324 = vector.broadcast %cst_136 : f32 to vector<8x64xf32>
      %325 = arith.subf %324, %221 : vector<8x64xf32>
      %326 = arith.mulf %325, %117 : vector<8x64xf32>
      %327 = arith.addf %323, %326 : vector<8x64xf32>
      %328 = arith.mulf %221, %117 : vector<8x64xf32>
      %cst_137 = arith.constant 1.000000e+00 : f32
      %329 = vector.broadcast %cst_137 : f32 to vector<8x64xf32>
      %330 = arith.subf %329, %225 : vector<8x64xf32>
      %331 = arith.mulf %330, %121 : vector<8x64xf32>
      %332 = arith.addf %328, %331 : vector<8x64xf32>
      %333 = arith.mulf %225, %121 : vector<8x64xf32>
      %cst_138 = arith.constant 1.000000e+00 : f32
      %334 = vector.broadcast %cst_138 : f32 to vector<8x64xf32>
      %335 = arith.subf %334, %229 : vector<8x64xf32>
      %336 = arith.mulf %335, %125 : vector<8x64xf32>
      %337 = arith.addf %333, %336 : vector<8x64xf32>
      %338 = arith.mulf %229, %125 : vector<8x64xf32>
      %cst_139 = arith.constant 1.000000e+00 : f32
      %339 = vector.broadcast %cst_139 : f32 to vector<8x64xf32>
      %340 = arith.subf %339, %233 : vector<8x64xf32>
      %341 = arith.mulf %340, %129 : vector<8x64xf32>
      %342 = arith.addf %338, %341 : vector<8x64xf32>
      %343 = arith.mulf %233, %129 : vector<8x64xf32>
      %cst_140 = arith.constant 1.000000e+00 : f32
      %344 = vector.broadcast %cst_140 : f32 to vector<8x64xf32>
      %345 = arith.subf %344, %237 : vector<8x64xf32>
      %346 = arith.mulf %345, %133 : vector<8x64xf32>
      %347 = arith.addf %343, %346 : vector<8x64xf32>
      %348 = arith.mulf %237, %133 : vector<8x64xf32>
      %cst_141 = arith.constant 1.000000e+00 : f32
      %349 = vector.broadcast %cst_141 : f32 to vector<8x64xf32>
      %350 = arith.subf %349, %241 : vector<8x64xf32>
      %351 = arith.mulf %350, %137 : vector<8x64xf32>
      %352 = arith.addf %348, %351 : vector<8x64xf32>
      %353 = arith.mulf %241, %137 : vector<8x64xf32>
      %cst_142 = arith.constant 1.000000e+00 : f32
      %354 = vector.broadcast %cst_142 : f32 to vector<8x64xf32>
      %355 = arith.subf %354, %245 : vector<8x64xf32>
      %356 = arith.mulf %355, %141 : vector<8x64xf32>
      %357 = arith.addf %353, %356 : vector<8x64xf32>
      %358 = arith.mulf %245, %141 : vector<8x64xf32>
      %cst_143 = arith.constant 1.000000e+00 : f32
      %359 = vector.broadcast %cst_143 : f32 to vector<8x64xf32>
      %360 = arith.subf %359, %249 : vector<8x64xf32>
      %361 = arith.mulf %360, %145 : vector<8x64xf32>
      %362 = arith.addf %358, %361 : vector<8x64xf32>
      %363 = arith.mulf %249, %145 : vector<8x64xf32>
      %cst_144 = arith.constant 1.000000e+00 : f32
      %364 = vector.broadcast %cst_144 : f32 to vector<8x64xf32>
      %365 = arith.subf %364, %253 : vector<8x64xf32>
      %366 = arith.mulf %365, %149 : vector<8x64xf32>
      %367 = arith.addf %363, %366 : vector<8x64xf32>
      %368 = arith.mulf %253, %149 : vector<8x64xf32>
      %cst_145 = arith.constant 1.000000e+00 : f32
      %369 = vector.broadcast %cst_145 : f32 to vector<8x64xf32>
      %370 = arith.subf %369, %257 : vector<8x64xf32>
      %371 = arith.mulf %370, %153 : vector<8x64xf32>
      %372 = arith.addf %368, %371 : vector<8x64xf32>
      %373 = arith.mulf %257, %153 : vector<8x64xf32>
      %cst_146 = arith.constant 1.000000e+00 : f32
      %374 = vector.broadcast %cst_146 : f32 to vector<8x64xf32>
      %375 = arith.subf %374, %261 : vector<8x64xf32>
      %376 = arith.mulf %375, %157 : vector<8x64xf32>
      %377 = arith.addf %373, %376 : vector<8x64xf32>
      %378 = arith.mulf %261, %157 : vector<8x64xf32>
      %cst_147 = arith.constant 1.000000e+00 : f32
      %379 = vector.broadcast %cst_147 : f32 to vector<8x64xf32>
      %380 = arith.subf %379, %265 : vector<8x64xf32>
      %381 = arith.mulf %380, %161 : vector<8x64xf32>
      %382 = arith.addf %378, %381 : vector<8x64xf32>
      %383 = arith.mulf %265, %161 : vector<8x64xf32>
      %cst_148 = arith.constant 1.000000e+00 : f32
      %384 = vector.broadcast %cst_148 : f32 to vector<8x64xf32>
      %385 = arith.subf %384, %269 : vector<8x64xf32>
      %386 = arith.mulf %385, %165 : vector<8x64xf32>
      %387 = arith.addf %383, %386 : vector<8x64xf32>
      %388 = arith.mulf %269, %165 : vector<8x64xf32>
      %cst_149 = arith.constant 1.000000e+00 : f32
      %389 = vector.broadcast %cst_149 : f32 to vector<8x64xf32>
      %390 = arith.subf %389, %273 : vector<8x64xf32>
      %391 = arith.mulf %390, %169 : vector<8x64xf32>
      %392 = arith.addf %388, %391 : vector<8x64xf32>
      %393 = arith.mulf %273, %169 : vector<8x64xf32>
      %cst_150 = arith.constant 1.000000e+00 : f32
      %394 = vector.broadcast %cst_150 : f32 to vector<8x64xf32>
      %395 = arith.subf %394, %277 : vector<8x64xf32>
      %396 = arith.mulf %395, %173 : vector<8x64xf32>
      %397 = arith.addf %393, %396 : vector<8x64xf32>
      %398 = arith.mulf %277, %173 : vector<8x64xf32>
      %cst_151 = arith.constant 1.000000e+00 : f32
      %399 = vector.broadcast %cst_151 : f32 to vector<8x64xf32>
      %400 = arith.subf %399, %281 : vector<8x64xf32>
      %401 = arith.mulf %400, %177 : vector<8x64xf32>
      %402 = arith.addf %398, %401 : vector<8x64xf32>
      %403 = arith.mulf %281, %177 : vector<8x64xf32>
      %cst_152 = arith.constant 1.000000e+00 : f32
      %404 = vector.broadcast %cst_152 : f32 to vector<8x64xf32>
      %405 = arith.subf %404, %285 : vector<8x64xf32>
      %406 = arith.mulf %405, %181 : vector<8x64xf32>
      %407 = arith.addf %403, %406 : vector<8x64xf32>
      %408 = arith.mulf %285, %181 : vector<8x64xf32>
      %cst_153 = arith.constant 1.000000e+00 : f32
      %409 = vector.broadcast %cst_153 : f32 to vector<8x64xf32>
      %410 = arith.subf %409, %289 : vector<8x64xf32>
      %411 = arith.mulf %410, %185 : vector<8x64xf32>
      %412 = arith.addf %408, %411 : vector<8x64xf32>
      %413 = arith.mulf %289, %185 : vector<8x64xf32>
      %cst_154 = arith.constant 1.000000e+00 : f32
      %414 = vector.broadcast %cst_154 : f32 to vector<8x64xf32>
      %415 = arith.subf %414, %293 : vector<8x64xf32>
      %416 = arith.mulf %415, %189 : vector<8x64xf32>
      %417 = arith.addf %413, %416 : vector<8x64xf32>
      %418 = arith.mulf %293, %189 : vector<8x64xf32>
      %cst_155 = arith.constant 1.000000e+00 : f32
      %419 = vector.broadcast %cst_155 : f32 to vector<8x64xf32>
      %420 = arith.subf %419, %297 : vector<8x64xf32>
      %421 = arith.mulf %420, %193 : vector<8x64xf32>
      %422 = arith.addf %418, %421 : vector<8x64xf32>
      %c440 = arith.constant 440 : index
      %c0_156 = arith.constant 0 : index
      %423 = vector.load %arg4[%c440, %c0_156] : memref<1816x64xf32, #tpu.memory_space<vmem>>, vector<8x64xf32>
      %424 = arith.mulf %35, %423 : vector<8x64xf32>
      %c1040 = arith.constant 1040 : index
      %c0_157 = arith.constant 0 : index
      %425 = vector.load %arg4[%c1040, %c0_157] : memref<1816x64xf32, #tpu.memory_space<vmem>>, vector<8x64xf32>
      %426 = arith.subf %424, %425 : vector<8x64xf32>
      %c448 = arith.constant 448 : index
      %c0_158 = arith.constant 0 : index
      %427 = vector.load %arg4[%c448, %c0_158] : memref<1816x64xf32, #tpu.memory_space<vmem>>, vector<8x64xf32>
      %428 = arith.mulf %35, %427 : vector<8x64xf32>
      %c1048 = arith.constant 1048 : index
      %c0_159 = arith.constant 0 : index
      %429 = vector.load %arg4[%c1048, %c0_159] : memref<1816x64xf32, #tpu.memory_space<vmem>>, vector<8x64xf32>
      %430 = arith.subf %428, %429 : vector<8x64xf32>
      %c456 = arith.constant 456 : index
      %c0_160 = arith.constant 0 : index
      %431 = vector.load %arg4[%c456, %c0_160] : memref<1816x64xf32, #tpu.memory_space<vmem>>, vector<8x64xf32>
      %432 = arith.mulf %35, %431 : vector<8x64xf32>
      %c1056 = arith.constant 1056 : index
      %c0_161 = arith.constant 0 : index
      %433 = vector.load %arg4[%c1056, %c0_161] : memref<1816x64xf32, #tpu.memory_space<vmem>>, vector<8x64xf32>
      %434 = arith.subf %432, %433 : vector<8x64xf32>
      %c464 = arith.constant 464 : index
      %c0_162 = arith.constant 0 : index
      %435 = vector.load %arg4[%c464, %c0_162] : memref<1816x64xf32, #tpu.memory_space<vmem>>, vector<8x64xf32>
      %436 = arith.mulf %35, %435 : vector<8x64xf32>
      %c1064 = arith.constant 1064 : index
      %c0_163 = arith.constant 0 : index
      %437 = vector.load %arg4[%c1064, %c0_163] : memref<1816x64xf32, #tpu.memory_space<vmem>>, vector<8x64xf32>
      %438 = arith.subf %436, %437 : vector<8x64xf32>
      %c472 = arith.constant 472 : index
      %c0_164 = arith.constant 0 : index
      %439 = vector.load %arg4[%c472, %c0_164] : memref<1816x64xf32, #tpu.memory_space<vmem>>, vector<8x64xf32>
      %440 = arith.mulf %35, %439 : vector<8x64xf32>
      %c1072 = arith.constant 1072 : index
      %c0_165 = arith.constant 0 : index
      %441 = vector.load %arg4[%c1072, %c0_165] : memref<1816x64xf32, #tpu.memory_space<vmem>>, vector<8x64xf32>
      %442 = arith.subf %440, %441 : vector<8x64xf32>
      %c480 = arith.constant 480 : index
      %c0_166 = arith.constant 0 : index
      %443 = vector.load %arg4[%c480, %c0_166] : memref<1816x64xf32, #tpu.memory_space<vmem>>, vector<8x64xf32>
      %444 = arith.mulf %35, %443 : vector<8x64xf32>
      %c1080 = arith.constant 1080 : index
      %c0_167 = arith.constant 0 : index
      %445 = vector.load %arg4[%c1080, %c0_167] : memref<1816x64xf32, #tpu.memory_space<vmem>>, vector<8x64xf32>
      %446 = arith.subf %444, %445 : vector<8x64xf32>
      %c488 = arith.constant 488 : index
      %c0_168 = arith.constant 0 : index
      %447 = vector.load %arg4[%c488, %c0_168] : memref<1816x64xf32, #tpu.memory_space<vmem>>, vector<8x64xf32>
      %448 = arith.mulf %35, %447 : vector<8x64xf32>
      %c1088 = arith.constant 1088 : index
      %c0_169 = arith.constant 0 : index
      %449 = vector.load %arg4[%c1088, %c0_169] : memref<1816x64xf32, #tpu.memory_space<vmem>>, vector<8x64xf32>
      %450 = arith.subf %448, %449 : vector<8x64xf32>
      %c496 = arith.constant 496 : index
      %c0_170 = arith.constant 0 : index
      %451 = vector.load %arg4[%c496, %c0_170] : memref<1816x64xf32, #tpu.memory_space<vmem>>, vector<8x64xf32>
      %452 = arith.mulf %35, %451 : vector<8x64xf32>
      %c1096 = arith.constant 1096 : index
      %c0_171 = arith.constant 0 : index
      %453 = vector.load %arg4[%c1096, %c0_171] : memref<1816x64xf32, #tpu.memory_space<vmem>>, vector<8x64xf32>
      %454 = arith.subf %452, %453 : vector<8x64xf32>
      %c504 = arith.constant 504 : index
      %c0_172 = arith.constant 0 : index
      %455 = vector.load %arg4[%c504, %c0_172] : memref<1816x64xf32, #tpu.memory_space<vmem>>, vector<8x64xf32>
      %456 = arith.mulf %35, %455 : vector<8x64xf32>
      %c1104 = arith.constant 1104 : index
      %c0_173 = arith.constant 0 : index
      %457 = vector.load %arg4[%c1104, %c0_173] : memref<1816x64xf32, #tpu.memory_space<vmem>>, vector<8x64xf32>
      %458 = arith.subf %456, %457 : vector<8x64xf32>
      %c512 = arith.constant 512 : index
      %c0_174 = arith.constant 0 : index
      %459 = vector.load %arg4[%c512, %c0_174] : memref<1816x64xf32, #tpu.memory_space<vmem>>, vector<8x64xf32>
      %460 = arith.mulf %35, %459 : vector<8x64xf32>
      %c1112 = arith.constant 1112 : index
      %c0_175 = arith.constant 0 : index
      %461 = vector.load %arg4[%c1112, %c0_175] : memref<1816x64xf32, #tpu.memory_space<vmem>>, vector<8x64xf32>
      %462 = arith.subf %460, %461 : vector<8x64xf32>
      %c520 = arith.constant 520 : index
      %c0_176 = arith.constant 0 : index
      %463 = vector.load %arg4[%c520, %c0_176] : memref<1816x64xf32, #tpu.memory_space<vmem>>, vector<8x64xf32>
      %464 = arith.mulf %35, %463 : vector<8x64xf32>
      %c1120 = arith.constant 1120 : index
      %c0_177 = arith.constant 0 : index
      %465 = vector.load %arg4[%c1120, %c0_177] : memref<1816x64xf32, #tpu.memory_space<vmem>>, vector<8x64xf32>
      %466 = arith.subf %464, %465 : vector<8x64xf32>
      %c528 = arith.constant 528 : index
      %c0_178 = arith.constant 0 : index
      %467 = vector.load %arg4[%c528, %c0_178] : memref<1816x64xf32, #tpu.memory_space<vmem>>, vector<8x64xf32>
      %468 = arith.mulf %35, %467 : vector<8x64xf32>
      %c1128 = arith.constant 1128 : index
      %c0_179 = arith.constant 0 : index
      %469 = vector.load %arg4[%c1128, %c0_179] : memref<1816x64xf32, #tpu.memory_space<vmem>>, vector<8x64xf32>
      %470 = arith.subf %468, %469 : vector<8x64xf32>
      %c536 = arith.constant 536 : index
      %c0_180 = arith.constant 0 : index
      %471 = vector.load %arg4[%c536, %c0_180] : memref<1816x64xf32, #tpu.memory_space<vmem>>, vector<8x64xf32>
      %472 = arith.mulf %35, %471 : vector<8x64xf32>
      %c1136 = arith.constant 1136 : index
      %c0_181 = arith.constant 0 : index
      %473 = vector.load %arg4[%c1136, %c0_181] : memref<1816x64xf32, #tpu.memory_space<vmem>>, vector<8x64xf32>
      %474 = arith.subf %472, %473 : vector<8x64xf32>
      %c544 = arith.constant 544 : index
      %c0_182 = arith.constant 0 : index
      %475 = vector.load %arg4[%c544, %c0_182] : memref<1816x64xf32, #tpu.memory_space<vmem>>, vector<8x64xf32>
      %476 = arith.mulf %35, %475 : vector<8x64xf32>
      %c1144 = arith.constant 1144 : index
      %c0_183 = arith.constant 0 : index
      %477 = vector.load %arg4[%c1144, %c0_183] : memref<1816x64xf32, #tpu.memory_space<vmem>>, vector<8x64xf32>
      %478 = arith.subf %476, %477 : vector<8x64xf32>
      %c552 = arith.constant 552 : index
      %c0_184 = arith.constant 0 : index
      %479 = vector.load %arg4[%c552, %c0_184] : memref<1816x64xf32, #tpu.memory_space<vmem>>, vector<8x64xf32>
      %480 = arith.mulf %35, %479 : vector<8x64xf32>
      %c1152 = arith.constant 1152 : index
      %c0_185 = arith.constant 0 : index
      %481 = vector.load %arg4[%c1152, %c0_185] : memref<1816x64xf32, #tpu.memory_space<vmem>>, vector<8x64xf32>
      %482 = arith.subf %480, %481 : vector<8x64xf32>
      %c560 = arith.constant 560 : index
      %c0_186 = arith.constant 0 : index
      %483 = vector.load %arg4[%c560, %c0_186] : memref<1816x64xf32, #tpu.memory_space<vmem>>, vector<8x64xf32>
      %484 = arith.mulf %35, %483 : vector<8x64xf32>
      %c1160 = arith.constant 1160 : index
      %c0_187 = arith.constant 0 : index
      %485 = vector.load %arg4[%c1160, %c0_187] : memref<1816x64xf32, #tpu.memory_space<vmem>>, vector<8x64xf32>
      %486 = arith.subf %484, %485 : vector<8x64xf32>
      %c568 = arith.constant 568 : index
      %c0_188 = arith.constant 0 : index
      %487 = vector.load %arg4[%c568, %c0_188] : memref<1816x64xf32, #tpu.memory_space<vmem>>, vector<8x64xf32>
      %488 = arith.mulf %35, %487 : vector<8x64xf32>
      %c1168 = arith.constant 1168 : index
      %c0_189 = arith.constant 0 : index
      %489 = vector.load %arg4[%c1168, %c0_189] : memref<1816x64xf32, #tpu.memory_space<vmem>>, vector<8x64xf32>
      %490 = arith.subf %488, %489 : vector<8x64xf32>
      %c576 = arith.constant 576 : index
      %c0_190 = arith.constant 0 : index
      %491 = vector.load %arg4[%c576, %c0_190] : memref<1816x64xf32, #tpu.memory_space<vmem>>, vector<8x64xf32>
      %492 = arith.mulf %35, %491 : vector<8x64xf32>
      %c1176 = arith.constant 1176 : index
      %c0_191 = arith.constant 0 : index
      %493 = vector.load %arg4[%c1176, %c0_191] : memref<1816x64xf32, #tpu.memory_space<vmem>>, vector<8x64xf32>
      %494 = arith.subf %492, %493 : vector<8x64xf32>
      %c584 = arith.constant 584 : index
      %c0_192 = arith.constant 0 : index
      %495 = vector.load %arg4[%c584, %c0_192] : memref<1816x64xf32, #tpu.memory_space<vmem>>, vector<8x64xf32>
      %496 = arith.mulf %35, %495 : vector<8x64xf32>
      %c1184 = arith.constant 1184 : index
      %c0_193 = arith.constant 0 : index
      %497 = vector.load %arg4[%c1184, %c0_193] : memref<1816x64xf32, #tpu.memory_space<vmem>>, vector<8x64xf32>
      %498 = arith.subf %496, %497 : vector<8x64xf32>
      %c592 = arith.constant 592 : index
      %c0_194 = arith.constant 0 : index
      %499 = vector.load %arg4[%c592, %c0_194] : memref<1816x64xf32, #tpu.memory_space<vmem>>, vector<8x64xf32>
      %500 = arith.mulf %35, %499 : vector<8x64xf32>
      %c1192 = arith.constant 1192 : index
      %c0_195 = arith.constant 0 : index
      %501 = vector.load %arg4[%c1192, %c0_195] : memref<1816x64xf32, #tpu.memory_space<vmem>>, vector<8x64xf32>
      %502 = arith.subf %500, %501 : vector<8x64xf32>
      %c600 = arith.constant 600 : index
      %c0_196 = arith.constant 0 : index
      %503 = vector.load %arg4[%c600, %c0_196] : memref<1816x64xf32, #tpu.memory_space<vmem>>, vector<8x64xf32>
      %504 = arith.mulf %35, %503 : vector<8x64xf32>
      %c1200 = arith.constant 1200 : index
      %c0_197 = arith.constant 0 : index
      %505 = vector.load %arg4[%c1200, %c0_197] : memref<1816x64xf32, #tpu.memory_space<vmem>>, vector<8x64xf32>
      %506 = arith.subf %504, %505 : vector<8x64xf32>
      %c608 = arith.constant 608 : index
      %c0_198 = arith.constant 0 : index
      %507 = vector.load %arg4[%c608, %c0_198] : memref<1816x64xf32, #tpu.memory_space<vmem>>, vector<8x64xf32>
      %508 = arith.mulf %35, %507 : vector<8x64xf32>
      %c1208 = arith.constant 1208 : index
      %c0_199 = arith.constant 0 : index
      %509 = vector.load %arg4[%c1208, %c0_199] : memref<1816x64xf32, #tpu.memory_space<vmem>>, vector<8x64xf32>
      %510 = arith.subf %508, %509 : vector<8x64xf32>
      %c616 = arith.constant 616 : index
      %c0_200 = arith.constant 0 : index
      %511 = vector.load %arg4[%c616, %c0_200] : memref<1816x64xf32, #tpu.memory_space<vmem>>, vector<8x64xf32>
      %512 = arith.mulf %35, %511 : vector<8x64xf32>
      %c1216 = arith.constant 1216 : index
      %c0_201 = arith.constant 0 : index
      %513 = vector.load %arg4[%c1216, %c0_201] : memref<1816x64xf32, #tpu.memory_space<vmem>>, vector<8x64xf32>
      %514 = arith.subf %512, %513 : vector<8x64xf32>
      %c624 = arith.constant 624 : index
      %c0_202 = arith.constant 0 : index
      %515 = vector.load %arg4[%c624, %c0_202] : memref<1816x64xf32, #tpu.memory_space<vmem>>, vector<8x64xf32>
      %516 = arith.mulf %35, %515 : vector<8x64xf32>
      %c1224 = arith.constant 1224 : index
      %c0_203 = arith.constant 0 : index
      %517 = vector.load %arg4[%c1224, %c0_203] : memref<1816x64xf32, #tpu.memory_space<vmem>>, vector<8x64xf32>
      %518 = arith.subf %516, %517 : vector<8x64xf32>
      %c632 = arith.constant 632 : index
      %c0_204 = arith.constant 0 : index
      %519 = vector.load %arg4[%c632, %c0_204] : memref<1816x64xf32, #tpu.memory_space<vmem>>, vector<8x64xf32>
      %520 = arith.mulf %35, %519 : vector<8x64xf32>
      %c1232 = arith.constant 1232 : index
      %c0_205 = arith.constant 0 : index
      %521 = vector.load %arg4[%c1232, %c0_205] : memref<1816x64xf32, #tpu.memory_space<vmem>>, vector<8x64xf32>
      %522 = arith.subf %520, %521 : vector<8x64xf32>
      %523 = arith.mulf %426, %302 : vector<8x64xf32>
      %cst_206 = arith.constant 1.000000e+00 : f32
      %524 = vector.broadcast %cst_206 : f32 to vector<8x64xf32>
      %525 = arith.subf %524, %430 : vector<8x64xf32>
      %526 = arith.mulf %525, %307 : vector<8x64xf32>
      %527 = arith.addf %523, %526 : vector<8x64xf32>
      %528 = arith.mulf %430, %307 : vector<8x64xf32>
      %cst_207 = arith.constant 1.000000e+00 : f32
      %529 = vector.broadcast %cst_207 : f32 to vector<8x64xf32>
      %530 = arith.subf %529, %434 : vector<8x64xf32>
      %531 = arith.mulf %530, %312 : vector<8x64xf32>
      %532 = arith.addf %528, %531 : vector<8x64xf32>
      %533 = arith.mulf %434, %312 : vector<8x64xf32>
      %cst_208 = arith.constant 1.000000e+00 : f32
      %534 = vector.broadcast %cst_208 : f32 to vector<8x64xf32>
      %535 = arith.subf %534, %438 : vector<8x64xf32>
      %536 = arith.mulf %535, %317 : vector<8x64xf32>
      %537 = arith.addf %533, %536 : vector<8x64xf32>
      %538 = arith.mulf %438, %317 : vector<8x64xf32>
      %cst_209 = arith.constant 1.000000e+00 : f32
      %539 = vector.broadcast %cst_209 : f32 to vector<8x64xf32>
      %540 = arith.subf %539, %442 : vector<8x64xf32>
      %541 = arith.mulf %540, %322 : vector<8x64xf32>
      %542 = arith.addf %538, %541 : vector<8x64xf32>
      %543 = arith.mulf %442, %322 : vector<8x64xf32>
      %cst_210 = arith.constant 1.000000e+00 : f32
      %544 = vector.broadcast %cst_210 : f32 to vector<8x64xf32>
      %545 = arith.subf %544, %446 : vector<8x64xf32>
      %546 = arith.mulf %545, %327 : vector<8x64xf32>
      %547 = arith.addf %543, %546 : vector<8x64xf32>
      %548 = arith.mulf %446, %327 : vector<8x64xf32>
      %cst_211 = arith.constant 1.000000e+00 : f32
      %549 = vector.broadcast %cst_211 : f32 to vector<8x64xf32>
      %550 = arith.subf %549, %450 : vector<8x64xf32>
      %551 = arith.mulf %550, %332 : vector<8x64xf32>
      %552 = arith.addf %548, %551 : vector<8x64xf32>
      %553 = arith.mulf %450, %332 : vector<8x64xf32>
      %cst_212 = arith.constant 1.000000e+00 : f32
      %554 = vector.broadcast %cst_212 : f32 to vector<8x64xf32>
      %555 = arith.subf %554, %454 : vector<8x64xf32>
      %556 = arith.mulf %555, %337 : vector<8x64xf32>
      %557 = arith.addf %553, %556 : vector<8x64xf32>
      %558 = arith.mulf %454, %337 : vector<8x64xf32>
      %cst_213 = arith.constant 1.000000e+00 : f32
      %559 = vector.broadcast %cst_213 : f32 to vector<8x64xf32>
      %560 = arith.subf %559, %458 : vector<8x64xf32>
      %561 = arith.mulf %560, %342 : vector<8x64xf32>
      %562 = arith.addf %558, %561 : vector<8x64xf32>
      %563 = arith.mulf %458, %342 : vector<8x64xf32>
      %cst_214 = arith.constant 1.000000e+00 : f32
      %564 = vector.broadcast %cst_214 : f32 to vector<8x64xf32>
      %565 = arith.subf %564, %462 : vector<8x64xf32>
      %566 = arith.mulf %565, %347 : vector<8x64xf32>
      %567 = arith.addf %563, %566 : vector<8x64xf32>
      %568 = arith.mulf %462, %347 : vector<8x64xf32>
      %cst_215 = arith.constant 1.000000e+00 : f32
      %569 = vector.broadcast %cst_215 : f32 to vector<8x64xf32>
      %570 = arith.subf %569, %466 : vector<8x64xf32>
      %571 = arith.mulf %570, %352 : vector<8x64xf32>
      %572 = arith.addf %568, %571 : vector<8x64xf32>
      %573 = arith.mulf %466, %352 : vector<8x64xf32>
      %cst_216 = arith.constant 1.000000e+00 : f32
      %574 = vector.broadcast %cst_216 : f32 to vector<8x64xf32>
      %575 = arith.subf %574, %470 : vector<8x64xf32>
      %576 = arith.mulf %575, %357 : vector<8x64xf32>
      %577 = arith.addf %573, %576 : vector<8x64xf32>
      %578 = arith.mulf %470, %357 : vector<8x64xf32>
      %cst_217 = arith.constant 1.000000e+00 : f32
      %579 = vector.broadcast %cst_217 : f32 to vector<8x64xf32>
      %580 = arith.subf %579, %474 : vector<8x64xf32>
      %581 = arith.mulf %580, %362 : vector<8x64xf32>
      %582 = arith.addf %578, %581 : vector<8x64xf32>
      %583 = arith.mulf %474, %362 : vector<8x64xf32>
      %cst_218 = arith.constant 1.000000e+00 : f32
      %584 = vector.broadcast %cst_218 : f32 to vector<8x64xf32>
      %585 = arith.subf %584, %478 : vector<8x64xf32>
      %586 = arith.mulf %585, %367 : vector<8x64xf32>
      %587 = arith.addf %583, %586 : vector<8x64xf32>
      %588 = arith.mulf %478, %367 : vector<8x64xf32>
      %cst_219 = arith.constant 1.000000e+00 : f32
      %589 = vector.broadcast %cst_219 : f32 to vector<8x64xf32>
      %590 = arith.subf %589, %482 : vector<8x64xf32>
      %591 = arith.mulf %590, %372 : vector<8x64xf32>
      %592 = arith.addf %588, %591 : vector<8x64xf32>
      %593 = arith.mulf %482, %372 : vector<8x64xf32>
      %cst_220 = arith.constant 1.000000e+00 : f32
      %594 = vector.broadcast %cst_220 : f32 to vector<8x64xf32>
      %595 = arith.subf %594, %486 : vector<8x64xf32>
      %596 = arith.mulf %595, %377 : vector<8x64xf32>
      %597 = arith.addf %593, %596 : vector<8x64xf32>
      %598 = arith.mulf %486, %377 : vector<8x64xf32>
      %cst_221 = arith.constant 1.000000e+00 : f32
      %599 = vector.broadcast %cst_221 : f32 to vector<8x64xf32>
      %600 = arith.subf %599, %490 : vector<8x64xf32>
      %601 = arith.mulf %600, %382 : vector<8x64xf32>
      %602 = arith.addf %598, %601 : vector<8x64xf32>
      %603 = arith.mulf %490, %382 : vector<8x64xf32>
      %cst_222 = arith.constant 1.000000e+00 : f32
      %604 = vector.broadcast %cst_222 : f32 to vector<8x64xf32>
      %605 = arith.subf %604, %494 : vector<8x64xf32>
      %606 = arith.mulf %605, %387 : vector<8x64xf32>
      %607 = arith.addf %603, %606 : vector<8x64xf32>
      %608 = arith.mulf %494, %387 : vector<8x64xf32>
      %cst_223 = arith.constant 1.000000e+00 : f32
      %609 = vector.broadcast %cst_223 : f32 to vector<8x64xf32>
      %610 = arith.subf %609, %498 : vector<8x64xf32>
      %611 = arith.mulf %610, %392 : vector<8x64xf32>
      %612 = arith.addf %608, %611 : vector<8x64xf32>
      %613 = arith.mulf %498, %392 : vector<8x64xf32>
      %cst_224 = arith.constant 1.000000e+00 : f32
      %614 = vector.broadcast %cst_224 : f32 to vector<8x64xf32>
      %615 = arith.subf %614, %502 : vector<8x64xf32>
      %616 = arith.mulf %615, %397 : vector<8x64xf32>
      %617 = arith.addf %613, %616 : vector<8x64xf32>
      %618 = arith.mulf %502, %397 : vector<8x64xf32>
      %cst_225 = arith.constant 1.000000e+00 : f32
      %619 = vector.broadcast %cst_225 : f32 to vector<8x64xf32>
      %620 = arith.subf %619, %506 : vector<8x64xf32>
      %621 = arith.mulf %620, %402 : vector<8x64xf32>
      %622 = arith.addf %618, %621 : vector<8x64xf32>
      %623 = arith.mulf %506, %402 : vector<8x64xf32>
      %cst_226 = arith.constant 1.000000e+00 : f32
      %624 = vector.broadcast %cst_226 : f32 to vector<8x64xf32>
      %625 = arith.subf %624, %510 : vector<8x64xf32>
      %626 = arith.mulf %625, %407 : vector<8x64xf32>
      %627 = arith.addf %623, %626 : vector<8x64xf32>
      %628 = arith.mulf %510, %407 : vector<8x64xf32>
      %cst_227 = arith.constant 1.000000e+00 : f32
      %629 = vector.broadcast %cst_227 : f32 to vector<8x64xf32>
      %630 = arith.subf %629, %514 : vector<8x64xf32>
      %631 = arith.mulf %630, %412 : vector<8x64xf32>
      %632 = arith.addf %628, %631 : vector<8x64xf32>
      %633 = arith.mulf %514, %412 : vector<8x64xf32>
      %cst_228 = arith.constant 1.000000e+00 : f32
      %634 = vector.broadcast %cst_228 : f32 to vector<8x64xf32>
      %635 = arith.subf %634, %518 : vector<8x64xf32>
      %636 = arith.mulf %635, %417 : vector<8x64xf32>
      %637 = arith.addf %633, %636 : vector<8x64xf32>
      %638 = arith.mulf %518, %417 : vector<8x64xf32>
      %cst_229 = arith.constant 1.000000e+00 : f32
      %639 = vector.broadcast %cst_229 : f32 to vector<8x64xf32>
      %640 = arith.subf %639, %522 : vector<8x64xf32>
      %641 = arith.mulf %640, %422 : vector<8x64xf32>
      %642 = arith.addf %638, %641 : vector<8x64xf32>
      %c640 = arith.constant 640 : index
      %c0_230 = arith.constant 0 : index
      %643 = vector.load %arg4[%c640, %c0_230] : memref<1816x64xf32, #tpu.memory_space<vmem>>, vector<8x64xf32>
      %644 = arith.mulf %35, %643 : vector<8x64xf32>
      %c1240 = arith.constant 1240 : index
      %c0_231 = arith.constant 0 : index
      %645 = vector.load %arg4[%c1240, %c0_231] : memref<1816x64xf32, #tpu.memory_space<vmem>>, vector<8x64xf32>
      %646 = arith.subf %644, %645 : vector<8x64xf32>
      %c1432 = arith.constant 1432 : index
      %c0_232 = arith.constant 0 : index
      %647 = vector.load %arg4[%c1432, %c0_232] : memref<1816x64xf32, #tpu.memory_space<vmem>>, vector<8x64xf32>
      %c1624 = arith.constant 1624 : index
      %c0_233 = arith.constant 0 : index
      %648 = vector.load %arg4[%c1624, %c0_233] : memref<1816x64xf32, #tpu.memory_space<vmem>>, vector<8x64xf32>
      %649 = arith.mulf %646, %648 : vector<8x64xf32>
      %650 = arith.addf %647, %649 : vector<8x64xf32>
      %651 = arith.mulf %650, %527 : vector<8x64xf32>
      %c648 = arith.constant 648 : index
      %c0_234 = arith.constant 0 : index
      %652 = vector.load %arg4[%c648, %c0_234] : memref<1816x64xf32, #tpu.memory_space<vmem>>, vector<8x64xf32>
      %653 = arith.mulf %35, %652 : vector<8x64xf32>
      %c1248 = arith.constant 1248 : index
      %c0_235 = arith.constant 0 : index
      %654 = vector.load %arg4[%c1248, %c0_235] : memref<1816x64xf32, #tpu.memory_space<vmem>>, vector<8x64xf32>
      %655 = arith.subf %653, %654 : vector<8x64xf32>
      %c1440 = arith.constant 1440 : index
      %c0_236 = arith.constant 0 : index
      %656 = vector.load %arg4[%c1440, %c0_236] : memref<1816x64xf32, #tpu.memory_space<vmem>>, vector<8x64xf32>
      %c1632 = arith.constant 1632 : index
      %c0_237 = arith.constant 0 : index
      %657 = vector.load %arg4[%c1632, %c0_237] : memref<1816x64xf32, #tpu.memory_space<vmem>>, vector<8x64xf32>
      %658 = arith.mulf %655, %657 : vector<8x64xf32>
      %659 = arith.addf %656, %658 : vector<8x64xf32>
      %660 = arith.mulf %659, %532 : vector<8x64xf32>
      %c656 = arith.constant 656 : index
      %c0_238 = arith.constant 0 : index
      %661 = vector.load %arg4[%c656, %c0_238] : memref<1816x64xf32, #tpu.memory_space<vmem>>, vector<8x64xf32>
      %662 = arith.mulf %35, %661 : vector<8x64xf32>
      %c1256 = arith.constant 1256 : index
      %c0_239 = arith.constant 0 : index
      %663 = vector.load %arg4[%c1256, %c0_239] : memref<1816x64xf32, #tpu.memory_space<vmem>>, vector<8x64xf32>
      %664 = arith.subf %662, %663 : vector<8x64xf32>
      %c1448 = arith.constant 1448 : index
      %c0_240 = arith.constant 0 : index
      %665 = vector.load %arg4[%c1448, %c0_240] : memref<1816x64xf32, #tpu.memory_space<vmem>>, vector<8x64xf32>
      %c1640 = arith.constant 1640 : index
      %c0_241 = arith.constant 0 : index
      %666 = vector.load %arg4[%c1640, %c0_241] : memref<1816x64xf32, #tpu.memory_space<vmem>>, vector<8x64xf32>
      %667 = arith.mulf %664, %666 : vector<8x64xf32>
      %668 = arith.addf %665, %667 : vector<8x64xf32>
      %669 = arith.mulf %668, %537 : vector<8x64xf32>
      %c664 = arith.constant 664 : index
      %c0_242 = arith.constant 0 : index
      %670 = vector.load %arg4[%c664, %c0_242] : memref<1816x64xf32, #tpu.memory_space<vmem>>, vector<8x64xf32>
      %671 = arith.mulf %35, %670 : vector<8x64xf32>
      %c1264 = arith.constant 1264 : index
      %c0_243 = arith.constant 0 : index
      %672 = vector.load %arg4[%c1264, %c0_243] : memref<1816x64xf32, #tpu.memory_space<vmem>>, vector<8x64xf32>
      %673 = arith.subf %671, %672 : vector<8x64xf32>
      %c1456 = arith.constant 1456 : index
      %c0_244 = arith.constant 0 : index
      %674 = vector.load %arg4[%c1456, %c0_244] : memref<1816x64xf32, #tpu.memory_space<vmem>>, vector<8x64xf32>
      %c1648 = arith.constant 1648 : index
      %c0_245 = arith.constant 0 : index
      %675 = vector.load %arg4[%c1648, %c0_245] : memref<1816x64xf32, #tpu.memory_space<vmem>>, vector<8x64xf32>
      %676 = arith.mulf %673, %675 : vector<8x64xf32>
      %677 = arith.addf %674, %676 : vector<8x64xf32>
      %678 = arith.mulf %677, %542 : vector<8x64xf32>
      %c672 = arith.constant 672 : index
      %c0_246 = arith.constant 0 : index
      %679 = vector.load %arg4[%c672, %c0_246] : memref<1816x64xf32, #tpu.memory_space<vmem>>, vector<8x64xf32>
      %680 = arith.mulf %35, %679 : vector<8x64xf32>
      %c1272 = arith.constant 1272 : index
      %c0_247 = arith.constant 0 : index
      %681 = vector.load %arg4[%c1272, %c0_247] : memref<1816x64xf32, #tpu.memory_space<vmem>>, vector<8x64xf32>
      %682 = arith.subf %680, %681 : vector<8x64xf32>
      %c1464 = arith.constant 1464 : index
      %c0_248 = arith.constant 0 : index
      %683 = vector.load %arg4[%c1464, %c0_248] : memref<1816x64xf32, #tpu.memory_space<vmem>>, vector<8x64xf32>
      %c1656 = arith.constant 1656 : index
      %c0_249 = arith.constant 0 : index
      %684 = vector.load %arg4[%c1656, %c0_249] : memref<1816x64xf32, #tpu.memory_space<vmem>>, vector<8x64xf32>
      %685 = arith.mulf %682, %684 : vector<8x64xf32>
      %686 = arith.addf %683, %685 : vector<8x64xf32>
      %687 = arith.mulf %686, %547 : vector<8x64xf32>
      %c680 = arith.constant 680 : index
      %c0_250 = arith.constant 0 : index
      %688 = vector.load %arg4[%c680, %c0_250] : memref<1816x64xf32, #tpu.memory_space<vmem>>, vector<8x64xf32>
      %689 = arith.mulf %35, %688 : vector<8x64xf32>
      %c1280 = arith.constant 1280 : index
      %c0_251 = arith.constant 0 : index
      %690 = vector.load %arg4[%c1280, %c0_251] : memref<1816x64xf32, #tpu.memory_space<vmem>>, vector<8x64xf32>
      %691 = arith.subf %689, %690 : vector<8x64xf32>
      %c1472 = arith.constant 1472 : index
      %c0_252 = arith.constant 0 : index
      %692 = vector.load %arg4[%c1472, %c0_252] : memref<1816x64xf32, #tpu.memory_space<vmem>>, vector<8x64xf32>
      %c1664 = arith.constant 1664 : index
      %c0_253 = arith.constant 0 : index
      %693 = vector.load %arg4[%c1664, %c0_253] : memref<1816x64xf32, #tpu.memory_space<vmem>>, vector<8x64xf32>
      %694 = arith.mulf %691, %693 : vector<8x64xf32>
      %695 = arith.addf %692, %694 : vector<8x64xf32>
      %696 = arith.mulf %695, %552 : vector<8x64xf32>
      %c688 = arith.constant 688 : index
      %c0_254 = arith.constant 0 : index
      %697 = vector.load %arg4[%c688, %c0_254] : memref<1816x64xf32, #tpu.memory_space<vmem>>, vector<8x64xf32>
      %698 = arith.mulf %35, %697 : vector<8x64xf32>
      %c1288 = arith.constant 1288 : index
      %c0_255 = arith.constant 0 : index
      %699 = vector.load %arg4[%c1288, %c0_255] : memref<1816x64xf32, #tpu.memory_space<vmem>>, vector<8x64xf32>
      %700 = arith.subf %698, %699 : vector<8x64xf32>
      %c1480 = arith.constant 1480 : index
      %c0_256 = arith.constant 0 : index
      %701 = vector.load %arg4[%c1480, %c0_256] : memref<1816x64xf32, #tpu.memory_space<vmem>>, vector<8x64xf32>
      %c1672 = arith.constant 1672 : index
      %c0_257 = arith.constant 0 : index
      %702 = vector.load %arg4[%c1672, %c0_257] : memref<1816x64xf32, #tpu.memory_space<vmem>>, vector<8x64xf32>
      %703 = arith.mulf %700, %702 : vector<8x64xf32>
      %704 = arith.addf %701, %703 : vector<8x64xf32>
      %705 = arith.mulf %704, %557 : vector<8x64xf32>
      %c696 = arith.constant 696 : index
      %c0_258 = arith.constant 0 : index
      %706 = vector.load %arg4[%c696, %c0_258] : memref<1816x64xf32, #tpu.memory_space<vmem>>, vector<8x64xf32>
      %707 = arith.mulf %35, %706 : vector<8x64xf32>
      %c1296 = arith.constant 1296 : index
      %c0_259 = arith.constant 0 : index
      %708 = vector.load %arg4[%c1296, %c0_259] : memref<1816x64xf32, #tpu.memory_space<vmem>>, vector<8x64xf32>
      %709 = arith.subf %707, %708 : vector<8x64xf32>
      %c1488 = arith.constant 1488 : index
      %c0_260 = arith.constant 0 : index
      %710 = vector.load %arg4[%c1488, %c0_260] : memref<1816x64xf32, #tpu.memory_space<vmem>>, vector<8x64xf32>
      %c1680 = arith.constant 1680 : index
      %c0_261 = arith.constant 0 : index
      %711 = vector.load %arg4[%c1680, %c0_261] : memref<1816x64xf32, #tpu.memory_space<vmem>>, vector<8x64xf32>
      %712 = arith.mulf %709, %711 : vector<8x64xf32>
      %713 = arith.addf %710, %712 : vector<8x64xf32>
      %714 = arith.mulf %713, %562 : vector<8x64xf32>
      %c704 = arith.constant 704 : index
      %c0_262 = arith.constant 0 : index
      %715 = vector.load %arg4[%c704, %c0_262] : memref<1816x64xf32, #tpu.memory_space<vmem>>, vector<8x64xf32>
      %716 = arith.mulf %35, %715 : vector<8x64xf32>
      %c1304 = arith.constant 1304 : index
      %c0_263 = arith.constant 0 : index
      %717 = vector.load %arg4[%c1304, %c0_263] : memref<1816x64xf32, #tpu.memory_space<vmem>>, vector<8x64xf32>
      %718 = arith.subf %716, %717 : vector<8x64xf32>
      %c1496 = arith.constant 1496 : index
      %c0_264 = arith.constant 0 : index
      %719 = vector.load %arg4[%c1496, %c0_264] : memref<1816x64xf32, #tpu.memory_space<vmem>>, vector<8x64xf32>
      %c1688 = arith.constant 1688 : index
      %c0_265 = arith.constant 0 : index
      %720 = vector.load %arg4[%c1688, %c0_265] : memref<1816x64xf32, #tpu.memory_space<vmem>>, vector<8x64xf32>
      %721 = arith.mulf %718, %720 : vector<8x64xf32>
      %722 = arith.addf %719, %721 : vector<8x64xf32>
      %723 = arith.mulf %722, %567 : vector<8x64xf32>
      %c712 = arith.constant 712 : index
      %c0_266 = arith.constant 0 : index
      %724 = vector.load %arg4[%c712, %c0_266] : memref<1816x64xf32, #tpu.memory_space<vmem>>, vector<8x64xf32>
      %725 = arith.mulf %35, %724 : vector<8x64xf32>
      %c1312 = arith.constant 1312 : index
      %c0_267 = arith.constant 0 : index
      %726 = vector.load %arg4[%c1312, %c0_267] : memref<1816x64xf32, #tpu.memory_space<vmem>>, vector<8x64xf32>
      %727 = arith.subf %725, %726 : vector<8x64xf32>
      %c1504 = arith.constant 1504 : index
      %c0_268 = arith.constant 0 : index
      %728 = vector.load %arg4[%c1504, %c0_268] : memref<1816x64xf32, #tpu.memory_space<vmem>>, vector<8x64xf32>
      %c1696 = arith.constant 1696 : index
      %c0_269 = arith.constant 0 : index
      %729 = vector.load %arg4[%c1696, %c0_269] : memref<1816x64xf32, #tpu.memory_space<vmem>>, vector<8x64xf32>
      %730 = arith.mulf %727, %729 : vector<8x64xf32>
      %731 = arith.addf %728, %730 : vector<8x64xf32>
      %732 = arith.mulf %731, %572 : vector<8x64xf32>
      %c720 = arith.constant 720 : index
      %c0_270 = arith.constant 0 : index
      %733 = vector.load %arg4[%c720, %c0_270] : memref<1816x64xf32, #tpu.memory_space<vmem>>, vector<8x64xf32>
      %734 = arith.mulf %35, %733 : vector<8x64xf32>
      %c1320 = arith.constant 1320 : index
      %c0_271 = arith.constant 0 : index
      %735 = vector.load %arg4[%c1320, %c0_271] : memref<1816x64xf32, #tpu.memory_space<vmem>>, vector<8x64xf32>
      %736 = arith.subf %734, %735 : vector<8x64xf32>
      %c1512 = arith.constant 1512 : index
      %c0_272 = arith.constant 0 : index
      %737 = vector.load %arg4[%c1512, %c0_272] : memref<1816x64xf32, #tpu.memory_space<vmem>>, vector<8x64xf32>
      %c1704 = arith.constant 1704 : index
      %c0_273 = arith.constant 0 : index
      %738 = vector.load %arg4[%c1704, %c0_273] : memref<1816x64xf32, #tpu.memory_space<vmem>>, vector<8x64xf32>
      %739 = arith.mulf %736, %738 : vector<8x64xf32>
      %740 = arith.addf %737, %739 : vector<8x64xf32>
      %741 = arith.mulf %740, %577 : vector<8x64xf32>
      %c728 = arith.constant 728 : index
      %c0_274 = arith.constant 0 : index
      %742 = vector.load %arg4[%c728, %c0_274] : memref<1816x64xf32, #tpu.memory_space<vmem>>, vector<8x64xf32>
      %743 = arith.mulf %35, %742 : vector<8x64xf32>
      %c1328 = arith.constant 1328 : index
      %c0_275 = arith.constant 0 : index
      %744 = vector.load %arg4[%c1328, %c0_275] : memref<1816x64xf32, #tpu.memory_space<vmem>>, vector<8x64xf32>
      %745 = arith.subf %743, %744 : vector<8x64xf32>
      %c1520 = arith.constant 1520 : index
      %c0_276 = arith.constant 0 : index
      %746 = vector.load %arg4[%c1520, %c0_276] : memref<1816x64xf32, #tpu.memory_space<vmem>>, vector<8x64xf32>
      %c1712 = arith.constant 1712 : index
      %c0_277 = arith.constant 0 : index
      %747 = vector.load %arg4[%c1712, %c0_277] : memref<1816x64xf32, #tpu.memory_space<vmem>>, vector<8x64xf32>
      %748 = arith.mulf %745, %747 : vector<8x64xf32>
      %749 = arith.addf %746, %748 : vector<8x64xf32>
      %750 = arith.mulf %749, %582 : vector<8x64xf32>
      %c736 = arith.constant 736 : index
      %c0_278 = arith.constant 0 : index
      %751 = vector.load %arg4[%c736, %c0_278] : memref<1816x64xf32, #tpu.memory_space<vmem>>, vector<8x64xf32>
      %752 = arith.mulf %35, %751 : vector<8x64xf32>
      %c1336 = arith.constant 1336 : index
      %c0_279 = arith.constant 0 : index
      %753 = vector.load %arg4[%c1336, %c0_279] : memref<1816x64xf32, #tpu.memory_space<vmem>>, vector<8x64xf32>
      %754 = arith.subf %752, %753 : vector<8x64xf32>
      %c1528 = arith.constant 1528 : index
      %c0_280 = arith.constant 0 : index
      %755 = vector.load %arg4[%c1528, %c0_280] : memref<1816x64xf32, #tpu.memory_space<vmem>>, vector<8x64xf32>
      %c1720 = arith.constant 1720 : index
      %c0_281 = arith.constant 0 : index
      %756 = vector.load %arg4[%c1720, %c0_281] : memref<1816x64xf32, #tpu.memory_space<vmem>>, vector<8x64xf32>
      %757 = arith.mulf %754, %756 : vector<8x64xf32>
      %758 = arith.addf %755, %757 : vector<8x64xf32>
      %759 = arith.mulf %758, %587 : vector<8x64xf32>
      %c744 = arith.constant 744 : index
      %c0_282 = arith.constant 0 : index
      %760 = vector.load %arg4[%c744, %c0_282] : memref<1816x64xf32, #tpu.memory_space<vmem>>, vector<8x64xf32>
      %761 = arith.mulf %35, %760 : vector<8x64xf32>
      %c1344 = arith.constant 1344 : index
      %c0_283 = arith.constant 0 : index
      %762 = vector.load %arg4[%c1344, %c0_283] : memref<1816x64xf32, #tpu.memory_space<vmem>>, vector<8x64xf32>
      %763 = arith.subf %761, %762 : vector<8x64xf32>
      %c1536 = arith.constant 1536 : index
      %c0_284 = arith.constant 0 : index
      %764 = vector.load %arg4[%c1536, %c0_284] : memref<1816x64xf32, #tpu.memory_space<vmem>>, vector<8x64xf32>
      %c1728 = arith.constant 1728 : index
      %c0_285 = arith.constant 0 : index
      %765 = vector.load %arg4[%c1728, %c0_285] : memref<1816x64xf32, #tpu.memory_space<vmem>>, vector<8x64xf32>
      %766 = arith.mulf %763, %765 : vector<8x64xf32>
      %767 = arith.addf %764, %766 : vector<8x64xf32>
      %768 = arith.mulf %767, %592 : vector<8x64xf32>
      %c752 = arith.constant 752 : index
      %c0_286 = arith.constant 0 : index
      %769 = vector.load %arg4[%c752, %c0_286] : memref<1816x64xf32, #tpu.memory_space<vmem>>, vector<8x64xf32>
      %770 = arith.mulf %35, %769 : vector<8x64xf32>
      %c1352 = arith.constant 1352 : index
      %c0_287 = arith.constant 0 : index
      %771 = vector.load %arg4[%c1352, %c0_287] : memref<1816x64xf32, #tpu.memory_space<vmem>>, vector<8x64xf32>
      %772 = arith.subf %770, %771 : vector<8x64xf32>
      %c1544 = arith.constant 1544 : index
      %c0_288 = arith.constant 0 : index
      %773 = vector.load %arg4[%c1544, %c0_288] : memref<1816x64xf32, #tpu.memory_space<vmem>>, vector<8x64xf32>
      %c1736 = arith.constant 1736 : index
      %c0_289 = arith.constant 0 : index
      %774 = vector.load %arg4[%c1736, %c0_289] : memref<1816x64xf32, #tpu.memory_space<vmem>>, vector<8x64xf32>
      %775 = arith.mulf %772, %774 : vector<8x64xf32>
      %776 = arith.addf %773, %775 : vector<8x64xf32>
      %777 = arith.mulf %776, %597 : vector<8x64xf32>
      %c760 = arith.constant 760 : index
      %c0_290 = arith.constant 0 : index
      %778 = vector.load %arg4[%c760, %c0_290] : memref<1816x64xf32, #tpu.memory_space<vmem>>, vector<8x64xf32>
      %779 = arith.mulf %35, %778 : vector<8x64xf32>
      %c1360 = arith.constant 1360 : index
      %c0_291 = arith.constant 0 : index
      %780 = vector.load %arg4[%c1360, %c0_291] : memref<1816x64xf32, #tpu.memory_space<vmem>>, vector<8x64xf32>
      %781 = arith.subf %779, %780 : vector<8x64xf32>
      %c1552 = arith.constant 1552 : index
      %c0_292 = arith.constant 0 : index
      %782 = vector.load %arg4[%c1552, %c0_292] : memref<1816x64xf32, #tpu.memory_space<vmem>>, vector<8x64xf32>
      %c1744 = arith.constant 1744 : index
      %c0_293 = arith.constant 0 : index
      %783 = vector.load %arg4[%c1744, %c0_293] : memref<1816x64xf32, #tpu.memory_space<vmem>>, vector<8x64xf32>
      %784 = arith.mulf %781, %783 : vector<8x64xf32>
      %785 = arith.addf %782, %784 : vector<8x64xf32>
      %786 = arith.mulf %785, %602 : vector<8x64xf32>
      %c768 = arith.constant 768 : index
      %c0_294 = arith.constant 0 : index
      %787 = vector.load %arg4[%c768, %c0_294] : memref<1816x64xf32, #tpu.memory_space<vmem>>, vector<8x64xf32>
      %788 = arith.mulf %35, %787 : vector<8x64xf32>
      %c1368 = arith.constant 1368 : index
      %c0_295 = arith.constant 0 : index
      %789 = vector.load %arg4[%c1368, %c0_295] : memref<1816x64xf32, #tpu.memory_space<vmem>>, vector<8x64xf32>
      %790 = arith.subf %788, %789 : vector<8x64xf32>
      %c1560 = arith.constant 1560 : index
      %c0_296 = arith.constant 0 : index
      %791 = vector.load %arg4[%c1560, %c0_296] : memref<1816x64xf32, #tpu.memory_space<vmem>>, vector<8x64xf32>
      %c1752 = arith.constant 1752 : index
      %c0_297 = arith.constant 0 : index
      %792 = vector.load %arg4[%c1752, %c0_297] : memref<1816x64xf32, #tpu.memory_space<vmem>>, vector<8x64xf32>
      %793 = arith.mulf %790, %792 : vector<8x64xf32>
      %794 = arith.addf %791, %793 : vector<8x64xf32>
      %795 = arith.mulf %794, %607 : vector<8x64xf32>
      %c776 = arith.constant 776 : index
      %c0_298 = arith.constant 0 : index
      %796 = vector.load %arg4[%c776, %c0_298] : memref<1816x64xf32, #tpu.memory_space<vmem>>, vector<8x64xf32>
      %797 = arith.mulf %35, %796 : vector<8x64xf32>
      %c1376 = arith.constant 1376 : index
      %c0_299 = arith.constant 0 : index
      %798 = vector.load %arg4[%c1376, %c0_299] : memref<1816x64xf32, #tpu.memory_space<vmem>>, vector<8x64xf32>
      %799 = arith.subf %797, %798 : vector<8x64xf32>
      %c1568 = arith.constant 1568 : index
      %c0_300 = arith.constant 0 : index
      %800 = vector.load %arg4[%c1568, %c0_300] : memref<1816x64xf32, #tpu.memory_space<vmem>>, vector<8x64xf32>
      %c1760 = arith.constant 1760 : index
      %c0_301 = arith.constant 0 : index
      %801 = vector.load %arg4[%c1760, %c0_301] : memref<1816x64xf32, #tpu.memory_space<vmem>>, vector<8x64xf32>
      %802 = arith.mulf %799, %801 : vector<8x64xf32>
      %803 = arith.addf %800, %802 : vector<8x64xf32>
      %804 = arith.mulf %803, %612 : vector<8x64xf32>
      %c784 = arith.constant 784 : index
      %c0_302 = arith.constant 0 : index
      %805 = vector.load %arg4[%c784, %c0_302] : memref<1816x64xf32, #tpu.memory_space<vmem>>, vector<8x64xf32>
      %806 = arith.mulf %35, %805 : vector<8x64xf32>
      %c1384 = arith.constant 1384 : index
      %c0_303 = arith.constant 0 : index
      %807 = vector.load %arg4[%c1384, %c0_303] : memref<1816x64xf32, #tpu.memory_space<vmem>>, vector<8x64xf32>
      %808 = arith.subf %806, %807 : vector<8x64xf32>
      %c1576 = arith.constant 1576 : index
      %c0_304 = arith.constant 0 : index
      %809 = vector.load %arg4[%c1576, %c0_304] : memref<1816x64xf32, #tpu.memory_space<vmem>>, vector<8x64xf32>
      %c1768 = arith.constant 1768 : index
      %c0_305 = arith.constant 0 : index
      %810 = vector.load %arg4[%c1768, %c0_305] : memref<1816x64xf32, #tpu.memory_space<vmem>>, vector<8x64xf32>
      %811 = arith.mulf %808, %810 : vector<8x64xf32>
      %812 = arith.addf %809, %811 : vector<8x64xf32>
      %813 = arith.mulf %812, %617 : vector<8x64xf32>
      %c792 = arith.constant 792 : index
      %c0_306 = arith.constant 0 : index
      %814 = vector.load %arg4[%c792, %c0_306] : memref<1816x64xf32, #tpu.memory_space<vmem>>, vector<8x64xf32>
      %815 = arith.mulf %35, %814 : vector<8x64xf32>
      %c1392 = arith.constant 1392 : index
      %c0_307 = arith.constant 0 : index
      %816 = vector.load %arg4[%c1392, %c0_307] : memref<1816x64xf32, #tpu.memory_space<vmem>>, vector<8x64xf32>
      %817 = arith.subf %815, %816 : vector<8x64xf32>
      %c1584 = arith.constant 1584 : index
      %c0_308 = arith.constant 0 : index
      %818 = vector.load %arg4[%c1584, %c0_308] : memref<1816x64xf32, #tpu.memory_space<vmem>>, vector<8x64xf32>
      %c1776 = arith.constant 1776 : index
      %c0_309 = arith.constant 0 : index
      %819 = vector.load %arg4[%c1776, %c0_309] : memref<1816x64xf32, #tpu.memory_space<vmem>>, vector<8x64xf32>
      %820 = arith.mulf %817, %819 : vector<8x64xf32>
      %821 = arith.addf %818, %820 : vector<8x64xf32>
      %822 = arith.mulf %821, %622 : vector<8x64xf32>
      %c800 = arith.constant 800 : index
      %c0_310 = arith.constant 0 : index
      %823 = vector.load %arg4[%c800, %c0_310] : memref<1816x64xf32, #tpu.memory_space<vmem>>, vector<8x64xf32>
      %824 = arith.mulf %35, %823 : vector<8x64xf32>
      %c1400 = arith.constant 1400 : index
      %c0_311 = arith.constant 0 : index
      %825 = vector.load %arg4[%c1400, %c0_311] : memref<1816x64xf32, #tpu.memory_space<vmem>>, vector<8x64xf32>
      %826 = arith.subf %824, %825 : vector<8x64xf32>
      %c1592 = arith.constant 1592 : index
      %c0_312 = arith.constant 0 : index
      %827 = vector.load %arg4[%c1592, %c0_312] : memref<1816x64xf32, #tpu.memory_space<vmem>>, vector<8x64xf32>
      %c1784 = arith.constant 1784 : index
      %c0_313 = arith.constant 0 : index
      %828 = vector.load %arg4[%c1784, %c0_313] : memref<1816x64xf32, #tpu.memory_space<vmem>>, vector<8x64xf32>
      %829 = arith.mulf %826, %828 : vector<8x64xf32>
      %830 = arith.addf %827, %829 : vector<8x64xf32>
      %831 = arith.mulf %830, %627 : vector<8x64xf32>
      %c808 = arith.constant 808 : index
      %c0_314 = arith.constant 0 : index
      %832 = vector.load %arg4[%c808, %c0_314] : memref<1816x64xf32, #tpu.memory_space<vmem>>, vector<8x64xf32>
      %833 = arith.mulf %35, %832 : vector<8x64xf32>
      %c1408 = arith.constant 1408 : index
      %c0_315 = arith.constant 0 : index
      %834 = vector.load %arg4[%c1408, %c0_315] : memref<1816x64xf32, #tpu.memory_space<vmem>>, vector<8x64xf32>
      %835 = arith.subf %833, %834 : vector<8x64xf32>
      %c1600 = arith.constant 1600 : index
      %c0_316 = arith.constant 0 : index
      %836 = vector.load %arg4[%c1600, %c0_316] : memref<1816x64xf32, #tpu.memory_space<vmem>>, vector<8x64xf32>
      %c1792 = arith.constant 1792 : index
      %c0_317 = arith.constant 0 : index
      %837 = vector.load %arg4[%c1792, %c0_317] : memref<1816x64xf32, #tpu.memory_space<vmem>>, vector<8x64xf32>
      %838 = arith.mulf %835, %837 : vector<8x64xf32>
      %839 = arith.addf %836, %838 : vector<8x64xf32>
      %840 = arith.mulf %839, %632 : vector<8x64xf32>
      %c816 = arith.constant 816 : index
      %c0_318 = arith.constant 0 : index
      %841 = vector.load %arg4[%c816, %c0_318] : memref<1816x64xf32, #tpu.memory_space<vmem>>, vector<8x64xf32>
      %842 = arith.mulf %35, %841 : vector<8x64xf32>
      %c1416 = arith.constant 1416 : index
      %c0_319 = arith.constant 0 : index
      %843 = vector.load %arg4[%c1416, %c0_319] : memref<1816x64xf32, #tpu.memory_space<vmem>>, vector<8x64xf32>
      %844 = arith.subf %842, %843 : vector<8x64xf32>
      %c1608 = arith.constant 1608 : index
      %c0_320 = arith.constant 0 : index
      %845 = vector.load %arg4[%c1608, %c0_320] : memref<1816x64xf32, #tpu.memory_space<vmem>>, vector<8x64xf32>
      %c1800 = arith.constant 1800 : index
      %c0_321 = arith.constant 0 : index
      %846 = vector.load %arg4[%c1800, %c0_321] : memref<1816x64xf32, #tpu.memory_space<vmem>>, vector<8x64xf32>
      %847 = arith.mulf %844, %846 : vector<8x64xf32>
      %848 = arith.addf %845, %847 : vector<8x64xf32>
      %849 = arith.mulf %848, %637 : vector<8x64xf32>
      %c824 = arith.constant 824 : index
      %c0_322 = arith.constant 0 : index
      %850 = vector.load %arg4[%c824, %c0_322] : memref<1816x64xf32, #tpu.memory_space<vmem>>, vector<8x64xf32>
      %851 = arith.mulf %35, %850 : vector<8x64xf32>
      %c1424 = arith.constant 1424 : index
      %c0_323 = arith.constant 0 : index
      %852 = vector.load %arg4[%c1424, %c0_323] : memref<1816x64xf32, #tpu.memory_space<vmem>>, vector<8x64xf32>
      %853 = arith.subf %851, %852 : vector<8x64xf32>
      %c1616 = arith.constant 1616 : index
      %c0_324 = arith.constant 0 : index
      %854 = vector.load %arg4[%c1616, %c0_324] : memref<1816x64xf32, #tpu.memory_space<vmem>>, vector<8x64xf32>
      %c1808 = arith.constant 1808 : index
      %c0_325 = arith.constant 0 : index
      %855 = vector.load %arg4[%c1808, %c0_325] : memref<1816x64xf32, #tpu.memory_space<vmem>>, vector<8x64xf32>
      %856 = arith.mulf %853, %855 : vector<8x64xf32>
      %857 = arith.addf %854, %856 : vector<8x64xf32>
      %858 = arith.mulf %857, %642 : vector<8x64xf32>
      %859 = arith.addf %651, %660 : vector<8x64xf32>
      %860 = arith.addf %669, %678 : vector<8x64xf32>
      %861 = arith.addf %687, %696 : vector<8x64xf32>
      %862 = arith.addf %705, %714 : vector<8x64xf32>
      %863 = arith.addf %723, %732 : vector<8x64xf32>
      %864 = arith.addf %741, %750 : vector<8x64xf32>
      %865 = arith.addf %759, %768 : vector<8x64xf32>
      %866 = arith.addf %777, %786 : vector<8x64xf32>
      %867 = arith.addf %795, %804 : vector<8x64xf32>
      %868 = arith.addf %813, %822 : vector<8x64xf32>
      %869 = arith.addf %831, %840 : vector<8x64xf32>
      %870 = arith.addf %849, %858 : vector<8x64xf32>
      %871 = arith.addf %859, %860 : vector<8x64xf32>
      %872 = arith.addf %861, %862 : vector<8x64xf32>
      %873 = arith.addf %863, %864 : vector<8x64xf32>
      %874 = arith.addf %865, %866 : vector<8x64xf32>
      %875 = arith.addf %867, %868 : vector<8x64xf32>
      %876 = arith.addf %869, %870 : vector<8x64xf32>
      %877 = arith.addf %871, %872 : vector<8x64xf32>
      %878 = arith.addf %873, %874 : vector<8x64xf32>
      %879 = arith.addf %875, %876 : vector<8x64xf32>
      %880 = arith.addf %877, %878 : vector<8x64xf32>
      %881 = arith.addf %880, %879 : vector<8x64xf32>
      %882 = arith.negf %35 : vector<8x64xf32>
      %883 = math.exp %882 : vector<8x64xf32>
      %cst_326 = arith.constant 1.000000e+00 : f32
      %884 = vector.broadcast %cst_326 : f32 to vector<8x64xf32>
      %885 = arith.addf %884, %883 : vector<8x64xf32>
      %886 = arith.divf %884, %885 : vector<8x64xf32>
      %887 = arith.mulf %35, %886 : vector<8x64xf32>
      %888 = arith.addf %881, %887 : vector<8x64xf32>
      %889 = arith.index_cast %13 : i32 to index
      %c0_327 = arith.constant 0 : index
      %890 = vector.load %arg8[%889, %c0_327] : memref<128x64xf32, #tpu.memory_space<vmem>>, vector<8x64xf32>
      tpu.vector_store %arg8[%889, %c0_327], %888 {strides = array<i32>} : memref<128x64xf32, #tpu.memory_space<vmem>>, vector<8x64xf32>,
    }
    %c16_i32_9 = arith.constant 16 : i32
    %c0_10 = arith.constant 0 : index
    %c0_11 = arith.constant 0 : index
    %7 = vector.load %arg8[%c0_10, %c0_11] : memref<128x64xf32, #tpu.memory_space<vmem>>, vector<128x64xf32>
    %8 = arith.truncf %7 : vector<128x64xf32> to vector<128x64xbf16>
    %c0_12 = arith.constant 0 : index
    %c0_13 = arith.constant 0 : index
    %9 = vector.load %arg5[%c0_12, %c0_13] : memref<64x128xbf16, #tpu.memory_space<vmem>>, vector<64x128xbf16>
    %cst_14 = arith.constant dense<0.000000e+00> : vector<128x128xf32>
    %10 = tpu.matmul %8, %9, %cst_14 {dimension_numbers = #tpu.dot_dimension_numbers<[1], [0], [0], [1], [0, 0, 1, 1], [], []>} : vector<128x64xbf16>, vector<64x128xbf16>, vector<128x128xf32> -> vector<128x128xf32>
    %c0_15 = arith.constant 0 : index
    %c0_16 = arith.constant 0 : index
    %11 = vector.load %arg6[%c0_15, %c0_16] : memref<128x128xf32, #tpu.memory_space<vmem>>, vector<128x128xf32>
    tpu.vector_store %arg6[%c0_15, %c0_16], %10 {strides = array<i32>} : memref<128x128xf32, #tpu.memory_space<vmem>>, vector<128x128xf32>,
    return
  }
  func.func @transform_0(%arg0: i32) -> (i32, i32) {
    %c0_i32 = arith.constant 0 : i32
    %c0_i32_0 = arith.constant 0 : i32
    return %arg0, %c0_i32 : i32, i32
  }
  func.func @transform_1(%arg0: i32) -> (i32, i32) {
    %c0_i32 = arith.constant 0 : i32
    %c0_i32_0 = arith.constant 0 : i32
    %c0_i32_1 = arith.constant 0 : i32
    return %c0_i32, %c0_i32_0 : i32, i32
  }
  func.func @transform_2(%arg0: i32) -> (i32, i32) {
    %c0_i32 = arith.constant 0 : i32
    %c0_i32_0 = arith.constant 0 : i32
    %c0_i32_1 = arith.constant 0 : i32
    return %c0_i32, %c0_i32_0 : i32, i32
  }
  func.func @transform_3(%arg0: i32) -> (i32, i32) {
    %c0_i32 = arith.constant 0 : i32
    %c0_i32_0 = arith.constant 0 : i32
    %c0_i32_1 = arith.constant 0 : i32
    return %c0_i32, %c0_i32_0 : i32, i32
  }
  func.func @transform_4(%arg0: i32) -> (i32, i32) {
    %c0_i32 = arith.constant 0 : i32
    %c0_i32_0 = arith.constant 0 : i32
    %c0_i32_1 = arith.constant 0 : i32
    return %c0_i32, %c0_i32_0 : i32, i32
  }
  func.func @transform_5(%arg0: i32) -> (i32, i32) {
    %c0_i32 = arith.constant 0 : i32
    %c0_i32_0 = arith.constant 0 : i32
    return %arg0, %c0_i32 : i32, i32
  }
}

</mosaic_0001>

<bundles_post_ra>
// kernel: knots_kan_forward.1
= control target key start
LH: loop header
LB: loop body
LE: loop exit
PB: predicated region body
PF: predicated region fallthrough
CT: control target
= control target key end

     0   :  { %s2603_s18 = smov 0   ;;  %s6273_s0 = inlined_call_operand.vmem [shape: f32[256,32], index: 0, kind: input, shape index: {}]   ;;  %s6274_s1 = inlined_call_operand.vmem [shape: f32[1816,32], index: 1, kind: input, shape index: {}]   ;;  %s6275_s2 = inlined_call_operand.vmem [shape: bf16[32,64], index: 2, kind: input, shape index: {}]   ;;  %s6276_s3 = inlined_call_operand.vmem [shape: f32[1816,64], index: 3, kind: input, shape index: {}]   ;;  %s6277_s4 = inlined_call_operand.vmem [shape: bf16[64,128], index: 4, kind: input, shape index: {}]   ;;  %s6278_s5 = inlined_call_operand.vmem [shape: f32[256,128], index: 5, kind: output, shape index: {}]  }
   0x1 LB: > { %s2344_s19 = sadd.s32 4294967295, %s2559_s18   ;;  %p2348_p0 = scmp.ge.s32.totalorder %s2559_s18, 1  ;;  %s2559_s18 = sphi %s2603_s18, %s15_s18  }
   0x2   : > { %p188_p1 = scmp.lt.s32.totalorder %s2559_s18, 3 }
   0x4   : > { %p189_p2 = pnand %p2348_p0, %p188_p1 }
   0x5   : > { %s2349_s20 = sshll.u32 (!%p189_p2), %s2344_s19, 4  ;;  %s2621_s28 = smov (!%p189_p2), 0  }
   0x6   : > { %192 = sbr.rel (%p189_p2) target bundleno = 1432 (0x598), region = 40  ;;  %p217_p3 = scmp.lt.s32.totalorder (!%p189_p2), %s2349_s20, 31 }
   0xd   : > { %s6551_s20 = smov (!%p217_p3, %s2349_s20), 31 }
   0xe   : > { %s2350_s21 = sshll.u32 %s6551_s20, 3 }
   0xf   : > { %s2614_s24 = scalar_lea.vmem %s6273_s0, %s2350_s21  ;;  %s2619_s27 = scalar_lea.vmem %s6278_s5, %s2350_s21 }
  0x10 LB: >> { %s2353_s29 = sshll.u32 %s2563_s28, 3  ;;  %vm6279_vm0 = vcmask 261120   ;;  %v253_v12 = vld [vmem:[%s6274_s1] sm:$0xff]  ;;  %v255_v14 = vld [vmem:[%s6274_s1 + $0x8] sm:$0xff]  ;;  %v259_v16 = vld [vmem:[%s6274_s1 + $0x18] sm:$0xff]  ;;  %vm2569_vm3 = vmmov 1   ;;  %s2563_s28 = sphi %s2621_s28, %s234_s28  }
  0x11   : >> { %s236_s30 = scalar_lea.vmem %s2614_s24, %s2353_s29  ;;  %v257_v17 = vld [vmem:[%s6274_s1 + $0x10] sm:$0xff]  ;;  %v261_v18 = vld [vmem:[%s6274_s1 + $0x20] sm:$0xff]  ;;  %v263_v19 = vld [vmem:[%s6274_s1 + $0x28] sm:$0xff]  ;;  %v6281_v58 = vmov 0.0   ;;  %s1062_s21 = scalar_lea.vmem [#allocation2], %s2353_s29 }
  0x12   : >> { %v237_v0 = vld [vmem:[%s236_s30] sm:$0xff]  ;;  %v265_v20 = vld [vmem:[%s6274_s1 + $0x30] sm:$0xff]  ;;  %v267_v22 = vld [vmem:[%s6274_s1 + $0x38] sm:$0xff]  ;;  %s234_s28 = sadd.s32 1, %s2563_s28  }
  0x13   : >> { %v239_v1 = vsel %vm6279_vm0, %v237_v0, 0.0  ;;  %v269_v23 = vld [vmem:[%s6274_s1 + $0x40] sm:$0xff]  ;;  %v2682_v24 = vld [vmem:[%s6274_s1 + $0x48] sm:$0xff]  ;;  %v2687_v25 = vld [vmem:[%s6274_s1 + $0x50] sm:$0xff]  ;;  %p231_p4 = scmp.ge.s32.totalorder %s234_s28, 16  }
  0x14   : >> { %240 = vadd.xlane.f32.xlu0 %v239_v1  ;;  %v2700_v27 = vld [vmem:[%s6274_s1 + $0x58] sm:$0xff]  ;;  %v2705_v28 = vld [vmem:[%s6274_s1 + $0x60] sm:$0xff]  ;;  %v2710_v29 = vld [vmem:[%s6274_s1 + $0x68] sm:$0xff]  ;;  %s4443_s24 = smov (%p231_p4), 0  }
  0x15   : >> { %v415_v31 = vld [vmem:[%s6274_s1 + $0xe8] sm:$0xff]  ;;  %v419_v32 = vld [vmem:[%s6274_s1 + $0xf0] sm:$0xff]  ;;  %v2733_v34 = vld [vmem:[%s6274_s1 + $0x78] sm:$0xff] }
  0x16   : >> { %v2728_v33 = vld [vmem:[%s6274_s1 + $0x70] sm:$0xff]  ;;  %v423_v36 = vld [vmem:[%s6274_s1 + $0xf8] sm:$0xff]  ;;  %v427_v37 = vld [vmem:[%s6274_s1 + $0x100] sm:$0xff] }
  0x17   : >> { %v431_v39 = vld [vmem:[%s6274_s1 + $0x108] sm:$0xff]  ;;  %v435_v40 = vld [vmem:[%s6274_s1 + $0x110] sm:$0xff]  ;;  %v2773_v42 = vld [vmem:[%s6274_s1 + $0x340] sm:$0xff] }
  0x18   : >> { %v421_v43 = vld [vmem:[%s6274_s1 + $0x348] sm:$0xff]  ;;  %v425_v44 = vld [vmem:[%s6274_s1 + $0x350] sm:$0xff]  ;;  %v429_v49 = vld [vmem:[%s6274_s1 + $0x358] sm:$0xff] }
  0x19   : >> { %v439_v50 = vld [vmem:[%s6274_s1 + $0x118] sm:$0xff]  ;;  %v2810_v51 = vld [vmem:[%s6274_s1 + $0x80] sm:$0xff]  ;;  %v447_v56 = vld [vmem:[%s6274_s1 + $0x128] sm:$0xff] }
  0x1a   : >> { %v433_v54 = vld [vmem:[%s6274_s1 + $0x360] sm:$0xff]  ;;  %v2837_v57 = vld [vmem:[%s6274_s1 + $0x88] sm:$0xff]  ;;  %v441_v63 = vld [vmem:[%s6274_s1 + $0x370] sm:$0xff] }
  0x1b   : >> { %v443_v55 = vld [vmem:[%s6274_s1 + $0x120] sm:$0xff]  ;;  %v437_v62 = vld [vmem:[%s6274_s1 + $0x368] sm:$0xff]  ;;  %v455_v1 = vld [vmem:[%s6274_s1 + $0x138] sm:$0xff] }
  0x1c   : >> { %v465_v35 = vld [vmem:[%s6274_s1 + $0x3a0] sm:$0xff]  ;;  %v483_v45 = vld [vmem:[%s6274_s1 + $0x170] sm:$0xff]  ;;  %v487_v60 = vld [vmem:[%s6274_s1 + $0x178] sm:$0xff] }
  0xa1   : >> { %v241_v2 = vpop.xlane.xlu0 %240 }
  0xa2   : >> { %v243_v3 = vmul.f32 0.03125, %v241_v2  ;;  %v2868_v2 = vld [vmem:[%s6274_s1 + $0x90] sm:$0xff] }
  0xa4   : >> { %v244_v4 = vsub.f32 %v237_v0, %v243_v3  ;;  %v451_v0 = vld [vmem:[%s6274_s1 + $0x130] sm:$0xff] }
  0xa6   : >> { %v245_v5 = vmul.f32 %v244_v4, %v244_v4 }
  0xa8   : >> { %v246_v6 = vsel %vm6279_vm0, %v245_v5, 0.0  ;;  %v485_v5 = vld [vmem:[%s6274_s1 + $0x3c8] sm:$0xff] }
  0xa9   : >> { %247 = vadd.xlane.f32.xlu0 %v246_v6 }
 0x136   : >> { %v248_v7 = vpop.xlane.xlu0 %247 }
 0x137   : >> { %v249_v8 = vmul.f32 0.03125, %v248_v7 }
 0x139   : >> { %v250_v9 = vadd.f32 1e-05, %v249_v8  ;;  %v459_v8 = vld [vmem:[%s6274_s1 + $0x140] sm:$0xff] }
 0x13b   : >> { %2527 = vrsqrt.f32 %v250_v9  ;;  %v463_v9 = vld [vmem:[%s6274_s1 + $0x148] sm:$0xff] }
 0x145   : >> { %v2528_v10 = vpop.eup %2527 }
 0x146   : >> { %v252_v11 = vmul.f32 %v2528_v10, %v244_v4 }
 0x148   : >> { %v254_v13 = vmul.f32 %v253_v12, %v252_v11  ;;  %v511_v11 = vld [vmem:[%s6274_s1 + $0x1a8] sm:$0xff] }
 0x14a   : >> { %v2638_v15 = vadd.f32 %v255_v14, %v254_v13 }
 0x14c   : >> { %vm260_vm1 = vcmp.ge.f32.partialorder %v2638_v15, %v259_v16  ;;  %vm258_vm2 = vcmp.ge.f32.partialorder %v2638_v15, %v257_v17  ;;  %vm262_vm5 = vcmp.ge.f32.partialorder %v2638_v15, %v261_v18  ;;  %vm264_vm6 = vcmp.ge.f32.partialorder %v2638_v15, %v263_v19  ;;  %v445_v16 = vld [vmem:[%s6274_s1 + $0x378] sm:$0xff]  ;;  %v449_v17 = vld [vmem:[%s6274_s1 + $0x380] sm:$0xff]  ;;  %v453_v18 = vld [vmem:[%s6274_s1 + $0x388] sm:$0xff] }
 0x14d   : >> { %vm311_vm4 = vmxor %vm260_vm1, %vm2569_vm3  ;;  %vm266_vm7 = vcmp.ge.f32.partialorder %v2638_v15, %v265_v20  ;;  %vm268_vm12 = vcmp.ge.f32.partialorder %v2638_v15, %v267_v22  ;;  %vm270_vm14 = vcmp.ge.f32.partialorder %v2638_v15, %v269_v23  ;;  %v2791_v46 = vmul.f32 %v415_v31, %v2638_v15  ;;  %v467_v19 = vld [vmem:[%s6274_s1 + $0x150] sm:$0xff]  ;;  %v471_v20 = vld [vmem:[%s6274_s1 + $0x158] sm:$0xff] }
 0x14e   : >> { %vm2663_vm8 = vmand %vm258_vm2, %vm311_vm4  ;;  %v420_v47 = vmul.f32 %v419_v32, %v2638_v15  ;;  %v424_v48 = vmul.f32 %v423_v36, %v2638_v15  ;;  %v428_v53 = vmul.f32 %v427_v37, %v2638_v15  ;;  %v432_v61 = vmul.f32 %v431_v39, %v2638_v15  ;;  %v457_v31 = vld [vmem:[%s6274_s1 + $0x390] sm:$0xff]  ;;  %v461_v32 = vld [vmem:[%s6274_s1 + $0x398] sm:$0xff] }
 0x14f   : >> { %vm315_vm9 = vmxor %vm262_vm5, %vm2569_vm3  ;;  %v2842_v59 = vsel %vm2663_vm8, 1.0, %v6281_v58  ;;  %v436_v6 = vmul.f32 %v435_v40, %v2638_v15  ;;  %v440_v7 = vmul.f32 %v439_v50, %v2638_v15  ;;  %v418_v12 = vsub.f32 %v2791_v46, %v2773_v42  ;;  %v475_v36 = vld [vmem:[%s6274_s1 + $0x160] sm:$0xff]  ;;  %v479_v37 = vld [vmem:[%s6274_s1 + $0x168] sm:$0xff] }
 0x150   : >> { %vm319_vm10 = vmxor %vm264_vm6, %vm2569_vm3  ;;  %v2911_v13 = vsub.f32 %v420_v47, %v421_v43  ;;  %v2913_v14 = vsub.f32 %v424_v48, %v425_v44  ;;  %v2938_v22 = vsub.f32 %v428_v53, %v429_v49  ;;  %v444_v23 = vmul.f32 %v443_v55, %v2638_v15  ;;  %v469_v44 = vld [vmem:[%s6274_s1 + $0x3a8] sm:$0xff]  ;;  %v2984_v47 = vld [vmem:[%s6274_s1 + $0x98] sm:$0xff] }
 0x151   : >> { %vm2692_vm11 = vmxor %vm266_vm7, %vm2569_vm3  ;;  %v448_v26 = vmul.f32 %v447_v56, %v2638_v15  ;;  %v452_v30 = vmul.f32 %v451_v0, %v2638_v15  ;;  %v2968_v39 = vsub.f32 %v432_v61, %v433_v54  ;;  %v456_v40 = vmul.f32 %v455_v1, %v2638_v15  ;;  %v473_v54 = vld [vmem:[%s6274_s1 + $0x3b0] sm:$0xff]  ;;  %v477_v55 = vld [vmem:[%s6274_s1 + $0x3b8] sm:$0xff] }
 0x152   : >> { %vm2714_vm13 = vmand %vm260_vm1, %vm315_vm9  ;;  %vm6280_vm1 = vcmp.ge.f32.partialorder %v2638_v15, %v2682_v24  ;;  %vm276_vm9 = vcmp.ge.f32.partialorder %v2638_v15, %v2700_v27  ;;  %v460_v41 = vmul.f32 %v459_v8, %v2638_v15  ;;  %v464_v43 = vmul.f32 %v463_v9, %v2638_v15  ;;  %v481_v56 = vld [vmem:[%s6274_s1 + $0x3c0] sm:$0xff]  ;;  %v3052_v8 = vld [vmem:[%s6274_s1 + $0xa8] sm:$0xff] }
 0x153   : >> { %vm2737_vm15 = vmand %vm262_vm5, %vm319_vm10  ;;  %vm274_vm5 = vcmp.ge.f32.partialorder %v2638_v15, %v2687_v25  ;;  %v2873_v3 = vsel %vm2714_vm13, 1.0, %v6281_v58  ;;  %v2999_v50 = vsub.f32 %v436_v6, %v437_v62  ;;  %v3001_v52 = vsub.f32 %v440_v7, %v441_v63  ;;  %v3021_v61 = vld [vmem:[%s6274_s1 + $0xa0] sm:$0xff]  ;;  %v499_v25 = vld [vmem:[%s6274_s1 + $0x190] sm:$0xff] }
 0x154   : >> { %vm2753_vm2 = vmand %vm264_vm6, %vm2692_vm11  ;;  %vm282_vm11 = vcmp.ge.f32.partialorder %v2638_v15, %v2728_v33  ;;  %v2878_v4 = vsel %vm2737_vm15, 1.0, %v6281_v58  ;;  %vm6325_vm15 = vcmp.ge.f32.partialorder %v2638_v15, %v2705_v28  ;;  %v468_v53 = vmul.f32 %v467_v19, %v2638_v15  ;;  %v491_v7 = vld [vmem:[%s6274_s1 + $0x180] sm:$0xff]  ;;  %v3219_v9 = vld [vmem:[%s6274_s1 + $0x408] sm:$0xff] }
 0x155   : >> { %vm2766_vm4 = vmxor %vm268_vm12, %vm2569_vm3  ;;  %v2899_v10 = vsel %vm2753_vm2, 1.0, %v6281_v58  ;;  %v472_v0 = vmul.f32 %v471_v20, %v2638_v15  ;;  %v476_v1 = vmul.f32 %v475_v36, %v2638_v15  ;;  %v480_v6 = vmul.f32 %v479_v37, %v2638_v15  ;;  %v489_v37 = vld [vmem:[%s6274_s1 + $0x3d0] sm:$0xff]  ;;  %v507_v27 = vld [vmem:[%s6274_s1 + $0x1a0] sm:$0xff] }
 0x156   : >> { %vm2786_vm6 = vmxor %vm270_vm14, %vm2569_vm3  ;;  %v3063_v19 = vsub.f32 %v444_v23, %v445_v16  ;;  %v3065_v20 = vsub.f32 %v448_v26, %v449_v17  ;;  %v3067_v21 = vsub.f32 %v452_v30, %v453_v18  ;;  %v484_v36 = vmul.f32 %v483_v45, %v2638_v15  ;;  %v503_v30 = vld [vmem:[%s6274_s1 + $0x198] sm:$0xff]  ;;  %v497_v63 = vld [vmem:[%s6274_s1 + $0x3e0] sm:$0xff] }
 0x157   : >> { %vm2816_vm0 = vmxor %vm6280_vm1, %vm2569_vm3  ;;  %vm284_vm1 = vcmp.ge.f32.partialorder %v2638_v15, %v2733_v34  ;;  %v3085_v17 = vsub.f32 %v456_v40, %v457_v31  ;;  %v3087_v18 = vsub.f32 %v460_v41, %v461_v32  ;;  %v3089_v23 = vsub.f32 %v464_v43, %v465_v35  ;;  %v515_v41 = vld [vmem:[%s6274_s1 + $0x1b0] sm:$0xff]  ;;  %v3320_v33 = vld [vmem:[%s6274_s1 + $0xc8] sm:$0xff] }
 0x158   : >> { %vm2848_vm10 = vmand %vm266_vm7, %vm2766_vm4  ;;  %vm290_vm4 = vcmp.ge.f32.partialorder %v2638_v15, %v2868_v2  ;;  %v488_v26 = vmul.f32 %v487_v60, %v2638_v15  ;;  %v3111_v32 = vsub.f32 %v468_v53, %v469_v44  ;;  %v492_v35 = vmul.f32 %v491_v7, %v2638_v15  ;;  %v493_v60 = vld [vmem:[%s6274_s1 + $0x3d8] sm:$0xff] }
 0x159   : >> { %vm2884_vm7 = vmand %vm268_vm12, %vm2786_vm6  ;;  %vm286_vm12 = vcmp.ge.f32.partialorder %v2638_v15, %v2810_v51  ;;  %v2989_v48 = vsel %vm2848_vm10, 1.0, %v6281_v58  ;;  %vm6328_vm6 = vcmp.ge.f32.partialorder %v2638_v15, %v2682_v24  ;;  %v495_v24 = vld [vmem:[%s6274_s1 + $0x188] sm:$0xff]  ;;  %v3136_v45 = vsub.f32 %v472_v0, %v473_v54  ;;  %v3153_v54 = vld [vmem:[%s6274_s1 + $0xb0] sm:$0xff] }
 0x15a   : >> { %vm2905_vm8 = vmand %vm270_vm14, %vm2816_vm0  ;;  %vm288_vm14 = vcmp.ge.f32.partialorder %v2638_v15, %v2837_v57  ;;  %v3026_v62 = vsel %vm2884_vm7, 1.0, %v6281_v58  ;;  %v496_v40 = vmul.f32 %v495_v24, %v2638_v15  ;;  %v3138_v49 = vsub.f32 %v476_v1, %v477_v55  ;;  %v501_v1 = vld [vmem:[%s6274_s1 + $0x3e8] sm:$0xff]  ;;  %v3250_v55 = vld [vmem:[%s6274_s1 + $0xc0] sm:$0xff] }
 0x15b   : >> { %vm2934_vm0 = vmxor %vm274_vm5, %vm2569_vm3  ;;  %v3101_v38 = vsel %vm2905_vm8, 1.0, %v6281_v58  ;;  %vm292_vm8 = vcmp.ge.f32.partialorder %v2638_v15, %v2984_v47  ;;  %v3140_v53 = vsub.f32 %v480_v6, %v481_v56  ;;  %v3163_v56 = vsub.f32 %v484_v36, %v485_v5  ;;  %v505_v36 = vld [vmem:[%s6274_s1 + $0x3f0] sm:$0xff] }
 0x15c   : >> { %vm2964_vm13 = vmxor %vm276_vm9, %vm2569_vm3  ;;  %v500_v0 = vmul.f32 %v499_v25, %v2638_v15  ;;  %v504_v6 = vmul.f32 %v503_v30, %v2638_v15  ;;  %v508_v7 = vmul.f32 %v507_v27, %v2638_v15  ;;  %v3182_v24 = vsub.f32 %v488_v26, %v489_v37  ;;  %v509_v25 = vld [vmem:[%s6274_s1 + $0x3f8] sm:$0xff]  ;;  %v3341_v26 = vld [vmem:[%s6274_s1 + $0xd0] sm:$0xff] }
 0x15d   : >> { %vm2995_vm2 = vmxor %vm6325_vm15, %vm2569_vm3  ;;  %vm294_vm15 = vcmp.ge.f32.partialorder %v2638_v15, %v3021_v61  ;;  %v512_v30 = vmul.f32 %v511_v11, %v2638_v15  ;;  %v3192_v27 = vmul.f32 %v515_v41, %v2638_v15  ;;  %v3209_v31 = vsub.f32 %v492_v35, %v493_v60  ;;  %v513_v41 = vld [vmem:[%s6274_s1 + $0x400] sm:$0xff] }
 0x15e   : >> { %vm3033_vm10 = vmand %vm6328_vm6, %vm2934_vm0  ;;  %vm296_vm6 = vcmp.ge.f32.partialorder %v2638_v15, %v3052_v8  ;;  %v3211_v11 = vsub.f32 %v496_v40, %v497_v63  ;;  %v524_v44 = vsub.f32 1.0, %v2913_v14  ;;  %v519_v60 = vmul.f32 %v2842_v59, %v418_v12 }
 0x15f   : >> { %vm3059_vm7 = vmand %vm274_vm5, %vm2964_vm13  ;;  %v3126_v43 = vsel %vm3033_vm10, 1.0, %v6281_v58  ;;  %vm6342_vm10 = vcmp.ge.f32.partialorder %v2638_v15, %v2705_v28  ;;  %v520_v28 = vsub.f32 1.0, %v2911_v13  ;;  %v528_v63 = vsub.f32 1.0, %v2938_v22 }
 0x160   : >> { %vm3081_vm5 = vmand %vm276_vm9, %vm2995_vm2  ;;  %vm6335_vm9 = vcmp.ge.f32.partialorder %v2638_v15, %v2710_v29  ;;  %v3198_v37 = vsel %vm3059_vm7, 1.0, %v6281_v58  ;;  %6348 = vst [vmem:[#allocation5_spill] sm:$0xff] %v3211_v11  ;;  %v532_v16 = vsub.f32 1.0, %v2968_v39  ;;  %v3260_v42 = vsub.f32 %v500_v0, %v501_v1 }
 0x161   : >> { %vm3107_vm0 = vmxor %vm6335_vm9, %vm2569_vm3  ;;  %v3230_v35 = vsel %vm3081_vm5, 1.0, %v6281_v58  ;;  %v3262_v46 = vsub.f32 %v504_v6, %v505_v36  ;;  %v3264_v59 = vsub.f32 %v508_v7, %v509_v25  ;;  %v536_v12 = vsub.f32 1.0, %v2999_v50 }
 0x162   : >> { %vm3132_vm13 = vmxor %vm282_vm11, %vm2569_vm3  ;;  %vm298_vm5 = vcmp.ge.f32.partialorder %v2638_v15, %v3153_v54  ;;  %v3277_v11 = vsub.f32 %v512_v30, %v513_v41  ;;  %v521_v1 = vmul.f32 %v2873_v3, %v520_v28  ;;  %v540_v6 = vsub.f32 1.0, %v3001_v52 }
 0x163   : >> { %vm3159_vm2 = vmxor %vm284_vm1, %vm2569_vm3  ;;  %v6355_v7 = vmov 0.0   ;;  %v523_v30 = vmul.f32 %v2873_v3, %v2911_v13  ;;  %v525_v28 = vmul.f32 %v2878_v4, %v524_v44  ;;  %v544_v41 = vsub.f32 1.0, %v3063_v19 }
 0x164   : >> { %vm3178_vm9 = vmand %vm6342_vm10, %vm3107_vm0  ;;  %vm6345_vm0 = vcmp.ge.f32.partialorder %v2638_v15, %v2710_v29  ;;  %v3225_v29 = vld [vmem:[%s6274_s1 + $0xb8] sm:$0xff]  ;;  %v527_v0 = vmul.f32 %v2878_v4, %v2913_v14  ;;  %v529_v3 = vmul.f32 %v2899_v10, %v528_v63  ;;  %v531_v13 = vmul.f32 %v2899_v10, %v2938_v22 }
 0x165   : >> { %vm3205_vm10 = vmand %vm6345_vm0, %vm3132_vm13  ;;  %v2364_v36 = vsel %vm3178_vm9, 1.0, %v6355_v7  ;;  %v533_v44 = vmul.f32 %v2989_v48, %v532_v16  ;;  %v535_v10 = vmul.f32 %v2989_v48, %v2968_v39  ;;  %v537_v14 = vmul.f32 %v3026_v62, %v536_v12  ;;  %v3361_v16 = vld [vmem:[%s6274_s1 + $0xd8] sm:$0xff] }
 0x166   : >> { %vm3237_vm7 = vmand %vm282_vm11, %vm3159_vm2  ;;  %vm302_vm2 = vcmp.ge.f32.partialorder %v2638_v15, %v3250_v55  ;;  %v2365_v34 = vsel %vm3205_vm10, 1.0, %v6355_v7  ;;  %v548_v22 = vsub.f32 1.0, %v3065_v20  ;;  %v3352_v58 = vadd.f32 %v521_v1, %v519_v60  ;;  %v623_v55 = vld [vmem:[%s6274_s1 + $0x1c0] sm:$0xff] }
 0x167   : >> { %vm3256_vm11 = vmxor %vm286_vm12, %vm2569_vm3  ;;  %v539_v39 = vmul.f32 %v3026_v62, %v2999_v50  ;;  %v541_v48 = vmul.f32 %v3101_v38, %v540_v6  ;;  %v552_v63 = vsub.f32 1.0, %v3067_v21  ;;  %v2366_v57 = vsel %vm3237_vm7, 1.0, %v6355_v7  ;;  %v6388_v47 = vld [vmem:[#allocation5_spill] sm:$0xff] }
 0x168   : >> { %vm3273_vm13 = vmxor %vm288_vm14, %vm2569_vm3  ;;  %v3374_v50 = vadd.f32 %v525_v28, %v523_v30  ;;  %v545_v62 = vmul.f32 %v3126_v43, %v544_v41  ;;  %v556_v12 = vsub.f32 1.0, %v3085_v17  ;;  %vm304_vm10 = vcmp.ge.f32.partialorder %v2638_v15, %v3320_v33  ;;  %v631_v33 = vld [vmem:[%s6274_s1 + $0x1d0] sm:$0xff] }
 0x169   : >> { %vm3292_vm0 = vmxor %vm290_vm4, %vm2569_vm3  ;;  %v3388_v1 = vadd.f32 %v529_v3, %v527_v0  ;;  %v3390_v6 = vadd.f32 %v533_v44, %v531_v13  ;;  %v543_v25 = vmul.f32 %v3101_v38, %v3001_v52  ;;  %v560_v30 = vsub.f32 1.0, %v3087_v18  ;;  %v3433_v44 = vld [vmem:[%s6274_s1 + $0xe0] sm:$0xff] }
 0x16a   : >> { %vm3307_vm9 = vmand %vm284_vm1, %vm3256_vm11  ;;  %vm306_vm11 = vcmp.ge.f32.partialorder %v2638_v15, %v3341_v26  ;;  %v3408_v41 = vadd.f32 %v537_v14, %v535_v10  ;;  %v547_v52 = vmul.f32 %v3126_v43, %v3063_v19  ;;  %v549_v38 = vmul.f32 %v3198_v37, %v548_v22 }
 0x16b   : >> { %vm3330_vm1 = vmand %vm286_vm12, %vm3273_vm13  ;;  %v2367_v28 = vsel %vm3307_vm9, 1.0, %v6355_v7  ;;  %v3424_v3 = vadd.f32 %v541_v48, %v539_v39  ;;  %v551_v13 = vmul.f32 %v3198_v37, %v3065_v20  ;;  %v553_v19 = vmul.f32 %v3230_v35, %v552_v63 }
 0x16c   : >> { %vm3348_vm12 = vmand %vm288_vm14, %vm3292_vm0  ;;  %vm308_vm0 = vcmp.ge.f32.partialorder %v2638_v15, %v3361_v16  ;;  %v564_v43 = vsub.f32 1.0, %v3089_v23  ;;  %v2368_v2 = vsel %vm3330_vm1, 1.0, %v6355_v7  ;;  %v3447_v37 = vadd.f32 %v545_v62, %v543_v25 }
 0x16d   : >> { %vm3370_vm14 = vmxor %vm292_vm8, %vm2569_vm3  ;;  %v555_v10 = vmul.f32 %v3230_v35, %v3067_v21  ;;  %v557_v14 = vmul.f32 %v2364_v36, %v556_v12  ;;  %v2369_v4 = vsel %vm3348_vm12, 1.0, %v6355_v7  ;;  %v559_v22 = vmul.f32 %v2364_v36, %v3085_v17 }
 0x16e   : >> { %vm3384_vm7 = vmxor %vm294_vm15, %vm2569_vm3  ;;  %v561_v39 = vmul.f32 %v2365_v34, %v560_v30  ;;  %v568_v48 = vsub.f32 1.0, %v3111_v32  ;;  %v3473_v35 = vadd.f32 %v549_v38, %v547_v52  ;;  %v563_v61 = vmul.f32 %v2365_v34, %v3087_v18 }
 0x16f   : >> { %vm3404_vm13 = vmxor %vm296_vm6, %vm2569_vm3  ;;  %v572_v51 = vsub.f32 1.0, %v3136_v45  ;;  %v576_v63 = vsub.f32 1.0, %v3138_v49  ;;  %vm6378_vm12 = vcmp.ge.f32.partialorder %v2638_v15, %v3225_v29  ;;  %v3488_v36 = vadd.f32 %v553_v19, %v551_v13 }
 0x170   : >> { %vm3420_vm9 = vmand %vm290_vm4, %vm3370_vm14  ;;  %v565_v60 = vmul.f32 %v2366_v57, %v564_v43  ;;  %v567_v18 = vmul.f32 %v2366_v57, %v3089_v23  ;;  %v580_v34 = vsub.f32 1.0, %v3140_v53  ;;  %v3503_v40 = vadd.f32 %v557_v14, %v555_v10 }
 0x171   : >> { %vm3443_vm4 = vmand %vm292_vm8, %vm3384_vm7  ;;  %v2370_v62 = vsel %vm3420_vm9, 1.0, %v6355_v7  ;;  %v584_v25 = vsub.f32 1.0, %v3163_v56  ;;  %v588_v23 = vsub.f32 1.0, %v3182_v24  ;;  %v3512_v57 = vadd.f32 %v561_v39, %v559_v22 }
 0x172   : >> { %vm3459_vm1 = vmand %vm294_vm15, %vm3404_vm13  ;;  %vm310_vm15 = vcmp.ge.f32.partialorder %v2638_v15, %v3433_v44  ;;  %v569_v30 = vmul.f32 %v2367_v28, %v568_v48  ;;  %v571_v0 = vmul.f32 %v2367_v28, %v3111_v32  ;;  %v592_v52 = vsub.f32 1.0, %v3209_v31  ;;  %v635_v28 = vld [vmem:[%s6274_s1 + $0x1d8] sm:$0xff] }
 0x173   : >> { %vm3469_vm8 = vmxor %vm298_vm5, %vm2569_vm3  ;;  %v2371_v38 = vsel %vm3443_vm4, 1.0, %v6355_v7  ;;  %v573_v5 = vmul.f32 %v2368_v2, %v572_v51  ;;  %v575_v8 = vmul.f32 %v2368_v2, %v3136_v45  ;;  %v577_v13 = vmul.f32 %v2369_v4, %v576_v63  ;;  %v637_v51 = vld [vmem:[%s6274_s1 + $0x430] sm:$0xff] }
 0x174   : >> { %vm3484_vm14 = vmxor %vm6378_vm12, %vm2569_vm3  ;;  %v2372_v32 = vsel %vm3459_vm1, 1.0, %v6355_v7  ;;  %v3537_v19 = vadd.f32 %v565_v60, %v563_v61  ;;  %v579_v54 = vmul.f32 %v2369_v4, %v3138_v49  ;;  %v581_v43 = vmul.f32 %v2370_v62, %v580_v34  ;;  %v641_v34 = vld [vmem:[%s6274_s1 + $0x438] sm:$0xff] }
 0x175   : >> { %vm3499_vm7 = vmxor %vm302_vm2, %vm2569_vm3  ;;  %v583_v2 = vmul.f32 %v2370_v62, %v3140_v53  ;;  %v585_v20 = vmul.f32 %v2371_v38, %v584_v25  ;;  %v589_v29 = vmul.f32 %v2372_v32, %v588_v23  ;;  %v3555_v14 = vadd.f32 %v569_v30, %v567_v18  ;;  %v627_v25 = vld [vmem:[%s6274_s1 + $0x1c8] sm:$0xff]  ;;  %v629_v53 = vld [vmem:[%s6274_s1 + $0x420] sm:$0xff] }
 0x176   : >> { %vm388_vm13 = vmand %vm296_vm6, %vm3469_vm8  ;;  %v596_v22 = vsub.f32 1.0, %v6388_v47  ;;  %v3566_v39 = vadd.f32 %v573_v5, %v571_v0  ;;  %v3568_v48 = vadd.f32 %v577_v13, %v575_v8  ;;  %v587_v21 = vmul.f32 %v2371_v38, %v3163_v56  ;;  %v619_v56 = vld [vmem:[%s6274_s1 + $0x1b8] sm:$0xff]  ;;  %v645_v30 = vld [vmem:[%s6274_s1 + $0x440] sm:$0xff] }
 0x177   : >> { %vm392_vm9 = vmand %vm298_vm5, %vm3484_vm14  ;;  %v2373_v45 = vsel %vm388_vm13, 1.0, %v6355_v7  ;;  %v600_v61 = vsub.f32 1.0, %v3260_v42  ;;  %v3579_v63 = vadd.f32 %v581_v43, %v579_v54  ;;  %v591_v17 = vmul.f32 %v2372_v32, %v3182_v24  ;;  %v639_v54 = vld [vmem:[%s6274_s1 + $0x1e0] sm:$0xff] }
 0x178   : >> { %vm6383_vm6 = vmmov %vm6378_vm12  ;;  %v2374_v10 = vsel %vm392_vm9, 1.0, %v6355_v7  ;;  %v593_v4 = vmul.f32 %v2373_v45, %v592_v52  ;;  %v595_v60 = vmul.f32 %v2373_v45, %v3209_v31  ;;  %v604_v18 = vsub.f32 1.0, %v3262_v46  ;;  %v3653_v45 = vld [vmem:[%s6274_s1 + $0x410] sm:$0xff] }
 0x179   : >> { %vm3533_vm4 = vmand %vm6383_vm6, %vm3499_vm7  ;;  %v3599_v24 = vadd.f32 %v585_v20, %v583_v2  ;;  %v3601_v31 = vadd.f32 %v589_v29, %v587_v21  ;;  %v599_v62 = vmul.f32 %v2374_v10, %v6388_v47  ;;  %v608_v12 = vsub.f32 1.0, %v3264_v59  ;;  %v625_v2 = vld [vmem:[%s6274_s1 + $0x418] sm:$0xff]  ;;  %v633_v21 = vld [vmem:[%s6274_s1 + $0x428] sm:$0xff] }
 0x17a   : >> { %vm399_vm5 = vmxor %vm304_vm10, %vm2569_vm3  ;;  %v2375_v23 = vsel %vm3533_vm4, 1.0, %v6355_v7  ;;  %v3623_v0 = vadd.f32 %v593_v4, %v591_v17  ;;  %v597_v52 = vmul.f32 %v2374_v10, %v596_v22  ;;  %v612_v38 = vsub.f32 1.0, %v3277_v11 }
 0x17b   : >> { %vm3551_vm1 = vmxor %vm306_vm11, %vm2569_vm3  ;;  %v601_v26 = vmul.f32 %v2375_v23, %v600_v61  ;;  %v3638_v13 = vmul.f32 %v619_v56, %v2638_v15  ;;  %v624_v32 = vmul.f32 %v623_v55, %v2638_v15  ;;  %v628_v20 = vmul.f32 %v627_v25, %v2638_v15 }
 0x17c   : >> { %vm3562_vm8 = vmxor %vm308_vm0, %vm2569_vm3  ;;  %v632_v29 = vmul.f32 %v631_v33, %v2638_v15  ;;  %v603_v49 = vmul.f32 %v2375_v23, %v3260_v42  ;;  %v6399_v47 = vsub.f32 %v3192_v27, %v3219_v9  ;;  %v3682_v61 = vadd.f32 %v597_v52, %v595_v60  ;;  %v655_v52 = vld [vmem:[%s6274_s1 + $0x200] sm:$0xff]  ;;  %v685_v60 = vld [vmem:[%s6274_s1 + $0x490] sm:$0xff] }
 0x17d   : >> { %vm3575_vm12 = vmand %vm302_vm2, %vm399_vm5  ;;  %v636_v9 = vmul.f32 %v635_v28, %v2638_v15  ;;  %v640_v17 = vmul.f32 %v639_v54, %v2638_v15  ;;  %v3692_v16 = vadd.f32 %v601_v26, %v599_v62  ;;  %v3697_v55 = vsub.f32 %v624_v32, %v625_v2  ;;  %v651_v62 = vld [vmem:[%s6274_s1 + $0x1f8] sm:$0xff]  ;;  %v649_v28 = vld [vmem:[%s6274_s1 + $0x448] sm:$0xff] }
 0x17e   : >> { %vm3595_vm2 = vmand %vm304_vm10, %vm3551_vm1  ;;  %v2376_v5 = vsel %vm3575_vm12, 1.0, %v6355_v7  ;;  %v616_v22 = vsub.f32 1.0, %v6399_v47  ;;  %6402 = vst [vmem:[#allocation5_spill] sm:$0xff] %v3682_v61  ;;  %v3711_v33 = vsub.f32 %v628_v20, %v629_v53  ;;  %v3713_v23 = vsub.f32 %v632_v29, %v633_v21  ;;  %v667_v54 = vld [vmem:[%s6274_s1 + $0x218] sm:$0xff]  ;;  %v653_v29 = vld [vmem:[%s6274_s1 + $0x450] sm:$0xff] }
 0x17f   : >> { %vm3619_vm10 = vmand %vm306_vm11, %vm3562_vm8  ;;  %v2377_v44 = vsel %vm3595_vm2, 1.0, %v6355_v7  ;;  %v605_v43 = vmul.f32 %v2376_v5, %v604_v18  ;;  %v643_v18 = vld [vmem:[%s6274_s1 + $0x1e8] sm:$0xff]  ;;  %6403 = vst [vmem:[#allocation6_spill] sm:$0xff] %v3692_v16  ;;  %v607_v56 = vmul.f32 %v2376_v5, %v3262_v46  ;;  %v3750_v2 = vsub.f32 %v640_v17, %v641_v34  ;;  %v683_v47 = vld [vmem:[%s6274_s1 + $0x238] sm:$0xff] }
 0x180   : >> { %vm3633_vm14 = vmxor %vm310_vm15, %vm2569_vm3  ;;  %v2378_v10 = vsel %vm3619_vm10, 1.0, %v6355_v7  ;;  %v609_v4 = vmul.f32 %v2377_v44, %v608_v12  ;;  %v647_v12 = vld [vmem:[%s6274_s1 + $0x1f0] sm:$0xff]  ;;  %v611_v46 = vmul.f32 %v2377_v44, %v3264_v59  ;;  %v644_v32 = vmul.f32 %v643_v18, %v2638_v15  ;;  %v671_v44 = vld [vmem:[%s6274_s1 + $0x220] sm:$0xff] }
 0x181   : >> { %vm3678_vm3 = vmand %vm308_vm0, %vm3633_vm14  ;;  %v613_v27 = vmul.f32 %v2378_v10, %v612_v38  ;;  %v3708_v25 = vadd.f32 %v605_v43, %v603_v49  ;;  %v659_v38 = vld [vmem:[%s6274_s1 + $0x208] sm:$0xff]  ;;  %v663_v59 = vld [vmem:[%s6274_s1 + $0x210] sm:$0xff]  ;;  %v615_v26 = vmul.f32 %v2378_v10, %v3277_v11  ;;  %v3748_v11 = vsub.f32 %v636_v9, %v637_v51 }
 0x182   : >> { %v2379_v5 = vsel %vm3678_vm3, 1.0, %v6355_v7  ;;  %v3730_v8 = vadd.f32 %v609_v4, %v607_v56  ;;  %v675_v7 = vld [vmem:[%s6274_s1 + $0x228] sm:$0xff]  ;;  %v648_v20 = vmul.f32 %v647_v12, %v2638_v15  ;;  %v657_v10 = vld [vmem:[%s6274_s1 + $0x458] sm:$0xff]  ;;  %v661_v49 = vld [vmem:[%s6274_s1 + $0x460] sm:$0xff]  ;;  %v652_v42 = vmul.f32 %v651_v62, %v2638_v15 }
 0x183   : >> { %6404 = vst [vmem:[#allocation7_spill] sm:$0xff] %v3708_v25  ;;  %v3746_v43 = vadd.f32 %v613_v27, %v611_v46  ;;  %v679_v4 = vld [vmem:[%s6274_s1 + $0x230] sm:$0xff]  ;;  %v687_v53 = vld [vmem:[%s6274_s1 + $0x240] sm:$0xff]  ;;  %v617_v21 = vmul.f32 %v2379_v5, %v616_v22  ;;  %v656_v27 = vmul.f32 %v655_v52, %v2638_v15  ;;  %v660_v9 = vmul.f32 %v659_v38, %v2638_v15  ;;  %v691_v51 = vld [vmem:[%s6274_s1 + $0x248] sm:$0xff] }
 0x184   : >> { %6405 = vst [vmem:[#allocation8_spill] sm:$0xff] %v3730_v8  ;;  %v695_v17 = vld [vmem:[%s6274_s1 + $0x250] sm:$0xff]  ;;  %v699_v18 = vld [vmem:[%s6274_s1 + $0x258] sm:$0xff]  ;;  %v664_v22 = vmul.f32 %v663_v59, %v2638_v15  ;;  %v665_v56 = vld [vmem:[%s6274_s1 + $0x468] sm:$0xff]  ;;  %v668_v34 = vmul.f32 %v667_v54, %v2638_v15  ;;  %v672_v62 = vmul.f32 %v671_v44, %v2638_v15  ;;  %v676_v52 = vmul.f32 %v675_v7, %v2638_v15 }
 0x185   : >> { %6406 = vst [vmem:[#allocation9_spill] sm:$0xff] %v3746_v43  ;;  %v669_v12 = vld [vmem:[%s6274_s1 + $0x470] sm:$0xff]  ;;  %v673_v46 = vld [vmem:[%s6274_s1 + $0x478] sm:$0xff]  ;;  %v3796_v38 = vsub.f32 %v644_v32, %v645_v30  ;;  %v677_v59 = vld [vmem:[%s6274_s1 + $0x480] sm:$0xff]  ;;  %v680_v5 = vmul.f32 %v679_v4, %v2638_v15  ;;  %v684_v44 = vmul.f32 %v683_v47, %v2638_v15  ;;  %v688_v7 = vmul.f32 %v687_v53, %v2638_v15 }
 0x186   : >> { %v681_v54 = vld [vmem:[%s6274_s1 + $0x488] sm:$0xff]  ;;  %v3810_v30 = vsub.f32 %v648_v20, %v649_v28  ;;  %v689_v32 = vld [vmem:[%s6274_s1 + $0x498] sm:$0xff]  ;;  %v692_v4 = vmul.f32 %v691_v51, %v2638_v15  ;;  %v693_v43 = vld [vmem:[%s6274_s1 + $0x4a0] sm:$0xff]  ;;  %v696_v47 = vmul.f32 %v695_v17, %v2638_v15  ;;  %v700_v8 = vmul.f32 %v699_v18, %v2638_v15 }
 0x187   : >> { %v703_v53 = vld [vmem:[%s6274_s1 + $0x260] sm:$0xff]  ;;  %v3824_v28 = vadd.f32 %v617_v21, %v615_v26  ;;  %v654_v20 = vsub.f32 %v652_v42, %v653_v29  ;;  %v3826_v25 = vsub.f32 %v656_v27, %v657_v10  ;;  %v3828_v16 = vsub.f32 %v660_v9, %v661_v49  ;;  %v697_v51 = vld [vmem:[%s6274_s1 + $0x4a8] sm:$0xff]  ;;  %v701_v17 = vld [vmem:[%s6274_s1 + $0x4b0] sm:$0xff] }
 0x188   : >> { %v707_v18 = vld [vmem:[%s6274_s1 + $0x268] sm:$0xff]  ;;  %v3839_v61 = vsub.f32 %v664_v22, %v665_v56  ;;  %v3841_v26 = vsub.f32 %v668_v34, %v669_v12  ;;  %v3843_v29 = vsub.f32 %v672_v62, %v673_v46  ;;  %v3845_v10 = vsub.f32 %v676_v52, %v677_v59  ;;  %v711_v49 = vld [vmem:[%s6274_s1 + $0x270] sm:$0xff]  ;;  %v715_v21 = vld [vmem:[%s6274_s1 + $0x278] sm:$0xff] }
 0x189   : >> { %v3853_v42 = vsub.f32 %v680_v5, %v681_v54  ;;  %v3855_v27 = vsub.f32 %v684_v44, %v685_v60  ;;  %v3857_v9 = vsub.f32 %v688_v7, %v689_v32  ;;  %v704_v22 = vmul.f32 %v703_v53, %v2638_v15 }
 0x18a   : >> { %v3860_v56 = vsub.f32 %v692_v4, %v693_v43  ;;  %v3862_v34 = vsub.f32 %v696_v47, %v697_v51  ;;  %v3864_v12 = vsub.f32 %v700_v8, %v701_v17  ;;  %v708_v62 = vmul.f32 %v707_v18, %v2638_v15  ;;  %v705_v43 = vld [vmem:[%s6274_s1 + $0x4b8] sm:$0xff]  ;;  %v3899_v47 = vld [vmem:[%s6274_s1 + $0x4d0] sm:$0xff] }
 0x18b   : >> { %v712_v46 = vmul.f32 %v711_v49, %v2638_v15  ;;  %v3869_v52 = vmul.f32 %v715_v21, %v2638_v15  ;;  %v6407_v60 = vsub.f32 %v3638_v13, %v3653_v45  ;;  %v720_v5 = vsub.f32 1.0, %v3697_v55  ;;  %v709_v13 = vld [vmem:[%s6274_s1 + $0x4c0] sm:$0xff] }
 0x18c   : >> { %v723_v8 = vmul.f32 %v3697_v55, %v3374_v50  ;;  %v724_v54 = vsub.f32 1.0, %v3711_v33  ;;  %v728_v44 = vsub.f32 1.0, %v3713_v23  ;;  %v732_v7 = vsub.f32 1.0, %v3748_v11 }
 0x18d   : >> { %v719_v59 = vmul.f32 %v6407_v60, %v3352_v58  ;;  %v713_v58 = vld [vmem:[%s6274_s1 + $0x4c8] sm:$0xff]  ;;  %v721_v45 = vmul.f32 %v720_v5, %v3374_v50  ;;  %v727_v32 = vmul.f32 %v3711_v33, %v3388_v1  ;;  %v731_v55 = vmul.f32 %v3713_v23, %v3390_v6 }
 0x18e   : >> { %v736_v4 = vsub.f32 1.0, %v3750_v2  ;;  %v725_v53 = vmul.f32 %v724_v54, %v3388_v1  ;;  %v729_v51 = vmul.f32 %v728_v44, %v3390_v6  ;;  %v733_v17 = vmul.f32 %v732_v7, %v3408_v41 }
 0x18f   : >> { %v740_v50 = vsub.f32 1.0, %v3796_v38  ;;  %v3905_v18 = vsub.f32 %v704_v22, %v705_v43  ;;  %v735_v33 = vmul.f32 %v3748_v11, %v3408_v41  ;;  %v744_v49 = vsub.f32 1.0, %v3810_v30 }
 0x190   : >> { %v737_v23 = vmul.f32 %v736_v4, %v3424_v3  ;;  %v3911_v21 = vsub.f32 %v708_v62, %v709_v13  ;;  %v3913_v60 = vsub.f32 %v712_v46, %v713_v58  ;;  %v739_v1 = vmul.f32 %v3750_v2, %v3424_v3 }
 0x191   : >> { %v741_v6 = vmul.f32 %v740_v50, %v3447_v37  ;;  %v718_v22 = vsub.f32 %v3869_v52, %v3899_v47  ;;  %v743_v5 = vmul.f32 %v3796_v38, %v3447_v37  ;;  %v745_v41 = vmul.f32 %v744_v49, %v3473_v35  ;;  %v815_v49 = vld [vmem:[%s6274_s1 + $0x280] sm:$0xff]  ;;  %v880_v52 = vld [vmem:[%s6274_s1 + $0x510] sm:$0xff] }
 0x192   : >> { %v748_v11 = vsub.f32 1.0, %v654_v20  ;;  %v3923_v43 = vadd.f32 %v721_v45, %v719_v59  ;;  %v3925_v62 = vadd.f32 %v725_v53, %v723_v8  ;;  %v3927_v46 = vadd.f32 %v729_v51, %v727_v32 }
 0x193   : >> { %v3929_v54 = vadd.f32 %v733_v17, %v731_v55  ;;  %v3931_v3 = vadd.f32 %v737_v23, %v735_v33  ;;  %v747_v2 = vmul.f32 %v3810_v30, %v3473_v35  ;;  %v752_v37 = vsub.f32 1.0, %v3826_v25 }
 0x194   : >> { %v749_v44 = vmul.f32 %v748_v11, %v3488_v36  ;;  %v3937_v38 = vadd.f32 %v741_v6, %v739_v1  ;;  %v751_v59 = vmul.f32 %v654_v20, %v3488_v36  ;;  %v755_v8 = vmul.f32 %v3826_v25, %v3503_v40 }
 0x195   : >> { %v756_v7 = vsub.f32 1.0, %v3828_v16  ;;  %v3943_v13 = vadd.f32 %v745_v41, %v743_v5  ;;  %v753_v58 = vmul.f32 %v752_v37, %v3503_v40  ;;  %v759_v35 = vmul.f32 %v3828_v16, %v3512_v57  ;;  %v824_v5 = vld [vmem:[%s6274_s1 + $0x288] sm:$0xff] }
 0x196   : >> { %v760_v30 = vsub.f32 1.0, %v3839_v61  ;;  %v763_v32 = vmul.f32 %v3839_v61, %v3537_v19  ;;  %v764_v36 = vsub.f32 1.0, %v3841_v26  ;;  %v768_v25 = vsub.f32 1.0, %v3843_v29 }
 0x197   : >> { %v757_v45 = vmul.f32 %v756_v7, %v3512_v57  ;;  %v3954_v20 = vadd.f32 %v749_v44, %v747_v2  ;;  %v767_v40 = vmul.f32 %v3841_v26, %v3555_v14  ;;  %v772_v16 = vsub.f32 1.0, %v3845_v10  ;;  %v860_v44 = vld [vmem:[%s6274_s1 + $0x2a8] sm:$0xff]  ;;  %v6408_v7 = vld [vmem:[#allocation5_spill] sm:$0xff] }
 0x198   : >> { %v761_v55 = vmul.f32 %v760_v30, %v3537_v19  ;;  %v765_v4 = vmul.f32 %v764_v36, %v3555_v14  ;;  %v769_v57 = vmul.f32 %v768_v25, %v3566_v39  ;;  %v776_v53 = vsub.f32 1.0, %v3853_v42  ;;  %v869_v30 = vld [vmem:[%s6274_s1 + $0x2b0] sm:$0xff] }
 0x199   : >> { %v780_v61 = vsub.f32 1.0, %v3855_v27  ;;  %v3964_v51 = vadd.f32 %v753_v58, %v751_v59  ;;  %v771_v17 = vmul.f32 %v3843_v29, %v3566_v39  ;;  %v773_v19 = vmul.f32 %v772_v16, %v3568_v48 }
 0x19a   : >> { %v784_v50 = vsub.f32 1.0, %v3857_v9  ;;  %v775_v26 = vmul.f32 %v3845_v10, %v3568_v48  ;;  %v777_v14 = vmul.f32 %v776_v53, %v3579_v63  ;;  %v779_v33 = vmul.f32 %v3853_v42, %v3579_v63  ;;  %v6409_v53 = vld [vmem:[#allocation6_spill] sm:$0xff] }
 0x19b   : >> { %v781_v23 = vmul.f32 %v780_v61, %v3599_v24  ;;  %v3979_v1 = vadd.f32 %v757_v45, %v755_v8  ;;  %v783_v39 = vmul.f32 %v3855_v27, %v3599_v24  ;;  %v788_v48 = vsub.f32 1.0, %v3860_v56  ;;  %v833_v24 = vld [vmem:[%s6274_s1 + $0x290] sm:$0xff] }
 0x19c   : >> { %v785_v29 = vmul.f32 %v784_v50, %v3601_v31  ;;  %v3985_v10 = vadd.f32 %v761_v55, %v759_v35  ;;  %v3987_v6 = vadd.f32 %v765_v4, %v763_v32  ;;  %v3989_v63 = vadd.f32 %v769_v57, %v767_v40  ;;  %v817_v35 = vld [vmem:[%s6274_s1 + $0x4d8] sm:$0xff] }
 0x19d   : >> { %v787_v42 = vmul.f32 %v3857_v9, %v3601_v31  ;;  %v3999_v27 = vadd.f32 %v773_v19, %v771_v17  ;;  %v789_v41 = vmul.f32 %v788_v48, %v3623_v0  ;;  %v792_v11 = vsub.f32 1.0, %v3862_v34  ;;  %v842_v31 = vld [vmem:[%s6274_s1 + $0x298] sm:$0xff]  ;;  %v851_v9 = vld [vmem:[%s6274_s1 + $0x2a0] sm:$0xff]  ;;  %v844_v19 = vld [vmem:[%s6274_s1 + $0x4f0] sm:$0xff] }
 0x19e   : >> { %v816_v2 = vmul.f32 %v815_v49, %v2638_v15  ;;  %v4013_v37 = vadd.f32 %v777_v14, %v775_v26  ;;  %v4015_v59 = vadd.f32 %v781_v23, %v779_v33  ;;  %v791_v8 = vmul.f32 %v3860_v56, %v3623_v0  ;;  %v826_v56 = vld [vmem:[%s6274_s1 + $0x4e0] sm:$0xff]  ;;  %v878_v4 = vld [vmem:[%s6274_s1 + $0x2b8] sm:$0xff]  ;;  %v871_v48 = vld [vmem:[%s6274_s1 + $0x508] sm:$0xff] }
 0x19f   : >> { %v795_v58 = vmul.f32 %v3862_v34, %v6408_v7  ;;  %v4027_v45 = vadd.f32 %v785_v29, %v783_v39  ;;  %v793_v32 = vmul.f32 %v792_v11, %v6408_v7  ;;  %v825_v36 = vmul.f32 %v824_v5, %v2638_v15  ;;  %v835_v34 = vld [vmem:[%s6274_s1 + $0x4e8] sm:$0xff]  ;;  %v853_v50 = vld [vmem:[%s6274_s1 + $0x4f8] sm:$0xff]  ;;  %v862_v26 = vld [vmem:[%s6274_s1 + $0x500] sm:$0xff] }
 0x1a0   : >> { %v834_v25 = vmul.f32 %v833_v24, %v2638_v15  ;;  %v796_v0 = vsub.f32 1.0, %v3864_v12  ;;  %v843_v55 = vmul.f32 %v842_v31, %v2638_v15  ;;  %v852_v40 = vmul.f32 %v851_v9, %v2638_v15  ;;  %v820_v29 = vld [vmem:[%s6274_s1 + $0x658] sm:$0xff]  ;;  %v838_v31 = vld [vmem:[%s6274_s1 + $0x668] sm:$0xff] }
 0x1a1   : >> { %v861_v16 = vmul.f32 %v860_v44, %v2638_v15  ;;  %v4045_v57 = vadd.f32 %v789_v41, %v787_v42  ;;  %v799_v61 = vmul.f32 %v3864_v12, %v6409_v53  ;;  %v818_v17 = vsub.f32 %v816_v2, %v817_v35  ;;  %v6410_v12 = vld [vmem:[#allocation7_spill] sm:$0xff]  ;;  %v819_v11 = vld [vmem:[%s6274_s1 + $0x598] sm:$0xff]  ;;  %v829_v2 = vld [vmem:[%s6274_s1 + $0x660] sm:$0xff] }
 0x1a2   : >> { %v870_v14 = vmul.f32 %v869_v30, %v2638_v15  ;;  %v797_v33 = vmul.f32 %v796_v0, %v6409_v53  ;;  %v800_v23 = vsub.f32 1.0, %v3905_v18  ;;  %v803_v49 = vmul.f32 %v3905_v18, %v6410_v12  ;;  %v865_v0 = vld [vmem:[%s6274_s1 + $0x680] sm:$0xff] }
 0x1a3   : >> { %v804_v39 = vsub.f32 1.0, %v3911_v21  ;;  %v808_v42 = vsub.f32 1.0, %v3913_v60  ;;  %v827_v5 = vsub.f32 %v825_v36, %v826_v56  ;;  %v836_v24 = vsub.f32 %v834_v25, %v835_v34  ;;  %v847_v36 = vld [vmem:[%s6274_s1 + $0x670] sm:$0xff]  ;;  %v856_v25 = vld [vmem:[%s6274_s1 + $0x678] sm:$0xff]  ;;  %v887_v53 = vld [vmem:[%s6274_s1 + $0x2c0] sm:$0xff] }
 0x1a4   : >> { %v879_v41 = vmul.f32 %v878_v4, %v2638_v15  ;;  %v812_v18 = vsub.f32 1.0, %v718_v22  ;;  %v845_v9 = vsub.f32 %v843_v55, %v844_v19  ;;  %v854_v44 = vsub.f32 %v852_v40, %v853_v50  ;;  %v6411_v22 = vld [vmem:[#allocation8_spill] sm:$0xff]  ;;  %v6412_v55 = vld [vmem:[#allocation9_spill] sm:$0xff]  ;;  %v874_v4 = vld [vmem:[%s6274_s1 + $0x688] sm:$0xff] }
 0x1a5   : >> { %v863_v7 = vsub.f32 %v861_v16, %v862_v26  ;;  %v801_v47 = vmul.f32 %v800_v23, %v6410_v12  ;;  %v807_v35 = vmul.f32 %v3911_v21, %v6411_v22  ;;  %v821_v30 = vmul.f32 %v820_v29, %v818_v17  ;;  %v896_v17 = vld [vmem:[%s6274_s1 + $0x2c8] sm:$0xff]  ;;  %v864_v29 = vld [vmem:[%s6274_s1 + $0x5c0] sm:$0xff] }
 0x1a6   : >> { %v872_v56 = vsub.f32 %v870_v14, %v871_v48  ;;  %v805_v34 = vmul.f32 %v804_v39, %v6411_v22  ;;  %v809_v40 = vmul.f32 %v808_v42, %v6412_v55  ;;  %v811_v21 = vmul.f32 %v3913_v60, %v6412_v55  ;;  %v828_v60 = vld [vmem:[%s6274_s1 + $0x5a0] sm:$0xff]  ;;  %v846_v14 = vld [vmem:[%s6274_s1 + $0x5b0] sm:$0xff] }
 0x1a7   : >> { %v813_v16 = vmul.f32 %v812_v18, %v3824_v28  ;;  %v4113_v19 = vadd.f32 %v793_v32, %v791_v8  ;;  %v830_v50 = vmul.f32 %v829_v2, %v827_v5  ;;  %v837_v28 = vld [vmem:[%s6274_s1 + $0x5a8] sm:$0xff]  ;;  %v839_v26 = vmul.f32 %v838_v31, %v836_v24  ;;  %v855_v8 = vld [vmem:[%s6274_s1 + $0x5b8] sm:$0xff]  ;;  %v883_v42 = vld [vmem:[%s6274_s1 + $0x690] sm:$0xff] }
 0x1a8   : >> { %v881_v23 = vsub.f32 %v879_v41, %v880_v52  ;;  %v4124_v12 = vadd.f32 %v797_v33, %v795_v58  ;;  %v848_v39 = vmul.f32 %v847_v36, %v845_v9  ;;  %v857_v32 = vmul.f32 %v856_v25, %v854_v44  ;;  %v873_v58 = vld [vmem:[%s6274_s1 + $0x5c8] sm:$0xff]  ;;  %v889_v41 = vld [vmem:[%s6274_s1 + $0x518] sm:$0xff]  ;;  %v905_v2 = vld [vmem:[%s6274_s1 + $0x2d0] sm:$0xff] }
 0x1a9   : >> { %v866_v48 = vmul.f32 %v865_v0, %v863_v7  ;;  %v822_v5 = vadd.f32 %v821_v30, %v819_v11  ;;  %v875_v33 = vmul.f32 %v874_v4, %v872_v56  ;;  %v888_v24 = vmul.f32 %v887_v53, %v2638_v15  ;;  %v898_v7 = vld [vmem:[%s6274_s1 + $0x520] sm:$0xff]  ;;  %v914_v52 = vld [vmem:[%s6274_s1 + $0x2d8] sm:$0xff]  ;;  %v932_v30 = vld [vmem:[%s6274_s1 + $0x2e8] sm:$0xff] }
 0x1aa   : >> { %v897_v18 = vmul.f32 %v896_v17, %v2638_v15  ;;  %v4146_v31 = vadd.f32 %v801_v47, %v799_v61  ;;  %v4148_v11 = vadd.f32 %v805_v34, %v803_v49  ;;  %v4150_v9 = vadd.f32 %v809_v40, %v807_v35  ;;  %v923_v22 = vld [vmem:[%s6274_s1 + $0x2e0] sm:$0xff]  ;;  %v941_v36 = vld [vmem:[%s6274_s1 + $0x2f0] sm:$0xff]  ;;  %v950_v25 = vld [vmem:[%s6274_s1 + $0x2f8] sm:$0xff] }
 0x1ab   : >> { %v4152_v44 = vadd.f32 %v813_v16, %v811_v21  ;;  %v4164_v61 = vmul.f32 %v822_v5, %v3923_v43  ;;  %v831_v49 = vadd.f32 %v830_v50, %v828_v60  ;;  %v840_v47 = vadd.f32 %v839_v26, %v837_v28  ;;  %v882_v43 = vld [vmem:[%s6274_s1 + $0x5d0] sm:$0xff]  ;;  %v892_v16 = vld [vmem:[%s6274_s1 + $0x698] sm:$0xff]  ;;  %v901_v53 = vld [vmem:[%s6274_s1 + $0x6a0] sm:$0xff] }
 0x1ac   : >> { %v884_v35 = vmul.f32 %v883_v42, %v881_v23  ;;  %v849_v0 = vadd.f32 %v848_v39, %v846_v14  ;;  %v858_v56 = vadd.f32 %v857_v32, %v855_v8  ;;  %v867_v34 = vadd.f32 %v866_v48, %v864_v29  ;;  %v907_v17 = vld [vmem:[%s6274_s1 + $0x528] sm:$0xff]  ;;  %v916_v50 = vld [vmem:[%s6274_s1 + $0x530] sm:$0xff]  ;;  %v925_v26 = vld [vmem:[%s6274_s1 + $0x538] sm:$0xff] }
 0x1ad   : >> { %6413 = vst [vmem:[#allocation5_spill] sm:$0xff] %v4152_v44  ;;  %v906_v55 = vmul.f32 %v905_v2, %v2638_v15  ;;  %v876_v40 = vadd.f32 %v875_v33, %v873_v58  ;;  %v890_v21 = vsub.f32 %v888_v24, %v889_v41  ;;  %v899_v4 = vsub.f32 %v897_v18, %v898_v7  ;;  %v934_v23 = vld [vmem:[%s6274_s1 + $0x540] sm:$0xff]  ;;  %v910_v5 = vld [vmem:[%s6274_s1 + $0x6a8] sm:$0xff]  ;;  %v891_v41 = vld [vmem:[%s6274_s1 + $0x5d8] sm:$0xff] }
 0x1ae   : >> { %v915_v60 = vmul.f32 %v914_v52, %v2638_v15  ;;  %v4193_v28 = vmul.f32 %v923_v22, %v2638_v15  ;;  %v4199_v14 = vmul.f32 %v932_v30, %v2638_v15  ;;  %v942_v39 = vmul.f32 %v941_v36, %v2638_v15  ;;  %v943_v58 = vld [vmem:[%s6274_s1 + $0x548] sm:$0xff]  ;;  %v900_v18 = vld [vmem:[%s6274_s1 + $0x5e0] sm:$0xff]  ;;  %v986_v7 = vld [vmem:[%s6274_s1 + $0x318] sm:$0xff] }
 0x1af   : >> { %v951_v8 = vmul.f32 %v950_v25, %v2638_v15  ;;  %v4207_v32 = vmul.f32 %v831_v49, %v3925_v62  ;;  %v4210_v29 = vmul.f32 %v840_v47, %v3927_v46  ;;  %v4213_v48 = vmul.f32 %v849_v0, %v3929_v54  ;;  %v952_v62 = vld [vmem:[%s6274_s1 + $0x550] sm:$0xff]  ;;  %v959_v46 = vld [vmem:[%s6274_s1 + $0x300] sm:$0xff]  ;;  %v1004_v30 = vld [vmem:[%s6274_s1 + $0x328] sm:$0xff] }
 0x1b0   : >> { %v885_v42 = vadd.f32 %v884_v35, %v882_v43  ;;  %v4228_v54 = vmul.f32 %v858_v56, %v3931_v3  ;;  %v4231_v33 = vmul.f32 %v867_v34, %v3937_v38  ;;  %v4234_v24 = vmul.f32 %v876_v40, %v3943_v13  ;;  %v919_v3 = vld [vmem:[%s6274_s1 + $0x6b0] sm:$0xff]  ;;  %v968_v38 = vld [vmem:[%s6274_s1 + $0x308] sm:$0xff]  ;;  %v995_v35 = vld [vmem:[%s6274_s1 + $0x320] sm:$0xff] }
 0x1b1   : >> { %v908_v2 = vsub.f32 %v906_v55, %v907_v17  ;;  %v977_v13 = vld [vmem:[%s6274_s1 + $0x310] sm:$0xff]  ;;  %v893_v22 = vmul.f32 %v892_v16, %v890_v21  ;;  %v902_v49 = vmul.f32 %v901_v53, %v899_v4  ;;  %v917_v47 = vsub.f32 %v915_v60, %v916_v50  ;;  %v937_v56 = vld [vmem:[%s6274_s1 + $0x6c0] sm:$0xff]  ;;  %v1022_v55 = vld [vmem:[%s6274_s1 + $0x338] sm:$0xff] }
 0x1b2   : >> { %v4255_v52 = vmul.f32 %v885_v42, %v3954_v20  ;;  %v1013_v36 = vld [vmem:[%s6274_s1 + $0x330] sm:$0xff]  ;;  %v926_v25 = vsub.f32 %v4193_v28, %v925_v26  ;;  %v928_v20 = vld [vmem:[%s6274_s1 + $0x6b8] sm:$0xff]  ;;  %v935_v0 = vsub.f32 %v4199_v14, %v934_v23  ;;  %v944_v34 = vsub.f32 %v942_v39, %v943_v58  ;;  %v946_v40 = vld [vmem:[%s6274_s1 + $0x6c8] sm:$0xff] }
 0x1b3   : >> { %v953_v43 = vsub.f32 %v951_v8, %v952_v62  ;;  %v955_v21 = vld [vmem:[%s6274_s1 + $0x6d0] sm:$0xff]  ;;  %v960_v16 = vmul.f32 %v959_v46, %v2638_v15  ;;  %v961_v4 = vld [vmem:[%s6274_s1 + $0x558] sm:$0xff]  ;;  %v969_v53 = vmul.f32 %v968_v38, %v2638_v15  ;;  %v978_v17 = vmul.f32 %v977_v13, %v2638_v15  ;;  %v909_v50 = vld [vmem:[%s6274_s1 + $0x5e8] sm:$0xff] }
 0x1b4   : >> { %v987_v60 = vmul.f32 %v986_v7, %v2638_v15  ;;  %v911_v28 = vmul.f32 %v910_v5, %v908_v2  ;;  %v918_v26 = vld [vmem:[%s6274_s1 + $0x5f0] sm:$0xff]  ;;  %v970_v14 = vld [vmem:[%s6274_s1 + $0x560] sm:$0xff]  ;;  %v979_v23 = vld [vmem:[%s6274_s1 + $0x568] sm:$0xff]  ;;  %v996_v8 = vmul.f32 %v995_v35, %v2638_v15  ;;  %v1005_v42 = vmul.f32 %v1004_v30, %v2638_v15 }
 0x1b5   : >> { %v988_v39 = vld [vmem:[%s6274_s1 + $0x570] sm:$0xff]  ;;  %v1014_v5 = vmul.f32 %v1013_v36, %v2638_v15  ;;  %v894_v58 = vadd.f32 %v893_v22, %v891_v41  ;;  %v903_v62 = vadd.f32 %v902_v49, %v900_v18  ;;  %v920_v46 = vmul.f32 %v919_v3, %v917_v47  ;;  %v997_v2 = vld [vmem:[%s6274_s1 + $0x578] sm:$0xff]  ;;  %v1006_v38 = vld [vmem:[%s6274_s1 + $0x580] sm:$0xff] }
 0x1b6   : >> { %v1015_v13 = vld [vmem:[%s6274_s1 + $0x588] sm:$0xff]  ;;  %v1023_v7 = vmul.f32 %v1022_v55, %v2638_v15  ;;  %v927_v41 = vld [vmem:[%s6274_s1 + $0x5f8] sm:$0xff]  ;;  %v929_v18 = vmul.f32 %v928_v20, %v926_v25  ;;  %v936_v3 = vld [vmem:[%s6274_s1 + $0x600] sm:$0xff]  ;;  %v938_v22 = vmul.f32 %v937_v56, %v935_v0  ;;  %v947_v49 = vmul.f32 %v946_v40, %v944_v34 }
 0x1b7   : >> { %v956_v47 = vmul.f32 %v955_v21, %v953_v43  ;;  %v1024_v35 = vld [vmem:[%s6274_s1 + $0x590] sm:$0xff]  ;;  %v945_v30 = vld [vmem:[%s6274_s1 + $0x608] sm:$0xff]  ;;  %v962_v25 = vsub.f32 %v960_v16, %v961_v4  ;;  %v964_v20 = vld [vmem:[%s6274_s1 + $0x6d8] sm:$0xff]  ;;  %v971_v0 = vsub.f32 %v969_v53, %v970_v14  ;;  %v980_v56 = vsub.f32 %v978_v17, %v979_v23 }
 0x1b8   : >> { %v954_v36 = vld [vmem:[%s6274_s1 + $0x610] sm:$0xff]  ;;  %v989_v34 = vsub.f32 %v987_v60, %v988_v39  ;;  %v973_v43 = vld [vmem:[%s6274_s1 + $0x6e0] sm:$0xff]  ;;  %v982_v55 = vld [vmem:[%s6274_s1 + $0x6e8] sm:$0xff]  ;;  %v998_v21 = vsub.f32 %v996_v8, %v997_v2  ;;  %v1007_v16 = vsub.f32 %v1005_v42, %v1006_v38  ;;  %v1016_v4 = vsub.f32 %v1014_v5, %v1015_v13 }
 0x1b9   : >> { %v991_v40 = vld [vmem:[%s6274_s1 + $0x6f0] sm:$0xff]  ;;  %v2380_v44 = vmul.f32 -1.442695, %v2638_v15  ;;  %v895_v53 = vmul.f32 %v894_v58, %v3964_v51  ;;  %v912_v17 = vadd.f32 %v911_v28, %v909_v50  ;;  %v921_v60 = vadd.f32 %v920_v46, %v918_v26  ;;  %v1000_v14 = vld [vmem:[%s6274_s1 + $0x6f8] sm:$0xff]  ;;  %v1009_v23 = vld [vmem:[%s6274_s1 + $0x700] sm:$0xff] }
 0x1ba   : >> { %v1018_v39 = vld [vmem:[%s6274_s1 + $0x708] sm:$0xff]  ;;  %v1025_v8 = vsub.f32 %v1023_v7, %v1024_v35  ;;  %v930_v42 = vadd.f32 %v929_v18, %v927_v41  ;;  %v939_v5 = vadd.f32 %v938_v22, %v936_v3  ;;  %v948_v2 = vadd.f32 %v947_v49, %v945_v30  ;;  %v1027_v51 = vld [vmem:[%s6274_s1 + $0x710] sm:$0xff]  ;;  %v963_v50 = vld [vmem:[%s6274_s1 + $0x618] sm:$0xff] }
 0x1bb   : >> { %2529 = vpow2.f32 %v2380_v44  ;;  %v965_v28 = vmul.f32 %v964_v20, %v962_v25  ;;  %v974_v26 = vmul.f32 %v973_v43, %v971_v0  ;;  %v983_v58 = vmul.f32 %v982_v55, %v980_v56  ;;  %v972_v13 = vld [vmem:[%s6274_s1 + $0x620] sm:$0xff]  ;;  %v981_v7 = vld [vmem:[%s6274_s1 + $0x628] sm:$0xff]  ;;  %v990_v44 = vld [vmem:[%s6274_s1 + $0x630] sm:$0xff] }
 0x1bc   : >> { %v992_v46 = vmul.f32 %v991_v40, %v989_v34  ;;  %v957_v38 = vadd.f32 %v956_v47, %v954_v36  ;;  %v1001_v41 = vmul.f32 %v1000_v14, %v998_v21  ;;  %v1010_v18 = vmul.f32 %v1009_v23, %v1007_v16  ;;  %v999_v35 = vld [vmem:[%s6274_s1 + $0x638] sm:$0xff]  ;;  %v1008_v30 = vld [vmem:[%s6274_s1 + $0x640] sm:$0xff]  ;;  %v1017_v36 = vld [vmem:[%s6274_s1 + $0x648] sm:$0xff] }
 0x1bd   : >> { %v1019_v3 = vmul.f32 %v1018_v39, %v1016_v4  ;;  %v904_v22 = vmul.f32 %v903_v62, %v3979_v1  ;;  %v913_v49 = vmul.f32 %v912_v17, %v3985_v10  ;;  %v922_v47 = vmul.f32 %v921_v60, %v3987_v6  ;;  %v1026_v62 = vld [vmem:[%s6274_s1 + $0x650] sm:$0xff] }
 0x1be   : >> { %v1028_v25 = vmul.f32 %v1027_v51, %v1025_v8  ;;  %v931_v20 = vmul.f32 %v930_v42, %v3989_v63  ;;  %v940_v1 = vmul.f32 %v939_v5, %v3999_v27  ;;  %v949_v10 = vmul.f32 %v948_v2, %v4013_v37 }
 0x1bf   : >> { %v958_v6 = vmul.f32 %v957_v38, %v4015_v59  ;;  %v966_v0 = vadd.f32 %v965_v28, %v963_v50  ;;  %v975_v56 = vadd.f32 %v974_v26, %v972_v13  ;;  %v984_v34 = vadd.f32 %v983_v58, %v981_v7  ;;  %v2533_v13 = vld [vmem:[%s6275_s2] sm:$0xff] (%p231_p4)   ;;  %v2534_v7 = vld [vmem:[%s6275_s2 + $0x8] sm:$0xff] (%p231_p4)  }
 0x1c0   : >> { %v993_v43 = vadd.f32 %v992_v46, %v990_v44  ;;  %v1002_v55 = vadd.f32 %v1001_v41, %v999_v35  ;;  %v1011_v40 = vadd.f32 %v1010_v18, %v1008_v30  ;;  %v1020_v21 = vadd.f32 %v1019_v3, %v1017_v36  ;;  %2455 = vmatprep.subr.bf16.mxu0 (%p231_p4), %v2533_v13 }
 0x1c1   : >> { %v1031_v63 = vadd.f32 %v4207_v32, %v4164_v61  ;;  %v1029_v16 = vadd.f32 %v1028_v25, %v1026_v62  ;;  %v1032_v27 = vadd.f32 %v4213_v48, %v4210_v29  ;;  %v1033_v37 = vadd.f32 %v4231_v33, %v4228_v54  ;;  %v6414_v33 = vld [vmem:[#allocation5_spill] sm:$0xff]  ;;  %2456 = vmatpush3.bf16.msra.mxu0 (%p231_p4), %v2533_v13 }
 0x1c2   : >> { %v1034_v59 = vadd.f32 %v4255_v52, %v4234_v24  ;;  %v1035_v4 = vadd.f32 %v904_v22, %v895_v53  ;;  %v1036_v17 = vadd.f32 %v922_v47, %v913_v49  ;;  %v1037_v60 = vadd.f32 %v940_v1, %v931_v20  ;;  %2457 = vmatprep.subr.bf16.mxu0 (%p231_p4), %v2534_v7 }
 0x1c3   : >> { %v1038_v14 = vadd.f32 %v958_v6, %v949_v10  ;;  %v967_v23 = vmul.f32 %v966_v0, %v4027_v45  ;;  %v976_v39 = vmul.f32 %v975_v56, %v4045_v57  ;;  %v985_v61 = vmul.f32 %v984_v34, %v4113_v19 }
 0x1c4   : >> { %v994_v32 = vmul.f32 %v993_v43, %v4124_v12  ;;  %v1003_v29 = vmul.f32 %v1002_v55, %v4146_v31  ;;  %v1012_v48 = vmul.f32 %v1011_v40, %v4148_v11  ;;  %v1021_v54 = vmul.f32 %v1020_v21, %v4150_v9 }
 0x1c5   : >> { %v2530_v8 = vpop.eup %2529  ;;  %v1030_v24 = vmul.f32 %v1029_v16, %v6414_v33  ;;  %v1043_v53 = vadd.f32 %v1032_v27, %v1031_v63  ;;  %v1044_v42 = vadd.f32 %v1034_v59, %v1033_v37  ;;  %v1045_v5 = vadd.f32 %v1036_v17, %v1035_v4  ;;  %2458 = vmatpush3.bf16.msra.mxu0 (%p231_p4), %v2534_v7 }
 0x1c6   : >> { %v1057_v52 = vadd.f32 1.0, %v2530_v8  ;;  %v1046_v45 = vadd.f32 %v1038_v14, %v1037_v60  ;;  %v1039_v57 = vadd.f32 %v976_v39, %v967_v23  ;;  %v1040_v19 = vadd.f32 %v994_v32, %v985_v61 }
 0x1c7   : >> { %v1041_v2 = vadd.f32 %v1012_v48, %v1003_v29  ;;  %v1042_v12 = vadd.f32 %v1030_v24, %v1021_v54  ;;  %v1049_v51 = vadd.f32 %v1044_v42, %v1043_v53  ;;  %vm6415_vm11 = vcmask 261120  }
 0x1c8   : >> { %2531 = vrcp.f32 %v1057_v52  ;;  %v1050_v50 = vadd.f32 %v1046_v45, %v1045_v5  ;;  %v1047_v31 = vadd.f32 %v1040_v19, %v1039_v57  ;;  %vm6416_vm0 = vcmask (%p231_p4), 261120  }
 0x1c9   : >> { %v1048_v28 = vadd.f32 %v1042_v12, %v1041_v2  ;;  %vm6417_vm15 = vmmov (%p231_p4), %vm6416_vm0  ;;  %vm6289_vm1 = vcmask (%p231_p4), 523264  }
 0x1ca   : >> { %v1052_v11 = vadd.f32 %v1050_v50, %v1049_v51  ;;  %vm6418_vm7 = vmmov (%p231_p4), %vm6416_vm0 }
 0x1cb   : >> { %v1051_v26 = vadd.f32 %v1048_v28, %v1047_v31  ;;  %vm6419_vm13 = vmmov (%p231_p4), %vm6416_vm0 }
 0x1cc   : > { %vm6420_vm9 = vmmov (%p231_p4), %vm6416_vm0 }
 0x1cd   : >> { %v1053_v58 = vadd.f32 %v1052_v11, %v1051_v26  ;;  %vm6421_vm6 = vmmov (%p231_p4), %vm6416_vm0 }
 0x1ce   : > { %vm6422_vm4 = vmmov (%p231_p4), %vm6416_vm0 }
 0x1cf   : > { %vm6423_vm5 = vmmov (%p231_p4), %vm6416_vm0 }
 0x1d1   : > { %233 = sbr.rel (!%p231_p4) target bundleno = 16 (0x10), region = 88 }
 0x1d2   : >> { %v2532_v9 = vpop.eup %2531 }
 0x1d3   : >> { %v1060_v46 = vmul.f32 %v2532_v9, %v2638_v15 }
 0x1d5   : >> { %v1061_v38 = vadd.f32 %v1060_v46, %v1053_v58 }
 0x1d7   : >> { %1063 = vst.msk [vmem:[%s1062_s21] sm:$0xff] %vm6415_vm11, %v1061_v38 }
 0x1de   : > { %v1064_v15 = vld [vmem:[#allocation2] sm:$0xff]  ;;  %v1065_v44 = vld [vmem:[#allocation2 + $0x8] sm:$0xff]  ;;  %v1066_v18 = vld [vmem:[#allocation2 + $0x10] sm:$0xff] }
 0x1df   : > { %v1080_v41 = vpack.c.bf16 %v1065_v44, %v1064_v15  ;;  %v1067_v3 = vld [vmem:[#allocation2 + $0x18] sm:$0xff]  ;;  %v1068_v22 = vld [vmem:[#allocation2 + $0x20] sm:$0xff]  ;;  %v1069_v49 = vld [vmem:[#allocation2 + $0x28] sm:$0xff] }
 0x1e0   : > { %v1081_v47 = vpack.c.bf16 %v1067_v3, %v1066_v18  ;;  %v1082_v35 = vpack.c.bf16 %v1069_v49, %v1068_v22  ;;  %v1070_v30 = vld [vmem:[#allocation2 + $0x30] sm:$0xff]  ;;  %v1071_v36 = vld [vmem:[#allocation2 + $0x38] sm:$0xff]  ;;  %v1072_v25 = vld [vmem:[#allocation2 + $0x40] sm:$0xff] }
 0x1e1   : > { %2459 = vmatprep.mubr.msk.bf16.mxu0 %vm6416_vm0, %v1080_v41  ;;  %v1073_v20 = vld [vmem:[#allocation2 + $0x48] sm:$0xff]  ;;  %v1083_v1 = vpack.c.bf16 %v1071_v36, %v1070_v30  ;;  %v1074_v6 = vld [vmem:[#allocation2 + $0x50] sm:$0xff]  ;;  %v1075_v62 = vld [vmem:[#allocation2 + $0x58] sm:$0xff] }
 0x1e2   : > { %2460 = vmatmul.mubr.msk.bf16.vlgmr.msra.gmra.mrb[0].mxu0 %vm6417_vm15, %v1081_v47  ;;  %v1084_v10 = vpack.c.bf16 %v1073_v20, %v1072_v25  ;;  %v1076_v0 = vld [vmem:[#allocation2 + $0x60] sm:$0xff]  ;;  %v1077_v56 = vld [vmem:[#allocation2 + $0x68] sm:$0xff]  ;;  %v1085_v34 = vpack.c.bf16 %v1075_v62, %v1074_v6  ;;  %v1078_v55 = vld [vmem:[#allocation2 + $0x70] sm:$0xff] }
 0x1e3   : > { %2463 = vmatprep.mubr.msk.bf16.mxu0 %vm6418_vm7, %v1082_v35  ;;  %v1086_v43 = vpack.c.bf16 %v1077_v56, %v1076_v0  ;;  %v1079_v40 = vld [vmem:[#allocation2 + $0x78] sm:$0xff] }
 0x1e4   : > { %v1087_v21 = vpack.c.bf16 %v1079_v40, %v1078_v55 }
 0x1ea   : > { %2464 = vmatmul.mubr.msk.bf16.gmra.mrb[4].mxu0 %vm6419_vm13, %v1083_v1 }
 0x1eb   : > { %2467 = vmatprep.mubr.msk.bf16.mxu0 %vm6420_vm9, %v1084_v10 }
 0x1f2   : > { %2468 = vmatmul.mubr.msk.bf16.gmra.mrb[8].mxu0 %vm6421_vm6, %v1085_v34 }
 0x1f3   : > { %2471 = vmatprep.mubr.msk.bf16.mxu0 %vm6422_vm4, %v1086_v43 }
 0x1fa   : > { %2472 = vmatmul.mubr.msk.bf16.gmra.mrb[12].mxu0 %vm6423_vm5, %v1087_v21 }
 0x2b5   : > { %v2461_v63 = vpop.f32.mrb[0].mxu0 }
 0x2b6   : > { %1229 = vst.msk [vmem:[#allocation4 + $0x10] sm:$0xff] %vm6289_vm1, %v2461_v63  ;;  %v1163_v16 = vpop.f32.mrb[1].mxu0 }
 0x2b7   : > { %1227 = vst.msk [vmem:[#allocation4] sm:$0xff] %vm6289_vm1, %v1163_v16  ;;  %v2462_v27 = vpop.f32.mrb[2].mxu0 }
 0x2b8   : > { %1230 = vst.msk [vmem:[#allocation4 + $0x18] sm:$0xff] %vm6289_vm1, %v2462_v27  ;;  %v1166_v37 = vpop.f32.mrb[3].mxu0 }
 0x2b9   : > { %1228 = vst.msk [vmem:[#allocation4 + $0x8] sm:$0xff] %vm6289_vm1, %v1166_v37 }
 0x2bd   : > { %v2465_v59 = vpop.f32.mrb[4].mxu0 }
 0x2be   : > { %1233 = vst.msk [vmem:[#allocation4 + $0x30] sm:$0xff] %vm6289_vm1, %v2465_v59  ;;  %v1179_v4 = vpop.f32.mrb[5].mxu0 }
 0x2bf   : > { %1231 = vst.msk [vmem:[#allocation4 + $0x20] sm:$0xff] %vm6289_vm1, %v1179_v4  ;;  %v2466_v17 = vpop.f32.mrb[6].mxu0 }
 0x2c0   : > { %1234 = vst.msk [vmem:[#allocation4 + $0x38] sm:$0xff] %vm6289_vm1, %v2466_v17  ;;  %v1182_v60 = vpop.f32.mrb[7].mxu0 }
 0x2c1   : > { %1232 = vst.msk [vmem:[#allocation4 + $0x28] sm:$0xff] %vm6289_vm1, %v1182_v60 }
 0x2c5   : > { %v2469_v14 = vpop.f32.mrb[8].mxu0 }
 0x2c6   : > { %1237 = vst.msk [vmem:[#allocation4 + $0x50] sm:$0xff] %vm6289_vm1, %v2469_v14  ;;  %v1195_v23 = vpop.f32.mrb[9].mxu0 }
 0x2c7   : > { %1235 = vst.msk [vmem:[#allocation4 + $0x40] sm:$0xff] %vm6289_vm1, %v1195_v23  ;;  %v2470_v39 = vpop.f32.mrb[10].mxu0 }
 0x2c8   : > { %1238 = vst.msk [vmem:[#allocation4 + $0x58] sm:$0xff] %vm6289_vm1, %v2470_v39  ;;  %v1198_v61 = vpop.f32.mrb[11].mxu0 }
 0x2c9   : > { %1236 = vst.msk [vmem:[#allocation4 + $0x48] sm:$0xff] %vm6289_vm1, %v1198_v61 }
 0x2cd   : > { %v2473_v32 = vpop.f32.mrb[12].mxu0 }
 0x2ce   : > { %1241 = vst.msk [vmem:[#allocation4 + $0x70] sm:$0xff] %vm6289_vm1, %v2473_v32  ;;  %v1211_v8 = vpop.f32.mrb[13].mxu0 }
 0x2cf   : > { %1239 = vst.msk [vmem:[#allocation4 + $0x60] sm:$0xff] %vm6289_vm1, %v1211_v8  ;;  %v2474_v29 = vpop.f32.mrb[14].mxu0 }
 0x2d0   : > { %1242 = vst.msk [vmem:[#allocation4 + $0x78] sm:$0xff] %vm6289_vm1, %v2474_v29  ;;  %v1214_v48 = vpop.f32.mrb[15].mxu0 }
 0x2d1   : > { %1240 = vst.msk [vmem:[#allocation4 + $0x68] sm:$0xff] %vm6289_vm1, %v1214_v48 }
 0x2d2 LB: >> { %s2391_s28 = sshll.u32 %s2567_s24, 3  ;;  %vm6424_vm1 = vcmask 523264   ;;  %v1266_v51 = vld [vmem:[%s6276_s3] sm:$0xff]  ;;  %v1268_v31 = vld [vmem:[%s6276_s3 + $0x8] sm:$0xff]  ;;  %v1272_v11 = vld [vmem:[%s6276_s3 + $0x18] sm:$0xff]  ;;  %vm2571_vm2 = vmmov 1   ;;  %s2567_s24 = sphi %s4443_s24, %s1248_s24  }
 0x2d3   : >> { %s1250_s29 = scalar_lea.vmem [#allocation4], %s2391_s28  ;;  %v1270_v26 = vld [vmem:[%s6276_s3 + $0x10] sm:$0xff]  ;;  %v1274_v9 = vld [vmem:[%s6276_s3 + $0x20] sm:$0xff]  ;;  %v1276_v58 = vld [vmem:[%s6276_s3 + $0x28] sm:$0xff]  ;;  %v6291_v39 = vmov 0.0   ;;  %s2075_s19 = scalar_lea.vmem [#allocation3], %s2391_s28 }
 0x2d4   : >> { %v1278_v46 = vld [vmem:[%s6276_s3 + $0x30] sm:$0xff]  ;;  %v1280_v13 = vld [vmem:[%s6276_s3 + $0x38] sm:$0xff]  ;;  %v1282_v7 = vld [vmem:[%s6276_s3 + $0x40] sm:$0xff]  ;;  %s1248_s24 = sadd.s32 1, %s2567_s24  }
 0x2d5   : >> { %v4503_v15 = vld [vmem:[%s6276_s3 + $0x48] sm:$0xff]  ;;  %v4508_v44 = vld [vmem:[%s6276_s3 + $0x50] sm:$0xff]  ;;  %v4521_v18 = vld [vmem:[%s6276_s3 + $0x58] sm:$0xff]  ;;  %p1245_p5 = scmp.ge.s32.totalorder %s1248_s24, 16  }
 0x2d6   : >> { %v4526_v3 = vld [vmem:[%s6276_s3 + $0x60] sm:$0xff]  ;;  %v4531_v22 = vld [vmem:[%s6276_s3 + $0x68] sm:$0xff]  ;;  %v1432_v35 = vld [vmem:[%s6276_s3 + $0xf0] sm:$0xff] }
 0x2d7   : >> { %v1428_v47 = vld [vmem:[%s6276_s3 + $0xe8] sm:$0xff]  ;;  %v4549_v30 = vld [vmem:[%s6276_s3 + $0x70] sm:$0xff]  ;;  %v4554_v36 = vld [vmem:[%s6276_s3 + $0x78] sm:$0xff] }
 0x2d8   : >> { %v1251_v54 = vld [vmem:[%s1250_s29] sm:$0xff]  ;;  %v1436_v20 = vld [vmem:[%s6276_s3 + $0xf8] sm:$0xff]  ;;  %v1444_v6 = vld [vmem:[%s6276_s3 + $0x108] sm:$0xff] }
 0x2d9   : >> { %v1252_v33 = vsel %vm6424_vm1, %v1251_v54, 0.0  ;;  %v1440_v1 = vld [vmem:[%s6276_s3 + $0x100] sm:$0xff]  ;;  %v1448_v62 = vld [vmem:[%s6276_s3 + $0x110] sm:$0xff]  ;;  %v1434_v34 = vld [vmem:[%s6276_s3 + $0x348] sm:$0xff] }
 0x2da   : >> { %1253 = vadd.xlane.f32.xlu0 %v1252_v33  ;;  %v4594_v56 = vld [vmem:[%s6276_s3 + $0x340] sm:$0xff]  ;;  %v1438_v43 = vld [vmem:[%s6276_s3 + $0x350] sm:$0xff]  ;;  %v1442_v16 = vld [vmem:[%s6276_s3 + $0x358] sm:$0xff] }
 0x2db   : >> { %v1452_v27 = vld [vmem:[%s6276_s3 + $0x118] sm:$0xff]  ;;  %v4631_v37 = vld [vmem:[%s6276_s3 + $0x80] sm:$0xff]  ;;  %v1460_v14 = vld [vmem:[%s6276_s3 + $0x128] sm:$0xff] }
 0x2dc   : >> { %v1446_v17 = vld [vmem:[%s6276_s3 + $0x360] sm:$0xff]  ;;  %v4658_v23 = vld [vmem:[%s6276_s3 + $0x88] sm:$0xff]  ;;  %v1454_v48 = vld [vmem:[%s6276_s3 + $0x370] sm:$0xff] }
 0x2dd   : >> { %v1456_v60 = vld [vmem:[%s6276_s3 + $0x120] sm:$0xff]  ;;  %v1450_v29 = vld [vmem:[%s6276_s3 + $0x368] sm:$0xff]  ;;  %v1468_v33 = vld [vmem:[%s6276_s3 + $0x138] sm:$0xff] }
 0x2de   : >> { %v1478_v25 = vld [vmem:[%s6276_s3 + $0x3a0] sm:$0xff]  ;;  %v1496_v55 = vld [vmem:[%s6276_s3 + $0x170] sm:$0xff]  ;;  %v1500_v32 = vld [vmem:[%s6276_s3 + $0x178] sm:$0xff] }
 0x367   : >> { %v1254_v24 = vpop.xlane.xlu0 %1253 }
 0x368   : >> { %v1256_v52 = vmul.f32 0.015625, %v1254_v24  ;;  %v4689_v24 = vld [vmem:[%s6276_s3 + $0x90] sm:$0xff] }
 0x36a   : >> { %v1257_v53 = vsub.f32 %v1251_v54, %v1256_v52  ;;  %v1464_v54 = vld [vmem:[%s6276_s3 + $0x130] sm:$0xff] }
 0x36c   : >> { %v1258_v42 = vmul.f32 %v1257_v53, %v1257_v53 }
 0x36e   : >> { %v1259_v5 = vsel %vm6424_vm1, %v1258_v42, 0.0  ;;  %v1498_v42 = vld [vmem:[%s6276_s3 + $0x3c8] sm:$0xff] }
 0x36f   : >> { %1260 = vadd.xlane.f32.xlu0 %v1259_v5 }
 0x3fc   : >> { %v1261_v45 = vpop.xlane.xlu0 %1260 }
 0x3fd   : >> { %v1262_v57 = vmul.f32 0.015625, %v1261_v45 }
 0x3ff   : >> { %v1263_v19 = vadd.f32 1e-05, %v1262_v57  ;;  %v1472_v57 = vld [vmem:[%s6276_s3 + $0x140] sm:$0xff] }
 0x401   : >> { %2535 = vrsqrt.f32 %v1263_v19  ;;  %v1476_v19 = vld [vmem:[%s6276_s3 + $0x148] sm:$0xff] }
 0x40b   : >> { %v2536_v2 = vpop.eup %2535 }
 0x40c   : >> { %v1265_v12 = vmul.f32 %v2536_v2, %v1257_v53 }
 0x40e   : >> { %v1267_v50 = vmul.f32 %v1266_v51, %v1265_v12  ;;  %v1524_v12 = vld [vmem:[%s6276_s3 + $0x1a8] sm:$0xff] }
 0x410   : >> { %v4459_v28 = vadd.f32 %v1268_v31, %v1267_v50 }
 0x412   : >> { %vm1273_vm8 = vcmp.ge.f32.partialorder %v4459_v28, %v1272_v11  ;;  %vm1271_vm12 = vcmp.ge.f32.partialorder %v4459_v28, %v1270_v26  ;;  %vm1275_vm14 = vcmp.ge.f32.partialorder %v4459_v28, %v1274_v9  ;;  %vm1277_vm3 = vcmp.ge.f32.partialorder %v4459_v28, %v1276_v58  ;;  %v1458_v11 = vld [vmem:[%s6276_s3 + $0x378] sm:$0xff]  ;;  %v1462_v26 = vld [vmem:[%s6276_s3 + $0x380] sm:$0xff]  ;;  %v1466_v9 = vld [vmem:[%s6276_s3 + $0x388] sm:$0xff] }
 0x413   : >> { %vm1324_vm10 = vmxor %vm1273_vm8, %vm2571_vm2  ;;  %vm1279_vm11 = vcmp.ge.f32.partialorder %v4459_v28, %v1278_v46  ;;  %vm1281_vm9 = vcmp.ge.f32.partialorder %v4459_v28, %v1280_v13  ;;  %vm1283_vm4 = vcmp.ge.f32.partialorder %v4459_v28, %v1282_v7  ;;  %v4612_v40 = vmul.f32 %v1428_v47, %v4459_v28  ;;  %v1480_v58 = vld [vmem:[%s6276_s3 + $0x150] sm:$0xff]  ;;  %v1484_v46 = vld [vmem:[%s6276_s3 + $0x158] sm:$0xff] }
 0x414   : >> { %vm4484_vm0 = vmand %vm1271_vm12, %vm1324_vm10  ;;  %v1433_v21 = vmul.f32 %v1432_v35, %v4459_v28  ;;  %v1437_v63 = vmul.f32 %v1436_v20, %v4459_v28  ;;  %v1441_v4 = vmul.f32 %v1440_v1, %v4459_v28  ;;  %v1445_v8 = vmul.f32 %v1444_v6, %v4459_v28  ;;  %v1470_v47 = vld [vmem:[%s6276_s3 + $0x390] sm:$0xff]  ;;  %v1474_v35 = vld [vmem:[%s6276_s3 + $0x398] sm:$0xff] }
 0x415   : >> { %vm1328_vm15 = vmxor %vm1275_vm14, %vm2571_vm2  ;;  %v4663_v61 = vsel %vm4484_vm0, 1.0, %v6291_v39  ;;  %v1449_v5 = vmul.f32 %v1448_v62, %v4459_v28  ;;  %v1453_v45 = vmul.f32 %v1452_v27, %v4459_v28  ;;  %v1431_v51 = vsub.f32 %v4612_v40, %v4594_v56  ;;  %v1488_v20 = vld [vmem:[%s6276_s3 + $0x160] sm:$0xff]  ;;  %v1492_v1 = vld [vmem:[%s6276_s3 + $0x168] sm:$0xff] }
 0x416   : >> { %vm1332_vm7 = vmxor %vm1277_vm3, %vm2571_vm2  ;;  %v4732_v50 = vsub.f32 %v1433_v21, %v1434_v34  ;;  %v4734_v31 = vsub.f32 %v1437_v63, %v1438_v43  ;;  %v4759_v13 = vsub.f32 %v1441_v4, %v1442_v16  ;;  %v1457_v7 = vmul.f32 %v1456_v60, %v4459_v28  ;;  %v1482_v43 = vld [vmem:[%s6276_s3 + $0x3a8] sm:$0xff]  ;;  %v4805_v21 = vld [vmem:[%s6276_s3 + $0x98] sm:$0xff] }
 0x417   : >> { %vm4513_vm13 = vmxor %vm1279_vm11, %vm2571_vm2  ;;  %v1461_v41 = vmul.f32 %v1460_v14, %v4459_v28  ;;  %v1465_v49 = vmul.f32 %v1464_v54, %v4459_v28  ;;  %v4789_v6 = vsub.f32 %v1445_v8, %v1446_v17  ;;  %v1469_v62 = vmul.f32 %v1468_v33, %v4459_v28  ;;  %v1486_v17 = vld [vmem:[%s6276_s3 + $0x3b0] sm:$0xff]  ;;  %v1490_v60 = vld [vmem:[%s6276_s3 + $0x3b8] sm:$0xff] }
 0x418   : >> { %vm4535_vm6 = vmand %vm1273_vm8, %vm1328_vm15  ;;  %vm6290_vm8 = vcmp.ge.f32.partialorder %v4459_v28, %v4503_v15  ;;  %vm1289_vm15 = vcmp.ge.f32.partialorder %v4459_v28, %v4521_v18  ;;  %v1473_v0 = vmul.f32 %v1472_v57, %v4459_v28  ;;  %v1477_v34 = vmul.f32 %v1476_v19, %v4459_v28  ;;  %v1494_v14 = vld [vmem:[%s6276_s3 + $0x3c0] sm:$0xff]  ;;  %v4873_v57 = vld [vmem:[%s6276_s3 + $0xa8] sm:$0xff] }
 0x419   : >> { %vm4558_vm5 = vmand %vm1275_vm14, %vm1332_vm7  ;;  %vm1287_vm14 = vcmp.ge.f32.partialorder %v4459_v28, %v4508_v44  ;;  %v4694_v52 = vsel %vm4535_vm6, 1.0, %v6291_v39  ;;  %v4820_v27 = vsub.f32 %v1449_v5, %v1450_v29  ;;  %v4822_v59 = vsub.f32 %v1453_v45, %v1454_v48  ;;  %v4842_v8 = vld [vmem:[%s6276_s3 + $0xa0] sm:$0xff]  ;;  %v1512_v44 = vld [vmem:[%s6276_s3 + $0x190] sm:$0xff] }
 0x41a   : >> { %vm4574_vm12 = vmand %vm1277_vm3, %vm4513_vm13  ;;  %vm1295_vm13 = vcmp.ge.f32.partialorder %v4459_v28, %v4549_v30  ;;  %v4699_v53 = vsel %vm4558_vm5, 1.0, %v6291_v39  ;;  %vm6451_vm5 = vcmp.ge.f32.partialorder %v4459_v28, %v4526_v3  ;;  %v1481_v4 = vmul.f32 %v1480_v58, %v4459_v28  ;;  %v1504_v45 = vld [vmem:[%s6276_s3 + $0x180] sm:$0xff]  ;;  %v5040_v19 = vld [vmem:[%s6276_s3 + $0x408] sm:$0xff] }
 0x41b   : >> { %vm4587_vm10 = vmxor %vm1281_vm9, %vm2571_vm2  ;;  %v4720_v2 = vsel %vm4574_vm12, 1.0, %v6291_v39  ;;  %v1485_v54 = vmul.f32 %v1484_v46, %v4459_v28  ;;  %v1489_v33 = vmul.f32 %v1488_v20, %v4459_v28  ;;  %v1493_v5 = vmul.f32 %v1492_v1, %v4459_v28  ;;  %v1502_v1 = vld [vmem:[%s6276_s3 + $0x3d0] sm:$0xff]  ;;  %v1520_v18 = vld [vmem:[%s6276_s3 + $0x1a0] sm:$0xff] }
 0x41c   : >> { %vm4607_vm3 = vmxor %vm1283_vm4, %vm2571_vm2  ;;  %v4884_v58 = vsub.f32 %v1457_v7, %v1458_v11  ;;  %v4886_v46 = vsub.f32 %v1461_v41, %v1462_v26  ;;  %v4888_v38 = vsub.f32 %v1465_v49, %v1466_v9  ;;  %v1497_v20 = vmul.f32 %v1496_v55, %v4459_v28  ;;  %v1516_v49 = vld [vmem:[%s6276_s3 + $0x198] sm:$0xff]  ;;  %v1510_v48 = vld [vmem:[%s6276_s3 + $0x3e0] sm:$0xff] }
 0x41d   : >> { %vm4637_vm1 = vmxor %vm6290_vm8, %vm2571_vm2  ;;  %vm1297_vm8 = vcmp.ge.f32.partialorder %v4459_v28, %v4554_v36  ;;  %v4906_v26 = vsub.f32 %v1469_v62, %v1470_v47  ;;  %v4908_v9 = vsub.f32 %v1473_v0, %v1474_v35  ;;  %v4910_v7 = vsub.f32 %v1477_v34, %v1478_v25  ;;  %v1528_v0 = vld [vmem:[%s6276_s3 + $0x1b0] sm:$0xff]  ;;  %v5141_v30 = vld [vmem:[%s6276_s3 + $0xc8] sm:$0xff] }
 0x41e   : >> { %vm4669_vm7 = vmand %vm1279_vm11, %vm4587_vm10  ;;  %vm1303_vm10 = vcmp.ge.f32.partialorder %v4459_v28, %v4689_v24  ;;  %v1501_v41 = vmul.f32 %v1500_v32, %v4459_v28  ;;  %v4932_v35 = vsub.f32 %v1481_v4, %v1482_v43  ;;  %v1505_v25 = vmul.f32 %v1504_v45, %v4459_v28  ;;  %v1506_v32 = vld [vmem:[%s6276_s3 + $0x3d8] sm:$0xff] }
 0x41f   : >> { %vm4705_vm11 = vmand %vm1281_vm9, %vm4607_vm3  ;;  %vm1299_vm9 = vcmp.ge.f32.partialorder %v4459_v28, %v4631_v37  ;;  %v4810_v63 = vsel %vm4669_vm7, 1.0, %v6291_v39  ;;  %vm6454_vm3 = vcmp.ge.f32.partialorder %v4459_v28, %v4503_v15  ;;  %v1508_v15 = vld [vmem:[%s6276_s3 + $0x188] sm:$0xff]  ;;  %v4957_v55 = vsub.f32 %v1485_v54, %v1486_v17  ;;  %v4974_v17 = vld [vmem:[%s6276_s3 + $0xb0] sm:$0xff] }
 0x420   : >> { %vm4726_vm0 = vmand %vm1283_vm4, %vm4637_vm1  ;;  %vm1301_vm4 = vcmp.ge.f32.partialorder %v4459_v28, %v4658_v23  ;;  %v4847_v29 = vsel %vm4705_vm11, 1.0, %v6291_v39  ;;  %v1509_v62 = vmul.f32 %v1508_v15, %v4459_v28  ;;  %v4959_v16 = vsub.f32 %v1489_v33, %v1490_v60  ;;  %v1514_v33 = vld [vmem:[%s6276_s3 + $0x3e8] sm:$0xff]  ;;  %v5071_v60 = vld [vmem:[%s6276_s3 + $0xc0] sm:$0xff] }
 0x421   : >> { %vm4755_vm1 = vmxor %vm1287_vm14, %vm2571_vm2  ;;  %v4922_v10 = vsel %vm4726_vm0, 1.0, %v6291_v39  ;;  %vm1305_vm0 = vcmp.ge.f32.partialorder %v4459_v28, %v4805_v21  ;;  %v4961_v4 = vsub.f32 %v1493_v5, %v1494_v14  ;;  %v4984_v14 = vsub.f32 %v1497_v20, %v1498_v42  ;;  %v1518_v20 = vld [vmem:[%s6276_s3 + $0x3f0] sm:$0xff] }
 0x422   : >> { %vm4785_vm6 = vmxor %vm1289_vm15, %vm2571_vm2  ;;  %v1513_v54 = vmul.f32 %v1512_v44, %v4459_v28  ;;  %v1517_v5 = vmul.f32 %v1516_v49, %v4459_v28  ;;  %v1521_v45 = vmul.f32 %v1520_v18, %v4459_v28  ;;  %v5003_v15 = vsub.f32 %v1501_v41, %v1502_v1  ;;  %v1522_v44 = vld [vmem:[%s6276_s3 + $0x3f8] sm:$0xff]  ;;  %v5162_v41 = vld [vmem:[%s6276_s3 + $0xd0] sm:$0xff] }
 0x423   : >> { %vm4816_vm12 = vmxor %vm6451_vm5, %vm2571_vm2  ;;  %vm1307_vm5 = vcmp.ge.f32.partialorder %v4459_v28, %v4842_v8  ;;  %v1525_v49 = vmul.f32 %v1524_v12, %v4459_v28  ;;  %v5013_v18 = vmul.f32 %v1528_v0, %v4459_v28  ;;  %v5030_v47 = vsub.f32 %v1505_v25, %v1506_v32  ;;  %v1526_v0 = vld [vmem:[%s6276_s3 + $0x400] sm:$0xff] }
 0x424   : >> { %vm4854_vm7 = vmand %vm6454_vm3, %vm4755_vm1  ;;  %vm1309_vm3 = vcmp.ge.f32.partialorder %v4459_v28, %v4873_v57  ;;  %v5032_v12 = vsub.f32 %v1509_v62, %v1510_v48  ;;  %v1537_v43 = vsub.f32 1.0, %v4734_v31  ;;  %v1532_v32 = vmul.f32 %v4663_v61, %v1431_v51 }
 0x425   : >> { %vm4880_vm11 = vmand %vm1287_vm14, %vm4785_vm6  ;;  %v4947_v34 = vsel %vm4854_vm7, 1.0, %v6291_v39  ;;  %vm6468_vm7 = vcmp.ge.f32.partialorder %v4459_v28, %v4526_v3  ;;  %v1533_v3 = vsub.f32 1.0, %v4732_v50  ;;  %v1541_v48 = vsub.f32 1.0, %v4759_v13 }
 0x426   : >> { %vm4902_vm14 = vmand %vm1289_vm15, %vm4816_vm12  ;;  %vm6461_vm15 = vcmp.ge.f32.partialorder %v4459_v28, %v4531_v22  ;;  %v5019_v1 = vsel %vm4880_vm11, 1.0, %v6291_v39  ;;  %6474 = vst [vmem:[#allocation10_spill] sm:$0xff] %v5032_v12  ;;  %v1545_v11 = vsub.f32 1.0, %v4789_v6  ;;  %v5081_v56 = vsub.f32 %v1513_v54, %v1514_v33 }
 0x427   : >> { %vm4928_vm1 = vmxor %vm6461_vm15, %vm2571_vm2  ;;  %v5051_v25 = vsel %vm4902_vm14, 1.0, %v6291_v39  ;;  %v5083_v40 = vsub.f32 %v1517_v5, %v1518_v20  ;;  %v5085_v61 = vsub.f32 %v1521_v45, %v1522_v44  ;;  %v1549_v51 = vsub.f32 1.0, %v4820_v27 }
 0x428   : >> { %vm4953_vm6 = vmxor %vm1295_vm13, %vm2571_vm2  ;;  %vm1311_vm14 = vcmp.ge.f32.partialorder %v4459_v28, %v4974_v17  ;;  %v5098_v12 = vsub.f32 %v1525_v49, %v1526_v0  ;;  %v1534_v33 = vmul.f32 %v4694_v52, %v1533_v3  ;;  %v1553_v5 = vsub.f32 1.0, %v4822_v59 }
 0x429   : >> { %vm4980_vm12 = vmxor %vm1297_vm8, %vm2571_vm2  ;;  %v6481_v45 = vmov 0.0   ;;  %v1536_v49 = vmul.f32 %v4694_v52, %v4732_v50  ;;  %v1538_v3 = vmul.f32 %v4699_v53, %v1537_v43  ;;  %v1557_v0 = vsub.f32 1.0, %v4884_v58 }
 0x42a   : >> { %vm4999_vm15 = vmand %vm6468_vm7, %vm4928_vm1  ;;  %vm6471_vm1 = vcmp.ge.f32.partialorder %v4459_v28, %v4531_v22  ;;  %v5046_v22 = vld [vmem:[%s6276_s3 + $0xb8] sm:$0xff]  ;;  %v1540_v54 = vmul.f32 %v4699_v53, %v4734_v31  ;;  %v1542_v52 = vmul.f32 %v4720_v2, %v1541_v48  ;;  %v1544_v50 = vmul.f32 %v4720_v2, %v4759_v13 }
 0x42b   : >> { %vm5026_vm7 = vmand %vm6471_vm1, %vm4953_vm6  ;;  %v2402_v20 = vsel %vm4999_vm15, 1.0, %v6481_v45  ;;  %v1546_v43 = vmul.f32 %v4810_v63, %v1545_v11  ;;  %v1548_v2 = vmul.f32 %v4810_v63, %v4789_v6  ;;  %v1550_v31 = vmul.f32 %v4847_v29, %v1549_v51  ;;  %v5182_v11 = vld [vmem:[%s6276_s3 + $0xd8] sm:$0xff] }
 0x42c   : >> { %vm5058_vm11 = vmand %vm1295_vm13, %vm4980_vm12  ;;  %vm1315_vm12 = vcmp.ge.f32.partialorder %v4459_v28, %v5071_v60  ;;  %v2403_v36 = vsel %vm5026_vm7, 1.0, %v6481_v45  ;;  %v1561_v13 = vsub.f32 1.0, %v4886_v46  ;;  %v5173_v39 = vadd.f32 %v1534_v33, %v1532_v32  ;;  %v1636_v60 = vld [vmem:[%s6276_s3 + $0x1c0] sm:$0xff] }
 0x42d   : >> { %vm5077_vm13 = vmxor %vm1299_vm9, %vm2571_vm2  ;;  %v1552_v6 = vmul.f32 %v4847_v29, %v4820_v27  ;;  %v1554_v63 = vmul.f32 %v4922_v10, %v1553_v5  ;;  %v1565_v48 = vsub.f32 1.0, %v4888_v38  ;;  %v2404_v23 = vsel %vm5058_vm11, 1.0, %v6481_v45  ;;  %v6514_v21 = vld [vmem:[#allocation10_spill] sm:$0xff] }
 0x42e   : >> { %vm5094_vm6 = vmxor %vm1301_vm4, %vm2571_vm2  ;;  %v5195_v27 = vadd.f32 %v1538_v3, %v1536_v49  ;;  %v1558_v29 = vmul.f32 %v4947_v34, %v1557_v0  ;;  %v1569_v51 = vsub.f32 1.0, %v4906_v26  ;;  %vm1317_vm7 = vcmp.ge.f32.partialorder %v4459_v28, %v5141_v30  ;;  %v1644_v30 = vld [vmem:[%s6276_s3 + $0x1d0] sm:$0xff] }
 0x42f   : >> { %vm5113_vm1 = vmxor %vm1303_vm10, %vm2571_vm2  ;;  %v5209_v33 = vadd.f32 %v1542_v52, %v1540_v54  ;;  %v5211_v5 = vadd.f32 %v1546_v43, %v1544_v50  ;;  %v1556_v44 = vmul.f32 %v4922_v10, %v4822_v59  ;;  %v1573_v49 = vsub.f32 1.0, %v4908_v9  ;;  %v5254_v43 = vld [vmem:[%s6276_s3 + $0xe0] sm:$0xff] }
 0x430   : >> { %vm5128_vm15 = vmand %vm1297_vm8, %vm5077_vm13  ;;  %vm1319_vm13 = vcmp.ge.f32.partialorder %v4459_v28, %v5162_v41  ;;  %v5229_v0 = vadd.f32 %v1550_v31, %v1548_v2  ;;  %v1560_v59 = vmul.f32 %v4947_v34, %v4884_v58  ;;  %v1562_v10 = vmul.f32 %v5019_v1, %v1561_v13 }
 0x431   : >> { %vm5151_vm8 = vmand %vm1299_vm9, %vm5094_vm6  ;;  %v2405_v3 = vsel %vm5128_vm15, 1.0, %v6481_v45  ;;  %v5245_v52 = vadd.f32 %v1554_v63, %v1552_v6  ;;  %v1564_v50 = vmul.f32 %v5019_v1, %v4886_v46  ;;  %v1566_v58 = vmul.f32 %v5051_v25, %v1565_v48 }
 0x432   : >> { %vm5169_vm9 = vmand %vm1301_vm4, %vm5113_vm1  ;;  %vm1321_vm1 = vcmp.ge.f32.partialorder %v4459_v28, %v5182_v11  ;;  %v1577_v34 = vsub.f32 1.0, %v4910_v7  ;;  %v2406_v24 = vsel %vm5151_vm8, 1.0, %v6481_v45  ;;  %v5268_v1 = vadd.f32 %v1558_v29, %v1556_v44 }
 0x433   : >> { %vm5191_vm4 = vmxor %vm1305_vm0, %vm2571_vm2  ;;  %v1568_v2 = vmul.f32 %v5051_v25, %v4888_v38  ;;  %v1570_v31 = vmul.f32 %v2402_v20, %v1569_v51  ;;  %v2407_v53 = vsel %vm5169_vm9, 1.0, %v6481_v45  ;;  %v1572_v13 = vmul.f32 %v2402_v20, %v4906_v26 }
 0x434   : >> { %vm5205_vm11 = vmxor %vm1307_vm5, %vm2571_vm2  ;;  %v1574_v6 = vmul.f32 %v2403_v36, %v1573_v49  ;;  %v1581_v63 = vsub.f32 1.0, %v4932_v35  ;;  %v5294_v25 = vadd.f32 %v1562_v10, %v1560_v59  ;;  %v1576_v8 = vmul.f32 %v2403_v36, %v4908_v9 }
 0x435   : >> { %vm5225_vm6 = vmxor %vm1309_vm3, %vm2571_vm2  ;;  %v1585_v37 = vsub.f32 1.0, %v4957_v55  ;;  %v1589_v48 = vsub.f32 1.0, %v4959_v16  ;;  %vm6504_vm9 = vcmp.ge.f32.partialorder %v4459_v28, %v5046_v22  ;;  %v5309_v20 = vadd.f32 %v1566_v58, %v1564_v50 }
 0x436   : >> { %vm5241_vm15 = vmand %vm1303_vm10, %vm5191_vm4  ;;  %v1578_v32 = vmul.f32 %v2404_v23, %v1577_v34  ;;  %v1580_v9 = vmul.f32 %v2404_v23, %v4910_v7  ;;  %v1593_v36 = vsub.f32 1.0, %v4961_v4  ;;  %v5324_v62 = vadd.f32 %v1570_v31, %v1568_v2 }
 0x437   : >> { %vm5264_vm10 = vmand %vm1305_vm0, %vm5205_vm11  ;;  %v2408_v29 = vsel %vm5241_vm15, 1.0, %v6481_v45  ;;  %v1597_v44 = vsub.f32 1.0, %v4984_v14  ;;  %v1601_v7 = vsub.f32 1.0, %v5003_v15  ;;  %v5333_v23 = vadd.f32 %v1574_v6, %v1572_v13 }
 0x438   : >> { %vm5280_vm8 = vmand %vm1307_vm5, %vm5225_vm6  ;;  %vm1323_vm5 = vcmp.ge.f32.partialorder %v4459_v28, %v5254_v43  ;;  %v1582_v49 = vmul.f32 %v2405_v3, %v1581_v63  ;;  %v1584_v54 = vmul.f32 %v2405_v3, %v4932_v35  ;;  %v1605_v59 = vsub.f32 1.0, %v5030_v47  ;;  %v1648_v3 = vld [vmem:[%s6276_s3 + $0x1d8] sm:$0xff] }
 0x439   : >> { %vm5290_vm0 = vmxor %vm1311_vm14, %vm2571_vm2  ;;  %v2409_v10 = vsel %vm5264_vm10, 1.0, %v6481_v45  ;;  %v1586_v42 = vmul.f32 %v2406_v24, %v1585_v37  ;;  %v1588_v57 = vmul.f32 %v2406_v24, %v4957_v55  ;;  %v1590_v50 = vmul.f32 %v2407_v53, %v1589_v48  ;;  %v1650_v37 = vld [vmem:[%s6276_s3 + $0x430] sm:$0xff] }
 0x43a   : >> { %vm5305_vm4 = vmxor %vm6504_vm9, %vm2571_vm2  ;;  %v2410_v35 = vsel %vm5280_vm8, 1.0, %v6481_v45  ;;  %v5358_v58 = vadd.f32 %v1578_v32, %v1576_v8  ;;  %v1592_v17 = vmul.f32 %v2407_v53, %v4959_v16  ;;  %v1594_v34 = vmul.f32 %v2408_v29, %v1593_v36  ;;  %v1654_v36 = vld [vmem:[%s6276_s3 + $0x438] sm:$0xff] }
 0x43b   : >> { %vm5320_vm11 = vmxor %vm1315_vm12, %vm2571_vm2  ;;  %v1596_v24 = vmul.f32 %v2408_v29, %v4961_v4  ;;  %v1598_v46 = vmul.f32 %v2409_v10, %v1597_v44  ;;  %v1602_v22 = vmul.f32 %v2410_v35, %v1601_v7  ;;  %v5376_v31 = vadd.f32 %v1582_v49, %v1580_v9  ;;  %v1640_v44 = vld [vmem:[%s6276_s3 + $0x1c8] sm:$0xff]  ;;  %v1642_v4 = vld [vmem:[%s6276_s3 + $0x420] sm:$0xff] }
 0x43c   : >> { %vm1401_vm6 = vmand %vm1309_vm3, %vm5290_vm0  ;;  %v1609_v13 = vsub.f32 1.0, %v6514_v21  ;;  %v5387_v6 = vadd.f32 %v1586_v42, %v1584_v54  ;;  %v5389_v63 = vadd.f32 %v1590_v50, %v1588_v57  ;;  %v1600_v38 = vmul.f32 %v2409_v10, %v4984_v14  ;;  %v1632_v14 = vld [vmem:[%s6276_s3 + $0x1b8] sm:$0xff]  ;;  %v1658_v49 = vld [vmem:[%s6276_s3 + $0x440] sm:$0xff] }
 0x43d   : >> { %vm1405_vm15 = vmand %vm1311_vm14, %vm5305_vm4  ;;  %v2411_v55 = vsel %vm1401_vm6, 1.0, %v6481_v45  ;;  %v1613_v8 = vsub.f32 1.0, %v5081_v56  ;;  %v5400_v48 = vadd.f32 %v1594_v34, %v1592_v17  ;;  %v1604_v26 = vmul.f32 %v2410_v35, %v5003_v15  ;;  %v1652_v17 = vld [vmem:[%s6276_s3 + $0x1e0] sm:$0xff] }
 0x43e   : >> { %vm6509_vm3 = vmmov %vm6504_vm9  ;;  %v2412_v2 = vsel %vm1405_vm15, 1.0, %v6481_v45  ;;  %v1606_v53 = vmul.f32 %v2411_v55, %v1605_v59  ;;  %v1608_v32 = vmul.f32 %v2411_v55, %v5030_v47  ;;  %v1617_v9 = vsub.f32 1.0, %v5083_v40  ;;  %v5474_v55 = vld [vmem:[%s6276_s3 + $0x410] sm:$0xff] }
 0x43f   : >> { %vm5354_vm10 = vmand %vm6509_vm3, %vm5320_vm11  ;;  %v5420_v15 = vadd.f32 %v1598_v46, %v1596_v24  ;;  %v5422_v47 = vadd.f32 %v1602_v22, %v1600_v38  ;;  %v1612_v29 = vmul.f32 %v2412_v2, %v6514_v21  ;;  %v1621_v51 = vsub.f32 1.0, %v5085_v61  ;;  %v1638_v24 = vld [vmem:[%s6276_s3 + $0x418] sm:$0xff]  ;;  %v1646_v38 = vld [vmem:[%s6276_s3 + $0x428] sm:$0xff] }
 0x440   : >> { %vm1412_vm14 = vmxor %vm1317_vm7, %vm2571_vm2  ;;  %v2413_v7 = vsel %vm5354_vm10, 1.0, %v6481_v45  ;;  %v5444_v54 = vadd.f32 %v1606_v53, %v1604_v26  ;;  %v1610_v59 = vmul.f32 %v2412_v2, %v1609_v13  ;;  %v1625_v10 = vsub.f32 1.0, %v5098_v12 }
 0x441   : >> { %vm5372_vm8 = vmxor %vm1319_vm13, %vm2571_vm2  ;;  %v1614_v41 = vmul.f32 %v2413_v7, %v1613_v8  ;;  %v5459_v50 = vmul.f32 %v1632_v14, %v4459_v28  ;;  %v1637_v35 = vmul.f32 %v1636_v60, %v4459_v28  ;;  %v1641_v46 = vmul.f32 %v1640_v44, %v4459_v28 }
 0x442   : >> { %vm5383_vm0 = vmxor %vm1321_vm1, %vm2571_vm2  ;;  %v1645_v22 = vmul.f32 %v1644_v30, %v4459_v28  ;;  %v1616_v16 = vmul.f32 %v2413_v7, %v5081_v56  ;;  %v6525_v21 = vsub.f32 %v5013_v18, %v5040_v19  ;;  %v5503_v8 = vadd.f32 %v1610_v59, %v1608_v32  ;;  %v1668_v59 = vld [vmem:[%s6276_s3 + $0x200] sm:$0xff]  ;;  %v1698_v32 = vld [vmem:[%s6276_s3 + $0x490] sm:$0xff] }
 0x443   : >> { %vm5396_vm9 = vmand %vm1315_vm12, %vm1412_vm14  ;;  %v1649_v19 = vmul.f32 %v1648_v3, %v4459_v28  ;;  %v1653_v26 = vmul.f32 %v1652_v17, %v4459_v28  ;;  %v5513_v11 = vadd.f32 %v1614_v41, %v1612_v29  ;;  %v5518_v60 = vsub.f32 %v1637_v35, %v1638_v24  ;;  %v1664_v29 = vld [vmem:[%s6276_s3 + $0x1f8] sm:$0xff]  ;;  %v1662_v3 = vld [vmem:[%s6276_s3 + $0x448] sm:$0xff] }
 0x444   : >> { %vm5416_vm12 = vmand %vm1317_vm7, %vm5372_vm8  ;;  %v2414_v42 = vsel %vm5396_vm9, 1.0, %v6481_v45  ;;  %v1629_v13 = vsub.f32 1.0, %v6525_v21  ;;  %6528 = vst [vmem:[#allocation10_spill] sm:$0xff] %v5503_v8  ;;  %v5532_v30 = vsub.f32 %v1641_v46, %v1642_v4  ;;  %v5534_v7 = vsub.f32 %v1645_v22, %v1646_v38  ;;  %v1680_v17 = vld [vmem:[%s6276_s3 + $0x218] sm:$0xff]  ;;  %v1666_v22 = vld [vmem:[%s6276_s3 + $0x450] sm:$0xff] }
 0x445   : >> { %vm5440_vm7 = vmand %vm1319_vm13, %vm5383_vm0  ;;  %v2415_v43 = vsel %vm5416_vm12, 1.0, %v6481_v45  ;;  %v1618_v34 = vmul.f32 %v2414_v42, %v1617_v9  ;;  %v1656_v9 = vld [vmem:[%s6276_s3 + $0x1e8] sm:$0xff]  ;;  %6529 = vst [vmem:[#allocation11_spill] sm:$0xff] %v5513_v11  ;;  %v1620_v14 = vmul.f32 %v2414_v42, %v5083_v40  ;;  %v5571_v24 = vsub.f32 %v1653_v26, %v1654_v36  ;;  %v1696_v21 = vld [vmem:[%s6276_s3 + $0x238] sm:$0xff] }
 0x446   : >> { %vm5454_vm4 = vmxor %vm1323_vm5, %vm2571_vm2  ;;  %v2416_v2 = vsel %vm5440_vm7, 1.0, %v6481_v45  ;;  %v1622_v53 = vmul.f32 %v2415_v43, %v1621_v51  ;;  %v1660_v51 = vld [vmem:[%s6276_s3 + $0x1f0] sm:$0xff]  ;;  %v1624_v40 = vmul.f32 %v2415_v43, %v5085_v61  ;;  %v1657_v35 = vmul.f32 %v1656_v9, %v4459_v28  ;;  %v1684_v43 = vld [vmem:[%s6276_s3 + $0x220] sm:$0xff] }
 0x447   : >> { %vm5499_vm2 = vmand %vm1321_vm1, %vm5454_vm4  ;;  %v1626_v18 = vmul.f32 %v2416_v2, %v1625_v10  ;;  %v5529_v44 = vadd.f32 %v1618_v34, %v1616_v16  ;;  %v1672_v10 = vld [vmem:[%s6276_s3 + $0x208] sm:$0xff]  ;;  %v1676_v61 = vld [vmem:[%s6276_s3 + $0x210] sm:$0xff]  ;;  %v1628_v41 = vmul.f32 %v2416_v2, %v5098_v12  ;;  %v5569_v12 = vsub.f32 %v1649_v19, %v1650_v37 }
 0x448   : >> { %v2417_v42 = vsel %vm5499_vm2, 1.0, %v6481_v45  ;;  %v5551_v57 = vadd.f32 %v1622_v53, %v1620_v14  ;;  %v1688_v45 = vld [vmem:[%s6276_s3 + $0x228] sm:$0xff]  ;;  %v1661_v46 = vmul.f32 %v1660_v51, %v4459_v28  ;;  %v1670_v2 = vld [vmem:[%s6276_s3 + $0x458] sm:$0xff]  ;;  %v1674_v16 = vld [vmem:[%s6276_s3 + $0x460] sm:$0xff]  ;;  %v1665_v56 = vmul.f32 %v1664_v29, %v4459_v28 }
 0x449   : >> { %6530 = vst [vmem:[#allocation12_spill] sm:$0xff] %v5529_v44  ;;  %v5567_v34 = vadd.f32 %v1626_v18, %v1624_v40  ;;  %v1692_v53 = vld [vmem:[%s6276_s3 + $0x230] sm:$0xff]  ;;  %v1700_v4 = vld [vmem:[%s6276_s3 + $0x240] sm:$0xff]  ;;  %v1630_v38 = vmul.f32 %v2417_v42, %v1629_v13  ;;  %v1669_v18 = vmul.f32 %v1668_v59, %v4459_v28  ;;  %v1673_v19 = vmul.f32 %v1672_v10, %v4459_v28  ;;  %v1704_v37 = vld [vmem:[%s6276_s3 + $0x248] sm:$0xff] }
 0x44a   : >> { %6531 = vst [vmem:[#allocation13_spill] sm:$0xff] %v5551_v57  ;;  %v1708_v26 = vld [vmem:[%s6276_s3 + $0x250] sm:$0xff]  ;;  %v1712_v9 = vld [vmem:[%s6276_s3 + $0x258] sm:$0xff]  ;;  %v1677_v13 = vmul.f32 %v1676_v61, %v4459_v28  ;;  %v1678_v14 = vld [vmem:[%s6276_s3 + $0x468] sm:$0xff]  ;;  %v1681_v36 = vmul.f32 %v1680_v17, %v4459_v28  ;;  %v1685_v29 = vmul.f32 %v1684_v43, %v4459_v28  ;;  %v1689_v59 = vmul.f32 %v1688_v45, %v4459_v28 }
 0x44b   : >> { %6532 = vst [vmem:[#allocation14_spill] sm:$0xff] %v5567_v34  ;;  %v1682_v51 = vld [vmem:[%s6276_s3 + $0x470] sm:$0xff]  ;;  %v1686_v40 = vld [vmem:[%s6276_s3 + $0x478] sm:$0xff]  ;;  %v5617_v10 = vsub.f32 %v1657_v35, %v1658_v49  ;;  %v1690_v61 = vld [vmem:[%s6276_s3 + $0x480] sm:$0xff]  ;;  %v1693_v42 = vmul.f32 %v1692_v53, %v4459_v28  ;;  %v1697_v43 = vmul.f32 %v1696_v21, %v4459_v28  ;;  %v1701_v45 = vmul.f32 %v1700_v4, %v4459_v28 }
 0x44c   : >> { %v1694_v17 = vld [vmem:[%s6276_s3 + $0x488] sm:$0xff]  ;;  %v5631_v49 = vsub.f32 %v1661_v46, %v1662_v3  ;;  %v1702_v35 = vld [vmem:[%s6276_s3 + $0x498] sm:$0xff]  ;;  %v1705_v53 = vmul.f32 %v1704_v37, %v4459_v28  ;;  %v1706_v34 = vld [vmem:[%s6276_s3 + $0x4a0] sm:$0xff]  ;;  %v1709_v21 = vmul.f32 %v1708_v26, %v4459_v28  ;;  %v1713_v57 = vmul.f32 %v1712_v9, %v4459_v28 }
 0x44d   : >> { %v1716_v4 = vld [vmem:[%s6276_s3 + $0x260] sm:$0xff]  ;;  %v5645_v3 = vadd.f32 %v1630_v38, %v1628_v41  ;;  %v1667_v46 = vsub.f32 %v1665_v56, %v1666_v22  ;;  %v5647_v44 = vsub.f32 %v1669_v18, %v1670_v2  ;;  %v5649_v11 = vsub.f32 %v1673_v19, %v1674_v16  ;;  %v1710_v37 = vld [vmem:[%s6276_s3 + $0x4a8] sm:$0xff]  ;;  %v1714_v26 = vld [vmem:[%s6276_s3 + $0x4b0] sm:$0xff] }
 0x44e   : >> { %v1720_v9 = vld [vmem:[%s6276_s3 + $0x268] sm:$0xff]  ;;  %v5660_v8 = vsub.f32 %v1677_v13, %v1678_v14  ;;  %v5662_v41 = vsub.f32 %v1681_v36, %v1682_v51  ;;  %v5664_v22 = vsub.f32 %v1685_v29, %v1686_v40  ;;  %v5666_v2 = vsub.f32 %v1689_v59, %v1690_v61  ;;  %v1724_v16 = vld [vmem:[%s6276_s3 + $0x270] sm:$0xff]  ;;  %v1728_v38 = vld [vmem:[%s6276_s3 + $0x278] sm:$0xff] }
 0x44f   : >> { %v5674_v56 = vsub.f32 %v1693_v42, %v1694_v17  ;;  %v5676_v18 = vsub.f32 %v1697_v43, %v1698_v32  ;;  %v5678_v19 = vsub.f32 %v1701_v45, %v1702_v35  ;;  %v1717_v13 = vmul.f32 %v1716_v4, %v4459_v28 }
 0x450   : >> { %v5681_v14 = vsub.f32 %v1705_v53, %v1706_v34  ;;  %v5683_v36 = vsub.f32 %v1709_v21, %v1710_v37  ;;  %v5685_v51 = vsub.f32 %v1713_v57, %v1714_v26  ;;  %v1721_v29 = vmul.f32 %v1720_v9, %v4459_v28  ;;  %v1718_v34 = vld [vmem:[%s6276_s3 + $0x4b8] sm:$0xff]  ;;  %v5720_v21 = vld [vmem:[%s6276_s3 + $0x4d0] sm:$0xff] }
 0x451   : >> { %v1725_v40 = vmul.f32 %v1724_v16, %v4459_v28  ;;  %v5690_v59 = vmul.f32 %v1728_v38, %v4459_v28  ;;  %v6533_v32 = vsub.f32 %v5459_v50, %v5474_v55  ;;  %v1733_v42 = vsub.f32 1.0, %v5518_v60  ;;  %v1722_v50 = vld [vmem:[%s6276_s3 + $0x4c0] sm:$0xff] }
 0x452   : >> { %v1736_v57 = vmul.f32 %v5518_v60, %v5195_v27  ;;  %v1737_v17 = vsub.f32 1.0, %v5532_v30  ;;  %v1741_v43 = vsub.f32 1.0, %v5534_v7  ;;  %v1745_v45 = vsub.f32 1.0, %v5569_v12 }
 0x453   : >> { %v1732_v61 = vmul.f32 %v6533_v32, %v5173_v39  ;;  %v1726_v39 = vld [vmem:[%s6276_s3 + $0x4c8] sm:$0xff]  ;;  %v1734_v55 = vmul.f32 %v1733_v42, %v5195_v27  ;;  %v1740_v35 = vmul.f32 %v5532_v30, %v5209_v33  ;;  %v1744_v60 = vmul.f32 %v5534_v7, %v5211_v5 }
 0x454   : >> { %v1749_v53 = vsub.f32 1.0, %v5571_v24  ;;  %v1738_v4 = vmul.f32 %v1737_v17, %v5209_v33  ;;  %v1742_v37 = vmul.f32 %v1741_v43, %v5211_v5  ;;  %v1746_v26 = vmul.f32 %v1745_v45, %v5229_v0 }
 0x455   : >> { %v1753_v27 = vsub.f32 1.0, %v5617_v10  ;;  %v5726_v9 = vsub.f32 %v1717_v13, %v1718_v34  ;;  %v1748_v30 = vmul.f32 %v5569_v12, %v5229_v0  ;;  %v1757_v16 = vsub.f32 1.0, %v5631_v49 }
 0x456   : >> { %v1750_v7 = vmul.f32 %v1749_v53, %v5245_v52  ;;  %v5732_v38 = vsub.f32 %v1721_v29, %v1722_v50  ;;  %v5734_v32 = vsub.f32 %v1725_v40, %v1726_v39  ;;  %v1752_v33 = vmul.f32 %v5571_v24, %v5245_v52 }
 0x457   : >> { %v1754_v5 = vmul.f32 %v1753_v27, %v5268_v1  ;;  %v1731_v13 = vsub.f32 %v5690_v59, %v5720_v21  ;;  %v1756_v42 = vmul.f32 %v5617_v10, %v5268_v1  ;;  %v1758_v0 = vmul.f32 %v1757_v16, %v5294_v25  ;;  %v1828_v16 = vld [vmem:[%s6276_s3 + $0x280] sm:$0xff]  ;;  %v1893_v59 = vld [vmem:[%s6276_s3 + $0x510] sm:$0xff] }
 0x458   : >> { %v1761_v12 = vsub.f32 1.0, %v1667_v46  ;;  %v5744_v34 = vadd.f32 %v1734_v55, %v1732_v61  ;;  %v5746_v29 = vadd.f32 %v1738_v4, %v1736_v57  ;;  %v5748_v40 = vadd.f32 %v1742_v37, %v1740_v35 }
 0x459   : >> { %v5750_v17 = vadd.f32 %v1746_v26, %v1744_v60  ;;  %v5752_v52 = vadd.f32 %v1750_v7, %v1748_v30  ;;  %v1760_v24 = vmul.f32 %v5631_v49, %v5294_v25  ;;  %v1765_v1 = vsub.f32 1.0, %v5647_v44 }
 0x45a   : >> { %v1762_v43 = vmul.f32 %v1761_v12, %v5309_v20  ;;  %v5758_v10 = vadd.f32 %v1754_v5, %v1752_v33  ;;  %v1764_v61 = vmul.f32 %v1667_v46, %v5309_v20  ;;  %v1768_v57 = vmul.f32 %v5647_v44, %v5324_v62 }
 0x45b   : >> { %v1769_v45 = vsub.f32 1.0, %v5649_v11  ;;  %v5764_v50 = vadd.f32 %v1758_v0, %v1756_v42  ;;  %v1766_v39 = vmul.f32 %v1765_v1, %v5324_v62  ;;  %v1772_v25 = vmul.f32 %v5649_v11, %v5333_v23  ;;  %v1837_v42 = vld [vmem:[%s6276_s3 + $0x288] sm:$0xff] }
 0x45c   : >> { %v1773_v49 = vsub.f32 1.0, %v5660_v8  ;;  %v1776_v35 = vmul.f32 %v5660_v8, %v5358_v58  ;;  %v1777_v20 = vsub.f32 1.0, %v5662_v41  ;;  %v1781_v44 = vsub.f32 1.0, %v5664_v22 }
 0x45d   : >> { %v1770_v55 = vmul.f32 %v1769_v45, %v5333_v23  ;;  %v5775_v46 = vadd.f32 %v1762_v43, %v1760_v24  ;;  %v1780_v62 = vmul.f32 %v5662_v41, %v5376_v31  ;;  %v1785_v11 = vsub.f32 1.0, %v5666_v2  ;;  %v1873_v43 = vld [vmem:[%s6276_s3 + $0x2a8] sm:$0xff]  ;;  %v6534_v45 = vld [vmem:[#allocation10_spill] sm:$0xff] }
 0x45e   : >> { %v1774_v60 = vmul.f32 %v1773_v49, %v5358_v58  ;;  %v1778_v53 = vmul.f32 %v1777_v20, %v5376_v31  ;;  %v1782_v23 = vmul.f32 %v1781_v44, %v5387_v6  ;;  %v1789_v4 = vsub.f32 1.0, %v5674_v56  ;;  %v1882_v49 = vld [vmem:[%s6276_s3 + $0x2b0] sm:$0xff] }
 0x45f   : >> { %v1793_v8 = vsub.f32 1.0, %v5676_v18  ;;  %v5785_v37 = vadd.f32 %v1766_v39, %v1764_v61  ;;  %v1784_v26 = vmul.f32 %v5664_v22, %v5387_v6  ;;  %v1786_v58 = vmul.f32 %v1785_v11, %v5389_v63 }
 0x460   : >> { %v1797_v27 = vsub.f32 1.0, %v5678_v19  ;;  %v1788_v41 = vmul.f32 %v5666_v2, %v5389_v63  ;;  %v1790_v31 = vmul.f32 %v1789_v4, %v5400_v48  ;;  %v1792_v30 = vmul.f32 %v5674_v56, %v5400_v48  ;;  %v6535_v4 = vld [vmem:[#allocation11_spill] sm:$0xff] }
 0x461   : >> { %v1794_v7 = vmul.f32 %v1793_v8, %v5420_v15  ;;  %v5800_v33 = vadd.f32 %v1770_v55, %v1768_v57  ;;  %v1796_v6 = vmul.f32 %v5676_v18, %v5420_v15  ;;  %v1801_v63 = vsub.f32 1.0, %v5681_v14  ;;  %v1846_v15 = vld [vmem:[%s6276_s3 + $0x290] sm:$0xff] }
 0x462   : >> { %v1798_v22 = vmul.f32 %v1797_v27, %v5422_v47  ;;  %v5806_v2 = vadd.f32 %v1774_v60, %v1772_v25  ;;  %v5808_v5 = vadd.f32 %v1778_v53, %v1776_v35  ;;  %v5810_v48 = vadd.f32 %v1782_v23, %v1780_v62  ;;  %v1830_v25 = vld [vmem:[%s6276_s3 + $0x4d8] sm:$0xff] }
 0x463   : >> { %v1800_v56 = vmul.f32 %v5678_v19, %v5422_v47  ;;  %v5820_v18 = vadd.f32 %v1786_v58, %v1784_v26  ;;  %v1802_v0 = vmul.f32 %v1801_v63, %v5444_v54  ;;  %v1805_v12 = vsub.f32 1.0, %v5683_v36  ;;  %v1855_v47 = vld [vmem:[%s6276_s3 + $0x298] sm:$0xff]  ;;  %v1864_v19 = vld [vmem:[%s6276_s3 + $0x2a0] sm:$0xff]  ;;  %v1857_v58 = vld [vmem:[%s6276_s3 + $0x4f0] sm:$0xff] }
 0x464   : >> { %v1829_v24 = vmul.f32 %v1828_v16, %v4459_v28  ;;  %v5834_v1 = vadd.f32 %v1790_v31, %v1788_v41  ;;  %v5836_v61 = vadd.f32 %v1794_v7, %v1792_v30  ;;  %v1804_v57 = vmul.f32 %v5681_v14, %v5444_v54  ;;  %v1839_v14 = vld [vmem:[%s6276_s3 + $0x4e0] sm:$0xff]  ;;  %v1891_v53 = vld [vmem:[%s6276_s3 + $0x2b8] sm:$0xff]  ;;  %v1884_v63 = vld [vmem:[%s6276_s3 + $0x508] sm:$0xff] }
 0x465   : >> { %v1808_v39 = vmul.f32 %v5683_v36, %v6534_v45  ;;  %v5848_v55 = vadd.f32 %v1798_v22, %v1796_v6  ;;  %v1806_v35 = vmul.f32 %v1805_v12, %v6534_v45  ;;  %v1838_v20 = vmul.f32 %v1837_v42, %v4459_v28  ;;  %v1848_v36 = vld [vmem:[%s6276_s3 + $0x4e8] sm:$0xff]  ;;  %v1866_v27 = vld [vmem:[%s6276_s3 + $0x4f8] sm:$0xff]  ;;  %v1875_v41 = vld [vmem:[%s6276_s3 + $0x500] sm:$0xff] }
 0x466   : >> { %v1847_v44 = vmul.f32 %v1846_v15, %v4459_v28  ;;  %v1809_v54 = vsub.f32 1.0, %v5685_v51  ;;  %v1856_v60 = vmul.f32 %v1855_v47, %v4459_v28  ;;  %v1865_v62 = vmul.f32 %v1864_v19, %v4459_v28  ;;  %v1833_v22 = vld [vmem:[%s6276_s3 + $0x658] sm:$0xff]  ;;  %v1851_v47 = vld [vmem:[%s6276_s3 + $0x668] sm:$0xff] }
 0x467   : >> { %v1874_v11 = vmul.f32 %v1873_v43, %v4459_v28  ;;  %v5866_v23 = vadd.f32 %v1802_v0, %v1800_v56  ;;  %v1812_v8 = vmul.f32 %v5685_v51, %v6535_v4  ;;  %v1831_v26 = vsub.f32 %v1829_v24, %v1830_v25  ;;  %v6536_v51 = vld [vmem:[#allocation12_spill] sm:$0xff]  ;;  %v1832_v12 = vld [vmem:[%s6276_s3 + $0x598] sm:$0xff]  ;;  %v1842_v24 = vld [vmem:[%s6276_s3 + $0x660] sm:$0xff] }
 0x468   : >> { %v1883_v31 = vmul.f32 %v1882_v49, %v4459_v28  ;;  %v1810_v30 = vmul.f32 %v1809_v54, %v6535_v4  ;;  %v1813_v7 = vsub.f32 1.0, %v5726_v9  ;;  %v1816_v16 = vmul.f32 %v5726_v9, %v6536_v51  ;;  %v1878_v54 = vld [vmem:[%s6276_s3 + $0x680] sm:$0xff] }
 0x469   : >> { %v1817_v6 = vsub.f32 1.0, %v5732_v38  ;;  %v1821_v56 = vsub.f32 1.0, %v5734_v32  ;;  %v1840_v42 = vsub.f32 %v1838_v20, %v1839_v14  ;;  %v1849_v15 = vsub.f32 %v1847_v44, %v1848_v36  ;;  %v1860_v20 = vld [vmem:[%s6276_s3 + $0x670] sm:$0xff]  ;;  %v1869_v44 = vld [vmem:[%s6276_s3 + $0x678] sm:$0xff]  ;;  %v1900_v4 = vld [vmem:[%s6276_s3 + $0x2c0] sm:$0xff] }
 0x46a   : >> { %v1892_v0 = vmul.f32 %v1891_v53, %v4459_v28  ;;  %v1825_v9 = vsub.f32 1.0, %v1731_v13  ;;  %v1858_v19 = vsub.f32 %v1856_v60, %v1857_v58  ;;  %v1867_v43 = vsub.f32 %v1865_v62, %v1866_v27  ;;  %v6537_v13 = vld [vmem:[#allocation13_spill] sm:$0xff]  ;;  %v6538_v60 = vld [vmem:[#allocation14_spill] sm:$0xff]  ;;  %v1887_v53 = vld [vmem:[%s6276_s3 + $0x688] sm:$0xff] }
 0x46b   : >> { %v1876_v45 = vsub.f32 %v1874_v11, %v1875_v41  ;;  %v1814_v21 = vmul.f32 %v1813_v7, %v6536_v51  ;;  %v1820_v25 = vmul.f32 %v5732_v38, %v6537_v13  ;;  %v1834_v49 = vmul.f32 %v1833_v22, %v1831_v26  ;;  %v1909_v26 = vld [vmem:[%s6276_s3 + $0x2c8] sm:$0xff]  ;;  %v1877_v22 = vld [vmem:[%s6276_s3 + $0x5c0] sm:$0xff] }
 0x46c   : >> { %v1885_v14 = vsub.f32 %v1883_v31, %v1884_v63  ;;  %v1818_v36 = vmul.f32 %v1817_v6, %v6537_v13  ;;  %v1822_v62 = vmul.f32 %v1821_v56, %v6538_v60  ;;  %v1824_v38 = vmul.f32 %v5734_v32, %v6538_v60  ;;  %v1841_v32 = vld [vmem:[%s6276_s3 + $0x5a0] sm:$0xff]  ;;  %v1859_v31 = vld [vmem:[%s6276_s3 + $0x5b0] sm:$0xff] }
 0x46d   : >> { %v1826_v11 = vmul.f32 %v1825_v9, %v5645_v3  ;;  %v5934_v58 = vadd.f32 %v1806_v35, %v1804_v57  ;;  %v1843_v27 = vmul.f32 %v1842_v24, %v1840_v42  ;;  %v1850_v3 = vld [vmem:[%s6276_s3 + $0x5a8] sm:$0xff]  ;;  %v1852_v41 = vmul.f32 %v1851_v47, %v1849_v15  ;;  %v1868_v57 = vld [vmem:[%s6276_s3 + $0x5b8] sm:$0xff]  ;;  %v1896_v56 = vld [vmem:[%s6276_s3 + $0x690] sm:$0xff] }
 0x46e   : >> { %v1894_v7 = vsub.f32 %v1892_v0, %v1893_v59  ;;  %v5945_v51 = vadd.f32 %v1810_v30, %v1808_v39  ;;  %v1861_v6 = vmul.f32 %v1860_v20, %v1858_v19  ;;  %v1870_v35 = vmul.f32 %v1869_v44, %v1867_v43  ;;  %v1886_v39 = vld [vmem:[%s6276_s3 + $0x5c8] sm:$0xff]  ;;  %v1902_v0 = vld [vmem:[%s6276_s3 + $0x518] sm:$0xff]  ;;  %v1918_v24 = vld [vmem:[%s6276_s3 + $0x2d0] sm:$0xff] }
 0x46f   : >> { %v1879_v63 = vmul.f32 %v1878_v54, %v1876_v45  ;;  %v1835_v42 = vadd.f32 %v1834_v49, %v1832_v12  ;;  %v1888_v30 = vmul.f32 %v1887_v53, %v1885_v14  ;;  %v1901_v15 = vmul.f32 %v1900_v4, %v4459_v28  ;;  %v1911_v45 = vld [vmem:[%s6276_s3 + $0x520] sm:$0xff]  ;;  %v1927_v59 = vld [vmem:[%s6276_s3 + $0x2d8] sm:$0xff]  ;;  %v1945_v49 = vld [vmem:[%s6276_s3 + $0x2e8] sm:$0xff] }
 0x470   : >> { %v1910_v9 = vmul.f32 %v1909_v26, %v4459_v28  ;;  %v5967_v47 = vadd.f32 %v1814_v21, %v1812_v8  ;;  %v5969_v12 = vadd.f32 %v1818_v36, %v1816_v16  ;;  %v5971_v19 = vadd.f32 %v1822_v62, %v1820_v25  ;;  %v1936_v13 = vld [vmem:[%s6276_s3 + $0x2e0] sm:$0xff]  ;;  %v1954_v20 = vld [vmem:[%s6276_s3 + $0x2f0] sm:$0xff]  ;;  %v1963_v44 = vld [vmem:[%s6276_s3 + $0x2f8] sm:$0xff] }
 0x471   : >> { %v5973_v43 = vadd.f32 %v1826_v11, %v1824_v38  ;;  %v5985_v8 = vmul.f32 %v1835_v42, %v5744_v34  ;;  %v1844_v16 = vadd.f32 %v1843_v27, %v1841_v32  ;;  %v1853_v21 = vadd.f32 %v1852_v41, %v1850_v3  ;;  %v1895_v34 = vld [vmem:[%s6276_s3 + $0x5d0] sm:$0xff]  ;;  %v1905_v11 = vld [vmem:[%s6276_s3 + $0x698] sm:$0xff]  ;;  %v1914_v4 = vld [vmem:[%s6276_s3 + $0x6a0] sm:$0xff] }
 0x472   : >> { %v1897_v25 = vmul.f32 %v1896_v56, %v1894_v7  ;;  %v1862_v54 = vadd.f32 %v1861_v6, %v1859_v31  ;;  %v1871_v14 = vadd.f32 %v1870_v35, %v1868_v57  ;;  %v1880_v36 = vadd.f32 %v1879_v63, %v1877_v22  ;;  %v1920_v26 = vld [vmem:[%s6276_s3 + $0x528] sm:$0xff]  ;;  %v1929_v27 = vld [vmem:[%s6276_s3 + $0x530] sm:$0xff]  ;;  %v1938_v41 = vld [vmem:[%s6276_s3 + $0x538] sm:$0xff] }
 0x473   : >> { %6539 = vst [vmem:[#allocation10_spill] sm:$0xff] %v5973_v43  ;;  %v1919_v60 = vmul.f32 %v1918_v24, %v4459_v28  ;;  %v1889_v62 = vadd.f32 %v1888_v30, %v1886_v39  ;;  %v1903_v38 = vsub.f32 %v1901_v15, %v1902_v0  ;;  %v1912_v53 = vsub.f32 %v1910_v9, %v1911_v45  ;;  %v1947_v7 = vld [vmem:[%s6276_s3 + $0x540] sm:$0xff]  ;;  %v1923_v42 = vld [vmem:[%s6276_s3 + $0x6a8] sm:$0xff]  ;;  %v1904_v0 = vld [vmem:[%s6276_s3 + $0x5d8] sm:$0xff] }
 0x474   : >> { %v1928_v32 = vmul.f32 %v1927_v59, %v4459_v28  ;;  %v6014_v3 = vmul.f32 %v1936_v13, %v4459_v28  ;;  %v6020_v31 = vmul.f32 %v1945_v49, %v4459_v28  ;;  %v1955_v6 = vmul.f32 %v1954_v20, %v4459_v28  ;;  %v1956_v39 = vld [vmem:[%s6276_s3 + $0x548] sm:$0xff]  ;;  %v1913_v9 = vld [vmem:[%s6276_s3 + $0x5e0] sm:$0xff]  ;;  %v1999_v45 = vld [vmem:[%s6276_s3 + $0x318] sm:$0xff] }
 0x475   : >> { %v1964_v57 = vmul.f32 %v1963_v44, %v4459_v28  ;;  %v6028_v35 = vmul.f32 %v1844_v16, %v5746_v29  ;;  %v6031_v22 = vmul.f32 %v1853_v21, %v5748_v40  ;;  %v6034_v63 = vmul.f32 %v1862_v54, %v5750_v17  ;;  %v1965_v29 = vld [vmem:[%s6276_s3 + $0x550] sm:$0xff]  ;;  %v1972_v40 = vld [vmem:[%s6276_s3 + $0x300] sm:$0xff]  ;;  %v2017_v49 = vld [vmem:[%s6276_s3 + $0x328] sm:$0xff] }
 0x476   : >> { %v1898_v56 = vadd.f32 %v1897_v25, %v1895_v34  ;;  %v6049_v17 = vmul.f32 %v1871_v14, %v5752_v52  ;;  %v6052_v30 = vmul.f32 %v1880_v36, %v5758_v10  ;;  %v6055_v15 = vmul.f32 %v1889_v62, %v5764_v50  ;;  %v1932_v52 = vld [vmem:[%s6276_s3 + $0x6b0] sm:$0xff]  ;;  %v1981_v10 = vld [vmem:[%s6276_s3 + $0x308] sm:$0xff]  ;;  %v2008_v25 = vld [vmem:[%s6276_s3 + $0x320] sm:$0xff] }
 0x477   : >> { %v1921_v24 = vsub.f32 %v1919_v60, %v1920_v26  ;;  %v1990_v50 = vld [vmem:[%s6276_s3 + $0x310] sm:$0xff]  ;;  %v1906_v13 = vmul.f32 %v1905_v11, %v1903_v38  ;;  %v1915_v16 = vmul.f32 %v1914_v4, %v1912_v53  ;;  %v1930_v21 = vsub.f32 %v1928_v32, %v1929_v27  ;;  %v1950_v14 = vld [vmem:[%s6276_s3 + $0x6c0] sm:$0xff]  ;;  %v2035_v60 = vld [vmem:[%s6276_s3 + $0x338] sm:$0xff] }
 0x478   : >> { %v6076_v59 = vmul.f32 %v1898_v56, %v5775_v46  ;;  %v2026_v20 = vld [vmem:[%s6276_s3 + $0x330] sm:$0xff]  ;;  %v1939_v44 = vsub.f32 %v6014_v3, %v1938_v41  ;;  %v1941_v46 = vld [vmem:[%s6276_s3 + $0x6b8] sm:$0xff]  ;;  %v1948_v54 = vsub.f32 %v6020_v31, %v1947_v7  ;;  %v1957_v36 = vsub.f32 %v1955_v6, %v1956_v39  ;;  %v1959_v62 = vld [vmem:[%s6276_s3 + $0x6c8] sm:$0xff] }
 0x479   : >> { %v1966_v34 = vsub.f32 %v1964_v57, %v1965_v29  ;;  %v1968_v38 = vld [vmem:[%s6276_s3 + $0x6d0] sm:$0xff]  ;;  %v1973_v11 = vmul.f32 %v1972_v40, %v4459_v28  ;;  %v1974_v53 = vld [vmem:[%s6276_s3 + $0x558] sm:$0xff]  ;;  %v1982_v4 = vmul.f32 %v1981_v10, %v4459_v28  ;;  %v1991_v26 = vmul.f32 %v1990_v50, %v4459_v28  ;;  %v1922_v27 = vld [vmem:[%s6276_s3 + $0x5e8] sm:$0xff] }
 0x47a   : >> { %v2000_v32 = vmul.f32 %v1999_v45, %v4459_v28  ;;  %v1924_v3 = vmul.f32 %v1923_v42, %v1921_v24  ;;  %v1931_v41 = vld [vmem:[%s6276_s3 + $0x5f0] sm:$0xff]  ;;  %v1983_v31 = vld [vmem:[%s6276_s3 + $0x560] sm:$0xff]  ;;  %v1992_v7 = vld [vmem:[%s6276_s3 + $0x568] sm:$0xff]  ;;  %v2009_v57 = vmul.f32 %v2008_v25, %v4459_v28  ;;  %v2018_v56 = vmul.f32 %v2017_v49, %v4459_v28 }
 0x47b   : >> { %v2001_v6 = vld [vmem:[%s6276_s3 + $0x570] sm:$0xff]  ;;  %v2027_v42 = vmul.f32 %v2026_v20, %v4459_v28  ;;  %v1907_v39 = vadd.f32 %v1906_v13, %v1904_v0  ;;  %v1916_v29 = vadd.f32 %v1915_v16, %v1913_v9  ;;  %v1933_v40 = vmul.f32 %v1932_v52, %v1930_v21  ;;  %v2010_v24 = vld [vmem:[%s6276_s3 + $0x578] sm:$0xff]  ;;  %v2019_v10 = vld [vmem:[%s6276_s3 + $0x580] sm:$0xff] }
 0x47c   : >> { %v2028_v50 = vld [vmem:[%s6276_s3 + $0x588] sm:$0xff]  ;;  %v2036_v45 = vmul.f32 %v2035_v60, %v4459_v28  ;;  %v1940_v0 = vld [vmem:[%s6276_s3 + $0x5f8] sm:$0xff]  ;;  %v1942_v9 = vmul.f32 %v1941_v46, %v1939_v44  ;;  %v1949_v52 = vld [vmem:[%s6276_s3 + $0x600] sm:$0xff]  ;;  %v1951_v13 = vmul.f32 %v1950_v14, %v1948_v54  ;;  %v1960_v16 = vmul.f32 %v1959_v62, %v1957_v36 }
 0x47d   : >> { %v1969_v21 = vmul.f32 %v1968_v38, %v1966_v34  ;;  %v2037_v25 = vld [vmem:[%s6276_s3 + $0x590] sm:$0xff]  ;;  %v1958_v49 = vld [vmem:[%s6276_s3 + $0x608] sm:$0xff]  ;;  %v1975_v44 = vsub.f32 %v1973_v11, %v1974_v53  ;;  %v1977_v46 = vld [vmem:[%s6276_s3 + $0x6d8] sm:$0xff]  ;;  %v1984_v54 = vsub.f32 %v1982_v4, %v1983_v31  ;;  %v1993_v14 = vsub.f32 %v1991_v26, %v1992_v7 }
 0x47e   : >> { %v1967_v20 = vld [vmem:[%s6276_s3 + $0x610] sm:$0xff]  ;;  %v2002_v36 = vsub.f32 %v2000_v32, %v2001_v6  ;;  %v1986_v34 = vld [vmem:[%s6276_s3 + $0x6e0] sm:$0xff]  ;;  %v1995_v60 = vld [vmem:[%s6276_s3 + $0x6e8] sm:$0xff]  ;;  %v2011_v38 = vsub.f32 %v2009_v57, %v2010_v24  ;;  %v2020_v11 = vsub.f32 %v2018_v56, %v2019_v10  ;;  %v2029_v53 = vsub.f32 %v2027_v42, %v2028_v50 }
 0x47f   : >> { %v2004_v62 = vld [vmem:[%s6276_s3 + $0x6f0] sm:$0xff]  ;;  %v2418_v43 = vmul.f32 -1.442695, %v4459_v28  ;;  %v1908_v4 = vmul.f32 %v1907_v39, %v5785_v37  ;;  %v1925_v26 = vadd.f32 %v1924_v3, %v1922_v27  ;;  %v1934_v32 = vadd.f32 %v1933_v40, %v1931_v41  ;;  %v2013_v31 = vld [vmem:[%s6276_s3 + $0x6f8] sm:$0xff]  ;;  %v2022_v7 = vld [vmem:[%s6276_s3 + $0x700] sm:$0xff] }
 0x480   : >> { %v2031_v6 = vld [vmem:[%s6276_s3 + $0x708] sm:$0xff]  ;;  %v2038_v57 = vsub.f32 %v2036_v45, %v2037_v25  ;;  %v1943_v56 = vadd.f32 %v1942_v9, %v1940_v0  ;;  %v1952_v42 = vadd.f32 %v1951_v13, %v1949_v52  ;;  %v1961_v24 = vadd.f32 %v1960_v16, %v1958_v49  ;;  %v2040_v37 = vld [vmem:[%s6276_s3 + $0x710] sm:$0xff]  ;;  %v1976_v27 = vld [vmem:[%s6276_s3 + $0x618] sm:$0xff] }
 0x481   : >> { %2537 = vpow2.f32 %v2418_v43  ;;  %v1978_v3 = vmul.f32 %v1977_v46, %v1975_v44  ;;  %v1987_v41 = vmul.f32 %v1986_v34, %v1984_v54  ;;  %v1996_v39 = vmul.f32 %v1995_v60, %v1993_v14  ;;  %v1985_v50 = vld [vmem:[%s6276_s3 + $0x620] sm:$0xff]  ;;  %v1994_v45 = vld [vmem:[%s6276_s3 + $0x628] sm:$0xff]  ;;  %v2003_v43 = vld [vmem:[%s6276_s3 + $0x630] sm:$0xff] }
 0x482   : >> { %v2005_v40 = vmul.f32 %v2004_v62, %v2002_v36  ;;  %v1970_v10 = vadd.f32 %v1969_v21, %v1967_v20  ;;  %v2014_v0 = vmul.f32 %v2013_v31, %v2011_v38  ;;  %v2023_v9 = vmul.f32 %v2022_v7, %v2020_v11  ;;  %v2012_v25 = vld [vmem:[%s6276_s3 + $0x638] sm:$0xff]  ;;  %v2021_v49 = vld [vmem:[%s6276_s3 + $0x640] sm:$0xff]  ;;  %v2030_v20 = vld [vmem:[%s6276_s3 + $0x648] sm:$0xff] }
 0x483   : >> { %v2032_v52 = vmul.f32 %v2031_v6, %v2029_v53  ;;  %v1917_v13 = vmul.f32 %v1916_v29, %v5800_v33  ;;  %v1926_v16 = vmul.f32 %v1925_v26, %v5806_v2  ;;  %v1935_v21 = vmul.f32 %v1934_v32, %v5808_v5  ;;  %v2039_v29 = vld [vmem:[%s6276_s3 + $0x650] sm:$0xff] }
 0x484   : >> { %v2041_v44 = vmul.f32 %v2040_v37, %v2038_v57  ;;  %v1944_v46 = vmul.f32 %v1943_v56, %v5810_v48  ;;  %v1953_v33 = vmul.f32 %v1952_v42, %v5820_v18  ;;  %v1962_v2 = vmul.f32 %v1961_v24, %v5834_v1 }
 0x485   : >> { %v1971_v5 = vmul.f32 %v1970_v10, %v5836_v61  ;;  %v1979_v54 = vadd.f32 %v1978_v3, %v1976_v27  ;;  %v1988_v14 = vadd.f32 %v1987_v41, %v1985_v50  ;;  %v1997_v36 = vadd.f32 %v1996_v39, %v1994_v45  ;;  %v2541_v50 = vld [vmem:[%s6277_s4] sm:$0xff] (%p1245_p5)   ;;  %v2542_v45 = vld [vmem:[%s6277_s4 + $0x8] sm:$0xff] (%p1245_p5)  }
 0x486   : >> { %v2006_v34 = vadd.f32 %v2005_v40, %v2003_v43  ;;  %v2015_v60 = vadd.f32 %v2014_v0, %v2012_v25  ;;  %v2024_v62 = vadd.f32 %v2023_v9, %v2021_v49  ;;  %v2033_v38 = vadd.f32 %v2032_v52, %v2030_v20  ;;  %2475 = vmatprep.subr.bf16.mxu1 (%p1245_p5), %v2541_v50  ;;  %v2544_v52 = vld [vmem:[%s6277_s4 + $0x18] sm:$0xff] (%p1245_p5)  }
 0x487   : >> { %v2044_v48 = vadd.f32 %v6028_v35, %v5985_v8  ;;  %v2042_v11 = vadd.f32 %v2041_v44, %v2039_v29  ;;  %v2045_v18 = vadd.f32 %v6034_v63, %v6031_v22  ;;  %v2046_v1 = vadd.f32 %v6052_v30, %v6049_v17  ;;  %v6540_v30 = vld [vmem:[#allocation10_spill] sm:$0xff]  ;;  %2476 = vmatpush3.bf16.msra.mxu1 (%p1245_p5), %v2541_v50 }
 0x488   : >> { %v2047_v61 = vadd.f32 %v6076_v59, %v6055_v15  ;;  %v2048_v53 = vadd.f32 %v1917_v13, %v1908_v4  ;;  %v2049_v26 = vadd.f32 %v1935_v21, %v1926_v16  ;;  %v2050_v32 = vadd.f32 %v1953_v33, %v1944_v46  ;;  %2477 = vmatprep.subr.bf16.mxu1 (%p1245_p5), %v2542_v45 }
 0x489   : >> { %v2051_v31 = vadd.f32 %v1971_v5, %v1962_v2  ;;  %v1980_v7 = vmul.f32 %v1979_v54, %v5848_v55  ;;  %v1989_v6 = vmul.f32 %v1988_v14, %v5866_v23  ;;  %v1998_v8 = vmul.f32 %v1997_v36, %v5934_v58 }
 0x48a   : >> { %v2007_v35 = vmul.f32 %v2006_v34, %v5945_v51  ;;  %v2016_v22 = vmul.f32 %v2015_v60, %v5967_v47  ;;  %v2025_v63 = vmul.f32 %v2024_v62, %v5969_v12  ;;  %v2034_v17 = vmul.f32 %v2033_v38, %v5971_v19 }
 0x48b   : >> { %v2538_v57 = vpop.eup %2537  ;;  %v2043_v15 = vmul.f32 %v2042_v11, %v6540_v30  ;;  %v2056_v4 = vadd.f32 %v2045_v18, %v2044_v48  ;;  %v2057_v56 = vadd.f32 %v2047_v61, %v2046_v1  ;;  %v2058_v42 = vadd.f32 %v2049_v26, %v2048_v53  ;;  %2478 = vmatpush3.bf16.msra.mxu1 (%p1245_p5), %v2542_v45 }
 0x48c   : >> { %v2070_v59 = vadd.f32 1.0, %v2538_v57  ;;  %v2059_v55 = vadd.f32 %v2051_v31, %v2050_v32  ;;  %v2052_v23 = vadd.f32 %v1989_v6, %v1980_v7  ;;  %v2053_v58 = vadd.f32 %v2007_v35, %v1998_v8 }
 0x48d   : >> { %v2054_v24 = vadd.f32 %v2025_v63, %v2016_v22  ;;  %v2055_v51 = vadd.f32 %v2043_v15, %v2034_v17  ;;  %v2062_v37 = vadd.f32 %v2057_v56, %v2056_v4  ;;  %vm6541_vm13 = vcmask 523264  }
 0x48e   : >> { %2539 = vrcp.f32 %v2070_v59  ;;  %v2063_v27 = vadd.f32 %v2059_v55, %v2058_v42  ;;  %v2060_v47 = vadd.f32 %v2053_v58, %v2052_v23  ;;  %vm6542_vm1 = vcmask (%p1245_p5), 523264  }
 0x48f   : >> { %v2061_v3 = vadd.f32 %v2055_v51, %v2054_v24  ;;  %vm6543_vm5 = vmmov (%p1245_p5), %vm6542_vm1 }
 0x490   : >> { %v2065_v12 = vadd.f32 %v2063_v27, %v2062_v37  ;;  %vm6544_vm11 = vmmov (%p1245_p5), %vm6542_vm1 }
 0x491   : >> { %v2064_v41 = vadd.f32 %v2061_v3, %v2060_v47  ;;  %vm6545_vm6 = vmmov (%p1245_p5), %vm6542_vm1 }
 0x492   : > { %vm6546_vm15 = vmmov (%p1245_p5), %vm6542_vm1 }
 0x493   : >> { %v2066_v39 = vadd.f32 %v2065_v12, %v2064_v41  ;;  %vm6547_vm3 = vmmov (%p1245_p5), %vm6542_vm1 }
 0x494   : > { %vm6548_vm10 = vmmov (%p1245_p5), %vm6542_vm1 }
 0x495   : > { %vm6549_vm14 = vmmov (%p1245_p5), %vm6542_vm1 }
 0x497   : > { %1247 = sbr.rel (!%p1245_p5) target bundleno = 722 (0x2d2), region = 99 }
 0x498   : >> { %v2540_v19 = vpop.eup %2539 }
 0x499   : >> { %v2073_v40 = vmul.f32 %v2540_v19, %v4459_v28  ;;  %v2543_v28 = vld [vmem:[%s6277_s4 + $0x10] sm:$0xff] (%p1245_p5)  }
 0x49a   : > { %2479 = vmatprep.subr.bf16.mxu1 (%p1245_p5), %v2543_v28 }
 0x49b   : >> { %v2074_v10 = vadd.f32 %v2073_v40, %v2066_v39  ;;  %2480 = vmatpush3.bf16.msra.mxu1 (%p1245_p5), %v2543_v28 }
 0x49c   : > { %2481 = vmatprep.subr.bf16.mxu1 (%p1245_p5), %v2544_v52 }
 0x49d   : >> { %2076 = vst.msk [vmem:[%s2075_s19] sm:$0xff] %vm6541_vm13, %v2074_v10 }
 0x49f   : > { %2482 = vmatpush3.bf16.msra.mxu1 %v2544_v52 }
 0x4a4   : > { %v2077_v43 = vld [vmem:[#allocation3] sm:$0xff]  ;;  %v2078_v0 = vld [vmem:[#allocation3 + $0x8] sm:$0xff]  ;;  %v2079_v13 = vld [vmem:[#allocation3 + $0x10] sm:$0xff] }
 0x4a5   : > { %v2093_v9 = vpack.c.bf16 %v2078_v0, %v2077_v43  ;;  %v2080_v16 = vld [vmem:[#allocation3 + $0x18] sm:$0xff]  ;;  %v2081_v21 = vld [vmem:[#allocation3 + $0x20] sm:$0xff]  ;;  %v2082_v25 = vld [vmem:[#allocation3 + $0x28] sm:$0xff] }
 0x4a6   : > { %v2094_v49 = vpack.c.bf16 %v2080_v16, %v2079_v13  ;;  %v2095_v20 = vpack.c.bf16 %v2082_v25, %v2081_v21  ;;  %v2083_v44 = vld [vmem:[#allocation3 + $0x30] sm:$0xff]  ;;  %v2084_v46 = vld [vmem:[#allocation3 + $0x38] sm:$0xff]  ;;  %v2085_v33 = vld [vmem:[#allocation3 + $0x40] sm:$0xff] }
 0x4a7   : > { %2483 = vmatprep.mubr.msk.bf16.mxu1 %vm6542_vm1, %v2093_v9  ;;  %v2086_v2 = vld [vmem:[#allocation3 + $0x48] sm:$0xff]  ;;  %v2096_v5 = vpack.c.bf16 %v2084_v46, %v2083_v44  ;;  %v2087_v54 = vld [vmem:[#allocation3 + $0x50] sm:$0xff]  ;;  %v2088_v14 = vld [vmem:[#allocation3 + $0x58] sm:$0xff] }
 0x4a8   : > { %2484 = vmatmul.mubr.msk.bf16.vlgmr.msra.gmra.mrb[0].mxu1 %vm6543_vm5, %v2094_v49  ;;  %v2097_v29 = vpack.c.bf16 %v2086_v2, %v2085_v33  ;;  %v2089_v36 = vld [vmem:[#allocation3 + $0x60] sm:$0xff]  ;;  %v2090_v34 = vld [vmem:[#allocation3 + $0x68] sm:$0xff]  ;;  %v2098_v60 = vpack.c.bf16 %v2088_v14, %v2087_v54  ;;  %v2091_v38 = vld [vmem:[#allocation3 + $0x70] sm:$0xff] }
 0x4a9   : > { %2487 = vmatprep.mubr.msk.bf16.mxu1 %vm6544_vm11, %v2095_v20  ;;  %v2099_v62 = vpack.c.bf16 %v2090_v34, %v2089_v36  ;;  %v2092_v48 = vld [vmem:[#allocation3 + $0x78] sm:$0xff] }
 0x4aa   : > { %v2100_v11 = vpack.c.bf16 %v2092_v48, %v2091_v38 }
 0x4b0   : > { %2488 = vmatmul.mubr.msk.bf16.gmra.mrb[4].mxu1 %vm6545_vm6, %v2096_v5 }
 0x4b1   : > { %2491 = vmatprep.mubr.msk.bf16.mxu1 %vm6546_vm15, %v2097_v29 }
 0x4b8   : > { %2492 = vmatmul.mubr.msk.bf16.gmra.mrb[8].mxu1 %vm6547_vm3, %v2098_v60 }
 0x4b9   : > { %2495 = vmatprep.mubr.msk.bf16.mxu1 %vm6548_vm10, %v2099_v62 }
 0x4c0   : > { %2496 = vmatmul.mubr.msk.bf16.gmra.mrb[12].mxu1 %vm6549_vm14, %v2100_v11 }
 0x57b   : > { %v2485_v18 = vpop.f32.mrb[0].mxu1 }
 0x57c   : > { %2256 = vst [vmem:[%s2619_s27 + $0x10] sm:$0xff] %v2485_v18  ;;  %v2191_v1 = vpop.f32.mrb[1].mxu1 }
 0x57d   : > { %2254 = vst [vmem:[%s2619_s27] sm:$0xff] %v2191_v1  ;;  %v2486_v61 = vpop.f32.mrb[2].mxu1 }
 0x57e   : > { %2257 = vst [vmem:[%s2619_s27 + $0x18] sm:$0xff] %v2486_v61  ;;  %v2194_v53 = vpop.f32.mrb[3].mxu1 }
 0x57f   : > { %2255 = vst [vmem:[%s2619_s27 + $0x8] sm:$0xff] %v2194_v53 }
 0x583   : > { %v2489_v26 = vpop.f32.mrb[4].mxu1 }
 0x584   : > { %2260 = vst [vmem:[%s2619_s27 + $0x30] sm:$0xff] %v2489_v26  ;;  %v2207_v32 = vpop.f32.mrb[5].mxu1 }
 0x585   : > { %2258 = vst [vmem:[%s2619_s27 + $0x20] sm:$0xff] %v2207_v32  ;;  %v2490_v31 = vpop.f32.mrb[6].mxu1 }
 0x586   : > { %2261 = vst [vmem:[%s2619_s27 + $0x38] sm:$0xff] %v2490_v31  ;;  %v2210_v7 = vpop.f32.mrb[7].mxu1 }
 0x587   : > { %2259 = vst [vmem:[%s2619_s27 + $0x28] sm:$0xff] %v2210_v7 }
 0x58b   : > { %v2493_v6 = vpop.f32.mrb[8].mxu1 }
 0x58c   : > { %2264 = vst [vmem:[%s2619_s27 + $0x50] sm:$0xff] %v2493_v6  ;;  %v2223_v8 = vpop.f32.mrb[9].mxu1 }
 0x58d   : > { %2262 = vst [vmem:[%s2619_s27 + $0x40] sm:$0xff] %v2223_v8  ;;  %v2494_v35 = vpop.f32.mrb[10].mxu1 }
 0x58e   : > { %2265 = vst [vmem:[%s2619_s27 + $0x58] sm:$0xff] %v2494_v35  ;;  %v2226_v57 = vpop.f32.mrb[11].mxu1 }
 0x58f   : > { %2263 = vst [vmem:[%s2619_s27 + $0x48] sm:$0xff] %v2226_v57 }
 0x593   : > { %v2497_v22 = vpop.f32.mrb[12].mxu1 }
 0x594   : > { %2268 = vst [vmem:[%s2619_s27 + $0x70] sm:$0xff] %v2497_v22  ;;  %v2239_v63 = vpop.f32.mrb[13].mxu1 }
 0x595   : > { %2266 = vst [vmem:[%s2619_s27 + $0x60] sm:$0xff] %v2239_v63  ;;  %v2498_v17 = vpop.f32.mrb[14].mxu1 }
 0x596   : > { %2269 = vst [vmem:[%s2619_s27 + $0x78] sm:$0xff] %v2498_v17  ;;  %v2242_v30 = vpop.f32.mrb[15].mxu1 }
 0x597   : > { %2267 = vst [vmem:[%s2619_s27 + $0x68] sm:$0xff] %v2242_v30 }
 0x598 PF: > { %s15_s18 = sadd.s32 1, %s2559_s18  }
 0x599   : > { %p12_p6 = scmp.ge.s32.totalorder %s15_s18, 4  }
 0x59b   :  { %14 = sbr.rel (!%p12_p6) target bundleno = 1 (0x1), region = 110 }

</bundles_post_ra>
